<compile_context>
chip_gen: v7x
topology: tpu7x:2x2x1
jax: 0.10.0
libtpu: 0.0.40
codegen_flags: <defaults>
</compile_context>

<pallas_src>
import jax
import jax.numpy as jnp
from jax import lax
from jax.experimental import pallas as pl
from jax.experimental.pallas import tpu as pltpu

EPS = 1e-5
CP = 128      # channel padding -> full 128-lane vectors everywhere


# --------------------------------------------------------------------------
# Kernel
# --------------------------------------------------------------------------
def _residual_block_kernel(x_ref, w1_ref, w2_ref, g1_ref, be1_ref, g2_ref,
                           be2_ref, o_ref, pad_ref):
    """Fused ResidualBlock forward.

    x_ref   : (N, H, W, CP)      bf16  channel-padded input (lanes >= C are 0)
    w1_ref  : (9, CP, CP)        bf16  per-tap conv1 weights (zero padded)
    w2_ref  : (9, CP, CP)        bf16  per-tap conv2 weights (zero padded)
    g*_ref  : (1, CP)            f32   BN gamma (zero padded)
    be*_ref : (1, CP)            f32   BN beta  (zero padded)
    o_ref   : (N, H, W, C)       f32   output
    pad_ref : (N, H+2, W+2, CP)  f32   halo-padded activation scratch, reused
                                       for both convs; halo frame and padded
                                       channel lanes stay exactly zero.
    """
    N, H, W, C = o_ref.shape
    M = N * H * W

    def conv3x3(w_ref):
        # 3x3 conv as 9 full-width MXU matmuls (K = 128), f32 accumulation.
        acc = jnp.zeros((M, CP), jnp.float32)
        for kh in range(3):
            for kw in range(3):
                t = kh * 3 + kw
                win = pad_ref[:, kh:kh + H, kw:kw + W, :]        # (N,H,W,CP) f32
                lhs = win.reshape(M, CP).astype(jnp.bfloat16)    # bf16 MXU operand
                acc = acc + jnp.dot(lhs, w_ref[t],
                                    preferred_element_type=jnp.float32)
        return acc

    def batchnorm(y, gamma, beta):
        # Training-mode BN over the whole batch, biased variance, f32 math.
        mean = jnp.mean(y, axis=0, keepdims=True)
        var = jnp.mean((y - mean) * (y - mean), axis=0, keepdims=True)
        scale = gamma * lax.rsqrt(var + EPS)
        return y * scale + (beta - mean * scale)

    # Zero the padded scratch once: halo frame and padded channel lanes stay
    # zero for both convolutions.
    pad_ref[...] = jnp.zeros_like(pad_ref)

    # ---- conv1 -> BN1 -> ReLU ----
    pad_ref[:, 1:H + 1, 1:W + 1, :] = x_ref[...].astype(jnp.float32)
    y1 = conv3x3(w1_ref)
    h1 = jnp.maximum(batchnorm(y1, g1_ref[...], be1_ref[...]), 0.0)

    # ---- conv2 -> BN2 (reuse the padded scratch; halo still zero; padded
    #      channel lanes of h1 are exactly zero by construction) ----
    pad_ref[:, 1:H + 1, 1:W + 1, :] = h1.reshape(N, H, W, CP)
    y2 = conv3x3(w2_ref)
    h2 = batchnorm(y2, g2_ref[...], be2_ref[...])

    # ---- identity shortcut + final ReLU ----
    xsc = x_ref[...].reshape(M, CP).astype(jnp.float32)
    res = jnp.maximum(h2 + xsc, 0.0)
    o_ref[...] = res[:, 0:C].reshape(N, H, W, C)


# --------------------------------------------------------------------------
# Wrapper
# --------------------------------------------------------------------------
def _prep_conv_weights(w_oihw):
    """OIHW -> per-tap (kh*3+kw, Cin, Cout), zero-padded to (9, CP, CP), bf16."""
    co, ci = w_oihw.shape[0], w_oihw.shape[1]
    w = jnp.transpose(w_oihw, (2, 3, 1, 0)).reshape(9, ci, co)
    w = jnp.pad(w, ((0, 0), (0, CP - ci), (0, CP - co)))
    return w.astype(jnp.bfloat16)


def _prep_bn_vec(v):
    """(C,) -> (1, CP) f32, zero padded (so padded lanes stay exactly zero)."""
    return jnp.pad(v.astype(jnp.float32), (0, CP - v.shape[0])).reshape(1, CP)


def residual_block(x_nchw, params):
    """PyTorch-style NCHW in / NCHW out (training-mode BatchNorm, batch stats)."""
    N, C, H, W = x_nchw.shape
    Cout = params["w1"].shape[0]
    assert C == Cout, "empty shortcut requires inchannel == outchannel, stride=1"

    # NCHW -> NHWC, bf16, channels zero-padded to 128 lanes (lane-dense).
    # TODO(synk): fold these tiny XLA-side layout ops into the kernel at
    # production sizes (in-kernel XLU transpose / lane-dense end-to-end layout).
    x_nhwc = jnp.transpose(x_nchw, (0, 2, 3, 1)).astype(jnp.bfloat16)
    x_p = jnp.pad(x_nhwc, ((0, 0), (0, 0), (0, 0), (0, CP - C)))

    w1 = _prep_conv_weights(params["w1"])
    w2 = _prep_conv_weights(params["w2"])
    # NOTE: conv biases b1/b2 are intentionally dropped - a per-channel constant
    # added before training-mode BN is exactly cancelled by the mean subtraction.
    g1, be1 = _prep_bn_vec(params["g1"]), _prep_bn_vec(params["beta1"])
    g2, be2 = _prep_bn_vec(params["g2"]), _prep_bn_vec(params["beta2"])

    out_nhwc = pl.pallas_call(
        _residual_block_kernel,
        out_shape=jax.ShapeDtypeStruct((N, H, W, C), jnp.float32),
        scratch_shapes=[pltpu.VMEM((N, H + 2, W + 2, CP), jnp.float32)],
    )(x_p, w1, w2, g1, be1, g2, be2)

    return jnp.transpose(out_nhwc, (0, 3, 1, 2))   # back to NCHW


# --------------------------------------------------------------------------
# Plain-JAX reference (same bf16 quantization points as the kernel path)
# --------------------------------------------------------------------------
def ref_residual_block(x_nchw, params):
    x = jnp.transpose(x_nchw, (0, 2, 3, 1)).astype(jnp.float32)
    xq = x.astype(jnp.bfloat16).astype(jnp.float32)          # bf16 input activations
    dn = ("NHWC", "HWIO", "NHWC")

    def conv(inp, w_oihw, b):
        w = jnp.transpose(w_oihw, (2, 3, 1, 0)).astype(jnp.bfloat16).astype(jnp.float32)
        return lax.conv_general_dilated(inp, w, (1, 1), ((1, 1), (1, 1)),
                                        dimension_numbers=dn,
                                        precision=lax.Precision.HIGHEST) + b

    def bn(y, g, b):
        mean = jnp.mean(y, axis=(0, 1, 2))
        var = jnp.var(y, axis=(0, 1, 2))                     # biased variance
        return (y - mean) * lax.rsqrt(var + EPS) * g + b

    h = jax.nn.relu(bn(conv(xq, params["w1"], params["b1"]),
                       params["g1"], params["beta1"]))
    h = h.astype(jnp.bfloat16).astype(jnp.float32)           # conv2 bf16 operand
    h = bn(conv(h, params["w2"], params["b2"]), params["g2"], params["beta2"])
    out = jax.nn.relu(h + xq)
    return jnp.transpose(out, (0, 3, 1, 2))


if __name__ == "__main__":
    N, C, H, W = 2, 4, 16, 16          # inchannel = outchannel = 4, stride = 1
    key = jax.random.PRNGKey(0)
    ks = jax.random.split(key, 9)

    params = {
        "w1": 0.1 * jax.random.normal(ks[0], (C, C, 3, 3), jnp.float32),
        "b1": 0.1 * jax.random.normal(ks[1], (C,), jnp.float32),
        "g1": 1.0 + 0.1 * jax.random.normal(ks[2], (C,), jnp.float32),
        "beta1": 0.1 * jax.random.normal(ks[3], (C,), jnp.float32),
        "w2": 0.1 * jax.random.normal(ks[4], (C, C, 3, 3), jnp.float32),
        "b2": 0.1 * jax.random.normal(ks[5], (C,), jnp.float32),
        "g2": 1.0 + 0.1 * jax.random.normal(ks[6], (C,), jnp.float32),
        "beta2": 0.1 * jax.random.normal(ks[7], (C,), jnp.float32),
    }
    x = jax.random.normal(ks[8], (N, C, H, W), jnp.float32)

    out = jax.block_until_ready(jax.jit(residual_block)(x, params))
    ref = jax.block_until_ready(ref_residual_block(x, params))

    assert out.shape == (N, C, H, W)
    max_err = jnp.max(jnp.abs(out - ref))
    assert jnp.allclose(out, ref, rtol=2e-3, atol=2e-3), f"max abs err {max_err}"
    print("KERNEL_OK")
</pallas_src>

<mosaic_0001>
module attributes {stable_mosaic.version = 11 : i64} {
  func.func @_residual_block_kernel(%arg0: memref<2x16x16x128xbf16, #tpu.memory_space<vmem>>, %arg1: memref<9x128x128xbf16, #tpu.memory_space<vmem>>, %arg2: memref<9x128x128xbf16, #tpu.memory_space<vmem>>, %arg3: memref<1x128xf32, #tpu.memory_space<vmem>>, %arg4: memref<1x128xf32, #tpu.memory_space<vmem>>, %arg5: memref<1x128xf32, #tpu.memory_space<vmem>>, %arg6: memref<1x128xf32, #tpu.memory_space<vmem>>, %arg7: memref<2x16x16x4xf32, #tpu.memory_space<vmem>>, %arg8: memref<2x18x18x128xf32, #tpu.memory_space<vmem>>) attributes {dimension_semantics = [], scalar_prefetch = 0 : i64, scratch_operands = 1 : i64, tpu.core_type = #tpu.core_type<tc>} {
    %cst = arith.constant 0.000000e+00 : f32
    %0 = vector.broadcast %cst : f32 to vector<2x18x18x128xf32>
    %c0 = arith.constant 0 : index
    %c0_0 = arith.constant 0 : index
    %c0_1 = arith.constant 0 : index
    %c0_2 = arith.constant 0 : index
    %1 = vector.load %arg8[%c0, %c0_0, %c0_1, %c0_2] : memref<2x18x18x128xf32, #tpu.memory_space<vmem>>, vector<2x18x18x128xf32>
    tpu.vector_store %arg8[%c0, %c0_0, %c0_1, %c0_2], %0 {strides = array<i32>} : memref<2x18x18x128xf32, #tpu.memory_space<vmem>>, vector<2x18x18x128xf32>,
    %c0_3 = arith.constant 0 : index
    %c0_4 = arith.constant 0 : index
    %c0_5 = arith.constant 0 : index
    %c0_6 = arith.constant 0 : index
    %2 = vector.load %arg0[%c0_3, %c0_4, %c0_5, %c0_6] : memref<2x16x16x128xbf16, #tpu.memory_space<vmem>>, vector<2x16x16x128xbf16>
    %3 = arith.extf %2 : vector<2x16x16x128xbf16> to vector<2x16x16x128xf32>
    %c0_7 = arith.constant 0 : index
    %c1 = arith.constant 1 : index
    %c1_8 = arith.constant 1 : index
    %c0_9 = arith.constant 0 : index
    %4 = vector.load %arg8[%c0_7, %c1, %c1_8, %c0_9] : memref<2x18x18x128xf32, #tpu.memory_space<vmem>>, vector<2x16x16x128xf32>
    tpu.vector_store %arg8[%c0_7, %c1, %c1_8, %c0_9], %3 {strides = array<i32>} : memref<2x18x18x128xf32, #tpu.memory_space<vmem>>, vector<2x16x16x128xf32>,
    %cst_10 = arith.constant 0.000000e+00 : f32
    %5 = vector.broadcast %cst_10 : f32 to vector<512x128xf32>
    %c0_11 = arith.constant 0 : index
    %c0_12 = arith.constant 0 : index
    %c0_13 = arith.constant 0 : index
    %c0_14 = arith.constant 0 : index
    %6 = vector.load %arg8[%c0_11, %c0_12, %c0_13, %c0_14] : memref<2x18x18x128xf32, #tpu.memory_space<vmem>>, vector<2x16x16x128xf32>
    %7 = vector.shape_cast %6 : vector<2x16x16x128xf32> to vector<512x128xf32>
    %8 = arith.truncf %7 : vector<512x128xf32> to vector<512x128xbf16>
    %c0_15 = arith.constant 0 : index
    %c0_16 = arith.constant 0 : index
    %c0_17 = arith.constant 0 : index
    %9 = vector.load %arg1[%c0_15, %c0_16, %c0_17] : memref<9x128x128xbf16, #tpu.memory_space<vmem>>, vector<1x128x128xbf16>
    %10 = vector.shape_cast %9 : vector<1x128x128xbf16> to vector<128x128xbf16>
    %cst_18 = arith.constant dense<0.000000e+00> : vector<512x128xf32>
    %11 = tpu.matmul %8, %10, %cst_18 {dimension_numbers = #tpu.dot_dimension_numbers<[1], [0], [0], [1], [0, 0, 1, 1], [], []>} : vector<512x128xbf16>, vector<128x128xbf16>, vector<512x128xf32> -> vector<512x128xf32>
    %12 = arith.addf %5, %11 : vector<512x128xf32>
    %c0_19 = arith.constant 0 : index
    %c0_20 = arith.constant 0 : index
    %c1_21 = arith.constant 1 : index
    %c0_22 = arith.constant 0 : index
    %13 = vector.load %arg8[%c0_19, %c0_20, %c1_21, %c0_22] : memref<2x18x18x128xf32, #tpu.memory_space<vmem>>, vector<2x16x16x128xf32>
    %14 = vector.shape_cast %13 : vector<2x16x16x128xf32> to vector<512x128xf32>
    %15 = arith.truncf %14 : vector<512x128xf32> to vector<512x128xbf16>
    %c1_23 = arith.constant 1 : index
    %c0_24 = arith.constant 0 : index
    %c0_25 = arith.constant 0 : index
    %16 = vector.load %arg1[%c1_23, %c0_24, %c0_25] : memref<9x128x128xbf16, #tpu.memory_space<vmem>>, vector<1x128x128xbf16>
    %17 = vector.shape_cast %16 : vector<1x128x128xbf16> to vector<128x128xbf16>
    %cst_26 = arith.constant dense<0.000000e+00> : vector<512x128xf32>
    %18 = tpu.matmul %15, %17, %cst_26 {dimension_numbers = #tpu.dot_dimension_numbers<[1], [0], [0], [1], [0, 0, 1, 1], [], []>} : vector<512x128xbf16>, vector<128x128xbf16>, vector<512x128xf32> -> vector<512x128xf32>
    %19 = arith.addf %12, %18 : vector<512x128xf32>
    %c0_27 = arith.constant 0 : index
    %c0_28 = arith.constant 0 : index
    %c2 = arith.constant 2 : index
    %c0_29 = arith.constant 0 : index
    %20 = vector.load %arg8[%c0_27, %c0_28, %c2, %c0_29] : memref<2x18x18x128xf32, #tpu.memory_space<vmem>>, vector<2x16x16x128xf32>
    %21 = vector.shape_cast %20 : vector<2x16x16x128xf32> to vector<512x128xf32>
    %22 = arith.truncf %21 : vector<512x128xf32> to vector<512x128xbf16>
    %c2_30 = arith.constant 2 : index
    %c0_31 = arith.constant 0 : index
    %c0_32 = arith.constant 0 : index
    %23 = vector.load %arg1[%c2_30, %c0_31, %c0_32] : memref<9x128x128xbf16, #tpu.memory_space<vmem>>, vector<1x128x128xbf16>
    %24 = vector.shape_cast %23 : vector<1x128x128xbf16> to vector<128x128xbf16>
    %cst_33 = arith.constant dense<0.000000e+00> : vector<512x128xf32>
    %25 = tpu.matmul %22, %24, %cst_33 {dimension_numbers = #tpu.dot_dimension_numbers<[1], [0], [0], [1], [0, 0, 1, 1], [], []>} : vector<512x128xbf16>, vector<128x128xbf16>, vector<512x128xf32> -> vector<512x128xf32>
    %26 = arith.addf %19, %25 : vector<512x128xf32>
    %c0_34 = arith.constant 0 : index
    %c1_35 = arith.constant 1 : index
    %c0_36 = arith.constant 0 : index
    %c0_37 = arith.constant 0 : index
    %27 = vector.load %arg8[%c0_34, %c1_35, %c0_36, %c0_37] : memref<2x18x18x128xf32, #tpu.memory_space<vmem>>, vector<2x16x16x128xf32>
    %28 = vector.shape_cast %27 : vector<2x16x16x128xf32> to vector<512x128xf32>
    %29 = arith.truncf %28 : vector<512x128xf32> to vector<512x128xbf16>
    %c3 = arith.constant 3 : index
    %c0_38 = arith.constant 0 : index
    %c0_39 = arith.constant 0 : index
    %30 = vector.load %arg1[%c3, %c0_38, %c0_39] : memref<9x128x128xbf16, #tpu.memory_space<vmem>>, vector<1x128x128xbf16>
    %31 = vector.shape_cast %30 : vector<1x128x128xbf16> to vector<128x128xbf16>
    %cst_40 = arith.constant dense<0.000000e+00> : vector<512x128xf32>
    %32 = tpu.matmul %29, %31, %cst_40 {dimension_numbers = #tpu.dot_dimension_numbers<[1], [0], [0], [1], [0, 0, 1, 1], [], []>} : vector<512x128xbf16>, vector<128x128xbf16>, vector<512x128xf32> -> vector<512x128xf32>
    %33 = arith.addf %26, %32 : vector<512x128xf32>
    %c0_41 = arith.constant 0 : index
    %c1_42 = arith.constant 1 : index
    %c1_43 = arith.constant 1 : index
    %c0_44 = arith.constant 0 : index
    %34 = vector.load %arg8[%c0_41, %c1_42, %c1_43, %c0_44] : memref<2x18x18x128xf32, #tpu.memory_space<vmem>>, vector<2x16x16x128xf32>
    %35 = vector.shape_cast %34 : vector<2x16x16x128xf32> to vector<512x128xf32>
    %36 = arith.truncf %35 : vector<512x128xf32> to vector<512x128xbf16>
    %c4 = arith.constant 4 : index
    %c0_45 = arith.constant 0 : index
    %c0_46 = arith.constant 0 : index
    %37 = vector.load %arg1[%c4, %c0_45, %c0_46] : memref<9x128x128xbf16, #tpu.memory_space<vmem>>, vector<1x128x128xbf16>
    %38 = vector.shape_cast %37 : vector<1x128x128xbf16> to vector<128x128xbf16>
    %cst_47 = arith.constant dense<0.000000e+00> : vector<512x128xf32>
    %39 = tpu.matmul %36, %38, %cst_47 {dimension_numbers = #tpu.dot_dimension_numbers<[1], [0], [0], [1], [0, 0, 1, 1], [], []>} : vector<512x128xbf16>, vector<128x128xbf16>, vector<512x128xf32> -> vector<512x128xf32>
    %40 = arith.addf %33, %39 : vector<512x128xf32>
    %c0_48 = arith.constant 0 : index
    %c1_49 = arith.constant 1 : index
    %c2_50 = arith.constant 2 : index
    %c0_51 = arith.constant 0 : index
    %41 = vector.load %arg8[%c0_48, %c1_49, %c2_50, %c0_51] : memref<2x18x18x128xf32, #tpu.memory_space<vmem>>, vector<2x16x16x128xf32>
    %42 = vector.shape_cast %41 : vector<2x16x16x128xf32> to vector<512x128xf32>
    %43 = arith.truncf %42 : vector<512x128xf32> to vector<512x128xbf16>
    %c5 = arith.constant 5 : index
    %c0_52 = arith.constant 0 : index
    %c0_53 = arith.constant 0 : index
    %44 = vector.load %arg1[%c5, %c0_52, %c0_53] : memref<9x128x128xbf16, #tpu.memory_space<vmem>>, vector<1x128x128xbf16>
    %45 = vector.shape_cast %44 : vector<1x128x128xbf16> to vector<128x128xbf16>
    %cst_54 = arith.constant dense<0.000000e+00> : vector<512x128xf32>
    %46 = tpu.matmul %43, %45, %cst_54 {dimension_numbers = #tpu.dot_dimension_numbers<[1], [0], [0], [1], [0, 0, 1, 1], [], []>} : vector<512x128xbf16>, vector<128x128xbf16>, vector<512x128xf32> -> vector<512x128xf32>
    %47 = arith.addf %40, %46 : vector<512x128xf32>
    %c0_55 = arith.constant 0 : index
    %c2_56 = arith.constant 2 : index
    %c0_57 = arith.constant 0 : index
    %c0_58 = arith.constant 0 : index
    %48 = vector.load %arg8[%c0_55, %c2_56, %c0_57, %c0_58] : memref<2x18x18x128xf32, #tpu.memory_space<vmem>>, vector<2x16x16x128xf32>
    %49 = vector.shape_cast %48 : vector<2x16x16x128xf32> to vector<512x128xf32>
    %50 = arith.truncf %49 : vector<512x128xf32> to vector<512x128xbf16>
    %c6 = arith.constant 6 : index
    %c0_59 = arith.constant 0 : index
    %c0_60 = arith.constant 0 : index
    %51 = vector.load %arg1[%c6, %c0_59, %c0_60] : memref<9x128x128xbf16, #tpu.memory_space<vmem>>, vector<1x128x128xbf16>
    %52 = vector.shape_cast %51 : vector<1x128x128xbf16> to vector<128x128xbf16>
    %cst_61 = arith.constant dense<0.000000e+00> : vector<512x128xf32>
    %53 = tpu.matmul %50, %52, %cst_61 {dimension_numbers = #tpu.dot_dimension_numbers<[1], [0], [0], [1], [0, 0, 1, 1], [], []>} : vector<512x128xbf16>, vector<128x128xbf16>, vector<512x128xf32> -> vector<512x128xf32>
    %54 = arith.addf %47, %53 : vector<512x128xf32>
    %c0_62 = arith.constant 0 : index
    %c2_63 = arith.constant 2 : index
    %c1_64 = arith.constant 1 : index
    %c0_65 = arith.constant 0 : index
    %55 = vector.load %arg8[%c0_62, %c2_63, %c1_64, %c0_65] : memref<2x18x18x128xf32, #tpu.memory_space<vmem>>, vector<2x16x16x128xf32>
    %56 = vector.shape_cast %55 : vector<2x16x16x128xf32> to vector<512x128xf32>
    %57 = arith.truncf %56 : vector<512x128xf32> to vector<512x128xbf16>
    %c7 = arith.constant 7 : index
    %c0_66 = arith.constant 0 : index
    %c0_67 = arith.constant 0 : index
    %58 = vector.load %arg1[%c7, %c0_66, %c0_67] : memref<9x128x128xbf16, #tpu.memory_space<vmem>>, vector<1x128x128xbf16>
    %59 = vector.shape_cast %58 : vector<1x128x128xbf16> to vector<128x128xbf16>
    %cst_68 = arith.constant dense<0.000000e+00> : vector<512x128xf32>
    %60 = tpu.matmul %57, %59, %cst_68 {dimension_numbers = #tpu.dot_dimension_numbers<[1], [0], [0], [1], [0, 0, 1, 1], [], []>} : vector<512x128xbf16>, vector<128x128xbf16>, vector<512x128xf32> -> vector<512x128xf32>
    %61 = arith.addf %54, %60 : vector<512x128xf32>
    %c0_69 = arith.constant 0 : index
    %c2_70 = arith.constant 2 : index
    %c2_71 = arith.constant 2 : index
    %c0_72 = arith.constant 0 : index
    %62 = vector.load %arg8[%c0_69, %c2_70, %c2_71, %c0_72] : memref<2x18x18x128xf32, #tpu.memory_space<vmem>>, vector<2x16x16x128xf32>
    %63 = vector.shape_cast %62 : vector<2x16x16x128xf32> to vector<512x128xf32>
    %64 = arith.truncf %63 : vector<512x128xf32> to vector<512x128xbf16>
    %c8 = arith.constant 8 : index
    %c0_73 = arith.constant 0 : index
    %c0_74 = arith.constant 0 : index
    %65 = vector.load %arg1[%c8, %c0_73, %c0_74] : memref<9x128x128xbf16, #tpu.memory_space<vmem>>, vector<1x128x128xbf16>
    %66 = vector.shape_cast %65 : vector<1x128x128xbf16> to vector<128x128xbf16>
    %cst_75 = arith.constant dense<0.000000e+00> : vector<512x128xf32>
    %67 = tpu.matmul %64, %66, %cst_75 {dimension_numbers = #tpu.dot_dimension_numbers<[1], [0], [0], [1], [0, 0, 1, 1], [], []>} : vector<512x128xbf16>, vector<128x128xbf16>, vector<512x128xf32> -> vector<512x128xf32>
    %68 = arith.addf %61, %67 : vector<512x128xf32>
    %c0_76 = arith.constant 0 : index
    %c0_77 = arith.constant 0 : index
    %69 = vector.load %arg3[%c0_76, %c0_77] : memref<1x128xf32, #tpu.memory_space<vmem>>, vector<1x128xf32>
    %c0_78 = arith.constant 0 : index
    %c0_79 = arith.constant 0 : index
    %70 = vector.load %arg4[%c0_78, %c0_79] : memref<1x128xf32, #tpu.memory_space<vmem>>, vector<1x128xf32>
    %cst_80 = arith.constant dense<0.000000e+00> : vector<128xf32>
    %71 = vector.multi_reduction <add>, %68, %cst_80 [0] : vector<512x128xf32> to vector<128xf32>
    %72 = vector.shape_cast %71 : vector<128xf32> to vector<1x128xf32>
    %cst_81 = arith.constant 5.120000e+02 : f32
    %73 = vector.broadcast %cst_81 : f32 to vector<1x128xf32>
    %74 = arith.divf %72, %73 : vector<1x128xf32>
    %75 = vector.broadcast %74 : vector<1x128xf32> to vector<512x128xf32>
    %76 = arith.subf %68, %75 : vector<512x128xf32>
    %77 = vector.broadcast %74 : vector<1x128xf32> to vector<512x128xf32>
    %78 = arith.subf %68, %77 : vector<512x128xf32>
    %79 = arith.mulf %76, %78 : vector<512x128xf32>
    %cst_82 = arith.constant dense<0.000000e+00> : vector<128xf32>
    %80 = vector.multi_reduction <add>, %79, %cst_82 [0] : vector<512x128xf32> to vector<128xf32>
    %81 = vector.shape_cast %80 : vector<128xf32> to vector<1x128xf32>
    %cst_83 = arith.constant 5.120000e+02 : f32
    %82 = vector.broadcast %cst_83 : f32 to vector<1x128xf32>
    %83 = arith.divf %81, %82 : vector<1x128xf32>
    %cst_84 = arith.constant 9.99999974E-6 : f32
    %84 = vector.broadcast %cst_84 : f32 to vector<1x128xf32>
    %85 = arith.addf %83, %84 : vector<1x128xf32>
    %86 = math.rsqrt %85 : vector<1x128xf32>
    %87 = arith.mulf %69, %86 : vector<1x128xf32>
    %88 = vector.broadcast %87 : vector<1x128xf32> to vector<512x128xf32>
    %89 = arith.mulf %68, %88 : vector<512x128xf32>
    %90 = arith.mulf %74, %87 : vector<1x128xf32>
    %91 = arith.subf %70, %90 : vector<1x128xf32>
    %92 = vector.broadcast %91 : vector<1x128xf32> to vector<512x128xf32>
    %93 = arith.addf %89, %92 : vector<512x128xf32>
    %cst_85 = arith.constant 0.000000e+00 : f32
    %94 = vector.broadcast %cst_85 : f32 to vector<512x128xf32>
    %95 = arith.maximumf %93, %94 : vector<512x128xf32>
    %96 = vector.shape_cast %95 : vector<512x128xf32> to vector<2x16x16x128xf32>
    %c0_86 = arith.constant 0 : index
    %c1_87 = arith.constant 1 : index
    %c1_88 = arith.constant 1 : index
    %c0_89 = arith.constant 0 : index
    %97 = vector.load %arg8[%c0_86, %c1_87, %c1_88, %c0_89] : memref<2x18x18x128xf32, #tpu.memory_space<vmem>>, vector<2x16x16x128xf32>
    tpu.vector_store %arg8[%c0_86, %c1_87, %c1_88, %c0_89], %96 {strides = array<i32>} : memref<2x18x18x128xf32, #tpu.memory_space<vmem>>, vector<2x16x16x128xf32>,
    %cst_90 = arith.constant 0.000000e+00 : f32
    %98 = vector.broadcast %cst_90 : f32 to vector<512x128xf32>
    %c0_91 = arith.constant 0 : index
    %c0_92 = arith.constant 0 : index
    %c0_93 = arith.constant 0 : index
    %c0_94 = arith.constant 0 : index
    %99 = vector.load %arg8[%c0_91, %c0_92, %c0_93, %c0_94] : memref<2x18x18x128xf32, #tpu.memory_space<vmem>>, vector<2x16x16x128xf32>
    %100 = vector.shape_cast %99 : vector<2x16x16x128xf32> to vector<512x128xf32>
    %101 = arith.truncf %100 : vector<512x128xf32> to vector<512x128xbf16>
    %c0_95 = arith.constant 0 : index
    %c0_96 = arith.constant 0 : index
    %c0_97 = arith.constant 0 : index
    %102 = vector.load %arg2[%c0_95, %c0_96, %c0_97] : memref<9x128x128xbf16, #tpu.memory_space<vmem>>, vector<1x128x128xbf16>
    %103 = vector.shape_cast %102 : vector<1x128x128xbf16> to vector<128x128xbf16>
    %cst_98 = arith.constant dense<0.000000e+00> : vector<512x128xf32>
    %104 = tpu.matmul %101, %103, %cst_98 {dimension_numbers = #tpu.dot_dimension_numbers<[1], [0], [0], [1], [0, 0, 1, 1], [], []>} : vector<512x128xbf16>, vector<128x128xbf16>, vector<512x128xf32> -> vector<512x128xf32>
    %105 = arith.addf %98, %104 : vector<512x128xf32>
    %c0_99 = arith.constant 0 : index
    %c0_100 = arith.constant 0 : index
    %c1_101 = arith.constant 1 : index
    %c0_102 = arith.constant 0 : index
    %106 = vector.load %arg8[%c0_99, %c0_100, %c1_101, %c0_102] : memref<2x18x18x128xf32, #tpu.memory_space<vmem>>, vector<2x16x16x128xf32>
    %107 = vector.shape_cast %106 : vector<2x16x16x128xf32> to vector<512x128xf32>
    %108 = arith.truncf %107 : vector<512x128xf32> to vector<512x128xbf16>
    %c1_103 = arith.constant 1 : index
    %c0_104 = arith.constant 0 : index
    %c0_105 = arith.constant 0 : index
    %109 = vector.load %arg2[%c1_103, %c0_104, %c0_105] : memref<9x128x128xbf16, #tpu.memory_space<vmem>>, vector<1x128x128xbf16>
    %110 = vector.shape_cast %109 : vector<1x128x128xbf16> to vector<128x128xbf16>
    %cst_106 = arith.constant dense<0.000000e+00> : vector<512x128xf32>
    %111 = tpu.matmul %108, %110, %cst_106 {dimension_numbers = #tpu.dot_dimension_numbers<[1], [0], [0], [1], [0, 0, 1, 1], [], []>} : vector<512x128xbf16>, vector<128x128xbf16>, vector<512x128xf32> -> vector<512x128xf32>
    %112 = arith.addf %105, %111 : vector<512x128xf32>
    %c0_107 = arith.constant 0 : index
    %c0_108 = arith.constant 0 : index
    %c2_109 = arith.constant 2 : index
    %c0_110 = arith.constant 0 : index
    %113 = vector.load %arg8[%c0_107, %c0_108, %c2_109, %c0_110] : memref<2x18x18x128xf32, #tpu.memory_space<vmem>>, vector<2x16x16x128xf32>
    %114 = vector.shape_cast %113 : vector<2x16x16x128xf32> to vector<512x128xf32>
    %115 = arith.truncf %114 : vector<512x128xf32> to vector<512x128xbf16>
    %c2_111 = arith.constant 2 : index
    %c0_112 = arith.constant 0 : index
    %c0_113 = arith.constant 0 : index
    %116 = vector.load %arg2[%c2_111, %c0_112, %c0_113] : memref<9x128x128xbf16, #tpu.memory_space<vmem>>, vector<1x128x128xbf16>
    %117 = vector.shape_cast %116 : vector<1x128x128xbf16> to vector<128x128xbf16>
    %cst_114 = arith.constant dense<0.000000e+00> : vector<512x128xf32>
    %118 = tpu.matmul %115, %117, %cst_114 {dimension_numbers = #tpu.dot_dimension_numbers<[1], [0], [0], [1], [0, 0, 1, 1], [], []>} : vector<512x128xbf16>, vector<128x128xbf16>, vector<512x128xf32> -> vector<512x128xf32>
    %119 = arith.addf %112, %118 : vector<512x128xf32>
    %c0_115 = arith.constant 0 : index
    %c1_116 = arith.constant 1 : index
    %c0_117 = arith.constant 0 : index
    %c0_118 = arith.constant 0 : index
    %120 = vector.load %arg8[%c0_115, %c1_116, %c0_117, %c0_118] : memref<2x18x18x128xf32, #tpu.memory_space<vmem>>, vector<2x16x16x128xf32>
    %121 = vector.shape_cast %120 : vector<2x16x16x128xf32> to vector<512x128xf32>
    %122 = arith.truncf %121 : vector<512x128xf32> to vector<512x128xbf16>
    %c3_119 = arith.constant 3 : index
    %c0_120 = arith.constant 0 : index
    %c0_121 = arith.constant 0 : index
    %123 = vector.load %arg2[%c3_119, %c0_120, %c0_121] : memref<9x128x128xbf16, #tpu.memory_space<vmem>>, vector<1x128x128xbf16>
    %124 = vector.shape_cast %123 : vector<1x128x128xbf16> to vector<128x128xbf16>
    %cst_122 = arith.constant dense<0.000000e+00> : vector<512x128xf32>
    %125 = tpu.matmul %122, %124, %cst_122 {dimension_numbers = #tpu.dot_dimension_numbers<[1], [0], [0], [1], [0, 0, 1, 1], [], []>} : vector<512x128xbf16>, vector<128x128xbf16>, vector<512x128xf32> -> vector<512x128xf32>
    %126 = arith.addf %119, %125 : vector<512x128xf32>
    %c0_123 = arith.constant 0 : index
    %c1_124 = arith.constant 1 : index
    %c1_125 = arith.constant 1 : index
    %c0_126 = arith.constant 0 : index
    %127 = vector.load %arg8[%c0_123, %c1_124, %c1_125, %c0_126] : memref<2x18x18x128xf32, #tpu.memory_space<vmem>>, vector<2x16x16x128xf32>
    %128 = vector.shape_cast %127 : vector<2x16x16x128xf32> to vector<512x128xf32>
    %129 = arith.truncf %128 : vector<512x128xf32> to vector<512x128xbf16>
    %c4_127 = arith.constant 4 : index
    %c0_128 = arith.constant 0 : index
    %c0_129 = arith.constant 0 : index
    %130 = vector.load %arg2[%c4_127, %c0_128, %c0_129] : memref<9x128x128xbf16, #tpu.memory_space<vmem>>, vector<1x128x128xbf16>
    %131 = vector.shape_cast %130 : vector<1x128x128xbf16> to vector<128x128xbf16>
    %cst_130 = arith.constant dense<0.000000e+00> : vector<512x128xf32>
    %132 = tpu.matmul %129, %131, %cst_130 {dimension_numbers = #tpu.dot_dimension_numbers<[1], [0], [0], [1], [0, 0, 1, 1], [], []>} : vector<512x128xbf16>, vector<128x128xbf16>, vector<512x128xf32> -> vector<512x128xf32>
    %133 = arith.addf %126, %132 : vector<512x128xf32>
    %c0_131 = arith.constant 0 : index
    %c1_132 = arith.constant 1 : index
    %c2_133 = arith.constant 2 : index
    %c0_134 = arith.constant 0 : index
    %134 = vector.load %arg8[%c0_131, %c1_132, %c2_133, %c0_134] : memref<2x18x18x128xf32, #tpu.memory_space<vmem>>, vector<2x16x16x128xf32>
    %135 = vector.shape_cast %134 : vector<2x16x16x128xf32> to vector<512x128xf32>
    %136 = arith.truncf %135 : vector<512x128xf32> to vector<512x128xbf16>
    %c5_135 = arith.constant 5 : index
    %c0_136 = arith.constant 0 : index
    %c0_137 = arith.constant 0 : index
    %137 = vector.load %arg2[%c5_135, %c0_136, %c0_137] : memref<9x128x128xbf16, #tpu.memory_space<vmem>>, vector<1x128x128xbf16>
    %138 = vector.shape_cast %137 : vector<1x128x128xbf16> to vector<128x128xbf16>
    %cst_138 = arith.constant dense<0.000000e+00> : vector<512x128xf32>
    %139 = tpu.matmul %136, %138, %cst_138 {dimension_numbers = #tpu.dot_dimension_numbers<[1], [0], [0], [1], [0, 0, 1, 1], [], []>} : vector<512x128xbf16>, vector<128x128xbf16>, vector<512x128xf32> -> vector<512x128xf32>
    %140 = arith.addf %133, %139 : vector<512x128xf32>
    %c0_139 = arith.constant 0 : index
    %c2_140 = arith.constant 2 : index
    %c0_141 = arith.constant 0 : index
    %c0_142 = arith.constant 0 : index
    %141 = vector.load %arg8[%c0_139, %c2_140, %c0_141, %c0_142] : memref<2x18x18x128xf32, #tpu.memory_space<vmem>>, vector<2x16x16x128xf32>
    %142 = vector.shape_cast %141 : vector<2x16x16x128xf32> to vector<512x128xf32>
    %143 = arith.truncf %142 : vector<512x128xf32> to vector<512x128xbf16>
    %c6_143 = arith.constant 6 : index
    %c0_144 = arith.constant 0 : index
    %c0_145 = arith.constant 0 : index
    %144 = vector.load %arg2[%c6_143, %c0_144, %c0_145] : memref<9x128x128xbf16, #tpu.memory_space<vmem>>, vector<1x128x128xbf16>
    %145 = vector.shape_cast %144 : vector<1x128x128xbf16> to vector<128x128xbf16>
    %cst_146 = arith.constant dense<0.000000e+00> : vector<512x128xf32>
    %146 = tpu.matmul %143, %145, %cst_146 {dimension_numbers = #tpu.dot_dimension_numbers<[1], [0], [0], [1], [0, 0, 1, 1], [], []>} : vector<512x128xbf16>, vector<128x128xbf16>, vector<512x128xf32> -> vector<512x128xf32>
    %147 = arith.addf %140, %146 : vector<512x128xf32>
    %c0_147 = arith.constant 0 : index
    %c2_148 = arith.constant 2 : index
    %c1_149 = arith.constant 1 : index
    %c0_150 = arith.constant 0 : index
    %148 = vector.load %arg8[%c0_147, %c2_148, %c1_149, %c0_150] : memref<2x18x18x128xf32, #tpu.memory_space<vmem>>, vector<2x16x16x128xf32>
    %149 = vector.shape_cast %148 : vector<2x16x16x128xf32> to vector<512x128xf32>
    %150 = arith.truncf %149 : vector<512x128xf32> to vector<512x128xbf16>
    %c7_151 = arith.constant 7 : index
    %c0_152 = arith.constant 0 : index
    %c0_153 = arith.constant 0 : index
    %151 = vector.load %arg2[%c7_151, %c0_152, %c0_153] : memref<9x128x128xbf16, #tpu.memory_space<vmem>>, vector<1x128x128xbf16>
    %152 = vector.shape_cast %151 : vector<1x128x128xbf16> to vector<128x128xbf16>
    %cst_154 = arith.constant dense<0.000000e+00> : vector<512x128xf32>
    %153 = tpu.matmul %150, %152, %cst_154 {dimension_numbers = #tpu.dot_dimension_numbers<[1], [0], [0], [1], [0, 0, 1, 1], [], []>} : vector<512x128xbf16>, vector<128x128xbf16>, vector<512x128xf32> -> vector<512x128xf32>
    %154 = arith.addf %147, %153 : vector<512x128xf32>
    %c0_155 = arith.constant 0 : index
    %c2_156 = arith.constant 2 : index
    %c2_157 = arith.constant 2 : index
    %c0_158 = arith.constant 0 : index
    %155 = vector.load %arg8[%c0_155, %c2_156, %c2_157, %c0_158] : memref<2x18x18x128xf32, #tpu.memory_space<vmem>>, vector<2x16x16x128xf32>
    %156 = vector.shape_cast %155 : vector<2x16x16x128xf32> to vector<512x128xf32>
    %157 = arith.truncf %156 : vector<512x128xf32> to vector<512x128xbf16>
    %c8_159 = arith.constant 8 : index
    %c0_160 = arith.constant 0 : index
    %c0_161 = arith.constant 0 : index
    %158 = vector.load %arg2[%c8_159, %c0_160, %c0_161] : memref<9x128x128xbf16, #tpu.memory_space<vmem>>, vector<1x128x128xbf16>
    %159 = vector.shape_cast %158 : vector<1x128x128xbf16> to vector<128x128xbf16>
    %cst_162 = arith.constant dense<0.000000e+00> : vector<512x128xf32>
    %160 = tpu.matmul %157, %159, %cst_162 {dimension_numbers = #tpu.dot_dimension_numbers<[1], [0], [0], [1], [0, 0, 1, 1], [], []>} : vector<512x128xbf16>, vector<128x128xbf16>, vector<512x128xf32> -> vector<512x128xf32>
    %161 = arith.addf %154, %160 : vector<512x128xf32>
    %c0_163 = arith.constant 0 : index
    %c0_164 = arith.constant 0 : index
    %162 = vector.load %arg5[%c0_163, %c0_164] : memref<1x128xf32, #tpu.memory_space<vmem>>, vector<1x128xf32>
    %c0_165 = arith.constant 0 : index
    %c0_166 = arith.constant 0 : index
    %163 = vector.load %arg6[%c0_165, %c0_166] : memref<1x128xf32, #tpu.memory_space<vmem>>, vector<1x128xf32>
    %cst_167 = arith.constant dense<0.000000e+00> : vector<128xf32>
    %164 = vector.multi_reduction <add>, %161, %cst_167 [0] : vector<512x128xf32> to vector<128xf32>
    %165 = vector.shape_cast %164 : vector<128xf32> to vector<1x128xf32>
    %cst_168 = arith.constant 5.120000e+02 : f32
    %166 = vector.broadcast %cst_168 : f32 to vector<1x128xf32>
    %167 = arith.divf %165, %166 : vector<1x128xf32>
    %168 = vector.broadcast %167 : vector<1x128xf32> to vector<512x128xf32>
    %169 = arith.subf %161, %168 : vector<512x128xf32>
    %170 = vector.broadcast %167 : vector<1x128xf32> to vector<512x128xf32>
    %171 = arith.subf %161, %170 : vector<512x128xf32>
    %172 = arith.mulf %169, %171 : vector<512x128xf32>
    %cst_169 = arith.constant dense<0.000000e+00> : vector<128xf32>
    %173 = vector.multi_reduction <add>, %172, %cst_169 [0] : vector<512x128xf32> to vector<128xf32>
    %174 = vector.shape_cast %173 : vector<128xf32> to vector<1x128xf32>
    %cst_170 = arith.constant 5.120000e+02 : f32
    %175 = vector.broadcast %cst_170 : f32 to vector<1x128xf32>
    %176 = arith.divf %174, %175 : vector<1x128xf32>
    %cst_171 = arith.constant 9.99999974E-6 : f32
    %177 = vector.broadcast %cst_171 : f32 to vector<1x128xf32>
    %178 = arith.addf %176, %177 : vector<1x128xf32>
    %179 = math.rsqrt %178 : vector<1x128xf32>
    %180 = arith.mulf %162, %179 : vector<1x128xf32>
    %181 = vector.broadcast %180 : vector<1x128xf32> to vector<512x128xf32>
    %182 = arith.mulf %161, %181 : vector<512x128xf32>
    %183 = arith.mulf %167, %180 : vector<1x128xf32>
    %184 = arith.subf %163, %183 : vector<1x128xf32>
    %185 = vector.broadcast %184 : vector<1x128xf32> to vector<512x128xf32>
    %186 = arith.addf %182, %185 : vector<512x128xf32>
    %c0_172 = arith.constant 0 : index
    %c0_173 = arith.constant 0 : index
    %c0_174 = arith.constant 0 : index
    %c0_175 = arith.constant 0 : index
    %187 = vector.load %arg0[%c0_172, %c0_173, %c0_174, %c0_175] : memref<2x16x16x128xbf16, #tpu.memory_space<vmem>>, vector<2x16x16x128xbf16>
    %188 = vector.shape_cast %187 : vector<2x16x16x128xbf16> to vector<512x128xbf16>
    %189 = arith.extf %188 : vector<512x128xbf16> to vector<512x128xf32>
    %190 = arith.addf %186, %189 : vector<512x128xf32>
    %cst_176 = arith.constant 0.000000e+00 : f32
    %191 = vector.broadcast %cst_176 : f32 to vector<512x128xf32>
    %192 = arith.maximumf %190, %191 : vector<512x128xf32>
    %193 = vector.extract_strided_slice %192 {offsets = [0, 0], sizes = [512, 4], strides = [1, 1]} : vector<512x128xf32> to vector<512x4xf32>
    %194 = vector.shape_cast %193 : vector<512x4xf32> to vector<2x16x16x4xf32>
    %c0_177 = arith.constant 0 : index
    %c0_178 = arith.constant 0 : index
    %c0_179 = arith.constant 0 : index
    %c0_180 = arith.constant 0 : index
    %195 = vector.load %arg7[%c0_177, %c0_178, %c0_179, %c0_180] : memref<2x16x16x4xf32, #tpu.memory_space<vmem>>, vector<2x16x16x4xf32>
    tpu.vector_store %arg7[%c0_177, %c0_178, %c0_179, %c0_180], %194 {strides = array<i32>} : memref<2x16x16x4xf32, #tpu.memory_space<vmem>>, vector<2x16x16x4xf32>,
    return
  }
}

</mosaic_0001>

<bundles_post_ra>
// kernel: residual_block.1
= control target key start
LH: loop header
LB: loop body
LE: loop exit
PB: predicated region body
PF: predicated region fallthrough
CT: control target
= control target key end

     0   :  { %v14694_v1 = vmov 0.0   ;;  %vm10538_vm0 = vcmask 31744   ;;  %s19091_s1 = inlined_call_operand.vmem [shape: bf16[9,128,128], index: 1, kind: input, shape index: {}]   ;;  %s19092_s0 = inlined_call_operand.vmem [shape: bf16[2,16,16,128], index: 0, kind: input, shape index: {}]   ;;  %s19093_s2 = inlined_call_operand.vmem [shape: bf16[9,128,128], index: 2, kind: input, shape index: {}]   ;;  %s19094_s3 = inlined_call_operand.vmem [shape: f32[1,128], index: 3, kind: input, shape index: {}]   ;;  %s19095_s4 = inlined_call_operand.vmem [shape: f32[1,128], index: 4, kind: input, shape index: {}]   ;;  %s19096_s5 = inlined_call_operand.vmem [shape: f32[1,128], index: 5, kind: input, shape index: {}]   ;;  %s19097_s6 = inlined_call_operand.vmem [shape: f32[1,128], index: 6, kind: input, shape index: {}]   ;;  %s19098_s7 = inlined_call_operand.vmem [shape: f32[2,16,16,4], index: 7, kind: output, shape index: {}]  }
   0x1   :  { %v14738_v0 = vld [vmem:[%s19091_s1 + $0x40] sm:$0xff]   ;;  %27 = vst [vmem:[#allocation2] sm:$0xff] %v14694_v1  ;;  %28 = vst [vmem:[#allocation2 + $0x8] sm:$0xff] %v14694_v1  ;;  %v14511_v2 = vld [vmem:[%s19091_s1 + $0x48] sm:$0xff]  }
   0x2   :  { %29 = vst [vmem:[#allocation2 + $0x10] sm:$0x3] %v14694_v1  ;;  %30 = vst [vmem:[#allocation2 + $0x18] sm:$0xff] %v14694_v1  ;;  %12045 = vmatprep.subr.bf16.mxu0 %v14738_v0  ;;  %v14512_v3 = vld [vmem:[%s19091_s1 + $0x50] sm:$0xff]   ;;  %v14513_v4 = vld [vmem:[%s19091_s1 + $0x58] sm:$0xff]  }
   0x3   :  { %31 = vst [vmem:[#allocation2 + $0x20] sm:$0xff] %v14694_v1  ;;  %32 = vst [vmem:[#allocation2 + $0x28] sm:$0x3] %v14694_v1  ;;  %12046 = vmatpush3.bf16.msra.mxu0 %v14738_v0  ;;  %v11008_v7 = vld [vmem:[%s19092_s0] sm:$0xff]   ;;  %v11263_v11 = vld [vmem:[%s19092_s0 + $0x8] sm:$0xff]  }
   0x4   :  { %33 = vst [vmem:[#allocation2 + $0x30] sm:$0xff] %v14694_v1  ;;  %34 = vst [vmem:[#allocation2 + $0x38] sm:$0xff] %v14694_v1  ;;  %12047 = vmatprep.subr.bf16.mxu0 %v14511_v2  ;;  %v11009_v9 = vunpack.c.l.bf16 %v11008_v7  ;;  %v11010_v10 = vunpack.c.h.bf16 %v11008_v7  ;;  %v11013_v12 = vunpack.c.l.bf16 %v11263_v11  ;;  %v11014_v13 = vunpack.c.h.bf16 %v11263_v11  ;;  %v11264_v14 = vld [vmem:[%s19092_s0 + $0x10] sm:$0xff]   ;;  %v11265_v15 = vld [vmem:[%s19092_s0 + $0x18] sm:$0xff]  }
   0x5   :  { %35 = vst [vmem:[#allocation2 + $0x40] sm:$0x3] %v14694_v1  ;;  %36 = vst [vmem:[#allocation2 + $0x48] sm:$0xff] %v14694_v1  ;;  %v14514_v16 = vld [vmem:[%s19091_s1 + $0x60] sm:$0xff]   ;;  %v11017_v17 = vunpack.c.l.bf16 %v11264_v14  ;;  %v11018_v18 = vunpack.c.h.bf16 %v11264_v14  ;;  %v11021_v19 = vunpack.c.l.bf16 %v11265_v15  ;;  %v11022_v20 = vunpack.c.h.bf16 %v11265_v15  ;;  %v11267_v24 = vld [vmem:[%s19092_s0 + $0x28] sm:$0xff]  }
   0x6   :  { %37 = vst [vmem:[#allocation2 + $0x50] sm:$0xff] %v14694_v1  ;;  %38 = vst [vmem:[#allocation2 + $0x58] sm:$0x3] %v14694_v1  ;;  %v11266_v21 = vld [vmem:[%s19092_s0 + $0x20] sm:$0xff]   ;;  %v11268_v25 = vld [vmem:[%s19092_s0 + $0x30] sm:$0xff]   ;;  %v11029_v26 = vunpack.c.l.bf16 %v11267_v24  ;;  %v11030_v27 = vunpack.c.h.bf16 %v11267_v24 }
   0x7   :  { %39 = vst [vmem:[#allocation2 + $0x60] sm:$0xff] %v14694_v1  ;;  %40 = vst [vmem:[#allocation2 + $0x68] sm:$0xff] %v14694_v1  ;;  %12048 = vmatpush3.bf16.msra.mxu0 %v14511_v2  ;;  %v11025_v22 = vunpack.c.l.bf16 %v11266_v21  ;;  %v11026_v23 = vunpack.c.h.bf16 %v11266_v21  ;;  %v11033_v28 = vunpack.c.l.bf16 %v11268_v25  ;;  %v11034_v29 = vunpack.c.h.bf16 %v11268_v25  ;;  %v11269_v30 = vld [vmem:[%s19092_s0 + $0x38] sm:$0xff]   ;;  %v14515_v31 = vld [vmem:[%s19091_s1 + $0x68] sm:$0xff]  }
   0x8   :  { %41 = vst [vmem:[#allocation2 + $0x70] sm:$0x3] %v14694_v1  ;;  %42 = vst [vmem:[#allocation2 + $0x78] sm:$0xff] %v14694_v1  ;;  %12049 = vmatprep.subr.bf16.mxu0 %v14512_v3  ;;  %v440_v5 = vld [vmem:[#allocation2 + $0x1] sm:$0xff]  ;;  %v11037_v32 = vunpack.c.l.bf16 %v11269_v30  ;;  %v11038_v33 = vunpack.c.h.bf16 %v11269_v30  ;;  %v11272_v40 = vld [vmem:[%s19092_s0 + $0x50] sm:$0xff]  }
   0x9   :  { %43 = vst [vmem:[#allocation2 + $0x80] sm:$0xff] %v14694_v1  ;;  %44 = vst [vmem:[#allocation2 + $0x88] sm:$0x3] %v14694_v1  ;;  %v441_v6 = vld [vmem:[#allocation2 + $0x9] sm:$0xff]  ;;  %v11270_v34 = vld [vmem:[%s19092_s0 + $0x40] sm:$0xff]   ;;  %v11049_v41 = vunpack.c.l.bf16 %v11272_v40  ;;  %v11050_v42 = vunpack.c.h.bf16 %v11272_v40 }
   0xa   :  { %45 = vst [vmem:[#allocation2 + $0x90] sm:$0xff] %v14694_v1  ;;  %46 = vst [vmem:[#allocation2 + $0x98] sm:$0xff] %v14694_v1  ;;  %v504_v8 = vpack.c.bf16 %v441_v6, %v440_v5  ;;  %v11041_v35 = vunpack.c.l.bf16 %v11270_v34  ;;  %v11042_v36 = vunpack.c.h.bf16 %v11270_v34  ;;  %v11271_v37 = vld [vmem:[%s19092_s0 + $0x48] sm:$0xff]   ;;  %v11273_v43 = vld [vmem:[%s19092_s0 + $0x58] sm:$0xff]  }
   0xb   :  { %47 = vst [vmem:[#allocation2 + $0xa0] sm:$0x3] %v14694_v1  ;;  %48 = vst [vmem:[#allocation2 + $0xa8] sm:$0xff] %v14694_v1  ;;  %12050 = vmatpush3.bf16.msra.mxu0 %v14512_v3  ;;  %v11045_v38 = vunpack.c.l.bf16 %v11271_v37  ;;  %v11046_v39 = vunpack.c.h.bf16 %v11271_v37  ;;  %v11274_v44 = vld [vmem:[%s19092_s0 + $0x60] sm:$0xff]   ;;  %v14516_v45 = vld [vmem:[%s19091_s1 + $0x70] sm:$0xff]   ;;  %v11053_v46 = vunpack.c.l.bf16 %v11273_v43  ;;  %v11054_v47 = vunpack.c.h.bf16 %v11273_v43 }
   0xc   :  { %49 = vst [vmem:[#allocation2 + $0xb0] sm:$0xff] %v14694_v1  ;;  %50 = vst [vmem:[#allocation2 + $0xb8] sm:$0x3] %v14694_v1  ;;  %12061 = vmatprep.mubr.bf16.mxu0 %v504_v8  ;;  %12051 = vmatprep.subr.bf16.mxu0 %v14513_v4  ;;  %v11057_v48 = vunpack.c.l.bf16 %v11274_v44  ;;  %v11058_v49 = vunpack.c.h.bf16 %v11274_v44  ;;  %v11275_v50 = vld [vmem:[%s19092_s0 + $0x68] sm:$0xff]   ;;  %v11276_v53 = vld [vmem:[%s19092_s0 + $0x70] sm:$0xff]  }
   0xd   :  { %51 = vst [vmem:[#allocation2 + $0xc0] sm:$0xff] %v14694_v1  ;;  %52 = vst [vmem:[#allocation2 + $0xc8] sm:$0xff] %v14694_v1  ;;  %v11061_v51 = vunpack.c.l.bf16 %v11275_v50  ;;  %v11062_v52 = vunpack.c.h.bf16 %v11275_v50  ;;  %v11065_v54 = vunpack.c.l.bf16 %v11276_v53  ;;  %v11066_v55 = vunpack.c.h.bf16 %v11276_v53  ;;  %v11278_v56 = vld [vmem:[%s19092_s0 + $0x80] sm:$0xff]   ;;  %v14517_v57 = vld [vmem:[%s19091_s1 + $0x78] sm:$0xff]  }
   0xe   :  { %53 = vst [vmem:[#allocation2 + $0xd0] sm:$0x3] %v14694_v1  ;;  %54 = vst [vmem:[#allocation2 + $0xd8] sm:$0xff] %v14694_v1  ;;  %v11073_v58 = vunpack.c.l.bf16 %v11278_v56  ;;  %v11074_v59 = vunpack.c.h.bf16 %v11278_v56  ;;  %v11279_v60 = vld [vmem:[%s19092_s0 + $0x88] sm:$0xff]   ;;  %v11280_v61 = vld [vmem:[%s19092_s0 + $0x90] sm:$0xff]  }
   0xf   :  { %55 = vst [vmem:[#allocation2 + $0xe0] sm:$0xff] %v14694_v1  ;;  %56 = vst [vmem:[#allocation2 + $0xe8] sm:$0x3] %v14694_v1  ;;  %12052 = vmatpush3.bf16.msra.mxu0 %v14513_v4  ;;  %v11077_v62 = vunpack.c.l.bf16 %v11279_v60  ;;  %v11078_v63 = vunpack.c.h.bf16 %v11279_v60  ;;  %v11081_v0 = vunpack.c.l.bf16 %v11280_v61  ;;  %v11281_v2 = vld [vmem:[%s19092_s0 + $0x98] sm:$0xff]   ;;  %v11282_v5 = vld [vmem:[%s19092_s0 + $0xa0] sm:$0xff]  }
  0x10   :  { %57 = vst [vmem:[#allocation2 + $0xf0] sm:$0xff] %v14694_v1  ;;  %58 = vst [vmem:[#allocation2 + $0xf8] sm:$0xff] %v14694_v1  ;;  %12053 = vmatprep.subr.bf16.mxu0 %v14514_v16  ;;  %v11085_v3 = vunpack.c.l.bf16 %v11281_v2  ;;  %v11086_v4 = vunpack.c.h.bf16 %v11281_v2  ;;  %v14519_v6 = vld [vmem:[%s19091_s1] sm:$0xff]   ;;  %v11089_v7 = vunpack.c.l.bf16 %v11282_v5  ;;  %v11090_v8 = vunpack.c.h.bf16 %v11282_v5  ;;  %v11287_v24 = vld [vmem:[%s19092_s0 + $0xc8] sm:$0xff]  }
  0x11   :  { %59 = vst [vmem:[#allocation2 + $0x100] sm:$0x3] %v14694_v1  ;;  %60 = vst [vmem:[#allocation2 + $0x108] sm:$0xff] %v14694_v1  ;;  %v11109_v25 = vunpack.c.l.bf16 %v11287_v24  ;;  %v11291_v37 = vld [vmem:[%s19092_s0 + $0xe8] sm:$0xff]   ;;  %v14521_v43 = vld [vmem:[%s19092_s0 + $0x10] sm:$0xff] }
  0x12   :  { %61 = vst [vmem:[#allocation2 + $0x110] sm:$0xff] %v14694_v1  ;;  %62 = vst [vmem:[#allocation2 + $0x118] sm:$0x3] %v14694_v1  ;;  %v11126_v40 = vunpack.c.h.bf16 %v11291_v37  ;;  %v14522_v44 = vld [vmem:[%s19092_s0 + $0x18] sm:$0xff]  ;;  %v14548_v50 = vld [vmem:[%s19091_s1 + $0x30] sm:$0xff]  }
  0x13   :  { %63 = vst [vmem:[#allocation2 + $0x120] sm:$0xff] %v14694_v1  ;;  %64 = vst [vmem:[#allocation2 + $0x128] sm:$0xff] %v14694_v1  ;;  %12054 = vmatpush3.bf16.msra.mxu0 %v14514_v16  ;;  %v11285_v16 = vld [vmem:[%s19092_s0 + $0xb8] sm:$0xff]   ;;  %v14530_v56 = vld [vmem:[%s19092_s0 + $0x48] sm:$0xff] }
  0x14   :  { %65 = vst [vmem:[#allocation2 + $0x130] sm:$0x3] %v14694_v1  ;;  %66 = vst [vmem:[#allocation2 + $0x138] sm:$0xff] %v14694_v1  ;;  %12055 = vmatprep.subr.bf16.mxu0 %v14515_v31  ;;  %v14553_v53 = vld [vmem:[%s19091_s1 + $0x38] sm:$0xff]   ;;  %v14535_v60 = vld [vmem:[%s19092_s0 + $0x68] sm:$0xff] }
  0x15   :  { %67 = vst [vmem:[#allocation2 + $0x140] sm:$0xff] %v14694_v1  ;;  %68 = vst [vmem:[#allocation2 + $0x148] sm:$0x3] %v14694_v1  ;;  %v14539_v2 = vld [vmem:[%s19092_s0 + $0x88] sm:$0xff]  ;;  %v14542_v5 = vld [vmem:[%s19092_s0 + $0xa0] sm:$0xff] }
  0x16   :  { %69 = vst [vmem:[#allocation2 + $0x150] sm:$0xff] %v14694_v1  ;;  %70 = vst [vmem:[#allocation2 + $0x158] sm:$0xff] %v14694_v1 }
  0x17   :  { %71 = vst [vmem:[#allocation2 + $0x160] sm:$0x3] %v14694_v1  ;;  %72 = vst [vmem:[#allocation2 + $0x168] sm:$0xff] %v14694_v1  ;;  %12056 = vmatpush3.bf16.msra.mxu0 %v14515_v31 }
  0x18   :  { %73 = vst [vmem:[#allocation2 + $0x170] sm:$0xff] %v14694_v1  ;;  %74 = vst [vmem:[#allocation2 + $0x178] sm:$0x3] %v14694_v1  ;;  %12057 = vmatprep.subr.bf16.mxu0 %v14516_v45 }
  0x19   :  { %75 = vst [vmem:[#allocation2 + $0x180] sm:$0xff] %v14694_v1  ;;  %76 = vst [vmem:[#allocation2 + $0x188] sm:$0xff] %v14694_v1 }
  0x1a   :  { %77 = vst [vmem:[#allocation2 + $0x190] sm:$0x3] %v14694_v1  ;;  %78 = vst [vmem:[#allocation2 + $0x198] sm:$0xff] %v14694_v1 }
  0x1b   :  { %79 = vst [vmem:[#allocation2 + $0x1a0] sm:$0xff] %v14694_v1  ;;  %80 = vst [vmem:[#allocation2 + $0x1a8] sm:$0x3] %v14694_v1  ;;  %12058 = vmatpush3.bf16.msra.mxu0 %v14516_v45  ;;  %v14534_v45 = vld [vmem:[%s19091_s1 + $0x18] sm:$0xff]  }
  0x1c   :  { %81 = vst [vmem:[#allocation2 + $0x1b0] sm:$0xff] %v14694_v1  ;;  %82 = vst [vmem:[#allocation2 + $0x1b8] sm:$0xff] %v14694_v1  ;;  %12059 = vmatprep.subr.bf16.mxu0 %v14517_v57 }
  0x1d   :  { %83 = vst [vmem:[#allocation2 + $0x1c0] sm:$0x3] %v14694_v1  ;;  %84 = vst [vmem:[#allocation2 + $0x1c8] sm:$0xff] %v14694_v1 }
  0x1e   :  { %85 = vst [vmem:[#allocation2 + $0x1d0] sm:$0xff] %v14694_v1  ;;  %86 = vst [vmem:[#allocation2 + $0x1d8] sm:$0x3] %v14694_v1 }
  0x1f   :  { %87 = vst [vmem:[#allocation2 + $0x1e0] sm:$0xff] %v14694_v1  ;;  %88 = vst [vmem:[#allocation2 + $0x1e8] sm:$0xff] %v14694_v1  ;;  %12060 = vmatpush3.bf16.msra.mxu0 %v14517_v57  ;;  %v14531_v57 = vld [vmem:[%s19092_s0 + $0x50] sm:$0xff] }
  0x20   :  { %89 = vst [vmem:[#allocation2 + $0x1f0] sm:$0x3] %v14694_v1  ;;  %90 = vst [vmem:[#allocation2 + $0x1f8] sm:$0xff] %v14694_v1  ;;  %12125 = vmatprep.subr.bf16.mxu0 %v14519_v6 }
  0x21   :  { %91 = vst [vmem:[#allocation2 + $0x200] sm:$0xff] %v14694_v1  ;;  %92 = vst [vmem:[#allocation2 + $0x208] sm:$0x3] %v14694_v1 }
  0x22   :  { %93 = vst [vmem:[#allocation2 + $0x210] sm:$0xff] %v14694_v1  ;;  %94 = vst [vmem:[#allocation2 + $0x218] sm:$0xff] %v14694_v1 }
  0x23   :  { %95 = vst [vmem:[#allocation2 + $0x220] sm:$0x3] %v14694_v1  ;;  %96 = vst [vmem:[#allocation2 + $0x228] sm:$0xff] %v14694_v1 }
  0x24   :  { %97 = vst [vmem:[#allocation2 + $0x230] sm:$0xff] %v14694_v1  ;;  %98 = vst [vmem:[#allocation2 + $0x238] sm:$0x3] %v14694_v1 }
  0x25   :  { %99 = vst [vmem:[#allocation2 + $0x240] sm:$0xff] %v14694_v1  ;;  %100 = vst [vmem:[#allocation2 + $0x248] sm:$0xff] %v14694_v1 }
  0x26   :  { %101 = vst [vmem:[#allocation2 + $0x250] sm:$0x3] %v14694_v1  ;;  %102 = vst [vmem:[#allocation2 + $0x258] sm:$0xff] %v14694_v1 }
  0x27   :  { %103 = vst [vmem:[#allocation2 + $0x260] sm:$0xff] %v14694_v1  ;;  %104 = vst [vmem:[#allocation2 + $0x268] sm:$0x3] %v14694_v1 }
  0x28   :  { %105 = vst [vmem:[#allocation2 + $0x270] sm:$0xff] %v14694_v1  ;;  %106 = vst [vmem:[#allocation2 + $0x278] sm:$0xff] %v14694_v1 }
  0x29   :  { %107 = vst [vmem:[#allocation2 + $0x280] sm:$0x3] %v14694_v1  ;;  %108 = vst [vmem:[#allocation2 + $0x288] sm:$0xff] %v14694_v1 }
  0x2a   :  { %109 = vst [vmem:[#allocation2 + $0x290] sm:$0xff] %v14694_v1  ;;  %110 = vst [vmem:[#allocation2 + $0x298] sm:$0x3] %v14694_v1 }
  0x2b   :  { %111 = vst [vmem:[#allocation2 + $0x2a0] sm:$0xff] %v14694_v1  ;;  %112 = vst [vmem:[#allocation2 + $0x2a8] sm:$0xff] %v14694_v1 }
  0x2c   :  { %113 = vst [vmem:[#allocation2 + $0x2b0] sm:$0x3] %v14694_v1  ;;  %114 = vst [vmem:[#allocation2 + $0x2b8] sm:$0xff] %v14694_v1 }
  0x2d   :  { %115 = vst [vmem:[#allocation2 + $0x2c0] sm:$0xff] %v14694_v1  ;;  %116 = vst [vmem:[#allocation2 + $0x2c8] sm:$0x3] %v14694_v1 }
  0x2e   :  { %117 = vst [vmem:[#allocation2 + $0x2d0] sm:$0xff] %v14694_v1  ;;  %118 = vst [vmem:[#allocation2 + $0x2d8] sm:$0xff] %v14694_v1 }
  0x2f   :  { %119 = vst [vmem:[#allocation2 + $0x2e0] sm:$0x3] %v14694_v1  ;;  %120 = vst [vmem:[#allocation2 + $0x2e8] sm:$0xff] %v14694_v1 }
  0x30   :  { %121 = vst [vmem:[#allocation2 + $0x2f0] sm:$0xff] %v14694_v1  ;;  %122 = vst [vmem:[#allocation2 + $0x2f8] sm:$0x3] %v14694_v1 }
  0x31   :  { %123 = vst [vmem:[#allocation2 + $0x300] sm:$0xff] %v14694_v1  ;;  %124 = vst [vmem:[#allocation2 + $0x308] sm:$0xff] %v14694_v1 }
  0x32   :  { %125 = vst [vmem:[#allocation2 + $0x310] sm:$0x3] %v14694_v1  ;;  %126 = vst [vmem:[#allocation2 + $0x318] sm:$0xff] %v14694_v1 }
  0x33   :  { %127 = vst [vmem:[#allocation2 + $0x320] sm:$0xff] %v14694_v1  ;;  %128 = vst [vmem:[#allocation2 + $0x328] sm:$0x3] %v14694_v1 }
  0x34   :  { %129 = vst [vmem:[#allocation2 + $0x330] sm:$0xff] %v14694_v1  ;;  %130 = vst [vmem:[#allocation2 + $0x338] sm:$0xff] %v14694_v1 }
  0x35   :  { %131 = vst [vmem:[#allocation2 + $0x340] sm:$0x3] %v14694_v1  ;;  %132 = vst [vmem:[#allocation2 + $0x348] sm:$0xff] %v14694_v1 }
  0x36   :  { %133 = vst [vmem:[#allocation2 + $0x350] sm:$0xff] %v14694_v1  ;;  %134 = vst [vmem:[#allocation2 + $0x358] sm:$0x3] %v14694_v1  ;;  %v11082_v1 = vunpack.c.h.bf16 %v11280_v61  ;;  %v472_v61 = vld [vmem:[#allocation2 + $0x1b1] sm:$0xff] }
  0x37   :  { %264 = vst [vmem:[#allocation2 + $0x19] sm:$0xff] %v11009_v9  ;;  %265 = vst [vmem:[#allocation2 + $0x21] sm:$0xff] %v11010_v10  ;;  %v11283_v9 = vld [vmem:[%s19092_s0 + $0xa8] sm:$0xff]  }
  0x38   :  { %266 = vst [vmem:[#allocation2 + $0x31] sm:$0xff] %v11013_v12  ;;  %267 = vst [vmem:[#allocation2 + $0x39] sm:$0xff] %v11014_v13  ;;  %v11093_v10 = vunpack.c.l.bf16 %v11283_v9  ;;  %v11094_v11 = vunpack.c.h.bf16 %v11283_v9  ;;  %v11284_v12 = vld [vmem:[%s19092_s0 + $0xb0] sm:$0xff]   ;;  %v14518_v13 = vld [vmem:[%s19092_s0] sm:$0xff] }
  0x39   :  { %268 = vst [vmem:[#allocation2 + $0x49] sm:$0xff] %v11017_v17  ;;  %269 = vst [vmem:[#allocation2 + $0x51] sm:$0xff] %v11018_v18  ;;  %v11097_v14 = vunpack.c.l.bf16 %v11284_v12  ;;  %v11098_v15 = vunpack.c.h.bf16 %v11284_v12  ;;  %v11286_v17 = vld [vmem:[%s19092_s0 + $0xc0] sm:$0xff]   ;;  %v14520_v18 = vld [vmem:[%s19092_s0 + $0x8] sm:$0xff]  ;;  %12062 = vmatmul.mubr.bf16.vlgmr.msra.gmra.mrb[0].mxu0 %v14518_v13 }
  0x3a   :  { %270 = vst [vmem:[#allocation2 + $0x61] sm:$0xff] %v11021_v19  ;;  %271 = vst [vmem:[#allocation2 + $0x69] sm:$0xff] %v11022_v20  ;;  %v11101_v19 = vunpack.c.l.bf16 %v11285_v16  ;;  %v11102_v20 = vunpack.c.h.bf16 %v11285_v16  ;;  %v11105_v21 = vunpack.c.l.bf16 %v11286_v17  ;;  %12126 = vmatpush3.bf16.msra.mxu0 %v14519_v6  ;;  %12065 = vmatprep.mubr.bf16.mxu0 %v14520_v18  ;;  %v14544_v6 = vld [vmem:[%s19092_s0 + $0xa8] sm:$0xff]  ;;  %v14547_v9 = vld [vmem:[%s19092_s0 + $0xc0] sm:$0xff] }
  0x3b   :  { %272 = vst [vmem:[#allocation2 + $0x79] sm:$0xff] %v11025_v22  ;;  %273 = vst [vmem:[#allocation2 + $0x81] sm:$0xff] %v11026_v23  ;;  %v11106_v22 = vunpack.c.h.bf16 %v11286_v17  ;;  %v14524_v23 = vld [vmem:[%s19091_s1 + $0x8] sm:$0xff]   ;;  %v14551_v12 = vld [vmem:[%s19092_s0 + $0xd8] sm:$0xff] }
  0x3c   :  { %274 = vst [vmem:[#allocation2 + $0x91] sm:$0xff] %v11029_v26  ;;  %275 = vst [vmem:[#allocation2 + $0x99] sm:$0xff] %v11030_v27  ;;  %v11110_v26 = vunpack.c.h.bf16 %v11287_v24  ;;  %v11288_v27 = vld [vmem:[%s19092_s0 + $0xd0] sm:$0xff]   ;;  %12127 = vmatprep.subr.bf16.mxu0 %v14524_v23  ;;  %v14552_v13 = vld [vmem:[%s19092_s0 + $0xe0] sm:$0xff] }
  0x3d   :  { %276 = vst [vmem:[#allocation2 + $0xa9] sm:$0xff] %v11033_v28  ;;  %277 = vst [vmem:[#allocation2 + $0xb1] sm:$0xff] %v11034_v29  ;;  %v11289_v28 = vld [vmem:[%s19092_s0 + $0xd8] sm:$0xff]   ;;  %v11113_v29 = vunpack.c.l.bf16 %v11288_v27  ;;  %v11114_v30 = vunpack.c.h.bf16 %v11288_v27  ;;  %v14690_v16 = vld [vmem:[#allocation2] sm:$0xff] }
  0x3e   :  { %278 = vst [vmem:[#allocation2 + $0xc1] sm:$0xff] %v11037_v32  ;;  %279 = vst [vmem:[#allocation2 + $0xc9] sm:$0xff] %v11038_v33  ;;  %v11117_v31 = vunpack.c.l.bf16 %v11289_v28  ;;  %v11118_v32 = vunpack.c.h.bf16 %v11289_v28  ;;  %v11290_v33 = vld [vmem:[%s19092_s0 + $0xe0] sm:$0xff]   ;;  %12128 = vmatpush3.bf16.msra.mxu0 %v14524_v23  ;;  %v15078_v17 = vpack.c.bf16 %v14690_v16, %v14690_v16  ;;  %v330_v18 = vld [vmem:[#allocation2 + $0x18] sm:$0xff] }
  0x3f   :  { %280 = vst [vmem:[#allocation2 + $0xd9] sm:$0xff] %v11041_v35  ;;  %281 = vst [vmem:[#allocation2 + $0xe1] sm:$0xff] %v11042_v36  ;;  %v11121_v34 = vunpack.c.l.bf16 %v11290_v33  ;;  %v11122_v35 = vunpack.c.h.bf16 %v11290_v33  ;;  %v14529_v36 = vld [vmem:[%s19091_s1 + $0x10] sm:$0xff]   ;;  %v14557_v24 = vld [vmem:[%s19091_s1 + $0x88] sm:$0xff]  }
  0x40   :  { %282 = vst [vmem:[#allocation2 + $0xf1] sm:$0xff] %v11045_v38  ;;  %283 = vst [vmem:[#allocation2 + $0xf9] sm:$0xff] %v11046_v39  ;;  %v11292_v38 = vld [vmem:[%s19092_s0 + $0xf0] sm:$0xff]   ;;  %v11125_v39 = vunpack.c.l.bf16 %v11291_v37  ;;  %12129 = vmatprep.subr.bf16.mxu0 %v14529_v36  ;;  %v14560_v37 = vld [vmem:[%s19091_s1 + $0xa0] sm:$0xff]  }
  0x41   :  { %284 = vst [vmem:[#allocation2 + $0x109] sm:$0xff] %v11049_v41  ;;  %285 = vst [vmem:[#allocation2 + $0x111] sm:$0xff] %v11050_v42  ;;  %v11129_v41 = vunpack.c.l.bf16 %v11292_v38  ;;  %v11130_v42 = vunpack.c.h.bf16 %v11292_v38  ;;  %12066 = vmatmul.mubr.bf16.gmra.mrb[4].mxu0 %v14521_v43  ;;  %v336_v27 = vld [vmem:[#allocation2 + $0x60] sm:$0xff]  ;;  %v337_v28 = vld [vmem:[#allocation2 + $0x68] sm:$0xff] }
  0x42   :  { %286 = vst [vmem:[#allocation2 + $0x121] sm:$0xff] %v11053_v46  ;;  %287 = vst [vmem:[#allocation2 + $0x129] sm:$0xff] %v11054_v47  ;;  %12069 = vmatprep.mubr.bf16.mxu0 %v14522_v44  ;;  %12130 = vmatpush3.bf16.msra.mxu0 %v14529_v36  ;;  %v14538_v46 = vld [vmem:[%s19091_s1 + $0x20] sm:$0xff]   ;;  %v338_v33 = vld [vmem:[#allocation2 + $0x78] sm:$0xff] }
  0x43   :  { %288 = vst [vmem:[#allocation2 + $0x139] sm:$0xff] %v11057_v48  ;;  %289 = vst [vmem:[#allocation2 + $0x141] sm:$0xff] %v11058_v49  ;;  %v14523_v47 = vld [vmem:[%s19092_s0 + $0x20] sm:$0xff]  ;;  %12131 = vmatprep.subr.bf16.mxu0 %v14534_v45  ;;  %v14525_v48 = vld [vmem:[%s19092_s0 + $0x28] sm:$0xff] }
  0x44   :  { %290 = vst [vmem:[#allocation2 + $0x151] sm:$0xff] %v11061_v51  ;;  %291 = vst [vmem:[#allocation2 + $0x159] sm:$0xff] %v11062_v52  ;;  %v14543_v49 = vld [vmem:[%s19091_s1 + $0x28] sm:$0xff]   ;;  %v14526_v51 = vld [vmem:[%s19092_s0 + $0x30] sm:$0xff] }
  0x45   :  { %292 = vst [vmem:[#allocation2 + $0x169] sm:$0xff] %v11065_v54  ;;  %293 = vst [vmem:[#allocation2 + $0x171] sm:$0xff] %v11066_v55  ;;  %v14527_v52 = vld [vmem:[%s19092_s0 + $0x38] sm:$0xff]  ;;  %v14556_v54 = vld [vmem:[%s19091_s1 + $0x80] sm:$0xff]  }
  0x46   :  { %296 = vst [vmem:[#allocation2 + $0x1c9] sm:$0xff] %v11073_v58  ;;  %297 = vst [vmem:[#allocation2 + $0x1d1] sm:$0xff] %v11074_v59  ;;  %12132 = vmatpush3.bf16.msra.mxu0 %v14534_v45  ;;  %v14528_v55 = vld [vmem:[%s19092_s0 + $0x40] sm:$0xff]  ;;  %v14532_v58 = vld [vmem:[%s19092_s0 + $0x58] sm:$0xff] }
  0x47   :  { %298 = vst [vmem:[#allocation2 + $0x1e1] sm:$0xff] %v11077_v62  ;;  %299 = vst [vmem:[#allocation2 + $0x1e9] sm:$0xff] %v11078_v63  ;;  %12133 = vmatprep.subr.bf16.mxu0 %v14538_v46  ;;  %v14533_v59 = vld [vmem:[%s19092_s0 + $0x60] sm:$0xff]  ;;  %v14536_v63 = vld [vmem:[%s19092_s0 + $0x70] sm:$0xff] }
  0x48   :  { %300 = vst [vmem:[#allocation2 + $0x1f9] sm:$0xff] %v11081_v0  ;;  %301 = vst [vmem:[#allocation2 + $0x201] sm:$0xff] %v11082_v1  ;;  %v473_v62 = vld [vmem:[#allocation2 + $0x1b9] sm:$0xff]  ;;  %v345_v44 = vld [vmem:[#allocation2 + $0xc8] sm:$0xff] }
  0x49   :  { %302 = vst [vmem:[#allocation2 + $0x211] sm:$0xff] %v11085_v3  ;;  %303 = vst [vmem:[#allocation2 + $0x219] sm:$0xff] %v11086_v4  ;;  %12070 = vmatmul.mubr.bf16.gmra.mrb[8].mxu0 %v14523_v47  ;;  %v520_v0 = vpack.c.bf16 %v473_v62, %v472_v61  ;;  %v14537_v1 = vld [vmem:[%s19092_s0 + $0x80] sm:$0xff]  ;;  %v14540_v3 = vld [vmem:[%s19092_s0 + $0x90] sm:$0xff] }
  0x4a   :  { %304 = vst [vmem:[#allocation2 + $0x229] sm:$0xff] %v11089_v7  ;;  %305 = vst [vmem:[#allocation2 + $0x231] sm:$0xff] %v11090_v8  ;;  %12073 = vmatprep.mubr.bf16.mxu0 %v14525_v48  ;;  %12134 = vmatpush3.bf16.msra.mxu0 %v14538_v46  ;;  %v14541_v4 = vld [vmem:[%s19092_s0 + $0x98] sm:$0xff]  ;;  %v14545_v7 = vld [vmem:[%s19092_s0 + $0xb0] sm:$0xff] }
  0x4b   :  { %306 = vst [vmem:[#allocation2 + $0x241] sm:$0xff] %v11093_v10  ;;  %307 = vst [vmem:[#allocation2 + $0x249] sm:$0xff] %v11094_v11  ;;  %12135 = vmatprep.subr.bf16.mxu0 %v14543_v49  ;;  %v14546_v8 = vld [vmem:[%s19092_s0 + $0xb8] sm:$0xff]  ;;  %v14549_v10 = vld [vmem:[%s19092_s0 + $0xc8] sm:$0xff] }
  0x4c   :  { %308 = vst [vmem:[#allocation2 + $0x259] sm:$0xff] %v11097_v14  ;;  %309 = vst [vmem:[#allocation2 + $0x261] sm:$0xff] %v11098_v15  ;;  %v14550_v11 = vld [vmem:[%s19092_s0 + $0xd0] sm:$0xff]  ;;  %v14554_v14 = vld [vmem:[%s19092_s0 + $0xe8] sm:$0xff] }
  0x4d   :  { %310 = vst [vmem:[#allocation2 + $0x271] sm:$0xff] %v11101_v19  ;;  %311 = vst [vmem:[#allocation2 + $0x279] sm:$0xff] %v11102_v20  ;;  %v14555_v15 = vld [vmem:[%s19092_s0 + $0xf0] sm:$0xff]  ;;  %v331_v19 = vld [vmem:[#allocation2 + $0x20] sm:$0xff] }
  0x4e   :  { %312 = vst [vmem:[#allocation2 + $0x289] sm:$0xff] %v11105_v21  ;;  %313 = vst [vmem:[#allocation2 + $0x291] sm:$0xff] %v11106_v22  ;;  %12136 = vmatpush3.bf16.msra.mxu0 %v14543_v49  ;;  %v332_v20 = vld [vmem:[#allocation2 + $0x30] sm:$0xff]  ;;  %v333_v21 = vld [vmem:[#allocation2 + $0x38] sm:$0xff]  ;;  %v15081_v22 = vpack.c.bf16 %v331_v19, %v330_v18 }
  0x4f   :  { %314 = vst [vmem:[#allocation2 + $0x2a1] sm:$0xff] %v11109_v25  ;;  %315 = vst [vmem:[#allocation2 + $0x2a9] sm:$0xff] %v11110_v26  ;;  %12137 = vmatprep.subr.bf16.mxu0 %v14548_v50  ;;  %v15083_v23 = vpack.c.bf16 %v333_v21, %v332_v20  ;;  %v334_v25 = vld [vmem:[#allocation2 + $0x48] sm:$0xff]  ;;  %v335_v26 = vld [vmem:[#allocation2 + $0x50] sm:$0xff] }
  0x50   :  { %316 = vst [vmem:[#allocation2 + $0x2b9] sm:$0xff] %v11113_v29  ;;  %317 = vst [vmem:[#allocation2 + $0x2c1] sm:$0xff] %v11114_v30  ;;  %v14558_v29 = vld [vmem:[%s19091_s1 + $0x90] sm:$0xff]   ;;  %v15093_v30 = vpack.c.bf16 %v335_v26, %v334_v25  ;;  %v341_v36 = vld [vmem:[#allocation2 + $0x98] sm:$0xff] }
  0x51   :  { %318 = vst [vmem:[#allocation2 + $0x2d1] sm:$0xff] %v11117_v31  ;;  %319 = vst [vmem:[#allocation2 + $0x2d9] sm:$0xff] %v11118_v32  ;;  %12074 = vmatmul.mubr.bf16.gmra.mrb[12].mxu0 %v14526_v51  ;;  %v15095_v31 = vpack.c.bf16 %v337_v28, %v336_v27  ;;  %v14559_v32 = vld [vmem:[%s19091_s1 + $0x98] sm:$0xff]   ;;  %v344_v43 = vld [vmem:[#allocation2 + $0xc0] sm:$0xff] }
  0x52   :  { %320 = vst [vmem:[#allocation2 + $0x2e9] sm:$0xff] %v11121_v34  ;;  %321 = vst [vmem:[#allocation2 + $0x2f1] sm:$0xff] %v11122_v35  ;;  %12077 = vmatprep.mubr.bf16.mxu0 %v14527_v52  ;;  %12138 = vmatpush3.bf16.msra.mxu0 %v14548_v50  ;;  %v339_v34 = vld [vmem:[#allocation2 + $0x80] sm:$0xff]  ;;  %v340_v35 = vld [vmem:[#allocation2 + $0x90] sm:$0xff]  ;;  %v15119_v47 = vpack.c.bf16 %v345_v44, %v344_v43 }
  0x53   :  { %322 = vst [vmem:[#allocation2 + $0x301] sm:$0xff] %v11125_v39  ;;  %323 = vst [vmem:[#allocation2 + $0x309] sm:$0xff] %v11126_v40  ;;  %12139 = vmatprep.subr.bf16.mxu0 %v14553_v53  ;;  %v15105_v38 = vpack.c.bf16 %v339_v34, %v338_v33  ;;  %v15107_v39 = vpack.c.bf16 %v341_v36, %v340_v35  ;;  %v14561_v40 = vld [vmem:[%s19091_s1 + $0xa8] sm:$0xff]   ;;  %v14562_v45 = vld [vmem:[%s19091_s1 + $0xb0] sm:$0xff]  }
  0x54   :  { %324 = vst [vmem:[#allocation2 + $0x319] sm:$0xff] %v11129_v41  ;;  %325 = vst [vmem:[#allocation2 + $0x321] sm:$0xff] %v11130_v42  ;;  %v342_v41 = vld [vmem:[#allocation2 + $0xa8] sm:$0xff]  ;;  %v343_v42 = vld [vmem:[#allocation2 + $0xb0] sm:$0xff] }
  0x55   :  { %v15117_v46 = vpack.c.bf16 %v343_v42, %v342_v41  ;;  %v14563_v48 = vld [vmem:[%s19091_s1 + $0xb8] sm:$0xff]   ;;  %v347_v50 = vld [vmem:[#allocation2 + $0xe0] sm:$0xff]  ;;  %v348_v51 = vld [vmem:[#allocation2 + $0xf0] sm:$0xff] }
  0x56   :  { %12140 = vmatpush3.bf16.msra.mxu0 %v14553_v53  ;;  %v346_v49 = vld [vmem:[#allocation2 + $0xd8] sm:$0xff]  ;;  %v15129_v53 = vld [vmem:[%s19091_s1 + $0xc0] sm:$0xff]   ;;  %v371_v20 = vld [vmem:[#allocation2 + $0x230] sm:$0xff] }
  0x57   :  { %12205 = vmatprep.subr.bf16.mxu0 %v14556_v54  ;;  %v349_v52 = vld [vmem:[#allocation2 + $0xf8] sm:$0xff]  ;;  %v372_v21 = vld [vmem:[#allocation2 + $0x240] sm:$0xff]  ;;  %v378_v35 = vld [vmem:[#allocation2 + $0x288] sm:$0xff] }
  0x58   :  { %v354_v62 = vld [vmem:[#allocation2 + $0x138] sm:$0xff]  ;;  %v375_v28 = vld [vmem:[#allocation2 + $0x260] sm:$0xff]  ;;  %v379_v36 = vld [vmem:[#allocation2 + $0x290] sm:$0xff] }
  0x59   :  { %12078 = vmatmul.mubr.bf16.gmra.mrb[16].mxu0 %v14528_v55  ;;  %v15133_v55 = vpack.c.bf16 %v349_v52, %v348_v51  ;;  %v369_v16 = vld [vmem:[#allocation2 + $0x218] sm:$0xff]  ;;  %v15178_v41 = vpack.c.bf16 %v379_v36, %v378_v35  ;;  %v383_v44 = vld [vmem:[#allocation2 + $0x2c0] sm:$0xff]  ;;  %v386_v51 = vld [vmem:[#allocation2 + $0x2e8] sm:$0xff] }
  0x5a   :  { %12081 = vmatprep.mubr.bf16.mxu0 %v14530_v56  ;;  %v350_v56 = vld [vmem:[#allocation2 + $0x108] sm:$0xff]  ;;  %v374_v27 = vld [vmem:[#allocation2 + $0x258] sm:$0xff]  ;;  %v387_v52 = vld [vmem:[#allocation2 + $0x2f0] sm:$0xff] }
  0x5b   :  { %v15172_v33 = vpack.c.bf16 %v375_v28, %v374_v27  ;;  %v382_v43 = vld [vmem:[#allocation2 + $0x2b8] sm:$0xff] }
  0x5c   :  { %v1239_v35 = vld [vmem:[#allocation2 + $0x92] sm:$0xff]  ;;  %v1240_v36 = vld [vmem:[#allocation2 + $0x9a] sm:$0xff] }
  0x61   :  { %12082 = vmatmul.mubr.bf16.gmra.mrb[20].mxu0 %v14531_v57  ;;  %v351_v57 = vld [vmem:[#allocation2 + $0x110] sm:$0xff] }
  0x62   :  { %12085 = vmatprep.mubr.bf16.mxu0 %v14532_v58  ;;  %v352_v58 = vld [vmem:[#allocation2 + $0x120] sm:$0xff] }
  0x69   :  { %12086 = vmatmul.mubr.bf16.gmra.mrb[24].mxu0 %v14533_v59  ;;  %v353_v59 = vld [vmem:[#allocation2 + $0x128] sm:$0xff] }
  0x6a   :  { %12089 = vmatprep.mubr.bf16.mxu0 %v14535_v60  ;;  %v15138_v60 = vpack.c.bf16 %v351_v57, %v350_v56  ;;  %v15140_v61 = vpack.c.bf16 %v353_v59, %v352_v58  ;;  %v388_v56 = vld [vmem:[#allocation2 + $0x300] sm:$0xff]  ;;  %v389_v57 = vld [vmem:[#allocation2 + $0x308] sm:$0xff]  ;;  %v15190_v58 = vpack.c.bf16 %v387_v52, %v386_v51 }
  0x6b   :  { %v15192_v59 = vpack.c.bf16 %v389_v57, %v388_v56  ;;  %v1243_v51 = vld [vmem:[#allocation2 + $0xc2] sm:$0xff]  ;;  %v1244_v52 = vld [vmem:[#allocation2 + $0xca] sm:$0xff] }
  0x6c   :  { %v14570_v56 = vld [vmem:[%s19091_s1 + $0xf0] sm:$0xff]  }
  0x71   :  { %12090 = vmatmul.mubr.bf16.gmra.mrb[28].mxu0 %v14536_v63  ;;  %v355_v63 = vld [vmem:[#allocation2 + $0x140] sm:$0xff] }
  0x72   :  { %12093 = vmatprep.mubr.bf16.mxu0 %v520_v0  ;;  %v356_v0 = vld [vmem:[#allocation2 + $0x150] sm:$0xff] }
  0x79   :  { %12094 = vmatmul.mubr.bf16.gmra.mrb[32].mxu0 %v14537_v1  ;;  %v357_v1 = vld [vmem:[#allocation2 + $0x158] sm:$0xff] }
  0x7a   :  { %12097 = vmatprep.mubr.bf16.mxu0 %v14539_v2  ;;  %v15144_v2 = vpack.c.bf16 %v355_v63, %v354_v62  ;;  %v390_v62 = vld [vmem:[#allocation2 + $0x318] sm:$0xff]  ;;  %v391_v63 = vld [vmem:[#allocation2 + $0x320] sm:$0xff] }
  0x81   :  { %12098 = vmatmul.mubr.bf16.gmra.mrb[36].mxu0 %v14540_v3  ;;  %v15146_v3 = vpack.c.bf16 %v357_v1, %v356_v0  ;;  %v1227_v0 = vld [vmem:[#allocation2 + $0x2] sm:$0xff]  ;;  %v1228_v1 = vld [vmem:[#allocation2 + $0xa] sm:$0xff] }
  0x82   :  { %12101 = vmatprep.mubr.bf16.mxu0 %v14541_v4  ;;  %v358_v4 = vld [vmem:[#allocation2 + $0x168] sm:$0xff] }
  0x89   :  { %12102 = vmatmul.mubr.bf16.gmra.mrb[40].mxu0 %v14542_v5  ;;  %v359_v5 = vld [vmem:[#allocation2 + $0x170] sm:$0xff] }
  0x8a   :  { %12105 = vmatprep.mubr.bf16.mxu0 %v14544_v6  ;;  %v15150_v6 = vpack.c.bf16 %v359_v5, %v358_v4  ;;  %v15196_v4 = vpack.c.bf16 %v391_v63, %v390_v62  ;;  %v1291_v5 = vpack.c.bf16 %v1228_v1, %v1227_v0  ;;  %v15238_v62 = vpack.c.bf16 %v1244_v52, %v1243_v51  ;;  %v14571_v63 = vld [vmem:[%s19091_s1 + $0xf8] sm:$0xff]   ;;  %v1246_v1 = vld [vmem:[#allocation2 + $0xe2] sm:$0xff]  ;;  %v1257_v51 = vld [vmem:[#allocation2 + $0x16a] sm:$0xff] }
  0x8b   :  { %v1245_v0 = vld [vmem:[#allocation2 + $0xda] sm:$0xff]  ;;  %v1258_v52 = vld [vmem:[#allocation2 + $0x172] sm:$0xff] }
  0x91   :  { %12106 = vmatmul.mubr.bf16.gmra.mrb[44].mxu0 %v14545_v7  ;;  %v362_v7 = vld [vmem:[#allocation2 + $0x1c8] sm:$0xff] }
  0x92   :  { %12109 = vmatprep.mubr.bf16.mxu0 %v14546_v8  ;;  %v363_v8 = vld [vmem:[#allocation2 + $0x1d0] sm:$0xff] }
  0x99   :  { %12110 = vmatmul.mubr.bf16.gmra.mrb[48].mxu0 %v14547_v9  ;;  %v364_v9 = vld [vmem:[#allocation2 + $0x1e0] sm:$0xff] }
  0x9a   :  { %12113 = vmatprep.mubr.bf16.mxu0 %v14549_v10  ;;  %v365_v10 = vld [vmem:[#allocation2 + $0x1e8] sm:$0xff] }
  0xa1   :  { %12114 = vmatmul.mubr.bf16.gmra.mrb[52].mxu0 %v14550_v11  ;;  %v15154_v11 = vpack.c.bf16 %v363_v8, %v362_v7  ;;  %v1229_v7 = vld [vmem:[#allocation2 + $0x1a] sm:$0xff]  ;;  %v1230_v8 = vld [vmem:[#allocation2 + $0x22] sm:$0xff] }
  0xa2   :  { %12117 = vmatprep.mubr.bf16.mxu0 %v14551_v12  ;;  %v15156_v12 = vpack.c.bf16 %v365_v10, %v364_v9  ;;  %v1231_v9 = vld [vmem:[#allocation2 + $0x32] sm:$0xff]  ;;  %v1232_v10 = vld [vmem:[#allocation2 + $0x3a] sm:$0xff] }
  0xa9   :  { %12118 = vmatmul.mubr.bf16.gmra.mrb[56].mxu0 %v14552_v13  ;;  %v366_v13 = vld [vmem:[#allocation2 + $0x1f8] sm:$0xff] }
  0xaa   :  { %12121 = vmatprep.mubr.bf16.mxu0 %v14554_v14  ;;  %v367_v14 = vld [vmem:[#allocation2 + $0x200] sm:$0xff] }
  0xab   :  { %v15160_v18 = vpack.c.bf16 %v367_v14, %v366_v13  ;;  %v15199_v13 = vpack.c.bf16 %v1230_v8, %v1229_v7  ;;  %v15201_v14 = vpack.c.bf16 %v1232_v10, %v1231_v9  ;;  %v1248_v7 = vld [vmem:[#allocation2 + $0xfa] sm:$0xff]  ;;  %v15250_v9 = vpack.c.bf16 %v1246_v1, %v1245_v0 }
  0xac   :  { %v15248_v8 = vld [vmem:[%s19091_s1 + $0x100] sm:$0xff]   ;;  %v15272_v0 = vpack.c.bf16 %v1258_v52, %v1257_v51  ;;  %v1270_v51 = vld [vmem:[#allocation2 + $0x232] sm:$0xff] }
  0xad   :  { %v1271_v52 = vld [vmem:[#allocation2 + $0x242] sm:$0xff] }
  0xb1   :  { %12122 = vmatmul.mubr.bf16.gmra.mrb[60].mxu0 %v14555_v15  ;;  %v368_v15 = vld [vmem:[#allocation2 + $0x210] sm:$0xff] }
  0xb2   :  { %12141 = vmatprep.mubr.bf16.mxu0 %v15078_v17  ;;  %v15162_v19 = vpack.c.bf16 %v369_v16, %v368_v15  ;;  %v14565_v15 = vld [vmem:[%s19091_s1 + $0xc8] sm:$0xff]  }
  0xb3   :  { %v1233_v16 = vld [vmem:[#allocation2 + $0x4a] sm:$0xff] }
  0xb9   :  { %12142 = vmatmul.mubr.bf16.vlgmr.msra.gmra.mrb[0].mxu0 %v15081_v22 }
  0xba   :  { %12206 = vmatpush3.bf16.msra.mxu0 %v14556_v54  ;;  %12145 = vmatprep.mubr.bf16.mxu0 %v15083_v23  ;;  %v15131_v54 = vpack.c.bf16 %v347_v50, %v346_v49  ;;  %v15184_v49 = vpack.c.bf16 %v383_v44, %v382_v43  ;;  %v15226_v43 = vpack.c.bf16 %v1240_v36, %v1239_v35  ;;  %v14569_v44 = vld [vmem:[%s19091_s1 + $0xe8] sm:$0xff]   ;;  %v1256_v35 = vld [vmem:[#allocation2 + $0x15a] sm:$0xff] }
  0xbb   :  { %12207 = vmatprep.subr.bf16.mxu0 %v14557_v24  ;;  %v11277_v36 = vld [vmem:[%s19092_s0 + $0x78] sm:$0xff]  }
  0xbe   :  { %12208 = vmatpush3.bf16.msra.mxu0 %v14557_v24  ;;  %v373_v24 = vld [vmem:[#allocation2 + $0x248] sm:$0xff] }
  0xbf   :  { %12209 = vmatprep.subr.bf16.mxu0 %v14558_v29  ;;  %v15168_v26 = vpack.c.bf16 %v373_v24, %v372_v21  ;;  %v1236_v21 = vld [vmem:[#allocation2 + $0x6a] sm:$0xff] }
  0xc0   :  { %v14566_v24 = vld [vmem:[%s19091_s1 + $0xd0] sm:$0xff]  }
  0xc1   :  { %12146 = vmatmul.mubr.bf16.gmra.mrb[4].mxu0 %v15093_v30 }
  0xc2   :  { %12149 = vmatprep.mubr.bf16.mxu0 %v15095_v31  ;;  %12210 = vmatpush3.bf16.msra.mxu0 %v14558_v29  ;;  %v376_v29 = vld [vmem:[#allocation2 + $0x270] sm:$0xff] }
  0xc3   :  { %12211 = vmatprep.subr.bf16.mxu0 %v14559_v32 }
  0xc6   :  { %12212 = vmatpush3.bf16.msra.mxu0 %v14559_v32  ;;  %v377_v32 = vld [vmem:[#allocation2 + $0x278] sm:$0xff] }
  0xc7   :  { %12213 = vmatprep.subr.bf16.mxu0 %v14560_v37  ;;  %v15174_v34 = vpack.c.bf16 %v377_v32, %v376_v29  ;;  %v1237_v29 = vld [vmem:[#allocation2 + $0x7a] sm:$0xff]  ;;  %v1238_v32 = vld [vmem:[#allocation2 + $0x82] sm:$0xff] }
  0xc9   :  { %12150 = vmatmul.mubr.bf16.gmra.mrb[8].mxu0 %v15105_v38 }
  0xca   :  { %12153 = vmatprep.mubr.bf16.mxu0 %v15107_v39  ;;  %12214 = vmatpush3.bf16.msra.mxu0 %v14560_v37  ;;  %v380_v37 = vld [vmem:[#allocation2 + $0x2a0] sm:$0xff] }
  0xcb   :  { %12215 = vmatprep.subr.bf16.mxu0 %v14561_v40 }
  0xce   :  { %12216 = vmatpush3.bf16.msra.mxu0 %v14561_v40  ;;  %v381_v40 = vld [vmem:[#allocation2 + $0x2a8] sm:$0xff] }
  0xcf   :  { %12217 = vmatprep.subr.bf16.mxu0 %v14562_v45  ;;  %v15180_v42 = vpack.c.bf16 %v381_v40, %v380_v37  ;;  %v14568_v37 = vld [vmem:[%s19091_s1 + $0xe0] sm:$0xff]   ;;  %v15224_v40 = vpack.c.bf16 %v1238_v32, %v1237_v29  ;;  %v1255_v32 = vld [vmem:[#allocation2 + $0x152] sm:$0xff] }
  0xd0   :  { %v1254_v29 = vld [vmem:[#allocation2 + $0x142] sm:$0xff] }
  0xd1   :  { %12154 = vmatmul.mubr.bf16.gmra.mrb[12].mxu0 %v15117_v46 }
  0xd2   :  { %12157 = vmatprep.mubr.bf16.mxu0 %v15119_v47  ;;  %12218 = vmatpush3.bf16.msra.mxu0 %v14562_v45  ;;  %v384_v45 = vld [vmem:[#allocation2 + $0x2d0] sm:$0xff] }
  0xd3   :  { %12219 = vmatprep.subr.bf16.mxu0 %v14563_v48 }
  0xd6   :  { %12220 = vmatpush3.bf16.msra.mxu0 %v14563_v48  ;;  %v385_v48 = vld [vmem:[#allocation2 + $0x2d8] sm:$0xff] }
  0xd7   :  { %12285 = vmatprep.subr.bf16.mxu0 %v15129_v53  ;;  %v15186_v50 = vpack.c.bf16 %v385_v48, %v384_v45  ;;  %v1241_v45 = vld [vmem:[#allocation2 + $0xaa] sm:$0xff]  ;;  %v1242_v48 = vld [vmem:[#allocation2 + $0xb2] sm:$0xff] }
  0xd8   :  { %v15236_v57 = vpack.c.bf16 %v1242_v48, %v1241_v45  ;;  %v11070_v45 = vunpack.c.h.bf16 %v11277_v36  ;;  %v15268_v48 = vpack.c.bf16 %v1256_v35, %v1255_v32  ;;  %v1267_v32 = vld [vmem:[#allocation2 + $0x212] sm:$0xff]  ;;  %v1268_v35 = vld [vmem:[#allocation2 + $0x21a] sm:$0xff] }
  0xd9   :  { %12158 = vmatmul.mubr.bf16.gmra.mrb[16].mxu0 %v15131_v54 }
  0xda   :  { %12161 = vmatprep.mubr.bf16.mxu0 %v15133_v55  ;;  %295 = vst [vmem:[#allocation2 + $0x189] sm:$0xff] %v11070_v45  ;;  %v1269_v45 = vld [vmem:[#allocation2 + $0x22a] sm:$0xff] }
  0xe1   :  { %12162 = vmatmul.mubr.bf16.gmra.mrb[20].mxu0 %v15138_v60 }
  0xe2   :  { %12165 = vmatprep.mubr.bf16.mxu0 %v15140_v61 }
  0xe9   :  { %12166 = vmatmul.mubr.bf16.gmra.mrb[24].mxu0 %v15144_v2 }
  0xea   :  { %12169 = vmatprep.mubr.bf16.mxu0 %v15146_v3 }
  0xf1   :  { %12170 = vmatmul.mubr.bf16.gmra.mrb[28].mxu0 %v15150_v6 }
  0xf2   :  { %12173 = vmatprep.mubr.bf16.mxu0 %v15078_v17  ;;  %v370_v17 = vld [vmem:[#allocation2 + $0x228] sm:$0xff] }
  0xf3   :  { %v15166_v25 = vpack.c.bf16 %v371_v20, %v370_v17  ;;  %v1234_v17 = vld [vmem:[#allocation2 + $0x52] sm:$0xff]  ;;  %v1235_v20 = vld [vmem:[#allocation2 + $0x62] sm:$0xff] }
  0xf4   :  { %v15212_v27 = vpack.c.bf16 %v1234_v17, %v1233_v16  ;;  %v15214_v28 = vpack.c.bf16 %v1236_v21, %v1235_v20  ;;  %v1250_v16 = vld [vmem:[#allocation2 + $0x112] sm:$0xff]  ;;  %v1251_v17 = vld [vmem:[#allocation2 + $0x122] sm:$0xff]  ;;  %v1252_v20 = vld [vmem:[#allocation2 + $0x12a] sm:$0xff] }
  0xf9   :  { %12174 = vmatmul.mubr.bf16.gmra.mrb[32].mxu0 %v15154_v11 }
  0xfa   :  { %12177 = vmatprep.mubr.bf16.mxu0 %v15156_v12 }
 0x101   :  { %12178 = vmatmul.mubr.bf16.gmra.mrb[36].mxu0 %v15160_v18 }
 0x102   :  { %12181 = vmatprep.mubr.bf16.mxu0 %v15162_v19 }
 0x109   :  { %12182 = vmatmul.mubr.bf16.gmra.mrb[40].mxu0 %v15166_v25 }
 0x10a   :  { %12185 = vmatprep.mubr.bf16.mxu0 %v15168_v26 }
 0x111   :  { %12186 = vmatmul.mubr.bf16.gmra.mrb[44].mxu0 %v15172_v33 }
 0x112   :  { %12189 = vmatprep.mubr.bf16.mxu0 %v15174_v34 }
 0x119   :  { %12190 = vmatmul.mubr.bf16.gmra.mrb[48].mxu0 %v15178_v41 }
 0x11a   :  { %12193 = vmatprep.mubr.bf16.mxu0 %v15180_v42 }
 0x121   :  { %12194 = vmatmul.mubr.bf16.gmra.mrb[52].mxu0 %v15184_v49 }
 0x122   :  { %12197 = vmatprep.mubr.bf16.mxu0 %v15186_v50 }
 0x129   :  { %12198 = vmatmul.mubr.bf16.gmra.mrb[56].mxu0 %v15190_v58 }
 0x12a   :  { %12201 = vmatprep.mubr.bf16.mxu0 %v15192_v59 }
 0x131   :  { %12202 = vmatmul.mubr.bf16.gmra.mrb[60].mxu0 %v15196_v4 }
 0x132   :  { %12221 = vmatprep.mubr.bf16.mxu0 %v1291_v5  ;;  %v1247_v5 = vld [vmem:[#allocation2 + $0xf2] sm:$0xff] }
 0x133   :  { %v15252_v10 = vpack.c.bf16 %v1248_v7, %v1247_v5  ;;  %v1261_v5 = vld [vmem:[#allocation2 + $0x1ca] sm:$0xff]  ;;  %v1262_v7 = vld [vmem:[#allocation2 + $0x1d2] sm:$0xff] }
 0x139   :  { %12222 = vmatmul.mubr.bf16.vlgmr.msra.gmra.mrb[0].mxu0 %v15199_v13 }
 0x13a   :  { %12286 = vmatpush3.bf16.msra.mxu0 %v15129_v53  ;;  %12225 = vmatprep.mubr.bf16.mxu0 %v15201_v14  ;;  %v14567_v53 = vld [vmem:[%s19091_s1 + $0xd8] sm:$0xff]  }
 0x13b   :  { %12287 = vmatprep.subr.bf16.mxu0 %v14565_v15 }
 0x13e   :  { %12288 = vmatpush3.bf16.msra.mxu0 %v14565_v15  ;;  %v1249_v15 = vld [vmem:[#allocation2 + $0x10a] sm:$0xff] }
 0x13f   :  { %12289 = vmatprep.subr.bf16.mxu0 %v14566_v24  ;;  %v15257_v21 = vpack.c.bf16 %v1250_v16, %v1249_v15  ;;  %v1263_v15 = vld [vmem:[#allocation2 + $0x1e2] sm:$0xff]  ;;  %v1264_v16 = vld [vmem:[#allocation2 + $0x1ea] sm:$0xff] }
 0x141   :  { %12226 = vmatmul.mubr.bf16.gmra.mrb[4].mxu0 %v15212_v27 }
 0x142   :  { %12229 = vmatprep.mubr.bf16.mxu0 %v15214_v28  ;;  %12290 = vmatpush3.bf16.msra.mxu0 %v14566_v24  ;;  %v15259_v24 = vpack.c.bf16 %v1252_v20, %v1251_v17  ;;  %v15275_v17 = vpack.c.bf16 %v1262_v7, %v1261_v5  ;;  %v15277_v20 = vpack.c.bf16 %v1264_v16, %v1263_v15  ;;  %v1273_v5 = vld [vmem:[#allocation2 + $0x25a] sm:$0xff]  ;;  %v1274_v7 = vld [vmem:[#allocation2 + $0x262] sm:$0xff]  ;;  %v1275_v15 = vld [vmem:[#allocation2 + $0x272] sm:$0xff] }
 0x143   :  { %12291 = vmatprep.subr.bf16.mxu0 %v14567_v53  ;;  %v1276_v16 = vld [vmem:[#allocation2 + $0x27a] sm:$0xff] }
 0x146   :  { %12292 = vmatpush3.bf16.msra.mxu0 %v14567_v53  ;;  %v1253_v53 = vld [vmem:[#allocation2 + $0x13a] sm:$0xff] }
 0x147   :  { %12293 = vmatprep.subr.bf16.mxu0 %v14568_v37 }
 0x149   :  { %12230 = vmatmul.mubr.bf16.gmra.mrb[8].mxu0 %v15224_v40 }
 0x14a   :  { %12233 = vmatprep.mubr.bf16.mxu0 %v15226_v43  ;;  %12294 = vmatpush3.bf16.msra.mxu0 %v14568_v37  ;;  %v15266_v37 = vpack.c.bf16 %v1254_v29, %v1253_v53  ;;  %v1265_v53 = vld [vmem:[#allocation2 + $0x1fa] sm:$0xff]  ;;  %v1266_v29 = vld [vmem:[#allocation2 + $0x202] sm:$0xff] }
 0x14b   :  { %12295 = vmatprep.subr.bf16.mxu0 %v14569_v44 }
 0x14e   :  { %12296 = vmatpush3.bf16.msra.mxu0 %v14569_v44  ;;  %v11069_v44 = vunpack.c.l.bf16 %v11277_v36  ;;  %v15281_v36 = vpack.c.bf16 %v1266_v29, %v1265_v53  ;;  %v15293_v53 = vpack.c.bf16 %v1274_v7, %v1273_v5  ;;  %v15295_v29 = vpack.c.bf16 %v1276_v16, %v1275_v15  ;;  %v1281_v5 = vld [vmem:[#allocation2 + $0x2ba] sm:$0xff]  ;;  %v1282_v7 = vld [vmem:[#allocation2 + $0x2c2] sm:$0xff]  ;;  %v1283_v15 = vld [vmem:[#allocation2 + $0x2d2] sm:$0xff] }
 0x14f   :  { %12297 = vmatprep.subr.bf16.mxu0 %v14570_v56  ;;  %v1284_v16 = vld [vmem:[#allocation2 + $0x2da] sm:$0xff] }
 0x150   :  { %294 = vst [vmem:[#allocation2 + $0x181] sm:$0xff] %v11069_v44  ;;  %v15283_v44 = vpack.c.bf16 %v1268_v35, %v1267_v32  ;;  %19287 = vst [vmem:[#allocation5_spill] sm:$0xff] %v15293_v53  ;;  %v1277_v32 = vld [vmem:[#allocation2 + $0x28a] sm:$0xff]  ;;  %v1278_v35 = vld [vmem:[#allocation2 + $0x292] sm:$0xff] }
 0x151   :  { %12234 = vmatmul.mubr.bf16.gmra.mrb[12].mxu0 %v15236_v57  ;;  %19288 = vst [vmem:[#allocation6_spill] sm:$0xff] %v15295_v29 }
 0x152   :  { %12237 = vmatprep.mubr.bf16.mxu0 %v15238_v62  ;;  %12298 = vmatpush3.bf16.msra.mxu0 %v14570_v56  ;;  %v1259_v56 = vld [vmem:[#allocation2 + $0x1b2] sm:$0xff] }
 0x153   :  { %12299 = vmatprep.subr.bf16.mxu0 %v14571_v63 }
 0x156   :  { %12300 = vmatpush3.bf16.msra.mxu0 %v14571_v63  ;;  %v1260_v63 = vld [vmem:[#allocation2 + $0x1ba] sm:$0xff] }
 0x157   :  { %12365 = vmatprep.subr.bf16.mxu0 %v15248_v8  ;;  %v1307_v1 = vpack.c.bf16 %v1260_v63, %v1259_v56  ;;  %v1272_v56 = vld [vmem:[#allocation2 + $0x24a] sm:$0xff]  ;;  %v15287_v63 = vpack.c.bf16 %v1270_v51, %v1269_v45  ;;  %v1279_v45 = vld [vmem:[#allocation2 + $0x2a2] sm:$0xff] }
 0x158   :  { %v1280_v51 = vld [vmem:[#allocation2 + $0x2aa] sm:$0xff] }
 0x159   :  { %12238 = vmatmul.mubr.bf16.gmra.mrb[16].mxu0 %v15250_v9  ;;  %19285 = vst [vmem:[#allocation3_spill] sm:$0xff] %v15287_v63 }
 0x15a   :  { %12241 = vmatprep.mubr.bf16.mxu0 %v15252_v10 }
 0x161   :  { %12242 = vmatmul.mubr.bf16.gmra.mrb[20].mxu0 %v15257_v21 }
 0x162   :  { %12245 = vmatprep.mubr.bf16.mxu0 %v15259_v24 }
 0x169   :  { %12246 = vmatmul.mubr.bf16.gmra.mrb[24].mxu0 %v15266_v37 }
 0x16a   :  { %12249 = vmatprep.mubr.bf16.mxu0 %v15268_v48 }
 0x171   :  { %12250 = vmatmul.mubr.bf16.gmra.mrb[28].mxu0 %v15272_v0 }
 0x172   :  { %12253 = vmatprep.mubr.bf16.mxu0 %v1307_v1  ;;  %v15289_v1 = vpack.c.bf16 %v1272_v56, %v1271_v52  ;;  %v15299_v52 = vpack.c.bf16 %v1278_v35, %v1277_v32  ;;  %v15301_v56 = vpack.c.bf16 %v1280_v51, %v1279_v45  ;;  %v1285_v32 = vld [vmem:[#allocation2 + $0x2ea] sm:$0xff]  ;;  %v1286_v35 = vld [vmem:[#allocation2 + $0x2f2] sm:$0xff]  ;;  %v1287_v45 = vld [vmem:[#allocation2 + $0x302] sm:$0xff] }
 0x173   :  { %v1288_v51 = vld [vmem:[#allocation2 + $0x30a] sm:$0xff] }
 0x174   :  { %19286 = vst [vmem:[#allocation4_spill] sm:$0xff] %v15289_v1  ;;  %19289 = vst [vmem:[#allocation7_spill] sm:$0xff] %v15299_v52 }
 0x175   :  { %19290 = vst [vmem:[#allocation8_spill] sm:$0xff] %v15301_v56 }
 0x179   :  { %12254 = vmatmul.mubr.bf16.gmra.mrb[32].mxu0 %v15275_v17 }
 0x17a   :  { %12257 = vmatprep.mubr.bf16.mxu0 %v15277_v20 }
 0x181   :  { %12258 = vmatmul.mubr.bf16.gmra.mrb[36].mxu0 %v15281_v36 }
 0x182   :  { %12261 = vmatprep.mubr.bf16.mxu0 %v15283_v44 }
 0x189   :  { %12262 = vmatmul.mubr.bf16.gmra.mrb[40].mxu0 %v15287_v63 }
 0x18a   :  { %12265 = vmatprep.mubr.bf16.mxu0 %v15289_v1  ;;  %v15305_v1 = vpack.c.bf16 %v1282_v7, %v1281_v5  ;;  %v15316_v5 = vpack.c.bf16 %v1288_v51, %v1287_v45  ;;  %v1289_v7 = vld [vmem:[#allocation2 + $0x31a] sm:$0xff] }
 0x18b   :  { %v14585_v45 = vld [vmem:[%s19091_s1 + $0x160] sm:$0xff]  }
 0x191   :  { %12266 = vmatmul.mubr.bf16.gmra.mrb[44].mxu0 %v15293_v53  ;;  %v15307_v53 = vpack.c.bf16 %v1284_v16, %v1283_v15  ;;  %v1290_v15 = vld [vmem:[#allocation2 + $0x322] sm:$0xff] }
 0x192   :  { %12269 = vmatprep.mubr.bf16.mxu0 %v15295_v29  ;;  %v15320_v16 = vpack.c.bf16 %v1290_v15, %v1289_v7  ;;  %v14586_v15 = vld [vmem:[%s19091_s1 + $0x168] sm:$0xff]  }
 0x199   :  { %12270 = vmatmul.mubr.bf16.gmra.mrb[48].mxu0 %v15299_v52  ;;  %v15314_v52 = vpack.c.bf16 %v1286_v35, %v1285_v32  ;;  %v2267_v32 = vld [vmem:[#allocation2 + $0xa9] sm:$0xff]  ;;  %v2268_v35 = vld [vmem:[#allocation2 + $0xb1] sm:$0xff] }
 0x19a   :  { %12273 = vmatprep.mubr.bf16.mxu0 %v15301_v56  ;;  %v11293_v56 = vld [vmem:[%s19092_s0 + $0xf8] sm:$0xff]   ;;  %v15410_v7 = vpack.c.bf16 %v2268_v35, %v2267_v32 }
 0x19b   :  { %v11133_v29 = vunpack.c.l.bf16 %v11293_v56  ;;  %v11134_v63 = vunpack.c.h.bf16 %v11293_v56  ;;  %v14573_v56 = vld [vmem:[%s19091_s1 + $0x108] sm:$0xff]   ;;  %v2288_v32 = vld [vmem:[#allocation2 + $0x1d1] sm:$0xff] }
 0x19c   :  { %v14584_v35 = vld [vmem:[%s19092_s0 + $0x78] sm:$0xff] }
 0x19d   :  { %326 = vst [vmem:[#allocation2 + $0x331] sm:$0xff] %v11133_v29  ;;  %327 = vst [vmem:[#allocation2 + $0x339] sm:$0xff] %v11134_v63  ;;  %v14574_v63 = vld [vmem:[%s19091_s1 + $0x110] sm:$0xff]   ;;  %v2266_v29 = vld [vmem:[#allocation2 + $0x99] sm:$0xff] }
 0x1a1   :  { %12274 = vmatmul.mubr.bf16.gmra.mrb[52].mxu0 %v15305_v1 }
 0x1a2   :  { %12277 = vmatprep.mubr.bf16.mxu0 %v15307_v53 }
 0x1a9   :  { %12278 = vmatmul.mubr.bf16.gmra.mrb[56].mxu0 %v15314_v52 }
 0x1aa   :  { %12281 = vmatprep.mubr.bf16.mxu0 %v15316_v5 }
 0x1b1   :  { %12282 = vmatmul.mubr.bf16.gmra.mrb[60].mxu0 %v15320_v16 }
 0x1b2   :  { %12301 = vmatprep.mubr.bf16.mxu0 %v15081_v22  ;;  %v14575_v22 = vld [vmem:[%s19091_s1 + $0x118] sm:$0xff]  }
 0x1b9   :  { %12302 = vmatmul.mubr.bf16.vlgmr.msra.gmra.mrb[0].mxu0 %v15083_v23  ;;  %v14576_v23 = vld [vmem:[%s19091_s1 + $0x120] sm:$0xff]  }
 0x1ba   :  { %12366 = vmatpush3.bf16.msra.mxu0 %v15248_v8  ;;  %12305 = vmatprep.mubr.bf16.mxu0 %v15093_v30  ;;  %v14577_v30 = vld [vmem:[%s19091_s1 + $0x128] sm:$0xff]   ;;  %v2265_v8 = vld [vmem:[#allocation2 + $0x91] sm:$0xff] }
 0x1bb   :  { %12367 = vmatprep.subr.bf16.mxu0 %v14573_v56  ;;  %v15408_v51 = vpack.c.bf16 %v2266_v29, %v2265_v8  ;;  %v2287_v29 = vld [vmem:[#allocation2 + $0x1c9] sm:$0xff] }
 0x1be   :  { %12368 = vmatpush3.bf16.msra.mxu0 %v14573_v56  ;;  %v2269_v56 = vld [vmem:[#allocation2 + $0xc1] sm:$0xff] }
 0x1bf   :  { %12369 = vmatprep.subr.bf16.mxu0 %v14574_v63 }
 0x1c1   :  { %12306 = vmatmul.mubr.bf16.gmra.mrb[4].mxu0 %v15095_v31  ;;  %v14578_v31 = vld [vmem:[%s19091_s1 + $0x130] sm:$0xff]  }
 0x1c2   :  { %12309 = vmatprep.mubr.bf16.mxu0 %v15105_v38  ;;  %12370 = vmatpush3.bf16.msra.mxu0 %v14574_v63  ;;  %v14579_v38 = vld [vmem:[%s19091_s1 + $0x138] sm:$0xff]   ;;  %v2270_v63 = vld [vmem:[#allocation2 + $0xc9] sm:$0xff] }
 0x1c3   :  { %12371 = vmatprep.subr.bf16.mxu0 %v14575_v22 }
 0x1c6   :  { %12372 = vmatpush3.bf16.msra.mxu0 %v14575_v22  ;;  %v2271_v22 = vld [vmem:[#allocation2 + $0xd9] sm:$0xff] }
 0x1c7   :  { %12373 = vmatprep.subr.bf16.mxu0 %v14576_v23 }
 0x1c9   :  { %12310 = vmatmul.mubr.bf16.gmra.mrb[8].mxu0 %v15107_v39  ;;  %v14580_v39 = vld [vmem:[%s19091_s1 + $0x140] sm:$0xff]  }
 0x1ca   :  { %12313 = vmatprep.mubr.bf16.mxu0 %v15117_v46  ;;  %12374 = vmatpush3.bf16.msra.mxu0 %v14576_v23  ;;  %v1771_v46 = vld [vmem:[#allocation2 + $0x180] sm:$0xff] }
 0x1cb   :  { %12375 = vmatprep.subr.bf16.mxu0 %v14577_v30  ;;  %v2272_v23 = vld [vmem:[#allocation2 + $0xe1] sm:$0xff] }
 0x1ce   :  { %12376 = vmatpush3.bf16.msra.mxu0 %v14577_v30  ;;  %v14587_v30 = vld [vmem:[%s19091_s1 + $0x170] sm:$0xff]  }
 0x1cf   :  { %12377 = vmatprep.subr.bf16.mxu0 %v14578_v31 }
 0x1d1   :  { %12314 = vmatmul.mubr.bf16.gmra.mrb[12].mxu0 %v15119_v47  ;;  %v1772_v47 = vld [vmem:[#allocation2 + $0x188] sm:$0xff] }
 0x1d2   :  { %12317 = vmatprep.mubr.bf16.mxu0 %v15131_v54  ;;  %12378 = vmatpush3.bf16.msra.mxu0 %v14578_v31  ;;  %v15363_v54 = vpack.c.bf16 %v1772_v47, %v1771_v46  ;;  %v15420_v31 = vpack.c.bf16 %v2270_v63, %v2269_v56  ;;  %v2273_v46 = vld [vmem:[#allocation2 + $0xf1] sm:$0xff]  ;;  %v2274_v47 = vld [vmem:[#allocation2 + $0xf9] sm:$0xff]  ;;  %v2290_v56 = vld [vmem:[#allocation2 + $0x1e9] sm:$0xff] }
 0x1d3   :  { %12379 = vmatprep.subr.bf16.mxu0 %v14579_v38  ;;  %v2291_v63 = vld [vmem:[#allocation2 + $0x1f9] sm:$0xff] }
 0x1d6   :  { %12380 = vmatpush3.bf16.msra.mxu0 %v14579_v38  ;;  %v15422_v38 = vpack.c.bf16 %v2272_v23, %v2271_v22  ;;  %v2292_v22 = vld [vmem:[#allocation2 + $0x201] sm:$0xff] }
 0x1d7   :  { %12445 = vmatprep.subr.bf16.mxu0 %v14580_v39 }
 0x1d9   :  { %12318 = vmatmul.mubr.bf16.gmra.mrb[16].mxu0 %v15133_v55  ;;  %v1803_v55 = vld [vmem:[#allocation2 + $0x330] sm:$0xff] }
 0x1da   :  { %12321 = vmatprep.mubr.bf16.mxu0 %v15138_v60  ;;  %v1804_v60 = vld [vmem:[#allocation2 + $0x338] sm:$0xff] }
 0x1e1   :  { %12322 = vmatmul.mubr.bf16.gmra.mrb[20].mxu0 %v15140_v61  ;;  %v2255_v61 = vld [vmem:[#allocation2 + $0x19] sm:$0xff] }
 0x1e2   :  { %12325 = vmatprep.mubr.bf16.mxu0 %v15144_v2  ;;  %v2256_v2 = vld [vmem:[#allocation2 + $0x21] sm:$0xff] }
 0x1e9   :  { %12326 = vmatmul.mubr.bf16.gmra.mrb[24].mxu0 %v15146_v3  ;;  %v15381_v3 = vpack.c.bf16 %v1804_v60, %v1803_v55  ;;  %v2275_v55 = vld [vmem:[#allocation2 + $0x109] sm:$0xff]  ;;  %v2276_v60 = vld [vmem:[#allocation2 + $0x111] sm:$0xff] }
 0x1ea   :  { %12329 = vmatprep.mubr.bf16.mxu0 %v15150_v6  ;;  %v2319_v6 = vpack.c.bf16 %v2256_v2, %v2255_v61  ;;  %v15432_v61 = vld [vmem:[%s19091_s1 + $0x180] sm:$0xff]   ;;  %v15434_v2 = vpack.c.bf16 %v2274_v47, %v2273_v46  ;;  %v2295_v47 = vld [vmem:[#allocation2 + $0x229] sm:$0xff] }
 0x1eb   :  { %v2294_v46 = vld [vmem:[#allocation2 + $0x219] sm:$0xff] }
 0x1f1   :  { %12330 = vmatmul.mubr.bf16.gmra.mrb[28].mxu0 %v15363_v54 }
 0x1f2   :  { %12333 = vmatprep.mubr.bf16.mxu0 %v15154_v11  ;;  %v2257_v11 = vld [vmem:[#allocation2 + $0x31] sm:$0xff] }
 0x1f9   :  { %12334 = vmatmul.mubr.bf16.gmra.mrb[32].mxu0 %v15156_v12  ;;  %v2258_v12 = vld [vmem:[#allocation2 + $0x39] sm:$0xff] }
 0x1fa   :  { %12337 = vmatprep.mubr.bf16.mxu0 %v15160_v18  ;;  %v2259_v18 = vld [vmem:[#allocation2 + $0x49] sm:$0xff] }
 0x201   :  { %12338 = vmatmul.mubr.bf16.gmra.mrb[36].mxu0 %v15162_v19  ;;  %v2260_v19 = vld [vmem:[#allocation2 + $0x51] sm:$0xff] }
 0x202   :  { %12341 = vmatprep.mubr.bf16.mxu0 %v15166_v25  ;;  %v15384_v25 = vpack.c.bf16 %v2258_v12, %v2257_v11  ;;  %v2277_v11 = vld [vmem:[#allocation2 + $0x121] sm:$0xff]  ;;  %v2278_v12 = vld [vmem:[#allocation2 + $0x129] sm:$0xff] }
 0x209   :  { %12342 = vmatmul.mubr.bf16.gmra.mrb[40].mxu0 %v15168_v26  ;;  %v15386_v26 = vpack.c.bf16 %v2260_v19, %v2259_v18  ;;  %v2279_v18 = vld [vmem:[#allocation2 + $0x139] sm:$0xff]  ;;  %v2280_v19 = vld [vmem:[#allocation2 + $0x141] sm:$0xff] }
 0x20a   :  { %12345 = vmatprep.mubr.bf16.mxu0 %v15172_v33  ;;  %v14581_v33 = vld [vmem:[%s19091_s1 + $0x148] sm:$0xff]  }
 0x211   :  { %12346 = vmatmul.mubr.bf16.gmra.mrb[44].mxu0 %v15174_v34  ;;  %v2261_v34 = vld [vmem:[#allocation2 + $0x61] sm:$0xff] }
 0x212   :  { %12349 = vmatprep.mubr.bf16.mxu0 %v15178_v41  ;;  %v2262_v41 = vld [vmem:[#allocation2 + $0x69] sm:$0xff] }
 0x219   :  { %12350 = vmatmul.mubr.bf16.gmra.mrb[48].mxu0 %v15180_v42  ;;  %v2263_v42 = vld [vmem:[#allocation2 + $0x79] sm:$0xff] }
 0x21a   :  { %12353 = vmatprep.mubr.bf16.mxu0 %v15184_v49  ;;  %v2264_v49 = vld [vmem:[#allocation2 + $0x81] sm:$0xff] }
 0x221   :  { %12354 = vmatmul.mubr.bf16.gmra.mrb[52].mxu0 %v15186_v50  ;;  %v14582_v50 = vld [vmem:[%s19091_s1 + $0x150] sm:$0xff]  }
 0x222   :  { %12357 = vmatprep.mubr.bf16.mxu0 %v15190_v58  ;;  %v15396_v58 = vpack.c.bf16 %v2262_v41, %v2261_v34  ;;  %v15443_v34 = vpack.c.bf16 %v2280_v19, %v2279_v18  ;;  %v2281_v41 = vld [vmem:[#allocation2 + $0x151] sm:$0xff]  ;;  %v2298_v18 = vld [vmem:[#allocation2 + $0x249] sm:$0xff]  ;;  %v2299_v19 = vld [vmem:[#allocation2 + $0x259] sm:$0xff] }
 0x229   :  { %12358 = vmatmul.mubr.bf16.gmra.mrb[56].mxu0 %v15192_v59  ;;  %v15398_v59 = vpack.c.bf16 %v2264_v49, %v2263_v42  ;;  %v2282_v42 = vld [vmem:[#allocation2 + $0x159] sm:$0xff]  ;;  %v2283_v49 = vld [vmem:[#allocation2 + $0x169] sm:$0xff] }
 0x22a   :  { %12361 = vmatprep.mubr.bf16.mxu0 %v15196_v4  ;;  %v14583_v4 = vld [vmem:[%s19091_s1 + $0x158] sm:$0xff]  }
 0x231   :  { %12362 = vmatmul.mubr.bf16.gmra.mrb[60].mxu0 %v15381_v3 }
 0x232   :  { %12381 = vmatprep.mubr.bf16.mxu0 %v2319_v6  ;;  %v15436_v6 = vpack.c.bf16 %v2276_v60, %v2275_v55  ;;  %v2296_v55 = vld [vmem:[#allocation2 + $0x231] sm:$0xff] }
 0x239   :  { %12382 = vmatmul.mubr.bf16.vlgmr.msra.gmra.mrb[0].mxu0 %v15384_v25 }
 0x23a   :  { %12446 = vmatpush3.bf16.msra.mxu0 %v14580_v39  ;;  %12385 = vmatprep.mubr.bf16.mxu0 %v15386_v26  ;;  %v14588_v39 = vld [vmem:[%s19091_s1 + $0x178] sm:$0xff]  }
 0x23b   :  { %12447 = vmatprep.subr.bf16.mxu0 %v14581_v33 }
 0x23e   :  { %12448 = vmatpush3.bf16.msra.mxu0 %v14581_v33  ;;  %v15441_v33 = vpack.c.bf16 %v2278_v12, %v2277_v11  ;;  %v15464_v11 = vpack.c.bf16 %v2296_v55, %v2295_v47  ;;  %v2297_v12 = vld [vmem:[#allocation2 + $0x241] sm:$0xff]  ;;  %v2309_v55 = vld [vmem:[#allocation2 + $0x2d1] sm:$0xff] }
 0x23f   :  { %12449 = vmatprep.subr.bf16.mxu0 %v14582_v50 }
 0x241   :  { %12386 = vmatmul.mubr.bf16.gmra.mrb[4].mxu0 %v15396_v58 }
 0x242   :  { %12389 = vmatprep.mubr.bf16.mxu0 %v15398_v59  ;;  %12450 = vmatpush3.bf16.msra.mxu0 %v14582_v50  ;;  %v2284_v50 = vld [vmem:[#allocation2 + $0x171] sm:$0xff] }
 0x243   :  { %12451 = vmatprep.subr.bf16.mxu0 %v14583_v4  ;;  %v15449_v8 = vpack.c.bf16 %v2284_v50, %v2283_v49  ;;  %v2301_v50 = vld [vmem:[#allocation2 + $0x271] sm:$0xff] }
 0x246   :  { %12452 = vmatpush3.bf16.msra.mxu0 %v14583_v4  ;;  %v15447_v4 = vpack.c.bf16 %v2282_v42, %v2281_v41  ;;  %v2300_v41 = vld [vmem:[#allocation2 + $0x261] sm:$0xff]  ;;  %v15468_v42 = vpack.c.bf16 %v2298_v18, %v2297_v12  ;;  %v2310_v12 = vld [vmem:[#allocation2 + $0x2d9] sm:$0xff]  ;;  %v2311_v18 = vld [vmem:[#allocation2 + $0x2e9] sm:$0xff] }
 0x247   :  { %12453 = vmatprep.subr.bf16.mxu0 %v14585_v45  ;;  %v15470_v49 = vpack.c.bf16 %v2300_v41, %v2299_v19  ;;  %v2312_v19 = vld [vmem:[#allocation2 + $0x2f1] sm:$0xff]  ;;  %v15486_v41 = vpack.c.bf16 %v2310_v12, %v2309_v55  ;;  %v14591_v55 = vld [vmem:[%s19091_s1 + $0x188] sm:$0xff]  }
 0x248   :  { %v14592_v12 = vld [vmem:[%s19091_s1 + $0x190] sm:$0xff]  }
 0x249   :  { %12390 = vmatmul.mubr.bf16.gmra.mrb[8].mxu0 %v15408_v51 }
 0x24a   :  { %12393 = vmatprep.mubr.bf16.mxu0 %v15410_v7  ;;  %12454 = vmatpush3.bf16.msra.mxu0 %v14585_v45  ;;  %v2335_v45 = vpack.c.bf16 %v2288_v32, %v2287_v29  ;;  %v2302_v29 = vld [vmem:[#allocation2 + $0x279] sm:$0xff]  ;;  %v2303_v32 = vld [vmem:[#allocation2 + $0x289] sm:$0xff] }
 0x24b   :  { %12455 = vmatprep.subr.bf16.mxu0 %v14586_v15 }
 0x24e   :  { %12456 = vmatpush3.bf16.msra.mxu0 %v14586_v15  ;;  %v2289_v15 = vld [vmem:[#allocation2 + $0x1e1] sm:$0xff] }
 0x24f   :  { %12457 = vmatprep.subr.bf16.mxu0 %v14587_v30  ;;  %v15456_v23 = vpack.c.bf16 %v2290_v56, %v2289_v15  ;;  %v2305_v56 = vld [vmem:[#allocation2 + $0x2a1] sm:$0xff] }
 0x251   :  { %12394 = vmatmul.mubr.bf16.gmra.mrb[12].mxu0 %v15420_v31 }
 0x252   :  { %12397 = vmatprep.mubr.bf16.mxu0 %v15422_v38  ;;  %12458 = vmatpush3.bf16.msra.mxu0 %v14587_v30  ;;  %v15458_v30 = vpack.c.bf16 %v2292_v22, %v2291_v63  ;;  %v2306_v63 = vld [vmem:[#allocation2 + $0x2a9] sm:$0xff]  ;;  %v2307_v22 = vld [vmem:[#allocation2 + $0x2b9] sm:$0xff] }
 0x253   :  { %12459 = vmatprep.subr.bf16.mxu0 %v14588_v39 }
 0x256   :  { %12460 = vmatpush3.bf16.msra.mxu0 %v14588_v39  ;;  %v2293_v39 = vld [vmem:[#allocation2 + $0x211] sm:$0xff] }
 0x257   :  { %12525 = vmatprep.subr.bf16.mxu0 %v15432_v61  ;;  %v15462_v60 = vpack.c.bf16 %v2294_v46, %v2293_v39  ;;  %v2308_v39 = vld [vmem:[#allocation2 + $0x2c1] sm:$0xff]  ;;  %v15480_v46 = vpack.c.bf16 %v2306_v63, %v2305_v56 }
 0x258   :  { %v15482_v47 = vpack.c.bf16 %v2308_v39, %v2307_v22  ;;  %v2316_v56 = vld [vmem:[#allocation2 + $0x321] sm:$0xff]  ;;  %v14589_v39 = vld [vmem:[%s19092_s0 + $0xf8] sm:$0xff] }
 0x259   :  { %12398 = vmatmul.mubr.bf16.gmra.mrb[16].mxu0 %v15434_v2 }
 0x25a   :  { %12401 = vmatprep.mubr.bf16.mxu0 %v15436_v6 }
 0x261   :  { %12402 = vmatmul.mubr.bf16.gmra.mrb[20].mxu0 %v15441_v33 }
 0x262   :  { %12405 = vmatprep.mubr.bf16.mxu0 %v15443_v34 }
 0x269   :  { %12406 = vmatmul.mubr.bf16.gmra.mrb[24].mxu0 %v15447_v4 }
 0x26a   :  { %12409 = vmatprep.mubr.bf16.mxu0 %v15449_v8 }
 0x271   :  { %12410 = vmatmul.mubr.bf16.gmra.mrb[28].mxu0 %v14584_v35  ;;  %v2304_v35 = vld [vmem:[#allocation2 + $0x291] sm:$0xff] }
 0x272   :  { %12413 = vmatprep.mubr.bf16.mxu0 %v2335_v45  ;;  %v15474_v45 = vpack.c.bf16 %v2302_v29, %v2301_v50  ;;  %v15476_v15 = vpack.c.bf16 %v2304_v35, %v2303_v32  ;;  %v15488_v50 = vpack.c.bf16 %v2312_v19, %v2311_v18  ;;  %v2313_v29 = vld [vmem:[#allocation2 + $0x301] sm:$0xff]  ;;  %v2314_v32 = vld [vmem:[#allocation2 + $0x309] sm:$0xff]  ;;  %v2315_v35 = vld [vmem:[#allocation2 + $0x319] sm:$0xff] }
 0x273   :  { %v15492_v63 = vpack.c.bf16 %v2314_v32, %v2313_v29  ;;  %v15494_v22 = vpack.c.bf16 %v2316_v56, %v2315_v35  ;;  %v3286_v19 = vld [vmem:[#allocation2 + $0x48] sm:$0xff]  ;;  %v3288_v29 = vld [vmem:[#allocation2 + $0x60] sm:$0xff]  ;;  %v3292_v56 = vld [vmem:[#allocation2 + $0x90] sm:$0xff] }
 0x274   :  { %v3291_v35 = vld [vmem:[#allocation2 + $0x80] sm:$0xff] }
 0x279   :  { %12414 = vmatmul.mubr.bf16.gmra.mrb[32].mxu0 %v15456_v23 }
 0x27a   :  { %12417 = vmatprep.mubr.bf16.mxu0 %v15458_v30 }
 0x281   :  { %12418 = vmatmul.mubr.bf16.gmra.mrb[36].mxu0 %v15462_v60 }
 0x282   :  { %12421 = vmatprep.mubr.bf16.mxu0 %v15464_v11 }
 0x289   :  { %12422 = vmatmul.mubr.bf16.gmra.mrb[40].mxu0 %v15468_v42 }
 0x28a   :  { %12425 = vmatprep.mubr.bf16.mxu0 %v15470_v49 }
 0x291   :  { %12426 = vmatmul.mubr.bf16.gmra.mrb[44].mxu0 %v15474_v45 }
 0x292   :  { %12429 = vmatprep.mubr.bf16.mxu0 %v15476_v15 }
 0x299   :  { %12430 = vmatmul.mubr.bf16.gmra.mrb[48].mxu0 %v15480_v46 }
 0x29a   :  { %12433 = vmatprep.mubr.bf16.mxu0 %v15482_v47 }
 0x2a1   :  { %12434 = vmatmul.mubr.bf16.gmra.mrb[52].mxu0 %v15486_v41 }
 0x2a2   :  { %12437 = vmatprep.mubr.bf16.mxu0 %v15488_v50 }
 0x2a9   :  { %12438 = vmatmul.mubr.bf16.gmra.mrb[56].mxu0 %v15492_v63 }
 0x2aa   :  { %12441 = vmatprep.mubr.bf16.mxu0 %v15494_v22 }
 0x2b1   :  { %12442 = vmatmul.mubr.bf16.gmra.mrb[60].mxu0 %v14589_v39  ;;  %v3293_v39 = vld [vmem:[#allocation2 + $0x98] sm:$0xff] }
 0x2b2   :  { %12461 = vmatprep.mubr.bf16.mxu0 %v15199_v13  ;;  %v14593_v13 = vld [vmem:[%s19091_s1 + $0x198] sm:$0xff]  }
 0x2b9   :  { %12462 = vmatmul.mubr.bf16.vlgmr.msra.gmra.mrb[0].mxu0 %v15201_v14  ;;  %v14594_v14 = vld [vmem:[%s19091_s1 + $0x1a0] sm:$0xff]  }
 0x2ba   :  { %12526 = vmatpush3.bf16.msra.mxu0 %v15432_v61  ;;  %12465 = vmatprep.mubr.bf16.mxu0 %v15212_v27  ;;  %v14595_v27 = vld [vmem:[%s19091_s1 + $0x1a8] sm:$0xff]  }
 0x2bb   :  { %12527 = vmatprep.subr.bf16.mxu0 %v14591_v55 }
 0x2be   :  { %12528 = vmatpush3.bf16.msra.mxu0 %v14591_v55  ;;  %v14600_v55 = vld [vmem:[%s19091_s1 + $0x1d0] sm:$0xff]  }
 0x2bf   :  { %12529 = vmatprep.subr.bf16.mxu0 %v14592_v12 }
 0x2c1   :  { %12466 = vmatmul.mubr.bf16.gmra.mrb[4].mxu0 %v15214_v28  ;;  %v14596_v28 = vld [vmem:[%s19091_s1 + $0x1b0] sm:$0xff]  }
 0x2c2   :  { %12469 = vmatprep.mubr.bf16.mxu0 %v15224_v40  ;;  %12530 = vmatpush3.bf16.msra.mxu0 %v14592_v12  ;;  %v14597_v40 = vld [vmem:[%s19091_s1 + $0x1b8] sm:$0xff]  }
 0x2c3   :  { %12531 = vmatprep.subr.bf16.mxu0 %v14593_v13 }
 0x2c6   :  { %12532 = vmatpush3.bf16.msra.mxu0 %v14593_v13  ;;  %v3352_v13 = vpack.c.bf16 %v3293_v39, %v3292_v56  ;;  %v3309_v56 = vld [vmem:[#allocation2 + $0x158] sm:$0xff] }
 0x2c7   :  { %12533 = vmatprep.subr.bf16.mxu0 %v14594_v14 }
 0x2c9   :  { %12470 = vmatmul.mubr.bf16.gmra.mrb[8].mxu0 %v15226_v43  ;;  %v14598_v43 = vld [vmem:[%s19091_s1 + $0x1c0] sm:$0xff]  }
 0x2ca   :  { %12473 = vmatprep.mubr.bf16.mxu0 %v15236_v57  ;;  %12534 = vmatpush3.bf16.msra.mxu0 %v14594_v14  ;;  %v2799_v57 = vld [vmem:[#allocation2 + $0x182] sm:$0xff]  ;;  %v14601_v14 = vld [vmem:[%s19091_s1 + $0x1d8] sm:$0xff]  }
 0x2cb   :  { %12535 = vmatprep.subr.bf16.mxu0 %v14595_v27 }
 0x2ce   :  { %12536 = vmatpush3.bf16.msra.mxu0 %v14595_v27  ;;  %v3294_v27 = vld [vmem:[#allocation2 + $0xa8] sm:$0xff] }
 0x2cf   :  { %12537 = vmatprep.subr.bf16.mxu0 %v14596_v28 }
 0x2d1   :  { %12474 = vmatmul.mubr.bf16.gmra.mrb[12].mxu0 %v15238_v62  ;;  %v2800_v62 = vld [vmem:[#allocation2 + $0x18a] sm:$0xff] }
 0x2d2   :  { %12477 = vmatprep.mubr.bf16.mxu0 %v15250_v9  ;;  %12538 = vmatpush3.bf16.msra.mxu0 %v14596_v28  ;;  %v15541_v9 = vpack.c.bf16 %v2800_v62, %v2799_v57  ;;  %v3295_v28 = vld [vmem:[#allocation2 + $0xb0] sm:$0xff]  ;;  %v14602_v57 = vld [vmem:[%s19091_s1 + $0x1e0] sm:$0xff]  }
 0x2d3   :  { %12539 = vmatprep.subr.bf16.mxu0 %v14597_v40  ;;  %v3353_v62 = vpack.c.bf16 %v3295_v28, %v3294_v27  ;;  %v3316_v27 = vld [vmem:[#allocation2 + $0x1e0] sm:$0xff]  ;;  %v3317_v28 = vld [vmem:[#allocation2 + $0x1e8] sm:$0xff] }
 0x2d6   :  { %12540 = vmatpush3.bf16.msra.mxu0 %v14597_v40  ;;  %v3296_v40 = vld [vmem:[#allocation2 + $0xc0] sm:$0xff] }
 0x2d7   :  { %12605 = vmatprep.subr.bf16.mxu0 %v14598_v43 }
 0x2d9   :  { %12478 = vmatmul.mubr.bf16.gmra.mrb[16].mxu0 %v15252_v10  ;;  %v19291_v10 = vld [vmem:[#allocation3_spill] sm:$0xff] }
 0x2da   :  { %12481 = vmatprep.mubr.bf16.mxu0 %v15257_v21  ;;  %v19292_v21 = vld [vmem:[#allocation4_spill] sm:$0xff] }
 0x2e1   :  { %12482 = vmatmul.mubr.bf16.gmra.mrb[20].mxu0 %v15259_v24  ;;  %v19293_v24 = vld [vmem:[#allocation5_spill] sm:$0xff] }
 0x2e2   :  { %12485 = vmatprep.mubr.bf16.mxu0 %v15266_v37  ;;  %v19294_v37 = vld [vmem:[#allocation6_spill] sm:$0xff] }
 0x2e9   :  { %12486 = vmatmul.mubr.bf16.gmra.mrb[24].mxu0 %v15268_v48  ;;  %v19295_v48 = vld [vmem:[#allocation7_spill] sm:$0xff] }
 0x2ea   :  { %12489 = vmatprep.mubr.bf16.mxu0 %v15272_v0  ;;  %v19296_v0 = vld [vmem:[#allocation8_spill] sm:$0xff] }
 0x2f1   :  { %12490 = vmatmul.mubr.bf16.gmra.mrb[28].mxu0 %v15541_v9 }
 0x2f2   :  { %12493 = vmatprep.mubr.bf16.mxu0 %v15275_v17  ;;  %v2831_v17 = vld [vmem:[#allocation2 + $0x332] sm:$0xff] }
 0x2f9   :  { %12494 = vmatmul.mubr.bf16.gmra.mrb[32].mxu0 %v15277_v20  ;;  %v2832_v20 = vld [vmem:[#allocation2 + $0x33a] sm:$0xff] }
 0x2fa   :  { %12497 = vmatprep.mubr.bf16.mxu0 %v15281_v36  ;;  %v3284_v36 = vld [vmem:[#allocation2 + $0x30] sm:$0xff]  ;;  %v15559_v61 = vpack.c.bf16 %v2832_v20, %v2831_v17 }
 0x2fb   :  { %v14604_v17 = vld [vmem:[%s19091_s1 + $0x1f0] sm:$0xff]  }
 0x301   :  { %12498 = vmatmul.mubr.bf16.gmra.mrb[36].mxu0 %v15283_v44  ;;  %v3285_v44 = vld [vmem:[#allocation2 + $0x38] sm:$0xff] }
 0x302   :  { %12501 = vmatprep.mubr.bf16.mxu0 %v19291_v10  ;;  %v3348_v18 = vpack.c.bf16 %v3285_v44, %v3284_v36  ;;  %v14605_v44 = vld [vmem:[%s19091_s1 + $0x1f8] sm:$0xff]  }
 0x309   :  { %12502 = vmatmul.mubr.bf16.gmra.mrb[40].mxu0 %v19292_v21  ;;  %v14603_v21 = vld [vmem:[%s19091_s1 + $0x1e8] sm:$0xff]  }
 0x30a   :  { %12505 = vmatprep.mubr.bf16.mxu0 %v19293_v24  ;;  %v3298_v24 = vld [vmem:[#allocation2 + $0xd8] sm:$0xff] }
 0x311   :  { %12506 = vmatmul.mubr.bf16.gmra.mrb[44].mxu0 %v19294_v37  ;;  %v3299_v37 = vld [vmem:[#allocation2 + $0xe0] sm:$0xff] }
 0x312   :  { %12509 = vmatprep.mubr.bf16.mxu0 %v19295_v48  ;;  %v3300_v48 = vld [vmem:[#allocation2 + $0xf0] sm:$0xff]  ;;  %v3355_v20 = vpack.c.bf16 %v3299_v37, %v3298_v24  ;;  %v3321_v24 = vld [vmem:[#allocation2 + $0x218] sm:$0xff] }
 0x319   :  { %12510 = vmatmul.mubr.bf16.gmra.mrb[48].mxu0 %v19296_v0  ;;  %v3301_v0 = vld [vmem:[#allocation2 + $0xf8] sm:$0xff] }
 0x31a   :  { %12513 = vmatprep.mubr.bf16.mxu0 %v15305_v1  ;;  %v3287_v1 = vld [vmem:[#allocation2 + $0x50] sm:$0xff]  ;;  %v3356_v36 = vpack.c.bf16 %v3301_v0, %v3300_v48  ;;  %v3322_v0 = vld [vmem:[#allocation2 + $0x228] sm:$0xff] }
 0x31b   :  { %v3349_v32 = vpack.c.bf16 %v3287_v1, %v3286_v19  ;;  %v3303_v19 = vld [vmem:[#allocation2 + $0x110] sm:$0xff]  ;;  %v3304_v1 = vld [vmem:[#allocation2 + $0x120] sm:$0xff] }
 0x321   :  { %12514 = vmatmul.mubr.bf16.gmra.mrb[52].mxu0 %v15307_v53  ;;  %v3289_v53 = vld [vmem:[#allocation2 + $0x68] sm:$0xff] }
 0x322   :  { %12517 = vmatprep.mubr.bf16.mxu0 %v15314_v52  ;;  %v3350_v52 = vpack.c.bf16 %v3289_v53, %v3288_v29  ;;  %v3305_v29 = vld [vmem:[#allocation2 + $0x128] sm:$0xff]  ;;  %v15586_v53 = vld [vmem:[%s19091_s1 + $0x200] sm:$0xff]  }
 0x329   :  { %12518 = vmatmul.mubr.bf16.gmra.mrb[56].mxu0 %v15316_v5  ;;  %v14599_v5 = vld [vmem:[%s19091_s1 + $0x1c8] sm:$0xff]  }
 0x32a   :  { %12521 = vmatprep.mubr.bf16.mxu0 %v15320_v16  ;;  %v3290_v16 = vld [vmem:[#allocation2 + $0x78] sm:$0xff] }
 0x32b   :  { %v3351_v12 = vpack.c.bf16 %v3291_v35, %v3290_v16  ;;  %v3307_v16 = vld [vmem:[#allocation2 + $0x140] sm:$0xff]  ;;  %v3308_v35 = vld [vmem:[#allocation2 + $0x150] sm:$0xff] }
 0x331   :  { %12522 = vmatmul.mubr.bf16.gmra.mrb[60].mxu0 %v15559_v61 }
 0x332   :  { %12541 = vmatprep.mubr.bf16.mxu0 %v3348_v18  ;;  %v3302_v18 = vld [vmem:[#allocation2 + $0x108] sm:$0xff] }
 0x339   :  { %12542 = vmatmul.mubr.bf16.vlgmr.msra.gmra.mrb[0].mxu0 %v3349_v32  ;;  %v3357_v32 = vpack.c.bf16 %v3303_v19, %v3302_v18  ;;  %v3326_v18 = vld [vmem:[#allocation2 + $0x258] sm:$0xff]  ;;  %v3327_v19 = vld [vmem:[#allocation2 + $0x260] sm:$0xff] }
 0x33a   :  { %12606 = vmatpush3.bf16.msra.mxu0 %v14598_v43  ;;  %12545 = vmatprep.mubr.bf16.mxu0 %v3350_v52  ;;  %v3297_v43 = vld [vmem:[#allocation2 + $0xc8] sm:$0xff]  ;;  %v3358_v52 = vpack.c.bf16 %v3305_v29, %v3304_v1  ;;  %v3328_v1 = vld [vmem:[#allocation2 + $0x270] sm:$0xff]  ;;  %v3329_v29 = vld [vmem:[#allocation2 + $0x278] sm:$0xff] }
 0x33b   :  { %12607 = vmatprep.subr.bf16.mxu0 %v14599_v5  ;;  %v3354_v10 = vpack.c.bf16 %v3297_v43, %v3296_v40  ;;  %v14691_v40 = vld [vmem:[#allocation2] sm:$0xff] }
 0x33c   :  { %v3363_v43 = vpack.c.bf16 %v14691_v40, %v14691_v40 }
 0x33e   :  { %12608 = vmatpush3.bf16.msra.mxu0 %v14599_v5  ;;  %v3306_v5 = vld [vmem:[#allocation2 + $0x138] sm:$0xff] }
 0x33f   :  { %12609 = vmatprep.subr.bf16.mxu0 %v14600_v55  ;;  %v3359_v39 = vpack.c.bf16 %v3307_v16, %v3306_v5  ;;  %v3330_v5 = vld [vmem:[#allocation2 + $0x288] sm:$0xff]  ;;  %v3331_v16 = vld [vmem:[#allocation2 + $0x290] sm:$0xff] }
 0x341   :  { %12546 = vmatmul.mubr.bf16.gmra.mrb[4].mxu0 %v3351_v12  ;;  %v3310_v12 = vld [vmem:[#allocation2 + $0x168] sm:$0xff] }
 0x342   :  { %12549 = vmatprep.mubr.bf16.mxu0 %v3352_v13  ;;  %12610 = vmatpush3.bf16.msra.mxu0 %v14600_v55  ;;  %v3360_v55 = vpack.c.bf16 %v3309_v56, %v3308_v35  ;;  %v3311_v13 = vld [vmem:[#allocation2 + $0x170] sm:$0xff]  ;;  %v3332_v35 = vld [vmem:[#allocation2 + $0x2a0] sm:$0xff]  ;;  %v3333_v56 = vld [vmem:[#allocation2 + $0x2a8] sm:$0xff] }
 0x343   :  { %12611 = vmatprep.subr.bf16.mxu0 %v14601_v14 }
 0x346   :  { %12612 = vmatpush3.bf16.msra.mxu0 %v14601_v14  ;;  %v3361_v14 = vpack.c.bf16 %v3311_v13, %v3310_v12  ;;  %v3334_v12 = vld [vmem:[#allocation2 + $0x2b8] sm:$0xff]  ;;  %v3335_v13 = vld [vmem:[#allocation2 + $0x2c0] sm:$0xff] }
 0x347   :  { %12613 = vmatprep.subr.bf16.mxu0 %v14602_v57 }
 0x349   :  { %12550 = vmatmul.mubr.bf16.gmra.mrb[8].mxu0 %v3353_v62  ;;  %v3318_v62 = vld [vmem:[#allocation2 + $0x1f8] sm:$0xff] }
 0x34a   :  { %12553 = vmatprep.mubr.bf16.mxu0 %v3354_v10  ;;  %12614 = vmatpush3.bf16.msra.mxu0 %v14602_v57  ;;  %v3364_v57 = vpack.c.bf16 %v3317_v28, %v3316_v27  ;;  %v3319_v10 = vld [vmem:[#allocation2 + $0x200] sm:$0xff]  ;;  %v3337_v27 = vld [vmem:[#allocation2 + $0x2d8] sm:$0xff]  ;;  %v3373_v28 = vpack.c.bf16 %v3335_v13, %v3334_v12 }
 0x34b   :  { %12615 = vmatprep.subr.bf16.mxu0 %v14603_v21  ;;  %v3365_v37 = vpack.c.bf16 %v3319_v10, %v3318_v62  ;;  %v3339_v62 = vld [vmem:[#allocation2 + $0x2f0] sm:$0xff]  ;;  %v3340_v10 = vld [vmem:[#allocation2 + $0x300] sm:$0xff] }
 0x34c   :  { %v4331_v12 = vld [vmem:[#allocation2 + $0x112] sm:$0xff]  ;;  %v4332_v13 = vld [vmem:[#allocation2 + $0x122] sm:$0xff] }
 0x34e   :  { %12616 = vmatpush3.bf16.msra.mxu0 %v14603_v21  ;;  %v3320_v21 = vld [vmem:[#allocation2 + $0x210] sm:$0xff] }
 0x34f   :  { %12617 = vmatprep.subr.bf16.mxu0 %v14604_v17  ;;  %v3366_v48 = vpack.c.bf16 %v3321_v24, %v3320_v21  ;;  %v3341_v21 = vld [vmem:[#allocation2 + $0x308] sm:$0xff] }
 0x351   :  { %12554 = vmatmul.mubr.bf16.gmra.mrb[12].mxu0 %v3355_v20  ;;  %v3324_v20 = vld [vmem:[#allocation2 + $0x240] sm:$0xff] }
 0x352   :  { %12557 = vmatprep.mubr.bf16.mxu0 %v3356_v36  ;;  %12618 = vmatpush3.bf16.msra.mxu0 %v14604_v17  ;;  %v3323_v17 = vld [vmem:[#allocation2 + $0x230] sm:$0xff]  ;;  %v3325_v36 = vld [vmem:[#allocation2 + $0x248] sm:$0xff] }
 0x353   :  { %12619 = vmatprep.subr.bf16.mxu0 %v14605_v44 }
 0x356   :  { %12620 = vmatpush3.bf16.msra.mxu0 %v14605_v44  ;;  %v3368_v44 = vpack.c.bf16 %v3325_v36, %v3324_v20  ;;  %v14607_v20 = vld [vmem:[%s19091_s1 + $0x208] sm:$0xff]   ;;  %v14608_v36 = vld [vmem:[%s19091_s1 + $0x210] sm:$0xff]  }
 0x357   :  { %12685 = vmatprep.subr.bf16.mxu0 %v15586_v53 }
 0x359   :  { %12558 = vmatmul.mubr.bf16.gmra.mrb[16].mxu0 %v3357_v32  ;;  %v3369_v32 = vpack.c.bf16 %v3327_v19, %v3326_v18  ;;  %v4323_v18 = vld [vmem:[#allocation2 + $0xb2] sm:$0xff]  ;;  %v4324_v19 = vld [vmem:[#allocation2 + $0xc2] sm:$0xff] }
 0x35a   :  { %12561 = vmatprep.mubr.bf16.mxu0 %v3358_v52  ;;  %v3370_v52 = vpack.c.bf16 %v3329_v29, %v3328_v1  ;;  %v4325_v1 = vld [vmem:[#allocation2 + $0xca] sm:$0xff] }
 0x361   :  { %12562 = vmatmul.mubr.bf16.gmra.mrb[20].mxu0 %v3359_v39  ;;  %v3371_v39 = vpack.c.bf16 %v3331_v16, %v3330_v5  ;;  %v4327_v5 = vld [vmem:[#allocation2 + $0xe2] sm:$0xff]  ;;  %v4328_v16 = vld [vmem:[#allocation2 + $0xf2] sm:$0xff] }
 0x362   :  { %12565 = vmatprep.mubr.bf16.mxu0 %v3360_v55  ;;  %v3372_v55 = vpack.c.bf16 %v3333_v56, %v3332_v35  ;;  %v4329_v35 = vld [vmem:[#allocation2 + $0xfa] sm:$0xff] }
 0x369   :  { %12566 = vmatmul.mubr.bf16.gmra.mrb[24].mxu0 %v3361_v14  ;;  %v3336_v14 = vld [vmem:[#allocation2 + $0x2d0] sm:$0xff] }
 0x36a   :  { %12569 = vmatprep.mubr.bf16.mxu0 %v15363_v54  ;;  %v3367_v54 = vpack.c.bf16 %v3323_v17, %v3322_v0  ;;  %v3374_v40 = vpack.c.bf16 %v3337_v27, %v3336_v14  ;;  %v3343_v0 = vld [vmem:[#allocation2 + $0x320] sm:$0xff]  ;;  %v4333_v14 = vld [vmem:[#allocation2 + $0x12a] sm:$0xff] }
 0x371   :  { %12570 = vmatmul.mubr.bf16.gmra.mrb[28].mxu0 %v3363_v43 }
 0x372   :  { %12573 = vmatprep.mubr.bf16.mxu0 %v3364_v57  ;;  %v3338_v57 = vld [vmem:[#allocation2 + $0x2e8] sm:$0xff] }
 0x373   :  { %v3375_v24 = vpack.c.bf16 %v3339_v62, %v3338_v57  ;;  %v4335_v57 = vld [vmem:[#allocation2 + $0x142] sm:$0xff]  ;;  %v4336_v62 = vld [vmem:[#allocation2 + $0x152] sm:$0xff] }
 0x379   :  { %12574 = vmatmul.mubr.bf16.gmra.mrb[32].mxu0 %v3365_v37  ;;  %v3376_v37 = vpack.c.bf16 %v3341_v21, %v3340_v10  ;;  %v4337_v10 = vld [vmem:[#allocation2 + $0x15a] sm:$0xff] }
 0x37a   :  { %12577 = vmatprep.mubr.bf16.mxu0 %v3366_v48  ;;  %v3342_v48 = vld [vmem:[#allocation2 + $0x318] sm:$0xff] }
 0x37b   :  { %v3377_v17 = vpack.c.bf16 %v3343_v0, %v3342_v48  ;;  %v4339_v48 = vld [vmem:[#allocation2 + $0x172] sm:$0xff] }
 0x381   :  { %12578 = vmatmul.mubr.bf16.gmra.mrb[36].mxu0 %v3367_v54 }
 0x382   :  { %12581 = vmatprep.mubr.bf16.mxu0 %v3368_v44  ;;  %v4322_v44 = vld [vmem:[#allocation2 + $0xaa] sm:$0xff] }
 0x383   :  { %v4381_v29 = vpack.c.bf16 %v4323_v18, %v4322_v44  ;;  %v4366_v44 = vld [vmem:[#allocation2 + $0x2ea] sm:$0xff]  ;;  %v4367_v18 = vld [vmem:[#allocation2 + $0x2f2] sm:$0xff] }
 0x389   :  { %12582 = vmatmul.mubr.bf16.gmra.mrb[40].mxu0 %v3369_v32  ;;  %v4382_v32 = vpack.c.bf16 %v4325_v1, %v4324_v19  ;;  %v4368_v19 = vld [vmem:[#allocation2 + $0x302] sm:$0xff]  ;;  %v4369_v1 = vld [vmem:[#allocation2 + $0x30a] sm:$0xff] }
 0x38a   :  { %12585 = vmatprep.mubr.bf16.mxu0 %v3370_v52  ;;  %v4326_v52 = vld [vmem:[#allocation2 + $0xda] sm:$0xff] }
 0x38b   :  { %v4383_v56 = vpack.c.bf16 %v4327_v5, %v4326_v52  ;;  %v4370_v52 = vld [vmem:[#allocation2 + $0x31a] sm:$0xff]  ;;  %v4371_v5 = vld [vmem:[#allocation2 + $0x322] sm:$0xff] }
 0x391   :  { %12586 = vmatmul.mubr.bf16.gmra.mrb[44].mxu0 %v3371_v39  ;;  %v4384_v39 = vpack.c.bf16 %v4329_v35, %v4328_v16  ;;  %v4405_v16 = vpack.c.bf16 %v4371_v5, %v4370_v52  ;;  %v4374_v35 = vld [vmem:[#allocation2 + $0x34a] sm:$0xff] }
 0x392   :  { %12589 = vmatprep.mubr.bf16.mxu0 %v3372_v55  ;;  %v4330_v55 = vld [vmem:[#allocation2 + $0x10a] sm:$0xff] }
 0x393   :  { %v4385_v27 = vpack.c.bf16 %v4331_v12, %v4330_v55 }
 0x399   :  { %12590 = vmatmul.mubr.bf16.gmra.mrb[48].mxu0 %v3373_v28  ;;  %v4386_v28 = vpack.c.bf16 %v4333_v14, %v4332_v13 }
 0x39a   :  { %12593 = vmatprep.mubr.bf16.mxu0 %v3374_v40  ;;  %v4334_v40 = vld [vmem:[#allocation2 + $0x13a] sm:$0xff] }
 0x39b   :  { %v4387_v21 = vpack.c.bf16 %v4335_v57, %v4334_v40 }
 0x3a1   :  { %12594 = vmatmul.mubr.bf16.gmra.mrb[52].mxu0 %v3375_v24  ;;  %v4388_v24 = vpack.c.bf16 %v4337_v10, %v4336_v62 }
 0x3a2   :  { %12597 = vmatprep.mubr.bf16.mxu0 %v3376_v37  ;;  %v4338_v37 = vld [vmem:[#allocation2 + $0x16a] sm:$0xff] }
 0x3a3   :  { %v4389_v0 = vpack.c.bf16 %v4339_v48, %v4338_v37 }
 0x3a9   :  { %12598 = vmatmul.mubr.bf16.gmra.mrb[56].mxu0 %v3377_v17  ;;  %v4342_v17 = vld [vmem:[#allocation2 + $0x19a] sm:$0xff] }
 0x3aa   :  { %12601 = vmatprep.mubr.bf16.mxu0 %v15381_v3  ;;  %v14609_v3 = vld [vmem:[%s19091_s1 + $0x218] sm:$0xff]  }
 0x3b1   :  { %12602 = vmatmul.mubr.bf16.gmra.mrb[60].mxu0 %v3363_v43 }
 0x3b2   :  { %12621 = vmatprep.mubr.bf16.mxu0 %v15384_v25  ;;  %v14610_v25 = vld [vmem:[%s19091_s1 + $0x220] sm:$0xff]  }
 0x3b9   :  { %12622 = vmatmul.mubr.bf16.vlgmr.msra.gmra.mrb[0].mxu0 %v15386_v26  ;;  %v14611_v26 = vld [vmem:[%s19091_s1 + $0x228] sm:$0xff]  }
 0x3ba   :  { %12686 = vmatpush3.bf16.msra.mxu0 %v15586_v53  ;;  %12625 = vmatprep.mubr.bf16.mxu0 %v15396_v58  ;;  %v14612_v58 = vld [vmem:[%s19091_s1 + $0x230] sm:$0xff]   ;;  %v3829_v53 = vld [vmem:[#allocation2 + $0x1a1] sm:$0xff] }
 0x3bb   :  { %12687 = vmatprep.subr.bf16.mxu0 %v14607_v20 }
 0x3be   :  { %12688 = vmatpush3.bf16.msra.mxu0 %v14607_v20  ;;  %v4343_v20 = vld [vmem:[#allocation2 + $0x1a2] sm:$0xff] }
 0x3bf   :  { %12689 = vmatprep.subr.bf16.mxu0 %v14608_v36 }
 0x3c1   :  { %12626 = vmatmul.mubr.bf16.gmra.mrb[4].mxu0 %v15398_v59  ;;  %v14613_v59 = vld [vmem:[%s19091_s1 + $0x238] sm:$0xff]  }
 0x3c2   :  { %12629 = vmatprep.mubr.bf16.mxu0 %v15408_v51  ;;  %12690 = vmatpush3.bf16.msra.mxu0 %v14608_v36  ;;  %v3826_v51 = vld [vmem:[#allocation2 + $0x181] sm:$0xff] }
 0x3c3   :  { %12691 = vmatprep.subr.bf16.mxu0 %v14609_v3  ;;  %v4344_v36 = vld [vmem:[#allocation2 + $0x1e2] sm:$0xff] }
 0x3c6   :  { %12692 = vmatpush3.bf16.msra.mxu0 %v14609_v3  ;;  %v4345_v3 = vld [vmem:[#allocation2 + $0x1ea] sm:$0xff] }
 0x3c7   :  { %12693 = vmatprep.subr.bf16.mxu0 %v14610_v25 }
 0x3c9   :  { %12630 = vmatmul.mubr.bf16.gmra.mrb[8].mxu0 %v15410_v7  ;;  %v3827_v7 = vld [vmem:[#allocation2 + $0x189] sm:$0xff] }
 0x3ca   :  { %12633 = vmatprep.mubr.bf16.mxu0 %v15420_v31  ;;  %12694 = vmatpush3.bf16.msra.mxu0 %v14610_v25  ;;  %v3876_v31 = vpack.c.bf16 %v3827_v7, %v3826_v51  ;;  %v4391_v25 = vpack.c.bf16 %v4343_v20, %v4342_v17  ;;  %v4348_v51 = vld [vmem:[#allocation2 + $0x212] sm:$0xff]  ;;  %v4349_v7 = vld [vmem:[#allocation2 + $0x21a] sm:$0xff] }
 0x3cb   :  { %12695 = vmatprep.subr.bf16.mxu0 %v14611_v26 }
 0x3ce   :  { %12696 = vmatpush3.bf16.msra.mxu0 %v14611_v26  ;;  %v4392_v26 = vpack.c.bf16 %v4345_v3, %v4344_v36 }
 0x3cf   :  { %12697 = vmatprep.subr.bf16.mxu0 %v14612_v58 }
 0x3d1   :  { %12634 = vmatmul.mubr.bf16.gmra.mrb[12].mxu0 %v15422_v38  ;;  %v3828_v38 = vld [vmem:[#allocation2 + $0x199] sm:$0xff] }
 0x3d2   :  { %12637 = vmatprep.mubr.bf16.mxu0 %v15434_v2  ;;  %12698 = vmatpush3.bf16.msra.mxu0 %v14612_v58  ;;  %v3877_v2 = vpack.c.bf16 %v3829_v53, %v3828_v38  ;;  %v4346_v58 = vld [vmem:[#allocation2 + $0x1fa] sm:$0xff]  ;;  %v4394_v38 = vpack.c.bf16 %v4349_v7, %v4348_v51  ;;  %v4350_v53 = vld [vmem:[#allocation2 + $0x22a] sm:$0xff] }
 0x3d3   :  { %12699 = vmatprep.subr.bf16.mxu0 %v14613_v59 }
 0x3d6   :  { %12700 = vmatpush3.bf16.msra.mxu0 %v14613_v59  ;;  %v4347_v59 = vld [vmem:[#allocation2 + $0x202] sm:$0xff] }
 0x3d9   :  { %12638 = vmatmul.mubr.bf16.gmra.mrb[16].mxu0 %v15436_v6  ;;  %v3858_v6 = vld [vmem:[#allocation2 + $0x331] sm:$0xff] }
 0x3da   :  { %12641 = vmatprep.mubr.bf16.mxu0 %v15441_v33  ;;  %v3859_v33 = vld [vmem:[#allocation2 + $0x339] sm:$0xff] }
 0x3e1   :  { %12642 = vmatmul.mubr.bf16.gmra.mrb[20].mxu0 %v15443_v34  ;;  %v3892_v34 = vpack.c.bf16 %v3859_v33, %v3858_v6  ;;  %v4352_v6 = vld [vmem:[#allocation2 + $0x242] sm:$0xff] }
 0x3e2   :  { %12645 = vmatprep.mubr.bf16.mxu0 %v15447_v4  ;;  %v3860_v4 = vld [vmem:[#allocation2 + $0x349] sm:$0xff] }
 0x3e9   :  { %12646 = vmatmul.mubr.bf16.gmra.mrb[24].mxu0 %v15449_v8  ;;  %v3861_v8 = vld [vmem:[#allocation2 + $0x351] sm:$0xff] }
 0x3ea   :  { %12649 = vmatprep.mubr.bf16.mxu0 %v3876_v31  ;;  %v4393_v31 = vpack.c.bf16 %v4347_v59, %v4346_v58 }
 0x3f1   :  { %12650 = vmatmul.mubr.bf16.gmra.mrb[28].mxu0 %v3877_v2  ;;  %v4351_v2 = vld [vmem:[#allocation2 + $0x232] sm:$0xff] }
 0x3f2   :  { %12653 = vmatprep.mubr.bf16.mxu0 %v15456_v23  ;;  %v4312_v23 = vld [vmem:[#allocation2 + $0x32] sm:$0xff]  ;;  %v4395_v33 = vpack.c.bf16 %v4351_v2, %v4350_v53 }
 0x3f9   :  { %12654 = vmatmul.mubr.bf16.gmra.mrb[32].mxu0 %v15458_v30  ;;  %v4313_v30 = vld [vmem:[#allocation2 + $0x3a] sm:$0xff] }
 0x3fa   :  { %12657 = vmatprep.mubr.bf16.mxu0 %v15462_v60  ;;  %v3893_v60 = vpack.c.bf16 %v3861_v8, %v3860_v4  ;;  %v4354_v4 = vld [vmem:[#allocation2 + $0x25a] sm:$0xff]  ;;  %v4355_v8 = vld [vmem:[#allocation2 + $0x262] sm:$0xff] }
 0x401   :  { %12658 = vmatmul.mubr.bf16.gmra.mrb[36].mxu0 %v15464_v11  ;;  %v4376_v11 = vpack.c.bf16 %v4313_v30, %v4312_v23  ;;  %v4356_v23 = vld [vmem:[#allocation2 + $0x272] sm:$0xff]  ;;  %v4357_v30 = vld [vmem:[#allocation2 + $0x27a] sm:$0xff] }
 0x402   :  { %12661 = vmatprep.mubr.bf16.mxu0 %v15468_v42  ;;  %v4314_v42 = vld [vmem:[#allocation2 + $0x4a] sm:$0xff] }
 0x409   :  { %12662 = vmatmul.mubr.bf16.gmra.mrb[40].mxu0 %v15470_v49  ;;  %v4315_v49 = vld [vmem:[#allocation2 + $0x52] sm:$0xff] }
 0x40a   :  { %12665 = vmatprep.mubr.bf16.mxu0 %v15474_v45  ;;  %v4316_v45 = vld [vmem:[#allocation2 + $0x62] sm:$0xff] }
 0x411   :  { %12666 = vmatmul.mubr.bf16.gmra.mrb[44].mxu0 %v15476_v15  ;;  %v4317_v15 = vld [vmem:[#allocation2 + $0x6a] sm:$0xff] }
 0x412   :  { %12669 = vmatprep.mubr.bf16.mxu0 %v15480_v46  ;;  %v4377_v46 = vpack.c.bf16 %v4315_v49, %v4314_v42  ;;  %v4358_v42 = vld [vmem:[#allocation2 + $0x28a] sm:$0xff]  ;;  %v4359_v49 = vld [vmem:[#allocation2 + $0x292] sm:$0xff] }
 0x419   :  { %12670 = vmatmul.mubr.bf16.gmra.mrb[48].mxu0 %v15482_v47  ;;  %v4378_v47 = vpack.c.bf16 %v4317_v15, %v4316_v45  ;;  %v4360_v45 = vld [vmem:[#allocation2 + $0x2a2] sm:$0xff]  ;;  %v4361_v15 = vld [vmem:[#allocation2 + $0x2aa] sm:$0xff] }
 0x41a   :  { %12673 = vmatprep.mubr.bf16.mxu0 %v15486_v41  ;;  %v4318_v41 = vld [vmem:[#allocation2 + $0x7a] sm:$0xff] }
 0x421   :  { %12674 = vmatmul.mubr.bf16.gmra.mrb[52].mxu0 %v15488_v50  ;;  %v4319_v50 = vld [vmem:[#allocation2 + $0x82] sm:$0xff] }
 0x422   :  { %12677 = vmatprep.mubr.bf16.mxu0 %v15492_v63  ;;  %v4320_v63 = vld [vmem:[#allocation2 + $0x92] sm:$0xff]  ;;  %v4379_v43 = vpack.c.bf16 %v4319_v50, %v4318_v41  ;;  %v4362_v41 = vld [vmem:[#allocation2 + $0x2ba] sm:$0xff]  ;;  %v4363_v50 = vld [vmem:[#allocation2 + $0x2c2] sm:$0xff] }
 0x429   :  { %12678 = vmatmul.mubr.bf16.gmra.mrb[56].mxu0 %v15494_v22  ;;  %v4321_v22 = vld [vmem:[#allocation2 + $0x9a] sm:$0xff] }
 0x42a   :  { %12681 = vmatprep.mubr.bf16.mxu0 %v3892_v34  ;;  %v4380_v54 = vpack.c.bf16 %v4321_v22, %v4320_v63  ;;  %v4364_v63 = vld [vmem:[#allocation2 + $0x2d2] sm:$0xff]  ;;  %v4365_v22 = vld [vmem:[#allocation2 + $0x2da] sm:$0xff] }
 0x431   :  { %12682 = vmatmul.mubr.bf16.gmra.mrb[60].mxu0 %v3893_v60  ;;  %v4397_v60 = vpack.c.bf16 %v4355_v8, %v4354_v4 }
 0x432   :  { %12701 = vmatprep.mubr.bf16.mxu0 %v4376_v11  ;;  %v4398_v11 = vpack.c.bf16 %v4357_v30, %v4356_v23 }
 0x439   :  { %12702 = vmatmul.mubr.bf16.vlgmr.msra.gmra.mrb[0].mxu0 %v4377_v46  ;;  %v4399_v46 = vpack.c.bf16 %v4359_v49, %v4358_v42 }
 0x43a   :  { %12705 = vmatprep.mubr.bf16.mxu0 %v4378_v47  ;;  %v4400_v47 = vpack.c.bf16 %v4361_v15, %v4360_v45 }
 0x441   :  { %12706 = vmatmul.mubr.bf16.gmra.mrb[4].mxu0 %v4379_v43  ;;  %v4401_v43 = vpack.c.bf16 %v4363_v50, %v4362_v41 }
 0x442   :  { %12709 = vmatprep.mubr.bf16.mxu0 %v4380_v54  ;;  %v4402_v54 = vpack.c.bf16 %v4365_v22, %v4364_v63 }
 0x449   :  { %12710 = vmatmul.mubr.bf16.gmra.mrb[8].mxu0 %v4381_v29  ;;  %v4403_v29 = vpack.c.bf16 %v4367_v18, %v4366_v44 }
 0x44a   :  { %12713 = vmatprep.mubr.bf16.mxu0 %v4382_v32  ;;  %v4404_v32 = vpack.c.bf16 %v4369_v1, %v4368_v19 }
 0x451   :  { %12714 = vmatmul.mubr.bf16.gmra.mrb[12].mxu0 %v4383_v56  ;;  %v4375_v56 = vld [vmem:[#allocation2 + $0x352] sm:$0xff] }
 0x452   :  { %12717 = vmatprep.mubr.bf16.mxu0 %v4384_v39  ;;  %v4407_v39 = vpack.c.bf16 %v4375_v56, %v4374_v35 }
 0x459   :  { %12718 = vmatmul.mubr.bf16.gmra.mrb[16].mxu0 %v4385_v27 }
 0x45a   :  { %12721 = vmatprep.mubr.bf16.mxu0 %v4386_v28 }
 0x461   :  { %12722 = vmatmul.mubr.bf16.gmra.mrb[20].mxu0 %v4387_v21 }
 0x462   :  { %12725 = vmatprep.mubr.bf16.mxu0 %v4388_v24 }
 0x469   :  { %12726 = vmatmul.mubr.bf16.gmra.mrb[24].mxu0 %v4389_v0 }
 0x46a   :  { %12729 = vmatprep.mubr.bf16.mxu0 %v15541_v9  ;;  %v4353_v9 = vld [vmem:[#allocation2 + $0x24a] sm:$0xff] }
 0x46b   :  { %v4396_v34 = vpack.c.bf16 %v4353_v9, %v4352_v6 }
 0x471   :  { %12730 = vmatmul.mubr.bf16.gmra.mrb[28].mxu0 %v4391_v25 }
 0x472   :  { %12733 = vmatprep.mubr.bf16.mxu0 %v4392_v26 }
 0x479   :  { %12734 = vmatmul.mubr.bf16.gmra.mrb[32].mxu0 %v4393_v31 }
 0x47a   :  { %12737 = vmatprep.mubr.bf16.mxu0 %v4394_v38 }
 0x481   :  { %12738 = vmatmul.mubr.bf16.gmra.mrb[36].mxu0 %v4395_v33 }
 0x482   :  { %12741 = vmatprep.mubr.bf16.mxu0 %v4396_v34 }
 0x489   :  { %12742 = vmatmul.mubr.bf16.gmra.mrb[40].mxu0 %v4397_v60 }
 0x48a   :  { %12745 = vmatprep.mubr.bf16.mxu0 %v4398_v11 }
 0x491   :  { %12746 = vmatmul.mubr.bf16.gmra.mrb[44].mxu0 %v4399_v46 }
 0x492   :  { %12749 = vmatprep.mubr.bf16.mxu0 %v4400_v47 }
 0x499   :  { %12750 = vmatmul.mubr.bf16.gmra.mrb[48].mxu0 %v4401_v43 }
 0x49a   :  { %12753 = vmatprep.mubr.bf16.mxu0 %v4402_v54 }
 0x4a1   :  { %12754 = vmatmul.mubr.bf16.gmra.mrb[52].mxu0 %v4403_v29 }
 0x4a2   :  { %12757 = vmatprep.mubr.bf16.mxu0 %v4404_v32 }
 0x4a9   :  { %12758 = vmatmul.mubr.bf16.gmra.mrb[56].mxu0 %v4405_v16 }
 0x4aa   :  { %12761 = vmatprep.mubr.bf16.mxu0 %v15559_v61 }
 0x4b1   :  { %12762 = vmatmul.mubr.bf16.gmra.mrb[60].mxu0 %v4407_v39 }
 0x50c   :  { %v15643_v55 = vpop.f32.mrb[0].mxu0 }
 0x50d   :  { %19297 = vst [vmem:[#allocation3_spill] sm:$0xff] %v15643_v55  ;;  %v15645_v12 = vpop.f32.mrb[1].mxu0 }
 0x50e   :  { %v15647_v13 = vpop.f32.mrb[2].mxu0 }
 0x50f   :  { %19298 = vst [vmem:[#allocation4_spill] sm:$0xff] %v15647_v13  ;;  %v15649_v14 = vpop.f32.mrb[3].mxu0 }
 0x510   :  { %19299 = vst [vmem:[#allocation5_spill] sm:$0xff] %v15649_v14  ;;  %v4828_v27 = vadd.f32 %v15649_v14, %v15645_v12 }
 0x512   :  { %v4829_v28 = vadd.f32 %v15643_v55, %v4828_v27 }
 0x514   :  { %v15654_v40 = vpop.f32.mrb[4].mxu0  ;;  %v4830_v61 = vadd.f32 %v15647_v13, %v4829_v28 }
 0x515   :  { %v15657_v57 = vpop.f32.mrb[5].mxu0 }
 0x516   :  { %19300 = vst [vmem:[#allocation6_spill] sm:$0xff] %v15657_v57  ;;  %v4831_v62 = vadd.f32 %v4830_v61, %v15657_v57  ;;  %v15660_v10 = vpop.f32.mrb[6].mxu0 }
 0x517   :  { %v15662_v21 = vpop.f32.mrb[7].mxu0 }
 0x518   :  { %v4832_v24 = vadd.f32 %v4831_v62, %v15662_v21 }
 0x51a   :  { %v4833_v37 = vadd.f32 %v15654_v40, %v4832_v24 }
 0x51c   :  { %v15666_v48 = vpop.f32.mrb[8].mxu0  ;;  %v4834_v0 = vadd.f32 %v15660_v10, %v4833_v37 }
 0x51d   :  { %v15669_v17 = vpop.f32.mrb[9].mxu0 }
 0x51e   :  { %v4835_v20 = vadd.f32 %v4834_v0, %v15669_v17  ;;  %v15672_v36 = vpop.f32.mrb[10].mxu0 }
 0x51f   :  { %v15674_v3 = vpop.f32.mrb[11].mxu0 }
 0x520   :  { %v4836_v25 = vadd.f32 %v4835_v20, %v15674_v3 }
 0x522   :  { %v4837_v26 = vadd.f32 %v15666_v48, %v4836_v25 }
 0x524   :  { %v15678_v58 = vpop.f32.mrb[12].mxu0  ;;  %v4838_v59 = vadd.f32 %v15672_v36, %v4837_v26 }
 0x525   :  { %v15681_v51 = vpop.f32.mrb[13].mxu0 }
 0x526   :  { %v4839_v7 = vadd.f32 %v4838_v59, %v15681_v51  ;;  %v15684_v31 = vpop.f32.mrb[14].mxu0 }
 0x527   :  { %v15686_v38 = vpop.f32.mrb[15].mxu0 }
 0x528   :  { %v4840_v53 = vadd.f32 %v4839_v7, %v15686_v38 }
 0x52a   :  { %v4841_v2 = vadd.f32 %v15678_v58, %v4840_v53 }
 0x52c   :  { %v15690_v6 = vpop.f32.mrb[16].mxu0  ;;  %v4842_v9 = vadd.f32 %v15684_v31, %v4841_v2 }
 0x52d   :  { %v15693_v33 = vpop.f32.mrb[17].mxu0 }
 0x52e   :  { %v4843_v34 = vadd.f32 %v4842_v9, %v15693_v33  ;;  %v15696_v4 = vpop.f32.mrb[18].mxu0 }
 0x52f   :  { %v15698_v8 = vpop.f32.mrb[19].mxu0 }
 0x530   :  { %v4844_v23 = vadd.f32 %v4843_v34, %v15698_v8 }
 0x532   :  { %v4845_v30 = vadd.f32 %v15690_v6, %v4844_v23 }
 0x534   :  { %v15702_v60 = vpop.f32.mrb[20].mxu0  ;;  %v4846_v11 = vadd.f32 %v15696_v4, %v4845_v30 }
 0x535   :  { %v15705_v42 = vpop.f32.mrb[21].mxu0 }
 0x536   :  { %v4847_v49 = vadd.f32 %v4846_v11, %v15705_v42  ;;  %v15708_v45 = vpop.f32.mrb[22].mxu0 }
 0x537   :  { %v15710_v15 = vpop.f32.mrb[23].mxu0 }
 0x538   :  { %v4848_v46 = vadd.f32 %v4847_v49, %v15710_v15 }
 0x53a   :  { %v4849_v47 = vadd.f32 %v15702_v60, %v4848_v46 }
 0x53c   :  { %v15714_v41 = vpop.f32.mrb[24].mxu0  ;;  %v4850_v50 = vadd.f32 %v15708_v45, %v4849_v47 }
 0x53d   :  { %v15717_v63 = vpop.f32.mrb[25].mxu0 }
 0x53e   :  { %v4851_v22 = vadd.f32 %v4850_v50, %v15717_v63  ;;  %v15720_v43 = vpop.f32.mrb[26].mxu0 }
 0x53f   :  { %v15722_v54 = vpop.f32.mrb[27].mxu0 }
 0x540   :  { %v4852_v44 = vadd.f32 %v4851_v22, %v15722_v54 }
 0x542   :  { %v4853_v18 = vadd.f32 %v15714_v41, %v4852_v44 }
 0x544   :  { %v15726_v19 = vpop.f32.mrb[28].mxu0  ;;  %v4854_v1 = vadd.f32 %v15720_v43, %v4853_v18 }
 0x545   :  { %v15729_v29 = vpop.f32.mrb[29].mxu0 }
 0x546   :  { %v4855_v32 = vadd.f32 %v4854_v1, %v15729_v29  ;;  %v15732_v52 = vpop.f32.mrb[30].mxu0 }
 0x547   :  { %v15734_v5 = vpop.f32.mrb[31].mxu0 }
 0x548   :  { %v4856_v16 = vadd.f32 %v4855_v32, %v15734_v5 }
 0x54a   :  { %v4857_v35 = vadd.f32 %v15726_v19, %v4856_v16 }
 0x54c   :  { %v15738_v56 = vpop.f32.mrb[32].mxu0  ;;  %v4858_v39 = vadd.f32 %v15732_v52, %v4857_v35 }
 0x54d   :  { %v15741_v27 = vpop.f32.mrb[33].mxu0 }
 0x54e   :  { %v4859_v28 = vadd.f32 %v4858_v39, %v15741_v27  ;;  %v15744_v61 = vpop.f32.mrb[34].mxu0 }
 0x54f   :  { %v15746_v62 = vpop.f32.mrb[35].mxu0 }
 0x550   :  { %v4860_v24 = vadd.f32 %v4859_v28, %v15746_v62 }
 0x552   :  { %v4861_v37 = vadd.f32 %v15738_v56, %v4860_v24 }
 0x554   :  { %v15750_v0 = vpop.f32.mrb[36].mxu0  ;;  %v4862_v20 = vadd.f32 %v15744_v61, %v4861_v37 }
 0x555   :  { %v15753_v25 = vpop.f32.mrb[37].mxu0 }
 0x556   :  { %v4863_v26 = vadd.f32 %v4862_v20, %v15753_v25  ;;  %v15756_v59 = vpop.f32.mrb[38].mxu0 }
 0x557   :  { %v15758_v7 = vpop.f32.mrb[39].mxu0 }
 0x558   :  { %v4864_v53 = vadd.f32 %v4863_v26, %v15758_v7 }
 0x55a   :  { %v4865_v2 = vadd.f32 %v15750_v0, %v4864_v53 }
 0x55c   :  { %v15762_v9 = vpop.f32.mrb[40].mxu0  ;;  %v4866_v34 = vadd.f32 %v15756_v59, %v4865_v2 }
 0x55d   :  { %19301 = vst [vmem:[#allocation7_spill] sm:$0xff] %v15762_v9  ;;  %v15765_v23 = vpop.f32.mrb[41].mxu0 }
 0x55e   :  { %v4867_v30 = vadd.f32 %v4866_v34, %v15765_v23  ;;  %v15768_v11 = vpop.f32.mrb[42].mxu0 }
 0x55f   :  { %19302 = vst [vmem:[#allocation8_spill] sm:$0xff] %v15768_v11  ;;  %v15770_v49 = vpop.f32.mrb[43].mxu0 }
 0x560   :  { %v4868_v46 = vadd.f32 %v4867_v30, %v15770_v49 }
 0x562   :  { %v4869_v47 = vadd.f32 %v15762_v9, %v4868_v46 }
 0x564   :  { %v15774_v50 = vpop.f32.mrb[44].mxu0  ;;  %v4870_v22 = vadd.f32 %v15768_v11, %v4869_v47 }
 0x565   :  { %19303 = vst [vmem:[#allocation9_spill] sm:$0xff] %v15774_v50  ;;  %v15777_v44 = vpop.f32.mrb[45].mxu0 }
 0x566   :  { %19304 = vst [vmem:[#allocation10_spill] sm:$0xff] %v15777_v44  ;;  %v4871_v18 = vadd.f32 %v4870_v22, %v15777_v44  ;;  %v15780_v1 = vpop.f32.mrb[46].mxu0 }
 0x567   :  { %19305 = vst [vmem:[#allocation11_spill] sm:$0xff] %v15780_v1  ;;  %v15782_v32 = vpop.f32.mrb[47].mxu0 }
 0x568   :  { %19306 = vst [vmem:[#allocation12_spill] sm:$0xff] %v15782_v32  ;;  %v4872_v16 = vadd.f32 %v4871_v18, %v15782_v32 }
 0x56a   :  { %v4873_v35 = vadd.f32 %v15774_v50, %v4872_v16 }
 0x56c   :  { %v15786_v39 = vpop.f32.mrb[48].mxu0  ;;  %v4874_v28 = vadd.f32 %v15780_v1, %v4873_v35 }
 0x56d   :  { %19307 = vst [vmem:[#allocation13_spill] sm:$0xff] %v15786_v39  ;;  %v15789_v24 = vpop.f32.mrb[49].mxu0 }
 0x56e   :  { %19308 = vst [vmem:[#allocation14_spill] sm:$0xff] %v15789_v24  ;;  %v4875_v37 = vadd.f32 %v4874_v28, %v15789_v24  ;;  %v15792_v20 = vpop.f32.mrb[50].mxu0 }
 0x56f   :  { %19309 = vst [vmem:[#allocation15_spill] sm:$0xff] %v15792_v20  ;;  %v15794_v26 = vpop.f32.mrb[51].mxu0 }
 0x570   :  { %19310 = vst [vmem:[#allocation16_spill] sm:$0xff] %v15794_v26  ;;  %v4876_v53 = vadd.f32 %v4875_v37, %v15794_v26 }
 0x572   :  { %v4877_v2 = vadd.f32 %v15786_v39, %v4876_v53 }
 0x574   :  { %v15798_v34 = vpop.f32.mrb[52].mxu0  ;;  %v4878_v30 = vadd.f32 %v15792_v20, %v4877_v2 }
 0x575   :  { %19311 = vst [vmem:[#allocation17_spill] sm:$0xff] %v15798_v34  ;;  %v15801_v46 = vpop.f32.mrb[53].mxu0 }
 0x576   :  { %19312 = vst [vmem:[#allocation18_spill] sm:$0xff] %v15801_v46  ;;  %v4879_v47 = vadd.f32 %v4878_v30, %v15801_v46  ;;  %v15804_v22 = vpop.f32.mrb[54].mxu0 }
 0x577   :  { %19313 = vst [vmem:[#allocation19_spill] sm:$0xff] %v15804_v22  ;;  %v15806_v18 = vpop.f32.mrb[55].mxu0 }
 0x578   :  { %19314 = vst [vmem:[#allocation20_spill] sm:$0xff] %v15806_v18  ;;  %v4880_v16 = vadd.f32 %v4879_v47, %v15806_v18 }
 0x57a   :  { %v4881_v35 = vadd.f32 %v15798_v34, %v4880_v16 }
 0x57c   :  { %v15810_v28 = vpop.f32.mrb[56].mxu0  ;;  %v4882_v37 = vadd.f32 %v15804_v22, %v4881_v35 }
 0x57d   :  { %19315 = vst [vmem:[#allocation21_spill] sm:$0xff] %v15810_v28  ;;  %v15813_v53 = vpop.f32.mrb[57].mxu0 }
 0x57e   :  { %19316 = vst [vmem:[#allocation22_spill] sm:$0xff] %v15813_v53  ;;  %v4883_v2 = vadd.f32 %v4882_v37, %v15813_v53  ;;  %v15816_v20 = vpop.f32.mrb[58].mxu0 }
 0x57f   :  { %19317 = vst [vmem:[#allocation23_spill] sm:$0xff] %v15816_v20  ;;  %v15818_v39 = vpop.f32.mrb[59].mxu0 }
 0x580   :  { %19318 = vst [vmem:[#allocation24_spill] sm:$0xff] %v15818_v39  ;;  %v4884_v30 = vadd.f32 %v4883_v2, %v15818_v39 }
 0x582   :  { %v4885_v46 = vadd.f32 %v15810_v28, %v4884_v30 }
 0x584   :  { %v15822_v26 = vpop.f32.mrb[60].mxu0  ;;  %v4886_v47 = vadd.f32 %v15816_v20, %v4885_v46 }
 0x585   :  { %19319 = vst [vmem:[#allocation25_spill] sm:$0xff] %v15822_v26  ;;  %v15825_v16 = vpop.f32.mrb[61].mxu0 }
 0x586   :  { %19320 = vst [vmem:[#allocation26_spill] sm:$0xff] %v15825_v16  ;;  %v4887_v35 = vadd.f32 %v4886_v47, %v15825_v16  ;;  %v15828_v22 = vpop.f32.mrb[62].mxu0 }
 0x587   :  { %v15830_v34 = vpop.f32.mrb[63].mxu0 }
 0x588   :  { %v4888_v37 = vadd.f32 %v4887_v35, %v15830_v34 }
 0x58a   :  { %v4889_v53 = vadd.f32 %v15822_v26, %v4888_v37 }
 0x58c   :  { %v4890_v2 = vadd.f32 %v15828_v22, %v4889_v53 }
 0x58e   :  { %v4891_v39 = vrot.slane %v4890_v2, 4 }
 0x590   :  { %v4892_v30 = vadd.f32 %v4891_v39, %v4890_v2 }
 0x592   :  { %v4893_v28 = vrot.slane %v4892_v30, 2 }
 0x594   :  { %v4894_v18 = vadd.f32 %v4893_v28, %v4892_v30 }
 0x596   :  { %v4895_v24 = vrot.slane %v4894_v18, 1 }
 0x598   :  { %v4896_v46 = vadd.f32 %v4895_v24, %v4894_v18 }
 0x59a   :  { %v15835_v20 = vmul.f32 0.001953125, %v4896_v46 }
 0x59c   :  { %v4899_v47 = vsub.f32 %v15645_v12, %v15835_v20  ;;  %v4900_v16 = vsub.f32 %v15649_v14, %v15835_v20  ;;  %v4901_v35 = vsub.f32 %v15643_v55, %v15835_v20  ;;  %v4902_v39 = vsub.f32 %v15647_v13, %v15835_v20 }
 0x59d   :  { %v4903_v28 = vsub.f32 %v15657_v57, %v15835_v20  ;;  %v4904_v53 = vsub.f32 %v15662_v21, %v15835_v20  ;;  %v4905_v46 = vsub.f32 %v15654_v40, %v15835_v20  ;;  %v4907_v57 = vsub.f32 %v15669_v17, %v15835_v20 }
 0x59e   :  { %v4963_v37 = vmul.f32 %v4899_v47, %v4899_v47  ;;  %v4964_v26 = vmul.f32 %v4900_v16, %v4900_v16  ;;  %v4965_v24 = vmul.f32 %v4901_v35, %v4901_v35  ;;  %v4966_v2 = vmul.f32 %v4902_v39, %v4902_v39 }
 0x59f   :  { %v4967_v14 = vmul.f32 %v4903_v28, %v4903_v28  ;;  %v4906_v16 = vsub.f32 %v15660_v10, %v15835_v20  ;;  %v4968_v47 = vmul.f32 %v4904_v53, %v4904_v53  ;;  %v4969_v35 = vmul.f32 %v4905_v46, %v4905_v46 }
 0x5a0   :  { %v5027_v18 = vadd.f32 %v4964_v26, %v4963_v37  ;;  %v4908_v37 = vsub.f32 %v15674_v3, %v15835_v20  ;;  %v4971_v28 = vmul.f32 %v4907_v57, %v4907_v57 }
 0x5a1   :  { %v4970_v39 = vmul.f32 %v4906_v16, %v4906_v16 }
 0x5a2   :  { %v5028_v30 = vadd.f32 %v5027_v18, %v4965_v24  ;;  %v4909_v18 = vsub.f32 %v15666_v48, %v15835_v20  ;;  %v4972_v53 = vmul.f32 %v4908_v37, %v4908_v37 }
 0x5a4   :  { %v5029_v55 = vadd.f32 %v5028_v30, %v4966_v2  ;;  %v4910_v30 = vsub.f32 %v15672_v36, %v15835_v20  ;;  %v4973_v46 = vmul.f32 %v4909_v18, %v4909_v18 }
 0x5a6   :  { %v5030_v13 = vadd.f32 %v5029_v55, %v4967_v14  ;;  %v4911_v14 = vsub.f32 %v15681_v51, %v15835_v20  ;;  %v4974_v16 = vmul.f32 %v4910_v30, %v4910_v30 }
 0x5a8   :  { %v5031_v26 = vadd.f32 %v5030_v13, %v4968_v47  ;;  %v4912_v47 = vsub.f32 %v15686_v38, %v15835_v20  ;;  %v4975_v57 = vmul.f32 %v4911_v14, %v4911_v14 }
 0x5aa   :  { %v5032_v24 = vadd.f32 %v5031_v26, %v4969_v35  ;;  %v4913_v26 = vsub.f32 %v15678_v58, %v15835_v20  ;;  %v4976_v37 = vmul.f32 %v4912_v47, %v4912_v47 }
 0x5ac   :  { %v5033_v2 = vadd.f32 %v5032_v24, %v4970_v39  ;;  %v4914_v24 = vsub.f32 %v15684_v31, %v15835_v20  ;;  %v4977_v18 = vmul.f32 %v4913_v26, %v4913_v26 }
 0x5ae   :  { %v5034_v55 = vadd.f32 %v5033_v2, %v4971_v28  ;;  %v4915_v2 = vsub.f32 %v15693_v33, %v15835_v20  ;;  %v4978_v30 = vmul.f32 %v4914_v24, %v4914_v24 }
 0x5b0   :  { %v5035_v13 = vadd.f32 %v5034_v55, %v4972_v53  ;;  %v4916_v55 = vsub.f32 %v15698_v8, %v15835_v20  ;;  %v4979_v14 = vmul.f32 %v4915_v2, %v4915_v2 }
 0x5b2   :  { %v5036_v35 = vadd.f32 %v5035_v13, %v4973_v46  ;;  %v4917_v13 = vsub.f32 %v15690_v6, %v15835_v20  ;;  %v4980_v47 = vmul.f32 %v4916_v55, %v4916_v55 }
 0x5b4   :  { %v5037_v39 = vadd.f32 %v5036_v35, %v4974_v16  ;;  %v4918_v35 = vsub.f32 %v15696_v4, %v15835_v20  ;;  %v4981_v26 = vmul.f32 %v4917_v13, %v4917_v13 }
 0x5b6   :  { %v5038_v28 = vadd.f32 %v5037_v39, %v4975_v57  ;;  %v4919_v39 = vsub.f32 %v15705_v42, %v15835_v20  ;;  %v4982_v24 = vmul.f32 %v4918_v35, %v4918_v35 }
 0x5b8   :  { %v5039_v53 = vadd.f32 %v5038_v28, %v4976_v37  ;;  %v4920_v28 = vsub.f32 %v15710_v15, %v15835_v20  ;;  %v4983_v2 = vmul.f32 %v4919_v39, %v4919_v39 }
 0x5ba   :  { %v5040_v46 = vadd.f32 %v5039_v53, %v4977_v18  ;;  %v4921_v53 = vsub.f32 %v15702_v60, %v15835_v20  ;;  %v4984_v55 = vmul.f32 %v4920_v28, %v4920_v28 }
 0x5bc   :  { %v5041_v16 = vadd.f32 %v5040_v46, %v4978_v30  ;;  %v4922_v46 = vsub.f32 %v15708_v45, %v15835_v20  ;;  %v4985_v13 = vmul.f32 %v4921_v53, %v4921_v53  ;;  %v14614_v53 = vld [vmem:[%s19093_s2 + $0x40] sm:$0xff]  }
 0x5bd   :  { %12765 = vmatprep.subr.bf16.mxu1 %v14614_v53 }
 0x5be   :  { %v5042_v57 = vadd.f32 %v5041_v16, %v4979_v14  ;;  %v4923_v16 = vsub.f32 %v15717_v63, %v15835_v20  ;;  %v4986_v35 = vmul.f32 %v4922_v46, %v4922_v46  ;;  %12766 = vmatpush3.bf16.msra.mxu1 %v14614_v53 }
 0x5c0   :  { %v5043_v37 = vadd.f32 %v5042_v57, %v4980_v47  ;;  %v4924_v57 = vsub.f32 %v15722_v54, %v15835_v20  ;;  %v4987_v39 = vmul.f32 %v4923_v16, %v4923_v16 }
 0x5c2   :  { %v5044_v18 = vadd.f32 %v5043_v37, %v4981_v26  ;;  %v4925_v37 = vsub.f32 %v15714_v41, %v15835_v20  ;;  %v4988_v28 = vmul.f32 %v4924_v57, %v4924_v57  ;;  %v4929_v57 = vsub.f32 %v15726_v19, %v15835_v20 }
 0x5c4   :  { %v5045_v30 = vadd.f32 %v5044_v18, %v4982_v24  ;;  %v4926_v18 = vsub.f32 %v15720_v43, %v15835_v20 }
 0x5c6   :  { %v5046_v14 = vadd.f32 %v5045_v30, %v4983_v2  ;;  %v4927_v30 = vsub.f32 %v15729_v29, %v15835_v20  ;;  %v4990_v16 = vmul.f32 %v4926_v18, %v4926_v18  ;;  %v14616_v18 = vld [vmem:[%s19093_s2 + $0x50] sm:$0xff]  }
 0x5c8   :  { %v5047_v47 = vadd.f32 %v5046_v14, %v4984_v55  ;;  %v4989_v55 = vmul.f32 %v4925_v37, %v4925_v37  ;;  %v4928_v14 = vsub.f32 %v15734_v5, %v15835_v20  ;;  %v4930_v37 = vsub.f32 %v15732_v52, %v15835_v20 }
 0x5ca   :  { %v5048_v26 = vadd.f32 %v5047_v47, %v4985_v13  ;;  %v14615_v47 = vld [vmem:[%s19093_s2 + $0x48] sm:$0xff]  }
 0x5cb   :  { %12767 = vmatprep.subr.bf16.mxu1 %v14615_v47 }
 0x5cc   :  { %v5049_v24 = vadd.f32 %v5048_v26, %v4986_v35  ;;  %v4991_v35 = vmul.f32 %v4927_v30, %v4927_v30  ;;  %12768 = vmatpush3.bf16.msra.mxu1 %v14615_v47  ;;  %v4932_v30 = vsub.f32 %v15746_v62, %v15835_v20 }
 0x5cd   :  { %12769 = vmatprep.subr.bf16.mxu1 %v14616_v18 }
 0x5ce   :  { %v5050_v2 = vadd.f32 %v5049_v24, %v4987_v39  ;;  %v4992_v39 = vmul.f32 %v4928_v14, %v4928_v14  ;;  %v14617_v14 = vld [vmem:[%s19093_s2 + $0x58] sm:$0xff]  }
 0x5d0   :  { %v5051_v46 = vadd.f32 %v5050_v2, %v4988_v28  ;;  %v4931_v28 = vsub.f32 %v15741_v27, %v15835_v20  ;;  %v4993_v2 = vmul.f32 %v4929_v57, %v4929_v57  ;;  %12770 = vmatpush3.bf16.msra.mxu1 %v14616_v18  ;;  %v4934_v57 = vsub.f32 %v15744_v61, %v15835_v20 }
 0x5d1   :  { %12771 = vmatprep.subr.bf16.mxu1 %v14617_v14 }
 0x5d2   :  { %v5052_v13 = vadd.f32 %v5051_v46, %v4989_v55  ;;  %v4994_v55 = vmul.f32 %v4930_v37, %v4930_v37  ;;  %v14618_v37 = vld [vmem:[%s19093_s2 + $0x60] sm:$0xff]  }
 0x5d4   :  { %v5053_v26 = vadd.f32 %v5052_v13, %v4990_v16  ;;  %v4933_v16 = vsub.f32 %v15738_v56, %v15835_v20  ;;  %v4995_v13 = vmul.f32 %v4931_v28, %v4931_v28  ;;  %12772 = vmatpush3.bf16.msra.mxu1 %v14617_v14  ;;  %v4936_v28 = vsub.f32 %v15758_v7, %v15835_v20 }
 0x5d5   :  { %12773 = vmatprep.subr.bf16.mxu1 %v14618_v37 }
 0x5d6   :  { %v5054_v24 = vadd.f32 %v5053_v26, %v4991_v35  ;;  %v4996_v35 = vmul.f32 %v4932_v30, %v4932_v30  ;;  %v14619_v30 = vld [vmem:[%s19093_s2 + $0x68] sm:$0xff]  }
 0x5d8   :  { %v5055_v53 = vadd.f32 %v5054_v24, %v4992_v39  ;;  %v4935_v39 = vsub.f32 %v15753_v25, %v15835_v20  ;;  %v4997_v24 = vmul.f32 %v4933_v16, %v4933_v16  ;;  %12774 = vmatpush3.bf16.msra.mxu1 %v14618_v37  ;;  %v4938_v16 = vsub.f32 %v15756_v59, %v15835_v20 }
 0x5d9   :  { %12775 = vmatprep.subr.bf16.mxu1 %v14619_v30 }
 0x5da   :  { %v5056_v46 = vadd.f32 %v5055_v53, %v4993_v2  ;;  %v4998_v2 = vmul.f32 %v4934_v57, %v4934_v57  ;;  %v14620_v57 = vld [vmem:[%s19093_s2 + $0x70] sm:$0xff]  }
 0x5dc   :  { %v5057_v47 = vadd.f32 %v5056_v46, %v4994_v55  ;;  %v4937_v55 = vsub.f32 %v15750_v0, %v15835_v20  ;;  %v4999_v46 = vmul.f32 %v4935_v39, %v4935_v39  ;;  %12776 = vmatpush3.bf16.msra.mxu1 %v14619_v30  ;;  %v4940_v39 = vsub.f32 %v15770_v49, %v15835_v20 }
 0x5dd   :  { %12777 = vmatprep.subr.bf16.mxu1 %v14620_v57 }
 0x5de   :  { %v5058_v26 = vadd.f32 %v5057_v47, %v4995_v13  ;;  %v5000_v13 = vmul.f32 %v4936_v28, %v4936_v28  ;;  %v14621_v28 = vld [vmem:[%s19093_s2 + $0x78] sm:$0xff]  }
 0x5e0   :  { %v5059_v18 = vadd.f32 %v5058_v26, %v4996_v35  ;;  %v4939_v35 = vsub.f32 %v15765_v23, %v15835_v20  ;;  %v5001_v26 = vmul.f32 %v4937_v55, %v4937_v55  ;;  %12778 = vmatpush3.bf16.msra.mxu1 %v14620_v57  ;;  %v5483_v55 = vld [vmem:[#allocation2 + $0x9] sm:$0xff]  ;;  %v15952_v57 = vld [vmem:[%s19093_s2] sm:$0xff]  }
 0x5e1   :  { %12779 = vmatprep.subr.bf16.mxu1 %v14621_v28  ;;  %19321 = vst [vmem:[#allocation27_spill] sm:$0xff] %v15952_v57 }
 0x5e2   :  { %v5060_v53 = vadd.f32 %v5059_v18, %v4997_v24  ;;  %v5002_v24 = vmul.f32 %v4938_v16, %v4938_v16 }
 0x5e4   :  { %v5061_v14 = vadd.f32 %v5060_v53, %v4998_v2  ;;  %v4941_v2 = vsub.f32 %v15762_v9, %v15835_v20  ;;  %v5003_v53 = vmul.f32 %v4939_v35, %v4939_v35  ;;  %12780 = vmatpush3.bf16.msra.mxu1 %v14621_v28  ;;  %v4945_v28 = vsub.f32 %v15774_v50, %v15835_v20 }
 0x5e5   :  { %12845 = vmatprep.subr.bf16.mxu1 %v15952_v57  ;;  %v19323_v57 = vld [vmem:[#allocation16_spill] sm:$0xff] }
 0x5e6   :  { %v5062_v47 = vadd.f32 %v5061_v14, %v4999_v46  ;;  %v5482_v46 = vld [vmem:[#allocation2 + $0x1] sm:$0xff]  ;;  %v4942_v14 = vsub.f32 %v15768_v11, %v15835_v20  ;;  %v5005_v35 = vmul.f32 %v4941_v2, %v4941_v2  ;;  %v19322_v2 = vld [vmem:[#allocation14_spill] sm:$0xff] }
 0x5e7   :  { %v5546_v16 = vpack.c.bf16 %v5483_v55, %v5482_v46  ;;  %v4946_v46 = vsub.f32 %v15780_v1, %v15835_v20 }
 0x5e8   :  { %v5063_v37 = vadd.f32 %v5062_v47, %v5000_v13  ;;  %v5004_v13 = vmul.f32 %v4940_v39, %v4940_v39  ;;  %v5006_v39 = vmul.f32 %v4942_v14, %v4942_v14 }
 0x5e9   :  { %12781 = vmatprep.mubr.bf16.mxu1 %v5546_v16  ;;  %v5010_v14 = vmul.f32 %v4946_v46, %v4946_v46 }
 0x5ea   :  { %v5064_v18 = vadd.f32 %v5063_v37, %v5001_v26  ;;  %v4943_v26 = vsub.f32 %v15777_v44, %v15835_v20 }
 0x5ec   :  { %v5065_v30 = vadd.f32 %v5064_v18, %v5002_v24  ;;  %v4944_v24 = vsub.f32 %v15782_v32, %v15835_v20  ;;  %v4948_v32 = vsub.f32 %v19323_v57, %v15835_v20 }
 0x5ee   :  { %v5066_v47 = vadd.f32 %v5065_v30, %v5003_v53  ;;  %v5007_v53 = vmul.f32 %v4943_v26, %v4943_v26  ;;  %v5008_v55 = vmul.f32 %v4944_v24, %v4944_v24  ;;  %v5012_v24 = vmul.f32 %v4948_v32, %v4948_v32 }
 0x5f0   :  { %v5067_v37 = vadd.f32 %v5066_v47, %v5004_v13  ;;  %v4947_v13 = vsub.f32 %v19322_v2, %v15835_v20  ;;  %v5009_v47 = vmul.f32 %v4945_v28, %v4945_v28 }
 0x5f2   :  { %v5068_v18 = vadd.f32 %v5067_v37, %v5005_v35  ;;  %v19324_v37 = vld [vmem:[#allocation13_spill] sm:$0xff]  ;;  %v5011_v26 = vmul.f32 %v4947_v13, %v4947_v13 }
 0x5f3   :  { %v4949_v50 = vsub.f32 %v19324_v37, %v15835_v20 }
 0x5f4   :  { %v5069_v30 = vadd.f32 %v5068_v18, %v5006_v39  ;;  %v19325_v18 = vld [vmem:[#allocation15_spill] sm:$0xff] }
 0x5f5   :  { %v4950_v1 = vsub.f32 %v19325_v18, %v15835_v20  ;;  %v5013_v28 = vmul.f32 %v4949_v50, %v4949_v50 }
 0x5f6   :  { %v5070_v44 = vadd.f32 %v5069_v30, %v5007_v53  ;;  %v19326_v30 = vld [vmem:[#allocation18_spill] sm:$0xff] }
 0x5f7   :  { %v4951_v2 = vsub.f32 %v19326_v30, %v15835_v20  ;;  %v5014_v46 = vmul.f32 %v4950_v1, %v4950_v1 }
 0x5f8   :  { %v5071_v16 = vadd.f32 %v5070_v44, %v5008_v55  ;;  %v19327_v55 = vld [vmem:[#allocation20_spill] sm:$0xff] }
 0x5f9   :  { %v4952_v57 = vsub.f32 %v19327_v55, %v15835_v20  ;;  %v5015_v13 = vmul.f32 %v4951_v2, %v4951_v2 }
 0x5fa   :  { %v5072_v35 = vadd.f32 %v5071_v16, %v5009_v47  ;;  %v19328_v16 = vld [vmem:[#allocation17_spill] sm:$0xff] }
 0x5fb   :  { %v4953_v37 = vsub.f32 %v19328_v16, %v15835_v20  ;;  %v5016_v32 = vmul.f32 %v4952_v57, %v4952_v57 }
 0x5fc   :  { %v5073_v39 = vadd.f32 %v5072_v35, %v5010_v14  ;;  %v19329_v35 = vld [vmem:[#allocation19_spill] sm:$0xff] }
 0x5fd   :  { %v4954_v18 = vsub.f32 %v19329_v35, %v15835_v20  ;;  %v5017_v50 = vmul.f32 %v4953_v37, %v4953_v37 }
 0x5fe   :  { %v5074_v53 = vadd.f32 %v5073_v39, %v5011_v26  ;;  %v19330_v39 = vld [vmem:[#allocation22_spill] sm:$0xff] }
 0x5ff   :  { %v4955_v30 = vsub.f32 %v19330_v39, %v15835_v20  ;;  %v5018_v1 = vmul.f32 %v4954_v18, %v4954_v18 }
 0x600   :  { %v5075_v44 = vadd.f32 %v5074_v53, %v5012_v24  ;;  %v19331_v53 = vld [vmem:[#allocation24_spill] sm:$0xff] }
 0x601   :  { %v4956_v55 = vsub.f32 %v19331_v53, %v15835_v20  ;;  %v5019_v2 = vmul.f32 %v4955_v30, %v4955_v30 }
 0x602   :  { %v5076_v47 = vadd.f32 %v5075_v44, %v5013_v28  ;;  %v19332_v44 = vld [vmem:[#allocation21_spill] sm:$0xff] }
 0x603   :  { %v4957_v16 = vsub.f32 %v19332_v44, %v15835_v20  ;;  %v5020_v57 = vmul.f32 %v4956_v55, %v4956_v55 }
 0x604   :  { %v5077_v14 = vadd.f32 %v5076_v47, %v5014_v46  ;;  %v19333_v47 = vld [vmem:[#allocation23_spill] sm:$0xff] }
 0x605   :  { %v4958_v35 = vsub.f32 %v19333_v47, %v15835_v20  ;;  %v5021_v37 = vmul.f32 %v4957_v16, %v4957_v16 }
 0x606   :  { %v5078_v26 = vadd.f32 %v5077_v14, %v5015_v13  ;;  %v19334_v14 = vld [vmem:[#allocation26_spill] sm:$0xff] }
 0x607   :  { %v4959_v39 = vsub.f32 %v19334_v14, %v15835_v20  ;;  %v5022_v18 = vmul.f32 %v4958_v35, %v4958_v35 }
 0x608   :  { %v5079_v24 = vadd.f32 %v5078_v26, %v5016_v32  ;;  %v4960_v26 = vsub.f32 %v15830_v34, %v15835_v20 }
 0x609   :  { %v5023_v30 = vmul.f32 %v4959_v39, %v4959_v39  ;;  %v5101_v39 = vlaneseq }
 0x60a   :  { %v5080_v28 = vadd.f32 %v5079_v24, %v5017_v50  ;;  %v19335_v24 = vld [vmem:[#allocation25_spill] sm:$0xff]  ;;  %v5024_v55 = vmul.f32 %v4960_v26, %v4960_v26  ;;  %v4826_v26 = vld [vmem:[%s19094_s3] sm:$0x1] }
 0x60b   :  { %v4961_v44 = vsub.f32 %v19335_v24, %v15835_v20 }
 0x60c   :  { %v5081_v46 = vadd.f32 %v5080_v28, %v5018_v1  ;;  %v4962_v28 = vsub.f32 %v15828_v22, %v15835_v20 }
 0x60e   :  { %v5082_v13 = vadd.f32 %v5081_v46, %v5019_v2  ;;  %v5025_v46 = vmul.f32 %v4961_v44, %v4961_v44  ;;  %v5026_v14 = vmul.f32 %v4962_v28, %v4962_v28 }
 0x610   :  { %v5083_v32 = vadd.f32 %v5082_v13, %v5020_v57 }
 0x612   :  { %v5084_v50 = vadd.f32 %v5083_v32, %v5021_v37 }
 0x614   :  { %v5085_v1 = vadd.f32 %v5084_v50, %v5022_v18  ;;  %v5102_v18 = vshrl.u32 %v5101_v39, 7 }
 0x616   :  { %v5086_v2 = vadd.f32 %v5085_v1, %v5023_v30  ;;  %v15998_v44 = vsub.s32 0, %v5102_v18  ;;  %v19337_v1 = vld [vmem:[#allocation5_spill] sm:$0xff] }
 0x618   :  { %v5087_v47 = vadd.f32 %v5086_v2, %v5024_v55  ;;  %19336 = vst [vmem:[#allocation28_spill] sm:$0xff] %v15998_v44  ;;  %v19338_v55 = vld [vmem:[#allocation3_spill] sm:$0xff] }
 0x61a   :  { %v5088_v16 = vadd.f32 %v5087_v47, %v5025_v46  ;;  %v19339_v46 = vld [vmem:[#allocation4_spill] sm:$0xff] }
 0x61c   :  { %v5089_v57 = vadd.f32 %v5088_v16, %v5026_v14  ;;  %v4827_v14 = vld [vmem:[%s19095_s4] sm:$0x1] }
 0x61e   :  { %v5090_v13 = vrot.slane %v5089_v57, 4 }
 0x620   :  { %v5091_v53 = vadd.f32 %v5090_v13, %v5089_v57 }
 0x622   :  { %v5092_v11 = vrot.slane %v5091_v53, 2 }
 0x624   :  { %v5093_v35 = vadd.f32 %v5092_v11, %v5091_v53 }
 0x626   :  { %v5094_v37 = vrot.slane %v5093_v35, 1 }
 0x628   :  { %v5095_v32 = vadd.f32 %v5094_v37, %v5093_v35 }
 0x62a   :  { %v5096_v9 = vmul.f32 0.001953125, %v5095_v32 }
 0x62c   :  { %v5097_v24 = vadd.f32 1e-05, %v5096_v9 }
 0x62e   :  { %14686 = vrsqrt.f32 %v5097_v24 }
 0x638   :  { %v14687_v50 = vpop.eup %14686 }
 0x639   :  { %v5099_v47 = vmul.f32 %v14687_v50, %v4826_v26  ;;  %v19342_v26 = vld [vmem:[#allocation7_spill] sm:$0xff]  ;;  %v19343_v50 = vld [vmem:[#allocation8_spill] sm:$0xff] }
 0x63b   :  { %v16004_v11 = vrot.slane %v5099_v47, %v15998_v44  ;;  %v5170_v9 = vmul.f32 %v5099_v47, %v15835_v20  ;;  %v19340_v20 = vld [vmem:[#allocation6_spill] sm:$0xff] }
 0x63c   :  { %v19344_v47 = vld [vmem:[#allocation10_spill] sm:$0xff] }
 0x63d   :  { %v5167_v53 = vmul.f32 %v16004_v11, %v15830_v34  ;;  %v5171_v24 = vsub.f32 %v4827_v14, %v5170_v9  ;;  %v16011_v30 = vmul.f32 %v16004_v11, %v15645_v12  ;;  %v16015_v28 = vmul.f32 %v16004_v11, %v19337_v1  ;;  %v19345_v14 = vld [vmem:[#allocation12_spill] sm:$0xff]  ;;  %v19346_v9 = vld [vmem:[#allocation9_spill] sm:$0xff]  ;;  %v19348_v1 = vld [vmem:[#allocation14_spill] sm:$0xff] }
 0x63e   :  { %v16019_v2 = vmul.f32 %v19338_v55, %v16004_v11  ;;  %v16023_v16 = vmul.f32 %v19339_v46, %v16004_v11  ;;  %v16027_v34 = vmul.f32 %v16004_v11, %v19340_v20  ;;  %v16031_v12 = vmul.f32 %v16004_v11, %v15662_v21  ;;  %v19349_v46 = vld [vmem:[#allocation16_spill] sm:$0xff] }
 0x63f   :  { %v16034_v57 = vrot.slane %v5171_v24, %v15998_v44  ;;  %v16038_v13 = vmul.f32 %v15654_v40, %v16004_v11  ;;  %v16042_v35 = vmul.f32 %v15660_v10, %v16004_v11  ;;  %v16046_v37 = vmul.f32 %v16004_v11, %v15669_v17  ;;  %v19358_v44 = vld [vmem:[#allocation17_spill] sm:$0xff] }
 0x640   :  { %v16050_v32 = vmul.f32 %v16004_v11, %v15674_v3  ;;  %v16054_v21 = vmul.f32 %v15666_v48, %v16004_v11  ;;  %v16058_v40 = vmul.f32 %v15672_v36, %v16004_v11  ;;  %v16062_v10 = vmul.f32 %v16004_v11, %v15681_v51 }
 0x641   :  { %v16065_v39 = vadd.f32 %v16034_v57, %v5167_v53  ;;  %v16069_v17 = vmul.f32 %v16004_v11, %v15686_v38  ;;  %v16073_v3 = vmul.f32 %v15678_v58, %v16004_v11  ;;  %v16077_v48 = vmul.f32 %v15684_v31, %v16004_v11  ;;  %v19347_v53 = vld [vmem:[#allocation11_spill] sm:$0xff] }
 0x642   :  { %v16081_v36 = vmul.f32 %v16004_v11, %v15693_v33  ;;  %v16085_v51 = vmul.f32 %v16004_v11, %v15698_v8  ;;  %v16089_v38 = vmul.f32 %v15690_v6, %v16004_v11  ;;  %v16093_v58 = vmul.f32 %v15696_v4, %v16004_v11 }
 0x643   :  { %19341 = vst [vmem:[#allocation5_spill] sm:$0xff] %v16065_v39  ;;  %v19144_v18 = vmax.f32 %v16065_v39, 0.0  ;;  %v16098_v31 = vmul.f32 %v16004_v11, %v15705_v42  ;;  %v16102_v33 = vmul.f32 %v16004_v11, %v15710_v15  ;;  %v16106_v8 = vmul.f32 %v15702_v60, %v16004_v11  ;;  %v19360_v39 = vld [vmem:[#allocation19_spill] sm:$0xff] }
 0x644   :  { %v16110_v6 = vmul.f32 %v15708_v45, %v16004_v11  ;;  %v16114_v4 = vmul.f32 %v16004_v11, %v15717_v63  ;;  %v16118_v42 = vmul.f32 %v16004_v11, %v15722_v54  ;;  %v16122_v15 = vmul.f32 %v15714_v41, %v16004_v11 }
 0x645   :  { %v16126_v60 = vmul.f32 %v15720_v43, %v16004_v11  ;;  %v16130_v45 = vmul.f32 %v16004_v11, %v15729_v29  ;;  %v16134_v63 = vmul.f32 %v16004_v11, %v15734_v5  ;;  %v16138_v54 = vmul.f32 %v15726_v19, %v16004_v11  ;;  %5367 = vst [vmem:[#allocation2 + $0x321] sm:$0xff] %v19144_v18  ;;  %v19356_v18 = vld [vmem:[#allocation20_spill] sm:$0xff] }
 0x646   :  { %v16144_v41 = vmul.f32 %v15732_v52, %v16004_v11  ;;  %v16148_v43 = vmul.f32 %v16004_v11, %v15741_v27  ;;  %v16152_v29 = vmul.f32 %v16004_v11, %v15746_v62  ;;  %v16156_v5 = vmul.f32 %v15738_v56, %v16004_v11 }
 0x647   :  { %v16160_v19 = vmul.f32 %v15744_v61, %v16004_v11  ;;  %v16164_v52 = vmul.f32 %v16004_v11, %v15753_v25  ;;  %v16168_v27 = vmul.f32 %v16004_v11, %v15758_v7  ;;  %v16172_v62 = vmul.f32 %v15750_v0, %v16004_v11 }
 0x648   :  { %v16176_v56 = vmul.f32 %v15756_v59, %v16004_v11  ;;  %v16180_v61 = vmul.f32 %v16004_v11, %v15765_v23  ;;  %v16184_v25 = vmul.f32 %v16004_v11, %v15770_v49  ;;  %v16188_v7 = vmul.f32 %v19342_v26, %v16004_v11  ;;  %v19350_v26 = vld [vmem:[#allocation13_spill] sm:$0xff] }
 0x649   :  { %v16192_v0 = vmul.f32 %v19343_v50, %v16004_v11  ;;  %v16196_v59 = vmul.f32 %v16004_v11, %v19344_v47  ;;  %v16200_v23 = vmul.f32 %v16004_v11, %v19345_v14  ;;  %v16204_v49 = vmul.f32 %v19346_v9, %v16004_v11  ;;  %v19352_v47 = vld [vmem:[#allocation15_spill] sm:$0xff]  ;;  %v19354_v9 = vld [vmem:[#allocation18_spill] sm:$0xff] }
 0x64a   :  { %v16208_v24 = vmul.f32 %v19347_v53, %v16004_v11  ;;  %v16212_v55 = vmul.f32 %v16004_v11, %v19348_v1  ;;  %v16216_v20 = vmul.f32 %v16004_v11, %v19349_v46  ;;  %v16220_v50 = vmul.f32 %v19350_v26, %v16004_v11 }
 0x64b   :  { %v16224_v14 = vmul.f32 %v19352_v47, %v16004_v11  ;;  %v16228_v53 = vmul.f32 %v16004_v11, %v19354_v9  ;;  %v16232_v1 = vmul.f32 %v16004_v11, %v19356_v18  ;;  %v16236_v46 = vmul.f32 %v19358_v44, %v16004_v11 }
 0x64c   :  { %19351 = vst [vmem:[#allocation3_spill] sm:$0xff] %v16220_v50  ;;  %v16240_v26 = vmul.f32 %v19360_v39, %v16004_v11  ;;  %v19362_v50 = vld [vmem:[#allocation22_spill] sm:$0xff] }
 0x64d   :  { %19353 = vst [vmem:[#allocation4_spill] sm:$0xff] %v16224_v14  ;;  %19355 = vst [vmem:[#allocation6_spill] sm:$0xff] %v16228_v53  ;;  %v16244_v47 = vmul.f32 %v16004_v11, %v19362_v50  ;;  %v19363_v14 = vld [vmem:[#allocation24_spill] sm:$0xff]  ;;  %v19364_v53 = vld [vmem:[#allocation21_spill] sm:$0xff] }
 0x64e   :  { %19357 = vst [vmem:[#allocation7_spill] sm:$0xff] %v16232_v1  ;;  %19359 = vst [vmem:[#allocation8_spill] sm:$0xff] %v16236_v46  ;;  %v16248_v9 = vmul.f32 %v16004_v11, %v19363_v14  ;;  %v16252_v18 = vmul.f32 %v19364_v53, %v16004_v11  ;;  %v19365_v1 = vld [vmem:[#allocation23_spill] sm:$0xff]  ;;  %v19366_v46 = vld [vmem:[#allocation26_spill] sm:$0xff]  ;;  %v16268_v14 = vmul.f32 %v15828_v22, %v16004_v11 }
 0x64f   :  { %19361 = vst [vmem:[#allocation10_spill] sm:$0xff] %v16240_v26  ;;  %v16256_v44 = vmul.f32 %v19365_v1, %v16004_v11  ;;  %v16260_v39 = vmul.f32 %v16004_v11, %v19366_v46  ;;  %v19367_v26 = vld [vmem:[#allocation25_spill] sm:$0xff]  ;;  %v16272_v53 = vadd.f32 %v16034_v57, %v16011_v30  ;;  %v16276_v1 = vadd.f32 %v16034_v57, %v16015_v28 }
 0x650   :  { %v16264_v50 = vmul.f32 %v19367_v26, %v16004_v11  ;;  %v16280_v46 = vadd.f32 %v16034_v57, %v16019_v2  ;;  %v16284_v26 = vadd.f32 %v16034_v57, %v16023_v16  ;;  %v16288_v22 = vadd.f32 %v16034_v57, %v16027_v34 }
 0x651   :  { %v16292_v11 = vadd.f32 %v16034_v57, %v16031_v12  ;;  %v16296_v30 = vadd.f32 %v16034_v57, %v16038_v13  ;;  %v16300_v28 = vadd.f32 %v16034_v57, %v16042_v35  ;;  %v16304_v2 = vadd.f32 %v16034_v57, %v16046_v37 }
 0x652   :  { %v16308_v16 = vadd.f32 %v16034_v57, %v16050_v32  ;;  %v16312_v34 = vadd.f32 %v16034_v57, %v16054_v21  ;;  %v16316_v12 = vadd.f32 %v16034_v57, %v16058_v40  ;;  %v16320_v13 = vadd.f32 %v16034_v57, %v16062_v10 }
 0x653   :  { %v16324_v35 = vadd.f32 %v16034_v57, %v16069_v17  ;;  %v16328_v37 = vadd.f32 %v16034_v57, %v16073_v3  ;;  %v16332_v32 = vadd.f32 %v16034_v57, %v16077_v48  ;;  %v16336_v21 = vadd.f32 %v16034_v57, %v16081_v36 }
 0x654   :  { %v16340_v40 = vadd.f32 %v16034_v57, %v16085_v51  ;;  %v16344_v10 = vadd.f32 %v16034_v57, %v16089_v38  ;;  %v16348_v17 = vadd.f32 %v16034_v57, %v16093_v58  ;;  %v16352_v3 = vadd.f32 %v16034_v57, %v16098_v31 }
 0x655   :  { %v16356_v48 = vadd.f32 %v16034_v57, %v16102_v33  ;;  %v16360_v36 = vadd.f32 %v16034_v57, %v16106_v8  ;;  %v16364_v51 = vadd.f32 %v16034_v57, %v16110_v6  ;;  %v16368_v38 = vadd.f32 %v16034_v57, %v16114_v4 }
 0x656   :  { %v16372_v58 = vadd.f32 %v16034_v57, %v16118_v42  ;;  %v16376_v31 = vadd.f32 %v16034_v57, %v16122_v15  ;;  %v16380_v33 = vadd.f32 %v16034_v57, %v16126_v60  ;;  %v16384_v8 = vadd.f32 %v16034_v57, %v16130_v45 }
 0x657   :  { %v16388_v6 = vadd.f32 %v16034_v57, %v16134_v63  ;;  %v16392_v4 = vadd.f32 %v16034_v57, %v16138_v54  ;;  %v16396_v42 = vadd.f32 %v16034_v57, %v16144_v41  ;;  %v16400_v15 = vadd.f32 %v16034_v57, %v16148_v43 }
 0x658   :  { %v16404_v60 = vadd.f32 %v16034_v57, %v16152_v29  ;;  %v16408_v45 = vadd.f32 %v16034_v57, %v16156_v5  ;;  %v16412_v63 = vadd.f32 %v16034_v57, %v16160_v19  ;;  %v16416_v54 = vadd.f32 %v16034_v57, %v16164_v52 }
 0x659   :  { %v16420_v41 = vadd.f32 %v16034_v57, %v16168_v27  ;;  %v16424_v43 = vadd.f32 %v16034_v57, %v16172_v62  ;;  %v16428_v29 = vadd.f32 %v16034_v57, %v16176_v56  ;;  %v16432_v5 = vadd.f32 %v16034_v57, %v16180_v61 }
 0x65a   :  { %v16436_v19 = vadd.f32 %v16034_v57, %v16184_v25  ;;  %v16440_v52 = vadd.f32 %v16034_v57, %v16188_v7  ;;  %v16444_v27 = vadd.f32 %v16034_v57, %v16192_v0  ;;  %v16448_v62 = vadd.f32 %v16034_v57, %v16196_v59  ;;  %v19377_v59 = vld [vmem:[#allocation3_spill] sm:$0xff] }
 0x65b   :  { %19368 = vst [vmem:[#allocation12_spill] sm:$0xff] %v16420_v41  ;;  %v16452_v56 = vadd.f32 %v16034_v57, %v16200_v23  ;;  %v16456_v61 = vadd.f32 %v16034_v57, %v16204_v49  ;;  %v16460_v25 = vadd.f32 %v16034_v57, %v16208_v24  ;;  %v16464_v7 = vadd.f32 %v16034_v57, %v16212_v55 }
 0x65c   :  { %19369 = vst [vmem:[#allocation9_spill] sm:$0xff] %v16440_v52  ;;  %19370 = vst [vmem:[#allocation11_spill] sm:$0xff] %v16444_v27  ;;  %v16468_v0 = vadd.f32 %v16034_v57, %v16216_v20  ;;  %v16472_v23 = vadd.f32 %v16034_v57, %v19377_v59 }
 0x65d   :  { %19371 = vst [vmem:[#allocation14_spill] sm:$0xff] %v16448_v62  ;;  %19372 = vst [vmem:[#allocation16_spill] sm:$0xff] %v16452_v56  ;;  %v19379_v56 = vld [vmem:[#allocation4_spill] sm:$0xff] }
 0x65e   :  { %19373 = vst [vmem:[#allocation13_spill] sm:$0xff] %v16456_v61  ;;  %19374 = vst [vmem:[#allocation15_spill] sm:$0xff] %v16460_v25  ;;  %v16476_v49 = vadd.f32 %v16034_v57, %v19379_v56  ;;  %v19381_v61 = vld [vmem:[#allocation6_spill] sm:$0xff]  ;;  %v19383_v25 = vld [vmem:[#allocation7_spill] sm:$0xff]  ;;  %v16496_v56 = vadd.f32 %v16034_v57, %v16244_v47  ;;  %v16516_v47 = vadd.f32 %v16034_v57, %v16264_v50  ;;  %v19392_v50 = vmax.f32 %v16284_v26, 0.0 }
 0x65f   :  { %19375 = vst [vmem:[#allocation18_spill] sm:$0xff] %v16464_v7  ;;  %19376 = vst [vmem:[#allocation20_spill] sm:$0xff] %v16468_v0  ;;  %v16480_v24 = vadd.f32 %v16034_v57, %v19381_v61  ;;  %v16484_v55 = vadd.f32 %v16034_v57, %v19383_v25  ;;  %v19384_v7 = vld [vmem:[#allocation8_spill] sm:$0xff]  ;;  %v19385_v0 = vld [vmem:[#allocation10_spill] sm:$0xff]  ;;  %v16500_v61 = vadd.f32 %v16034_v57, %v16248_v9 }
 0x660   :  { %19378 = vst [vmem:[#allocation17_spill] sm:$0xff] %v16472_v23  ;;  %19380 = vst [vmem:[#allocation19_spill] sm:$0xff] %v16476_v49  ;;  %v16488_v20 = vadd.f32 %v16034_v57, %v19384_v7  ;;  %v16492_v59 = vadd.f32 %v16034_v57, %v19385_v0  ;;  %v16504_v25 = vadd.f32 %v16034_v57, %v16252_v18  ;;  %v19154_v18 = vmax.f32 %v16276_v1, 0.0 }
 0x661   :  { %19382 = vst [vmem:[#allocation22_spill] sm:$0xff] %v16480_v24  ;;  %19386 = vst [vmem:[#allocation24_spill] sm:$0xff] %v16500_v61  ;;  %v16508_v7 = vadd.f32 %v16034_v57, %v16256_v44  ;;  %v16512_v0 = vadd.f32 %v16034_v57, %v16260_v39  ;;  %v16520_v9 = vadd.f32 %v16034_v57, %v16268_v14  ;;  %v19153_v61 = vmax.f32 %v16272_v53, 0.0 }
 0x662   :  { %19387 = vst [vmem:[#allocation21_spill] sm:$0xff] %v16504_v25  ;;  %19390 = vst [vmem:[#allocation25_spill] sm:$0xff] %v16516_v47  ;;  %v19156_v39 = vmax.f32 %v16292_v11, 0.0  ;;  %v19157_v47 = vmax.f32 %v16304_v2, 0.0  ;;  %v19158_v57 = vmax.f32 %v16308_v16, 0.0  ;;  %v19160_v14 = vmax.f32 %v16328_v37, 0.0 }
 0x663   :  { %19388 = vst [vmem:[#allocation23_spill] sm:$0xff] %v16508_v7  ;;  %19389 = vst [vmem:[#allocation26_spill] sm:$0xff] %v16512_v0  ;;  %v19155_v7 = vmax.f32 %v16288_v22, 0.0  ;;  %v19391_v0 = vmax.f32 %v16280_v46, 0.0  ;;  %v5273_v25 = vmax.f32 %v16396_v42, 0.0  ;;  %v19165_v44 = vmax.f32 %v16400_v15, 0.0 }
 0x664   :  { %5306 = vst [vmem:[#allocation2 + $0x19] sm:$0xff] %v19153_v61  ;;  %5307 = vst [vmem:[#allocation2 + $0x21] sm:$0xff] %v19154_v18  ;;  %v19159_v61 = vmax.f32 %v16324_v35, 0.0  ;;  %v19393_v18 = vmax.f32 %v16296_v30, 0.0 }
 0x665   :  { %5308 = vst [vmem:[#allocation2 + $0x31] sm:$0xff] %v19391_v0  ;;  %5309 = vst [vmem:[#allocation2 + $0x39] sm:$0xff] %v19392_v50  ;;  %v19394_v0 = vmax.f32 %v16300_v28, 0.0  ;;  %v19161_v50 = vmax.f32 %v16340_v40, 0.0  ;;  %v19413_v42 = vld [vmem:[#allocation15_spill] sm:$0xff] }
 0x666   :  { %5310 = vst [vmem:[#allocation2 + $0x49] sm:$0xff] %v19155_v7  ;;  %5311 = vst [vmem:[#allocation2 + $0x51] sm:$0xff] %v19156_v39  ;;  %v19395_v39 = vmax.f32 %v16312_v34, 0.0  ;;  %v19163_v7 = vmax.f32 %v16360_v36, 0.0 }
 0x667   :  { %5312 = vst [vmem:[#allocation2 + $0x61] sm:$0xff] %v19393_v18  ;;  %5313 = vst [vmem:[#allocation2 + $0x69] sm:$0xff] %v19394_v0  ;;  %v19396_v18 = vmax.f32 %v16316_v12, 0.0  ;;  %v19397_v0 = vmax.f32 %v16320_v13, 0.0 }
 0x668   :  { %5314 = vst [vmem:[#allocation2 + $0x79] sm:$0xff] %v19157_v47  ;;  %5315 = vst [vmem:[#allocation2 + $0x81] sm:$0xff] %v19158_v57  ;;  %v19162_v47 = vmax.f32 %v16356_v48, 0.0  ;;  %v5272_v57 = vmax.f32 %v16392_v4, 0.0  ;;  %v19414_v4 = vld [vmem:[#allocation18_spill] sm:$0xff] }
 0x669   :  { %5316 = vst [vmem:[#allocation2 + $0x91] sm:$0xff] %v19395_v39  ;;  %5317 = vst [vmem:[#allocation2 + $0x99] sm:$0xff] %v19396_v18  ;;  %v19398_v39 = vmax.f32 %v16332_v32, 0.0  ;;  %v19399_v18 = vmax.f32 %v16336_v21, 0.0 }
 0x66a   :  { %5318 = vst [vmem:[#allocation2 + $0xa9] sm:$0xff] %v19397_v0  ;;  %5319 = vst [vmem:[#allocation2 + $0xb1] sm:$0xff] %v19159_v61  ;;  %v19164_v0 = vmax.f32 %v16372_v58, 0.0  ;;  %v19400_v61 = vmax.f32 %v16344_v10, 0.0 }
 0x66b   :  { %5320 = vst [vmem:[#allocation2 + $0xc1] sm:$0xff] %v19160_v14  ;;  %5321 = vst [vmem:[#allocation2 + $0xc9] sm:$0xff] %v19398_v39  ;;  %v19401_v14 = vmax.f32 %v16348_v17, 0.0  ;;  %v19402_v39 = vmax.f32 %v16352_v3, 0.0 }
 0x66c   :  { %5322 = vst [vmem:[#allocation2 + $0xd9] sm:$0xff] %v19399_v18  ;;  %5323 = vst [vmem:[#allocation2 + $0xe1] sm:$0xff] %v19161_v50  ;;  %v19166_v18 = vmax.f32 %v16388_v6, 0.0  ;;  %v19408_v50 = vmax.f32 %v16408_v45, 0.0 }
 0x66d   :  { %5324 = vst [vmem:[#allocation2 + $0xf1] sm:$0xff] %v19400_v61  ;;  %5325 = vst [vmem:[#allocation2 + $0xf9] sm:$0xff] %v19401_v14  ;;  %v19403_v61 = vmax.f32 %v16364_v51, 0.0  ;;  %v19404_v14 = vmax.f32 %v16368_v38, 0.0 }
 0x66e   :  { %5326 = vst [vmem:[#allocation2 + $0x109] sm:$0xff] %v19402_v39  ;;  %5327 = vst [vmem:[#allocation2 + $0x111] sm:$0xff] %v19162_v47  ;;  %v19167_v39 = vmax.f32 %v16404_v60, 0.0  ;;  %v19405_v47 = vmax.f32 %v16376_v31, 0.0 }
 0x66f   :  { %5328 = vst [vmem:[#allocation2 + $0x121] sm:$0xff] %v19163_v7  ;;  %5329 = vst [vmem:[#allocation2 + $0x129] sm:$0xff] %v19403_v61  ;;  %v19406_v7 = vmax.f32 %v16380_v33, 0.0  ;;  %v19407_v61 = vmax.f32 %v16384_v8, 0.0 }
 0x670   :  { %5330 = vst [vmem:[#allocation2 + $0x139] sm:$0xff] %v19404_v14  ;;  %5331 = vst [vmem:[#allocation2 + $0x141] sm:$0xff] %v19164_v0  ;;  %v19169_v14 = vmax.f32 %v16420_v41, 0.0  ;;  %v19419_v41 = vmax.f32 %v16436_v19, 0.0  ;;  %v5298_v0 = vmax.f32 %v16496_v56, 0.0 }
 0x671   :  { %5332 = vst [vmem:[#allocation2 + $0x151] sm:$0xff] %v19405_v47  ;;  %5333 = vst [vmem:[#allocation2 + $0x159] sm:$0xff] %v19406_v7  ;;  %v19412_v7 = vld [vmem:[#allocation13_spill] sm:$0xff]  ;;  %v5296_v47 = vmax.f32 %v16488_v20, 0.0 }
 0x672   :  { %5334 = vst [vmem:[#allocation2 + $0x169] sm:$0xff] %v19407_v61  ;;  %5335 = vst [vmem:[#allocation2 + $0x171] sm:$0xff] %v19166_v18  ;;  %v5297_v61 = vmax.f32 %v16492_v59, 0.0 }
 0x673   :  { %5336 = vst [vmem:[#allocation2 + $0x181] sm:$0xff] %v5272_v57  ;;  %5337 = vst [vmem:[#allocation2 + $0x189] sm:$0xff] %v5273_v25  ;;  %v19409_v57 = vmax.f32 %v16412_v63, 0.0  ;;  %v19410_v25 = vmax.f32 %v16416_v54, 0.0 }
 0x674   :  { %5338 = vst [vmem:[#allocation2 + $0x1c9] sm:$0xff] %v19165_v44  ;;  %5339 = vst [vmem:[#allocation2 + $0x1d1] sm:$0xff] %v19167_v39  ;;  %v19411_v44 = vld [vmem:[#allocation16_spill] sm:$0xff]  ;;  %v19415_v39 = vmax.f32 %v16424_v43, 0.0 }
 0x675   :  { %5340 = vst [vmem:[#allocation2 + $0x1e1] sm:$0xff] %v19408_v50  ;;  %5341 = vst [vmem:[#allocation2 + $0x1e9] sm:$0xff] %v19409_v57  ;;  %v19416_v50 = vmax.f32 %v16428_v29, 0.0  ;;  %v19417_v57 = vmax.f32 %v16432_v5, 0.0  ;;  %v19423_v18 = vmax.f32 %v19411_v44, 0.0 }
 0x676   :  { %5342 = vst [vmem:[#allocation2 + $0x1f9] sm:$0xff] %v19410_v25  ;;  %5343 = vst [vmem:[#allocation2 + $0x201] sm:$0xff] %v19169_v14  ;;  %v19418_v25 = vld [vmem:[#allocation20_spill] sm:$0xff]  ;;  %v19420_v14 = vmax.f32 %v16440_v52, 0.0  ;;  %v19430_v52 = vld [vmem:[#allocation26_spill] sm:$0xff] }
 0x677   :  { %5344 = vst [vmem:[#allocation2 + $0x211] sm:$0xff] %v19415_v39  ;;  %5345 = vst [vmem:[#allocation2 + $0x219] sm:$0xff] %v19416_v50  ;;  %v19421_v39 = vmax.f32 %v16444_v27, 0.0  ;;  %v19422_v50 = vmax.f32 %v16448_v62, 0.0  ;;  %v19428_v62 = vld [vmem:[#allocation21_spill] sm:$0xff]  ;;  %v19429_v27 = vld [vmem:[#allocation23_spill] sm:$0xff] }
 0x678   :  { %5346 = vst [vmem:[#allocation2 + $0x229] sm:$0xff] %v19417_v57  ;;  %5347 = vst [vmem:[#allocation2 + $0x231] sm:$0xff] %v19419_v41  ;;  %v5295_v57 = vmax.f32 %v16484_v55, 0.0  ;;  %v19424_v41 = vmax.f32 %v19412_v7, 0.0  ;;  %v5300_v20 = vmax.f32 %v19428_v62, 0.0  ;;  %v5301_v59 = vmax.f32 %v19429_v27, 0.0 }
 0x679   :  { %5348 = vst [vmem:[#allocation2 + $0x241] sm:$0xff] %v19420_v14  ;;  %5349 = vst [vmem:[#allocation2 + $0x249] sm:$0xff] %v19421_v39  ;;  %v19425_v14 = vmax.f32 %v19413_v42, 0.0  ;;  %v19426_v39 = vmax.f32 %v19414_v4, 0.0  ;;  %v5302_v56 = vmax.f32 %v19430_v52, 0.0  ;;  %v19431_v44 = vmax.f32 %v19418_v25, 0.0 }
 0x67a   :  { %5350 = vst [vmem:[#allocation2 + $0x259] sm:$0xff] %v19422_v50  ;;  %5351 = vst [vmem:[#allocation2 + $0x261] sm:$0xff] %v19423_v18  ;;  %v19427_v50 = vld [vmem:[#allocation24_spill] sm:$0xff]  ;;  %v19432_v18 = vmax.f32 %v16472_v23, 0.0  ;;  %v5305_v62 = vmax.f32 %v16520_v9, 0.0  ;;  %v19436_v52 = vmax.f32 %v16272_v53, 0.0 }
 0x67b   :  { %5352 = vst [vmem:[#allocation2 + $0x271] sm:$0xff] %v19424_v41  ;;  %5353 = vst [vmem:[#allocation2 + $0x279] sm:$0xff] %v19425_v14  ;;  %v5299_v55 = vmax.f32 %v19427_v50, 0.0  ;;  %v19433_v41 = vmax.f32 %v16476_v49, 0.0  ;;  %v19434_v14 = vmax.f32 %v16480_v24, 0.0  ;;  %v19437_v27 = vmax.f32 %v16276_v1, 0.0 }
 0x67c   :  { %5354 = vst [vmem:[#allocation2 + $0x289] sm:$0xff] %v19426_v39  ;;  %5355 = vst [vmem:[#allocation2 + $0x291] sm:$0xff] %v19431_v44  ;;  %v19435_v39 = vld [vmem:[#allocation25_spill] sm:$0xff]  ;;  %v19440_v9 = vmax.f32 %v16288_v22, 0.0  ;;  %v19441_v53 = vmax.f32 %v16292_v11, 0.0  ;;  %v19442_v1 = vmax.f32 %v16296_v30, 0.0 }
 0x67d   :  { %5356 = vst [vmem:[#allocation2 + $0x2a1] sm:$0xff] %v19432_v18  ;;  %5357 = vst [vmem:[#allocation2 + $0x2a9] sm:$0xff] %v19433_v41  ;;  %v5304_v50 = vmax.f32 %v19435_v39, 0.0  ;;  %v5547_v44 = vpack.c.bf16 %v19437_v27, %v19436_v52  ;;  %v19438_v18 = vmax.f32 %v16280_v46, 0.0  ;;  %v19439_v41 = vmax.f32 %v16284_v26, 0.0 }
 0x67e   :  { %5358 = vst [vmem:[#allocation2 + $0x2b9] sm:$0xff] %v19434_v14  ;;  %5359 = vst [vmem:[#allocation2 + $0x2c1] sm:$0xff] %v5295_v57  ;;  %v14623_v14 = vld [vmem:[%s19093_s2 + $0x8] sm:$0xff]   ;;  %v5549_v39 = vpack.c.bf16 %v19441_v53, %v19440_v9  ;;  %v19443_v46 = vmax.f32 %v16300_v28, 0.0  ;;  %v19444_v26 = vmax.f32 %v16304_v2, 0.0  ;;  %v19445_v27 = vmax.f32 %v16308_v16, 0.0 }
 0x67f   :  { %5360 = vst [vmem:[#allocation2 + $0x2d1] sm:$0xff] %v5296_v47  ;;  %5361 = vst [vmem:[#allocation2 + $0x2d9] sm:$0xff] %v5297_v61  ;;  %v5548_v49 = vpack.c.bf16 %v19439_v41, %v19438_v18  ;;  %v19446_v41 = vmax.f32 %v16312_v34, 0.0  ;;  %v19447_v24 = vmax.f32 %v16316_v12, 0.0  ;;  %12782 = vmatmul.mubr.bf16.vlgmr.msra.gmra.mrb[0].mxu1 %v5547_v44  ;;  %v19448_v22 = vmax.f32 %v16320_v13, 0.0  ;;  %v19456_v13 = vld [vmem:[#allocation27_spill] sm:$0xff] }
 0x680   :  { %5362 = vst [vmem:[#allocation2 + $0x2e9] sm:$0xff] %v5298_v0  ;;  %5363 = vst [vmem:[#allocation2 + $0x2f1] sm:$0xff] %v5299_v55  ;;  %v5550_v52 = vpack.c.bf16 %v19443_v46, %v19442_v1  ;;  %v5551_v18 = vpack.c.bf16 %v19445_v27, %v19444_v26  ;;  %v19449_v11 = vmax.f32 %v16324_v35, 0.0  ;;  %v19450_v28 = vmax.f32 %v16328_v37, 0.0  ;;  %12846 = vmatpush3.bf16.msra.mxu1 %v19456_v13  ;;  %v19482_v13 = vld [vmem:[#allocation14_spill] sm:$0xff] }
 0x681   :  { %5364 = vst [vmem:[#allocation2 + $0x301] sm:$0xff] %v5300_v20  ;;  %5365 = vst [vmem:[#allocation2 + $0x309] sm:$0xff] %v5301_v59  ;;  %v5552_v23 = vpack.c.bf16 %v19447_v24, %v19446_v41  ;;  %v19451_v2 = vmax.f32 %v16332_v32, 0.0  ;;  %v19452_v16 = vmax.f32 %v16336_v21, 0.0  ;;  %v19453_v34 = vmax.f32 %v16340_v40, 0.0  ;;  %12785 = vmatprep.mubr.bf16.mxu1 %v5548_v49  ;;  %12847 = vmatprep.subr.bf16.mxu1 %v14623_v14 }
 0x682   :  { %5366 = vst [vmem:[#allocation2 + $0x319] sm:$0xff] %v5302_v56  ;;  %5368 = vst [vmem:[#allocation2 + $0x331] sm:$0xff] %v5304_v50  ;;  %v5553_v30 = vpack.c.bf16 %v19449_v11, %v19448_v22  ;;  %v19454_v12 = vmax.f32 %v16344_v10, 0.0  ;;  %v19455_v24 = vmax.f32 %v16348_v17, 0.0  ;;  %v19457_v35 = vmax.f32 %v16352_v3, 0.0  ;;  %v14624_v17 = vld [vmem:[%s19093_s2 + $0x10] sm:$0xff]  }
 0x683   :  { %5369 = vst [vmem:[#allocation2 + $0x339] sm:$0xff] %v5305_v62  ;;  %v5554_v9 = vpack.c.bf16 %v19451_v2, %v19450_v28  ;;  %v5555_v53 = vpack.c.bf16 %v19453_v34, %v19452_v16  ;;  %v19458_v37 = vmax.f32 %v16356_v48, 0.0  ;;  %v19459_v32 = vmax.f32 %v16360_v36, 0.0  ;;  %v19472_v11 = vld [vmem:[#allocation12_spill] sm:$0xff]  ;;  %v19478_v34 = vld [vmem:[#allocation9_spill] sm:$0xff] }
 0x684   :  { %v5556_v50 = vpack.c.bf16 %v19455_v24, %v19454_v12  ;;  %v19460_v21 = vmax.f32 %v16364_v51, 0.0  ;;  %v19461_v40 = vmax.f32 %v16368_v38, 0.0  ;;  %v19462_v10 = vmax.f32 %v16372_v58, 0.0  ;;  %v19480_v12 = vld [vmem:[#allocation11_spill] sm:$0xff]  ;;  %12848 = vmatpush3.bf16.msra.mxu1 %v14623_v14 }
 0x685   :  { %v5557_v62 = vpack.c.bf16 %v19458_v37, %v19457_v35  ;;  %v19463_v3 = vmax.f32 %v16376_v31, 0.0  ;;  %v19464_v48 = vmax.f32 %v16380_v33, 0.0  ;;  %v19465_v36 = vmax.f32 %v16384_v8, 0.0  ;;  %v19484_v35 = vld [vmem:[#allocation16_spill] sm:$0xff]  ;;  %12849 = vmatprep.subr.bf16.mxu1 %v14624_v17  ;;  %v14626_v14 = vld [vmem:[%s19093_s2 + $0x20] sm:$0xff]  }
 0x686   :  { %v5558_v44 = vpack.c.bf16 %v19460_v21, %v19459_v32  ;;  %v5559_v1 = vpack.c.bf16 %v19462_v10, %v19461_v40  ;;  %v19466_v51 = vmax.f32 %v16388_v6, 0.0  ;;  %v19467_v38 = vmax.f32 %v16400_v15, 0.0  ;;  %v19490_v10 = vld [vmem:[#allocation17_spill] sm:$0xff] }
 0x687   :  { %v5560_v49 = vpack.c.bf16 %v19464_v48, %v19463_v3  ;;  %v19468_v58 = vmax.f32 %v16404_v60, 0.0  ;;  %v19469_v27 = vmax.f32 %v16408_v45, 0.0  ;;  %v19470_v41 = vmax.f32 %v16412_v63, 0.0  ;;  %v19492_v48 = vld [vmem:[#allocation19_spill] sm:$0xff]  ;;  %12786 = vmatmul.mubr.bf16.gmra.mrb[4].mxu1 %v5549_v39  ;;  %v5372_v39 = vld [vmem:[#allocation2 + $0x18] sm:$0xff] }
 0x688   :  { %v5561_v46 = vpack.c.bf16 %v19466_v51, %v19465_v36  ;;  %v19471_v31 = vmax.f32 %v16416_v54, 0.0  ;;  %v19473_v33 = vmax.f32 %v19472_v11, 0.0  ;;  %v19474_v8 = vmax.f32 %v16424_v43, 0.0  ;;  %12789 = vmatprep.mubr.bf16.mxu1 %v5550_v52  ;;  %12850 = vmatpush3.bf16.msra.mxu1 %v14624_v17  ;;  %v5373_v52 = vld [vmem:[#allocation2 + $0x20] sm:$0xff] }
 0x689   :  { %v5563_v26 = vpack.c.bf16 %v19468_v58, %v19467_v38  ;;  %v5564_v22 = vpack.c.bf16 %v19470_v41, %v19469_v27  ;;  %v19475_v6 = vmax.f32 %v16428_v29, 0.0  ;;  %v19476_v15 = vmax.f32 %v16432_v5, 0.0  ;;  %v19494_v38 = vld [vmem:[#allocation22_spill] sm:$0xff]  ;;  %v5378_v17 = vld [vmem:[#allocation2 + $0x60] sm:$0xff] }
 0x68a   :  { %v5565_v28 = vpack.c.bf16 %v19473_v33, %v19471_v31  ;;  %v19477_v60 = vmax.f32 %v16436_v19, 0.0  ;;  %v19479_v45 = vmax.f32 %v19478_v34, 0.0  ;;  %v19481_v63 = vmax.f32 %v19480_v12, 0.0  ;;  %v14634_v33 = vld [vmem:[%s19093_s2 + $0xa0] sm:$0xff]   ;;  %v14636_v34 = vld [vmem:[%s19093_s2 + $0xb0] sm:$0xff]  }
 0x68b   :  { %v5566_v2 = vpack.c.bf16 %v19475_v6, %v19474_v8  ;;  %v19483_v54 = vmax.f32 %v19482_v13, 0.0  ;;  %v19485_v37 = vmax.f32 %v19484_v35, 0.0  ;;  %v19486_v43 = vmax.f32 %v19412_v7, 0.0  ;;  %v5381_v8 = vld [vmem:[#allocation2 + $0x80] sm:$0xff]  ;;  %v5382_v6 = vld [vmem:[#allocation2 + $0x90] sm:$0xff] }
 0x68c   :  { %v5567_v16 = vpack.c.bf16 %v19477_v60, %v19476_v15  ;;  %v5568_v24 = vpack.c.bf16 %v19481_v63, %v19479_v45  ;;  %v19487_v29 = vmax.f32 %v19413_v42, 0.0  ;;  %v19488_v5 = vmax.f32 %v19414_v4, 0.0  ;;  %v14625_v4 = vld [vmem:[%s19093_s2 + $0x18] sm:$0xff]   ;;  %v19496_v42 = vld [vmem:[#allocation5_spill] sm:$0xff]  ;;  %v14635_v60 = vld [vmem:[%s19093_s2 + $0xa8] sm:$0xff]  }
 0x68d   :  { %v5569_v32 = vpack.c.bf16 %v19485_v37, %v19483_v54  ;;  %v19489_v19 = vmax.f32 %v19418_v25, 0.0  ;;  %v19491_v3 = vmax.f32 %v19490_v10, 0.0  ;;  %v19493_v36 = vmax.f32 %v19492_v48, 0.0  ;;  %12851 = vmatprep.subr.bf16.mxu1 %v14625_v4  ;;  %v5384_v45 = vld [vmem:[#allocation2 + $0xa8] sm:$0xff]  ;;  %v5385_v12 = vld [vmem:[#allocation2 + $0xb0] sm:$0xff]  ;;  %v5386_v63 = vld [vmem:[#allocation2 + $0xc0] sm:$0xff] }
 0x68e   :  { %v5570_v21 = vpack.c.bf16 %v19487_v29, %v19486_v43  ;;  %v19495_v58 = vmax.f32 %v19494_v38, 0.0  ;;  %v5574_v41 = vpack.c.bf16 %v5297_v61, %v5296_v47  ;;  %v5575_v31 = vpack.c.bf16 %v5299_v55, %v5298_v0  ;;  %12852 = vmatpush3.bf16.msra.mxu1 %v14625_v4  ;;  %v14627_v0 = vld [vmem:[%s19093_s2 + $0x28] sm:$0xff]   ;;  %v14628_v47 = vld [vmem:[%s19093_s2 + $0x30] sm:$0xff]   ;;  %v14629_v61 = vld [vmem:[%s19093_s2 + $0x38] sm:$0xff]  }
 0x68f   :  { %v5571_v40 = vpack.c.bf16 %v19489_v19, %v19488_v5  ;;  %v5572_v51 = vpack.c.bf16 %v19493_v36, %v19491_v3  ;;  %v5576_v7 = vpack.c.bf16 %v5301_v59, %v5300_v20  ;;  %v19497_v25 = vmax.f32 %v19496_v42, 0.0  ;;  %12853 = vmatprep.subr.bf16.mxu1 %v14626_v14  ;;  %12790 = vmatmul.mubr.bf16.gmra.mrb[8].mxu1 %v5551_v18  ;;  %v5515_v55 = vld [vmem:[#allocation2 + $0x1b9] sm:$0xff]  ;;  %v5374_v18 = vld [vmem:[#allocation2 + $0x30] sm:$0xff]  ;;  %v5395_v48 = vld [vmem:[#allocation2 + $0x128] sm:$0xff] }
 0x690   :  { %v5573_v27 = vpack.c.bf16 %v5295_v57, %v19495_v58  ;;  %12793 = vmatprep.mubr.bf16.mxu1 %v5552_v23  ;;  %v14630_v23 = vld [vmem:[%s19093_s2 + $0x80] sm:$0xff]   ;;  %v5514_v57 = vld [vmem:[#allocation2 + $0x1b1] sm:$0xff]  ;;  %v16855_v13 = vpack.c.bf16 %v5385_v12, %v5384_v45  ;;  %v5400_v4 = vld [vmem:[#allocation2 + $0x168] sm:$0xff] }
 0x691   :  { %v5577_v11 = vpack.c.bf16 %v19497_v25, %v5302_v56  ;;  %v5562_v20 = vpack.c.bf16 %v5515_v55, %v5514_v57  ;;  %v14692_v59 = vld [vmem:[#allocation2] sm:$0xff]  ;;  %v14637_v54 = vld [vmem:[%s19093_s2 + $0xb8] sm:$0xff]   ;;  %v5390_v29 = vld [vmem:[#allocation2 + $0xf0] sm:$0xff] }
 0x692   :  { %12854 = vmatpush3.bf16.msra.mxu1 %v14626_v14  ;;  %v16816_v56 = vpack.c.bf16 %v14692_v59, %v14692_v59  ;;  %v16867_v37 = vld [vmem:[%s19093_s2 + $0xc0] sm:$0xff]   ;;  %v5393_v10 = vld [vmem:[#allocation2 + $0x110] sm:$0xff]  ;;  %v5396_v38 = vld [vmem:[#allocation2 + $0x138] sm:$0xff] }
 0x693   :  { %12855 = vmatprep.subr.bf16.mxu1 %v14627_v0  ;;  %v5389_v43 = vld [vmem:[#allocation2 + $0xe0] sm:$0xff]  ;;  %v5401_v42 = vld [vmem:[#allocation2 + $0x170] sm:$0xff]  ;;  %v5408_v57 = vld [vmem:[#allocation2 + $0x1f8] sm:$0xff] }
 0x694   :  { %v5394_v3 = vld [vmem:[#allocation2 + $0x120] sm:$0xff]  ;;  %v16888_v25 = vpack.c.bf16 %v5401_v42, %v5400_v4  ;;  %v5405_v14 = vld [vmem:[#allocation2 + $0x1d0] sm:$0xff]  ;;  %v5411_v59 = vld [vmem:[#allocation2 + $0x218] sm:$0xff] }
 0x695   :  { %v5397_v58 = vld [vmem:[#allocation2 + $0x140] sm:$0xff]  ;;  %v5424_v12 = vld [vmem:[#allocation2 + $0x2b8] sm:$0xff] }
 0x696   :  { %12856 = vmatpush3.bf16.msra.mxu1 %v14627_v0  ;;  %v5406_v0 = vld [vmem:[#allocation2 + $0x1e0] sm:$0xff] }
 0x697   :  { %12857 = vmatprep.subr.bf16.mxu1 %v14628_v47  ;;  %12794 = vmatmul.mubr.bf16.gmra.mrb[12].mxu1 %v5553_v30  ;;  %v5375_v30 = vld [vmem:[#allocation2 + $0x38] sm:$0xff]  ;;  %v5409_v55 = vld [vmem:[#allocation2 + $0x200] sm:$0xff] }
 0x698   :  { %12797 = vmatprep.mubr.bf16.mxu1 %v5554_v9  ;;  %v16819_v9 = vpack.c.bf16 %v5373_v52, %v5372_v39  ;;  %v16898_v39 = vpack.c.bf16 %v5409_v55, %v5408_v57  ;;  %v14639_v55 = vld [vmem:[%s19093_s2 + $0xc8] sm:$0xff]  }
 0x69a   :  { %12858 = vmatpush3.bf16.msra.mxu1 %v14628_v47  ;;  %v5407_v47 = vld [vmem:[#allocation2 + $0x1e8] sm:$0xff] }
 0x69b   :  { %12859 = vmatprep.subr.bf16.mxu1 %v14629_v61 }
 0x69e   :  { %12860 = vmatpush3.bf16.msra.mxu1 %v14629_v61 }
 0x69f   :  { %12925 = vmatprep.subr.bf16.mxu1 %v14630_v23  ;;  %12798 = vmatmul.mubr.bf16.gmra.mrb[16].mxu1 %v5555_v53  ;;  %v14631_v53 = vld [vmem:[%s19093_s2 + $0x88] sm:$0xff]  }
 0x6a0   :  { %12801 = vmatprep.mubr.bf16.mxu1 %v5556_v50  ;;  %v16824_v50 = vpack.c.bf16 %v5375_v30, %v5374_v18  ;;  %v5413_v18 = vld [vmem:[#allocation2 + $0x230] sm:$0xff]  ;;  %v5414_v30 = vld [vmem:[#allocation2 + $0x240] sm:$0xff] }
 0x6a7   :  { %12802 = vmatmul.mubr.bf16.gmra.mrb[20].mxu1 %v5557_v62  ;;  %v14632_v62 = vld [vmem:[%s19093_s2 + $0x90] sm:$0xff]  }
 0x6a8   :  { %12805 = vmatprep.mubr.bf16.mxu1 %v5558_v44  ;;  %v5376_v44 = vld [vmem:[#allocation2 + $0x48] sm:$0xff] }
 0x6af   :  { %12806 = vmatmul.mubr.bf16.gmra.mrb[24].mxu1 %v5559_v1  ;;  %v5377_v1 = vld [vmem:[#allocation2 + $0x50] sm:$0xff] }
 0x6b0   :  { %12809 = vmatprep.mubr.bf16.mxu1 %v5560_v49  ;;  %v5379_v49 = vld [vmem:[#allocation2 + $0x68] sm:$0xff] }
 0x6b7   :  { %12810 = vmatmul.mubr.bf16.gmra.mrb[28].mxu1 %v5561_v46  ;;  %v16831_v46 = vpack.c.bf16 %v5377_v1, %v5376_v44  ;;  %v5416_v1 = vld [vmem:[#allocation2 + $0x258] sm:$0xff] }
 0x6b8   :  { %12813 = vmatprep.mubr.bf16.mxu1 %v5562_v20  ;;  %v5410_v20 = vld [vmem:[#allocation2 + $0x210] sm:$0xff] }
 0x6b9   :  { %v16900_v52 = vpack.c.bf16 %v5411_v59, %v5410_v20  ;;  %v14640_v59 = vld [vmem:[%s19093_s2 + $0xd0] sm:$0xff]  }
 0x6bf   :  { %12814 = vmatmul.mubr.bf16.gmra.mrb[32].mxu1 %v5563_v26  ;;  %v14633_v26 = vld [vmem:[%s19093_s2 + $0x98] sm:$0xff]  }
 0x6c0   :  { %12817 = vmatprep.mubr.bf16.mxu1 %v5564_v22  ;;  %v16836_v22 = vpack.c.bf16 %v5379_v49, %v5378_v17  ;;  %v5417_v17 = vld [vmem:[#allocation2 + $0x260] sm:$0xff]  ;;  %v5418_v49 = vld [vmem:[#allocation2 + $0x270] sm:$0xff] }
 0x6c7   :  { %12818 = vmatmul.mubr.bf16.gmra.mrb[36].mxu1 %v5565_v28  ;;  %v5380_v28 = vld [vmem:[#allocation2 + $0x78] sm:$0xff] }
 0x6c8   :  { %12821 = vmatprep.mubr.bf16.mxu1 %v5566_v2  ;;  %v5383_v2 = vld [vmem:[#allocation2 + $0x98] sm:$0xff]  ;;  %v16843_v15 = vpack.c.bf16 %v5381_v8, %v5380_v28  ;;  %v5420_v8 = vld [vmem:[#allocation2 + $0x288] sm:$0xff] }
 0x6cf   :  { %12822 = vmatmul.mubr.bf16.gmra.mrb[40].mxu1 %v5567_v16  ;;  %v16848_v16 = vpack.c.bf16 %v5383_v2, %v5382_v6  ;;  %v5421_v6 = vld [vmem:[#allocation2 + $0x290] sm:$0xff]  ;;  %v5422_v2 = vld [vmem:[#allocation2 + $0x2a0] sm:$0xff] }
 0x6d0   :  { %12825 = vmatprep.mubr.bf16.mxu1 %v5568_v24  ;;  %v5387_v24 = vld [vmem:[#allocation2 + $0xc8] sm:$0xff] }
 0x6d1   :  { %v16860_v35 = vpack.c.bf16 %v5387_v24, %v5386_v63  ;;  %v5425_v63 = vld [vmem:[#allocation2 + $0x2c0] sm:$0xff]  ;;  %v5426_v24 = vld [vmem:[#allocation2 + $0x2d0] sm:$0xff] }
 0x6d7   :  { %12826 = vmatmul.mubr.bf16.gmra.mrb[44].mxu1 %v5569_v32  ;;  %v5388_v32 = vld [vmem:[#allocation2 + $0xd8] sm:$0xff] }
 0x6d8   :  { %12829 = vmatprep.mubr.bf16.mxu1 %v5570_v21  ;;  %v5391_v21 = vld [vmem:[#allocation2 + $0xf8] sm:$0xff]  ;;  %v16869_v5 = vpack.c.bf16 %v5389_v43, %v5388_v32  ;;  %v16922_v32 = vpack.c.bf16 %v5425_v63, %v5424_v12  ;;  %v14643_v12 = vld [vmem:[%s19093_s2 + $0xe8] sm:$0xff]  }
 0x6d9   :  { %v16872_v19 = vpack.c.bf16 %v5391_v21, %v5390_v29  ;;  %v5428_v29 = vld [vmem:[#allocation2 + $0x2e8] sm:$0xff]  ;;  %v5429_v21 = vld [vmem:[#allocation2 + $0x2f0] sm:$0xff] }
 0x6df   :  { %12830 = vmatmul.mubr.bf16.gmra.mrb[48].mxu1 %v5571_v40  ;;  %v5392_v40 = vld [vmem:[#allocation2 + $0x108] sm:$0xff] }
 0x6e0   :  { %12833 = vmatprep.mubr.bf16.mxu1 %v5572_v51  ;;  %v16876_v36 = vpack.c.bf16 %v5393_v10, %v5392_v40  ;;  %v16878_v51 = vpack.c.bf16 %v5395_v48, %v5394_v3  ;;  %v5430_v40 = vld [vmem:[#allocation2 + $0x300] sm:$0xff]  ;;  %v5431_v10 = vld [vmem:[#allocation2 + $0x308] sm:$0xff]  ;;  %v16928_v3 = vpack.c.bf16 %v5429_v21, %v5428_v29  ;;  %v6284_v29 = vld [vmem:[#allocation2 + $0xb2] sm:$0xff] }
 0x6e1   :  { %v16930_v48 = vpack.c.bf16 %v5431_v10, %v5430_v40  ;;  %v6285_v21 = vld [vmem:[#allocation2 + $0xc2] sm:$0xff]  ;;  %v6286_v40 = vld [vmem:[#allocation2 + $0xca] sm:$0xff] }
 0x6e7   :  { %12834 = vmatmul.mubr.bf16.gmra.mrb[52].mxu1 %v5573_v27  ;;  %v5398_v27 = vld [vmem:[#allocation2 + $0x150] sm:$0xff] }
 0x6e8   :  { %12837 = vmatprep.mubr.bf16.mxu1 %v5574_v41  ;;  %v5399_v41 = vld [vmem:[#allocation2 + $0x158] sm:$0xff] }
 0x6ef   :  { %12838 = vmatmul.mubr.bf16.gmra.mrb[56].mxu1 %v5575_v31  ;;  %v16882_v31 = vpack.c.bf16 %v5397_v58, %v5396_v38  ;;  %v6269_v38 = vld [vmem:[#allocation2 + $0x2] sm:$0xff]  ;;  %v6270_v58 = vld [vmem:[#allocation2 + $0xa] sm:$0xff] }
 0x6f0   :  { %12841 = vmatprep.mubr.bf16.mxu1 %v5576_v7  ;;  %v16884_v7 = vpack.c.bf16 %v5399_v41, %v5398_v27  ;;  %v5432_v27 = vld [vmem:[#allocation2 + $0x318] sm:$0xff]  ;;  %v5433_v41 = vld [vmem:[#allocation2 + $0x320] sm:$0xff]  ;;  %v6333_v4 = vpack.c.bf16 %v6270_v58, %v6269_v38  ;;  %v16979_v58 = vpack.c.bf16 %v6286_v40, %v6285_v21 }
 0x6f1   :  { %v16934_v42 = vpack.c.bf16 %v5433_v41, %v5432_v27  ;;  %v14645_v38 = vld [vmem:[%s19093_s2 + $0xf8] sm:$0xff]   ;;  %v16986_v27 = vld [vmem:[%s19093_s2 + $0x100] sm:$0xff]  }
 0x6f2   :  { %v6287_v41 = vld [vmem:[#allocation2 + $0xda] sm:$0xff] }
 0x6f7   :  { %12842 = vmatmul.mubr.bf16.gmra.mrb[60].mxu1 %v5577_v11  ;;  %v5404_v11 = vld [vmem:[#allocation2 + $0x1c8] sm:$0xff] }
 0x6f8   :  { %12861 = vmatprep.mubr.bf16.mxu1 %v16816_v56  ;;  %v16892_v61 = vpack.c.bf16 %v5405_v14, %v5404_v11  ;;  %v6271_v11 = vld [vmem:[#allocation2 + $0x1a] sm:$0xff]  ;;  %v6272_v14 = vld [vmem:[#allocation2 + $0x22] sm:$0xff] }
 0x6f9   :  { %v16937_v57 = vpack.c.bf16 %v6272_v14, %v6271_v11  ;;  %v6289_v11 = vld [vmem:[#allocation2 + $0xf2] sm:$0xff]  ;;  %v6290_v14 = vld [vmem:[#allocation2 + $0xfa] sm:$0xff] }
 0x6ff   :  { %12862 = vmatmul.mubr.bf16.vlgmr.msra.gmra.mrb[0].mxu1 %v16819_v9 }
 0x700   :  { %12865 = vmatprep.mubr.bf16.mxu1 %v16824_v50  ;;  %12926 = vmatpush3.bf16.msra.mxu1 %v14630_v23  ;;  %v16894_v23 = vpack.c.bf16 %v5407_v47, %v5406_v0  ;;  %v6273_v0 = vld [vmem:[#allocation2 + $0x32] sm:$0xff]  ;;  %v6274_v47 = vld [vmem:[#allocation2 + $0x3a] sm:$0xff] }
 0x701   :  { %12927 = vmatprep.subr.bf16.mxu1 %v14631_v53  ;;  %v16942_v20 = vpack.c.bf16 %v6274_v47, %v6273_v0  ;;  %v16991_v47 = vpack.c.bf16 %v6290_v14, %v6289_v11  ;;  %v6306_v11 = vld [vmem:[#allocation2 + $0x1ea] sm:$0xff] }
 0x704   :  { %12928 = vmatpush3.bf16.msra.mxu1 %v14631_v53  ;;  %v5415_v53 = vld [vmem:[#allocation2 + $0x248] sm:$0xff] }
 0x705   :  { %12929 = vmatprep.subr.bf16.mxu1 %v14632_v62  ;;  %v16906_v44 = vpack.c.bf16 %v5415_v53, %v5414_v30  ;;  %v6277_v30 = vld [vmem:[#allocation2 + $0x62] sm:$0xff]  ;;  %v6278_v53 = vld [vmem:[#allocation2 + $0x6a] sm:$0xff] }
 0x707   :  { %12866 = vmatmul.mubr.bf16.gmra.mrb[4].mxu1 %v16831_v46 }
 0x708   :  { %12869 = vmatprep.mubr.bf16.mxu1 %v16836_v22  ;;  %12930 = vmatpush3.bf16.msra.mxu1 %v14632_v62 }
 0x709   :  { %12931 = vmatprep.subr.bf16.mxu1 %v14633_v26 }
 0x70c   :  { %12932 = vmatpush3.bf16.msra.mxu1 %v14633_v26  ;;  %v5419_v26 = vld [vmem:[#allocation2 + $0x278] sm:$0xff] }
 0x70d   :  { %12933 = vmatprep.subr.bf16.mxu1 %v14634_v33  ;;  %v16912_v28 = vpack.c.bf16 %v5419_v26, %v5418_v49  ;;  %v16955_v49 = vpack.c.bf16 %v6278_v53, %v6277_v30  ;;  %v6279_v26 = vld [vmem:[#allocation2 + $0x7a] sm:$0xff] }
 0x70f   :  { %12870 = vmatmul.mubr.bf16.gmra.mrb[8].mxu1 %v16843_v15 }
 0x710   :  { %12873 = vmatprep.mubr.bf16.mxu1 %v16848_v16  ;;  %12934 = vmatpush3.bf16.msra.mxu1 %v14634_v33  ;;  %v16910_v33 = vpack.c.bf16 %v5417_v17, %v5416_v1  ;;  %v14641_v17 = vld [vmem:[%s19093_s2 + $0xd8] sm:$0xff]  }
 0x711   :  { %12935 = vmatprep.subr.bf16.mxu1 %v14635_v60 }
 0x714   :  { %12936 = vmatpush3.bf16.msra.mxu1 %v14635_v60  ;;  %v5423_v60 = vld [vmem:[#allocation2 + $0x2a8] sm:$0xff] }
 0x715   :  { %12937 = vmatprep.subr.bf16.mxu1 %v14636_v34  ;;  %v16918_v45 = vpack.c.bf16 %v5423_v60, %v5422_v2  ;;  %v6282_v2 = vld [vmem:[#allocation2 + $0x9a] sm:$0xff] }
 0x717   :  { %12874 = vmatmul.mubr.bf16.gmra.mrb[12].mxu1 %v16855_v13 }
 0x718   :  { %12877 = vmatprep.mubr.bf16.mxu1 %v16860_v35  ;;  %12938 = vmatpush3.bf16.msra.mxu1 %v14636_v34  ;;  %v16916_v34 = vpack.c.bf16 %v5421_v6, %v5420_v8  ;;  %v6280_v8 = vld [vmem:[#allocation2 + $0x82] sm:$0xff]  ;;  %v6281_v6 = vld [vmem:[#allocation2 + $0x92] sm:$0xff] }
 0x719   :  { %12939 = vmatprep.subr.bf16.mxu1 %v14637_v54  ;;  %v16962_v60 = vpack.c.bf16 %v6280_v8, %v6279_v26  ;;  %v16967_v63 = vpack.c.bf16 %v6282_v2, %v6281_v6  ;;  %v6297_v26 = vld [vmem:[#allocation2 + $0x152] sm:$0xff]  ;;  %v6298_v8 = vld [vmem:[#allocation2 + $0x15a] sm:$0xff] }
 0x71a   :  { %v17003_v2 = vpack.c.bf16 %v6298_v8, %v6297_v26  ;;  %v6311_v8 = vld [vmem:[#allocation2 + $0x22a] sm:$0xff] }
 0x71c   :  { %12940 = vmatpush3.bf16.msra.mxu1 %v14637_v54  ;;  %v5427_v54 = vld [vmem:[#allocation2 + $0x2d8] sm:$0xff] }
 0x71d   :  { %13005 = vmatprep.subr.bf16.mxu1 %v16867_v37  ;;  %v16924_v43 = vpack.c.bf16 %v5427_v54, %v5426_v24  ;;  %v14644_v24 = vld [vmem:[%s19093_s2 + $0xf0] sm:$0xff]  }
 0x71e   :  { %v6283_v54 = vld [vmem:[#allocation2 + $0xaa] sm:$0xff] }
 0x71f   :  { %12878 = vmatmul.mubr.bf16.gmra.mrb[16].mxu1 %v16869_v5  ;;  %v16974_v10 = vpack.c.bf16 %v6284_v29, %v6283_v54  ;;  %v6299_v54 = vld [vmem:[#allocation2 + $0x16a] sm:$0xff]  ;;  %v6300_v29 = vld [vmem:[#allocation2 + $0x172] sm:$0xff] }
 0x720   :  { %12881 = vmatprep.mubr.bf16.mxu1 %v16872_v19  ;;  %v17007_v40 = vpack.c.bf16 %v6300_v29, %v6299_v54  ;;  %v6314_v54 = vld [vmem:[#allocation2 + $0x24a] sm:$0xff] }
 0x727   :  { %12882 = vmatmul.mubr.bf16.gmra.mrb[20].mxu1 %v16876_v36 }
 0x728   :  { %12885 = vmatprep.mubr.bf16.mxu1 %v16878_v51 }
 0x72f   :  { %12886 = vmatmul.mubr.bf16.gmra.mrb[24].mxu1 %v16882_v31 }
 0x730   :  { %12889 = vmatprep.mubr.bf16.mxu1 %v16884_v7 }
 0x737   :  { %12890 = vmatmul.mubr.bf16.gmra.mrb[28].mxu1 %v16888_v25 }
 0x738   :  { %12893 = vmatprep.mubr.bf16.mxu1 %v16816_v56  ;;  %v5412_v56 = vld [vmem:[#allocation2 + $0x228] sm:$0xff] }
 0x739   :  { %v16904_v62 = vpack.c.bf16 %v5413_v18, %v5412_v56  ;;  %v6275_v56 = vld [vmem:[#allocation2 + $0x4a] sm:$0xff]  ;;  %v6276_v18 = vld [vmem:[#allocation2 + $0x52] sm:$0xff] }
 0x73a   :  { %v16950_v1 = vpack.c.bf16 %v6276_v18, %v6275_v56  ;;  %v6293_v56 = vld [vmem:[#allocation2 + $0x122] sm:$0xff]  ;;  %v6294_v18 = vld [vmem:[#allocation2 + $0x12a] sm:$0xff] }
 0x73b   :  { %v16997_v53 = vpack.c.bf16 %v6294_v18, %v6293_v56  ;;  %v6308_v56 = vld [vmem:[#allocation2 + $0x202] sm:$0xff]  ;;  %v6309_v18 = vld [vmem:[#allocation2 + $0x212] sm:$0xff] }
 0x73f   :  { %12894 = vmatmul.mubr.bf16.gmra.mrb[32].mxu1 %v16892_v61 }
 0x740   :  { %12897 = vmatprep.mubr.bf16.mxu1 %v16894_v23 }
 0x747   :  { %12898 = vmatmul.mubr.bf16.gmra.mrb[36].mxu1 %v16898_v39 }
 0x748   :  { %12901 = vmatprep.mubr.bf16.mxu1 %v16900_v52 }
 0x74f   :  { %12902 = vmatmul.mubr.bf16.gmra.mrb[40].mxu1 %v16904_v62 }
 0x750   :  { %12905 = vmatprep.mubr.bf16.mxu1 %v16906_v44 }
 0x757   :  { %12906 = vmatmul.mubr.bf16.gmra.mrb[44].mxu1 %v16910_v33 }
 0x758   :  { %12909 = vmatprep.mubr.bf16.mxu1 %v16912_v28 }
 0x75f   :  { %12910 = vmatmul.mubr.bf16.gmra.mrb[48].mxu1 %v16916_v34 }
 0x760   :  { %12913 = vmatprep.mubr.bf16.mxu1 %v16918_v45 }
 0x767   :  { %12914 = vmatmul.mubr.bf16.gmra.mrb[52].mxu1 %v16922_v32 }
 0x768   :  { %12917 = vmatprep.mubr.bf16.mxu1 %v16924_v43 }
 0x76f   :  { %12918 = vmatmul.mubr.bf16.gmra.mrb[56].mxu1 %v16928_v3 }
 0x770   :  { %12921 = vmatprep.mubr.bf16.mxu1 %v16930_v48 }
 0x777   :  { %12922 = vmatmul.mubr.bf16.gmra.mrb[60].mxu1 %v16934_v42 }
 0x778   :  { %12941 = vmatprep.mubr.bf16.mxu1 %v6333_v4  ;;  %v6288_v4 = vld [vmem:[#allocation2 + $0xe2] sm:$0xff] }
 0x779   :  { %v16988_v0 = vpack.c.bf16 %v6288_v4, %v6287_v41  ;;  %v6304_v41 = vld [vmem:[#allocation2 + $0x1d2] sm:$0xff]  ;;  %v6305_v4 = vld [vmem:[#allocation2 + $0x1e2] sm:$0xff] }
 0x77f   :  { %12942 = vmatmul.mubr.bf16.vlgmr.msra.gmra.mrb[0].mxu1 %v16937_v57 }
 0x780   :  { %12945 = vmatprep.mubr.bf16.mxu1 %v16942_v20  ;;  %13006 = vmatpush3.bf16.msra.mxu1 %v16867_v37  ;;  %v14642_v37 = vld [vmem:[%s19093_s2 + $0xe0] sm:$0xff]  }
 0x781   :  { %13007 = vmatprep.subr.bf16.mxu1 %v14639_v55 }
 0x784   :  { %13008 = vmatpush3.bf16.msra.mxu1 %v14639_v55  ;;  %v6291_v55 = vld [vmem:[#allocation2 + $0x10a] sm:$0xff] }
 0x785   :  { %13009 = vmatprep.subr.bf16.mxu1 %v14640_v59 }
 0x787   :  { %12946 = vmatmul.mubr.bf16.gmra.mrb[4].mxu1 %v16950_v1 }
 0x788   :  { %12949 = vmatprep.mubr.bf16.mxu1 %v16955_v49  ;;  %13010 = vmatpush3.bf16.msra.mxu1 %v14640_v59  ;;  %v6292_v59 = vld [vmem:[#allocation2 + $0x112] sm:$0xff] }
 0x789   :  { %13011 = vmatprep.subr.bf16.mxu1 %v14641_v17  ;;  %v16995_v30 = vpack.c.bf16 %v6292_v59, %v6291_v55  ;;  %v17012_v55 = vpack.c.bf16 %v6306_v11, %v6305_v4  ;;  %v6307_v59 = vld [vmem:[#allocation2 + $0x1fa] sm:$0xff]  ;;  %v6317_v4 = vld [vmem:[#allocation2 + $0x272] sm:$0xff] }
 0x78a   :  { %v6318_v11 = vld [vmem:[#allocation2 + $0x27a] sm:$0xff] }
 0x78c   :  { %13012 = vmatpush3.bf16.msra.mxu1 %v14641_v17  ;;  %v6295_v17 = vld [vmem:[#allocation2 + $0x13a] sm:$0xff] }
 0x78d   :  { %13013 = vmatprep.subr.bf16.mxu1 %v14642_v37 }
 0x78f   :  { %12950 = vmatmul.mubr.bf16.gmra.mrb[8].mxu1 %v16962_v60 }
 0x790   :  { %12953 = vmatprep.mubr.bf16.mxu1 %v16967_v63  ;;  %13014 = vmatpush3.bf16.msra.mxu1 %v14642_v37  ;;  %v6296_v37 = vld [vmem:[#allocation2 + $0x142] sm:$0xff] }
 0x791   :  { %13015 = vmatprep.subr.bf16.mxu1 %v14643_v12  ;;  %v17001_v6 = vpack.c.bf16 %v6296_v37, %v6295_v17  ;;  %v6310_v17 = vld [vmem:[#allocation2 + $0x21a] sm:$0xff]  ;;  %v17016_v37 = vpack.c.bf16 %v6308_v56, %v6307_v59  ;;  %v17030_v56 = vpack.c.bf16 %v6318_v11, %v6317_v4  ;;  %v6325_v4 = vld [vmem:[#allocation2 + $0x2d2] sm:$0xff] }
 0x792   :  { %v17018_v26 = vpack.c.bf16 %v6310_v17, %v6309_v18  ;;  %v6319_v18 = vld [vmem:[#allocation2 + $0x28a] sm:$0xff]  ;;  %v6320_v17 = vld [vmem:[#allocation2 + $0x292] sm:$0xff]  ;;  %v6326_v11 = vld [vmem:[#allocation2 + $0x2da] sm:$0xff] }
 0x793   :  { %19500 = vst [vmem:[#allocation6_spill] sm:$0xff] %v17030_v56 }
 0x794   :  { %13016 = vmatpush3.bf16.msra.mxu1 %v14643_v12  ;;  %v6301_v12 = vld [vmem:[#allocation2 + $0x1b2] sm:$0xff] }
 0x795   :  { %13017 = vmatprep.subr.bf16.mxu1 %v14644_v24 }
 0x797   :  { %12954 = vmatmul.mubr.bf16.gmra.mrb[12].mxu1 %v16974_v10 }
 0x798   :  { %12957 = vmatprep.mubr.bf16.mxu1 %v16979_v58  ;;  %13018 = vmatpush3.bf16.msra.mxu1 %v14644_v24  ;;  %v6302_v24 = vld [vmem:[#allocation2 + $0x1ba] sm:$0xff] }
 0x799   :  { %13019 = vmatprep.subr.bf16.mxu1 %v14645_v38  ;;  %v6349_v21 = vpack.c.bf16 %v6302_v24, %v6301_v12  ;;  %v6312_v12 = vld [vmem:[#allocation2 + $0x232] sm:$0xff]  ;;  %v6313_v24 = vld [vmem:[#allocation2 + $0x242] sm:$0xff] }
 0x79a   :  { %v17022_v29 = vpack.c.bf16 %v6312_v12, %v6311_v8  ;;  %v6321_v8 = vld [vmem:[#allocation2 + $0x2a2] sm:$0xff]  ;;  %v6322_v12 = vld [vmem:[#allocation2 + $0x2aa] sm:$0xff] }
 0x79c   :  { %13020 = vmatpush3.bf16.msra.mxu1 %v14645_v38  ;;  %v6303_v38 = vld [vmem:[#allocation2 + $0x1ca] sm:$0xff] }
 0x79d   :  { %13085 = vmatprep.subr.bf16.mxu1 %v16986_v27  ;;  %v17010_v14 = vpack.c.bf16 %v6304_v41, %v6303_v38  ;;  %v6315_v38 = vld [vmem:[#allocation2 + $0x25a] sm:$0xff]  ;;  %v6316_v41 = vld [vmem:[#allocation2 + $0x262] sm:$0xff] }
 0x79e   :  { %v17028_v59 = vpack.c.bf16 %v6316_v41, %v6315_v38  ;;  %v6323_v38 = vld [vmem:[#allocation2 + $0x2ba] sm:$0xff]  ;;  %v6324_v41 = vld [vmem:[#allocation2 + $0x2c2] sm:$0xff] }
 0x79f   :  { %12958 = vmatmul.mubr.bf16.gmra.mrb[16].mxu1 %v16988_v0 }
 0x7a0   :  { %12961 = vmatprep.mubr.bf16.mxu1 %v16991_v47  ;;  %19499 = vst [vmem:[#allocation4_spill] sm:$0xff] %v17028_v59 }
 0x7a7   :  { %12962 = vmatmul.mubr.bf16.gmra.mrb[20].mxu1 %v16995_v30 }
 0x7a8   :  { %12965 = vmatprep.mubr.bf16.mxu1 %v16997_v53 }
 0x7af   :  { %12966 = vmatmul.mubr.bf16.gmra.mrb[24].mxu1 %v17001_v6 }
 0x7b0   :  { %12969 = vmatprep.mubr.bf16.mxu1 %v17003_v2 }
 0x7b7   :  { %12970 = vmatmul.mubr.bf16.gmra.mrb[28].mxu1 %v17007_v40 }
 0x7b8   :  { %12973 = vmatprep.mubr.bf16.mxu1 %v6349_v21  ;;  %v17024_v21 = vpack.c.bf16 %v6314_v54, %v6313_v24  ;;  %v17034_v24 = vpack.c.bf16 %v6320_v17, %v6319_v18  ;;  %v17036_v54 = vpack.c.bf16 %v6322_v12, %v6321_v8  ;;  %v6327_v18 = vld [vmem:[#allocation2 + $0x2ea] sm:$0xff]  ;;  %v6328_v17 = vld [vmem:[#allocation2 + $0x2f2] sm:$0xff]  ;;  %v6329_v8 = vld [vmem:[#allocation2 + $0x302] sm:$0xff] }
 0x7b9   :  { %v6330_v12 = vld [vmem:[#allocation2 + $0x30a] sm:$0xff] }
 0x7ba   :  { %19498 = vst [vmem:[#allocation3_spill] sm:$0xff] %v17024_v21  ;;  %19501 = vst [vmem:[#allocation7_spill] sm:$0xff] %v17034_v24 }
 0x7bf   :  { %12974 = vmatmul.mubr.bf16.gmra.mrb[32].mxu1 %v17010_v14 }
 0x7c0   :  { %12977 = vmatprep.mubr.bf16.mxu1 %v17012_v55 }
 0x7c7   :  { %12978 = vmatmul.mubr.bf16.gmra.mrb[36].mxu1 %v17016_v37 }
 0x7c8   :  { %12981 = vmatprep.mubr.bf16.mxu1 %v17018_v26 }
 0x7cf   :  { %12982 = vmatmul.mubr.bf16.gmra.mrb[40].mxu1 %v17022_v29 }
 0x7d0   :  { %12985 = vmatprep.mubr.bf16.mxu1 %v17024_v21  ;;  %v17040_v21 = vpack.c.bf16 %v6324_v41, %v6323_v38  ;;  %v6331_v38 = vld [vmem:[#allocation2 + $0x31a] sm:$0xff]  ;;  %v6332_v41 = vld [vmem:[#allocation2 + $0x322] sm:$0xff] }
 0x7d7   :  { %12986 = vmatmul.mubr.bf16.gmra.mrb[44].mxu1 %v17028_v59  ;;  %v17042_v59 = vpack.c.bf16 %v6326_v11, %v6325_v4  ;;  %v17052_v4 = vpack.c.bf16 %v6332_v41, %v6331_v38  ;;  %v14647_v11 = vld [vmem:[%s19093_s2 + $0x108] sm:$0xff]   ;;  %v7310_v38 = vld [vmem:[#allocation2 + $0xb1] sm:$0xff] }
 0x7d8   :  { %12989 = vmatprep.mubr.bf16.mxu1 %v17030_v56  ;;  %v17046_v56 = vpack.c.bf16 %v6328_v17, %v6327_v18  ;;  %v14648_v18 = vld [vmem:[%s19093_s2 + $0x110] sm:$0xff]  }
 0x7d9   :  { %v7307_v17 = vld [vmem:[#allocation2 + $0x91] sm:$0xff] }
 0x7df   :  { %12990 = vmatmul.mubr.bf16.gmra.mrb[48].mxu1 %v17034_v24  ;;  %v17048_v24 = vpack.c.bf16 %v6330_v12, %v6329_v8  ;;  %v7308_v8 = vld [vmem:[#allocation2 + $0x99] sm:$0xff]  ;;  %v7309_v12 = vld [vmem:[#allocation2 + $0xa9] sm:$0xff] }
 0x7e0   :  { %12993 = vmatprep.mubr.bf16.mxu1 %v17036_v54  ;;  %v17140_v41 = vpack.c.bf16 %v7308_v8, %v7307_v17 }
 0x7e7   :  { %12994 = vmatmul.mubr.bf16.gmra.mrb[52].mxu1 %v17040_v21 }
 0x7e8   :  { %12997 = vmatprep.mubr.bf16.mxu1 %v17042_v59 }
 0x7ef   :  { %12998 = vmatmul.mubr.bf16.gmra.mrb[56].mxu1 %v17046_v56 }
 0x7f0   :  { %13001 = vmatprep.mubr.bf16.mxu1 %v17048_v24 }
 0x7f7   :  { %13002 = vmatmul.mubr.bf16.gmra.mrb[60].mxu1 %v17052_v4 }
 0x7f8   :  { %13021 = vmatprep.mubr.bf16.mxu1 %v16819_v9  ;;  %v14649_v9 = vld [vmem:[%s19093_s2 + $0x118] sm:$0xff]  }
 0x7ff   :  { %13022 = vmatmul.mubr.bf16.vlgmr.msra.gmra.mrb[0].mxu1 %v16824_v50  ;;  %v14650_v50 = vld [vmem:[%s19093_s2 + $0x120] sm:$0xff]  }
 0x800   :  { %13025 = vmatprep.mubr.bf16.mxu1 %v16831_v46  ;;  %13086 = vmatpush3.bf16.msra.mxu1 %v16986_v27  ;;  %v14651_v46 = vld [vmem:[%s19093_s2 + $0x128] sm:$0xff]   ;;  %v14658_v27 = vld [vmem:[%s19093_s2 + $0x160] sm:$0xff]  }
 0x801   :  { %13087 = vmatprep.subr.bf16.mxu1 %v14647_v11 }
 0x804   :  { %13088 = vmatpush3.bf16.msra.mxu1 %v14647_v11  ;;  %v14659_v11 = vld [vmem:[%s19093_s2 + $0x168] sm:$0xff]  }
 0x805   :  { %13089 = vmatprep.subr.bf16.mxu1 %v14648_v18 }
 0x807   :  { %13026 = vmatmul.mubr.bf16.gmra.mrb[4].mxu1 %v16836_v22  ;;  %v14652_v22 = vld [vmem:[%s19093_s2 + $0x130] sm:$0xff]  }
 0x808   :  { %13029 = vmatprep.mubr.bf16.mxu1 %v16843_v15  ;;  %13090 = vmatpush3.bf16.msra.mxu1 %v14648_v18  ;;  %v14653_v15 = vld [vmem:[%s19093_s2 + $0x138] sm:$0xff]   ;;  %v17145_v18 = vpack.c.bf16 %v7310_v38, %v7309_v12  ;;  %v7327_v12 = vld [vmem:[#allocation2 + $0x181] sm:$0xff]  ;;  %v7328_v38 = vld [vmem:[#allocation2 + $0x189] sm:$0xff] }
 0x809   :  { %13091 = vmatprep.subr.bf16.mxu1 %v14649_v9 }
 0x80c   :  { %13092 = vmatpush3.bf16.msra.mxu1 %v14649_v9  ;;  %v14660_v9 = vld [vmem:[%s19093_s2 + $0x170] sm:$0xff]  }
 0x80d   :  { %13093 = vmatprep.subr.bf16.mxu1 %v14650_v50 }
 0x80f   :  { %13030 = vmatmul.mubr.bf16.gmra.mrb[8].mxu1 %v16848_v16  ;;  %v14654_v16 = vld [vmem:[%s19093_s2 + $0x140] sm:$0xff]  }
 0x810   :  { %13033 = vmatprep.mubr.bf16.mxu1 %v16855_v13  ;;  %13094 = vmatpush3.bf16.msra.mxu1 %v14650_v50  ;;  %v6813_v13 = vld [vmem:[#allocation2 + $0x180] sm:$0xff] }
 0x811   :  { %13095 = vmatprep.subr.bf16.mxu1 %v14651_v46  ;;  %v7311_v50 = vld [vmem:[#allocation2 + $0xc1] sm:$0xff] }
 0x814   :  { %13096 = vmatpush3.bf16.msra.mxu1 %v14651_v46  ;;  %v7312_v46 = vld [vmem:[#allocation2 + $0xc9] sm:$0xff] }
 0x815   :  { %13097 = vmatprep.subr.bf16.mxu1 %v14652_v22 }
 0x817   :  { %13034 = vmatmul.mubr.bf16.gmra.mrb[12].mxu1 %v16860_v35  ;;  %v6814_v35 = vld [vmem:[#allocation2 + $0x188] sm:$0xff] }
 0x818   :  { %13037 = vmatprep.mubr.bf16.mxu1 %v16869_v5  ;;  %13098 = vmatpush3.bf16.msra.mxu1 %v14652_v22  ;;  %v17095_v5 = vpack.c.bf16 %v6814_v35, %v6813_v13  ;;  %v7313_v22 = vld [vmem:[#allocation2 + $0xd9] sm:$0xff] }
 0x819   :  { %13099 = vmatprep.subr.bf16.mxu1 %v14653_v15  ;;  %v14661_v13 = vld [vmem:[%s19093_s2 + $0x178] sm:$0xff]  }
 0x81c   :  { %13100 = vmatpush3.bf16.msra.mxu1 %v14653_v15  ;;  %v7314_v15 = vld [vmem:[#allocation2 + $0xe1] sm:$0xff] }
 0x81d   :  { %13165 = vmatprep.subr.bf16.mxu1 %v14654_v16  ;;  %v17157_v35 = vpack.c.bf16 %v7314_v15, %v7313_v22  ;;  %v7331_v22 = vld [vmem:[#allocation2 + $0x1e1] sm:$0xff]  ;;  %v7332_v15 = vld [vmem:[#allocation2 + $0x1e9] sm:$0xff] }
 0x81f   :  { %13038 = vmatmul.mubr.bf16.gmra.mrb[16].mxu1 %v16872_v19  ;;  %v6845_v19 = vld [vmem:[#allocation2 + $0x330] sm:$0xff] }
 0x820   :  { %13041 = vmatprep.mubr.bf16.mxu1 %v16876_v36  ;;  %v6846_v36 = vld [vmem:[#allocation2 + $0x338] sm:$0xff] }
 0x827   :  { %13042 = vmatmul.mubr.bf16.gmra.mrb[20].mxu1 %v16878_v51  ;;  %v7297_v51 = vld [vmem:[#allocation2 + $0x19] sm:$0xff] }
 0x828   :  { %13045 = vmatprep.mubr.bf16.mxu1 %v16882_v31  ;;  %v7298_v31 = vld [vmem:[#allocation2 + $0x21] sm:$0xff] }
 0x82f   :  { %13046 = vmatmul.mubr.bf16.gmra.mrb[24].mxu1 %v16884_v7  ;;  %v17113_v7 = vpack.c.bf16 %v6846_v36, %v6845_v19  ;;  %v17164_v19 = vld [vmem:[%s19093_s2 + $0x180] sm:$0xff]   ;;  %v7315_v36 = vld [vmem:[#allocation2 + $0xf1] sm:$0xff] }
 0x830   :  { %13049 = vmatprep.mubr.bf16.mxu1 %v16888_v25  ;;  %v7361_v25 = vpack.c.bf16 %v7298_v31, %v7297_v51  ;;  %v7316_v51 = vld [vmem:[#allocation2 + $0xf9] sm:$0xff]  ;;  %v7317_v31 = vld [vmem:[#allocation2 + $0x109] sm:$0xff] }
 0x837   :  { %13050 = vmatmul.mubr.bf16.gmra.mrb[28].mxu1 %v17095_v5 }
 0x838   :  { %13053 = vmatprep.mubr.bf16.mxu1 %v16892_v61  ;;  %v7299_v61 = vld [vmem:[#allocation2 + $0x31] sm:$0xff] }
 0x83f   :  { %13054 = vmatmul.mubr.bf16.gmra.mrb[32].mxu1 %v16894_v23  ;;  %v7300_v23 = vld [vmem:[#allocation2 + $0x39] sm:$0xff] }
 0x840   :  { %13057 = vmatprep.mubr.bf16.mxu1 %v16898_v39  ;;  %v7301_v39 = vld [vmem:[#allocation2 + $0x49] sm:$0xff] }
 0x847   :  { %13058 = vmatmul.mubr.bf16.gmra.mrb[36].mxu1 %v16900_v52  ;;  %v7302_v52 = vld [vmem:[#allocation2 + $0x51] sm:$0xff] }
 0x848   :  { %13061 = vmatprep.mubr.bf16.mxu1 %v16904_v62  ;;  %v17116_v62 = vpack.c.bf16 %v7300_v23, %v7299_v61  ;;  %v17166_v61 = vpack.c.bf16 %v7316_v51, %v7315_v36  ;;  %v7334_v36 = vld [vmem:[#allocation2 + $0x201] sm:$0xff]  ;;  %v17188_v51 = vpack.c.bf16 %v7332_v15, %v7331_v22  ;;  %v7345_v22 = vld [vmem:[#allocation2 + $0x289] sm:$0xff]  ;;  %v7346_v15 = vld [vmem:[#allocation2 + $0x291] sm:$0xff] }
 0x84f   :  { %13062 = vmatmul.mubr.bf16.gmra.mrb[40].mxu1 %v16906_v44  ;;  %v14655_v44 = vld [vmem:[%s19093_s2 + $0x148] sm:$0xff]  }
 0x850   :  { %13065 = vmatprep.mubr.bf16.mxu1 %v16910_v33  ;;  %v17121_v33 = vpack.c.bf16 %v7302_v52, %v7301_v39  ;;  %v7319_v39 = vld [vmem:[#allocation2 + $0x121] sm:$0xff]  ;;  %v7320_v52 = vld [vmem:[#allocation2 + $0x129] sm:$0xff] }
 0x857   :  { %13066 = vmatmul.mubr.bf16.gmra.mrb[44].mxu1 %v16912_v28  ;;  %v14656_v28 = vld [vmem:[%s19093_s2 + $0x150] sm:$0xff]  }
 0x858   :  { %13069 = vmatprep.mubr.bf16.mxu1 %v16916_v34  ;;  %v7303_v34 = vld [vmem:[#allocation2 + $0x61] sm:$0xff] }
 0x85f   :  { %13070 = vmatmul.mubr.bf16.gmra.mrb[48].mxu1 %v16918_v45  ;;  %v7304_v45 = vld [vmem:[#allocation2 + $0x69] sm:$0xff] }
 0x860   :  { %13073 = vmatprep.mubr.bf16.mxu1 %v16922_v32  ;;  %v7305_v32 = vld [vmem:[#allocation2 + $0x79] sm:$0xff] }
 0x867   :  { %13074 = vmatmul.mubr.bf16.gmra.mrb[52].mxu1 %v16924_v43  ;;  %v7306_v43 = vld [vmem:[#allocation2 + $0x81] sm:$0xff] }
 0x868   :  { %13077 = vmatprep.mubr.bf16.mxu1 %v16928_v3  ;;  %v17128_v3 = vpack.c.bf16 %v7304_v45, %v7303_v34  ;;  %v17173_v34 = vpack.c.bf16 %v7320_v52, %v7319_v39  ;;  %v7336_v39 = vld [vmem:[#allocation2 + $0x219] sm:$0xff]  ;;  %v7337_v52 = vld [vmem:[#allocation2 + $0x229] sm:$0xff] }
 0x86f   :  { %13078 = vmatmul.mubr.bf16.gmra.mrb[56].mxu1 %v16930_v48  ;;  %v14657_v48 = vld [vmem:[%s19093_s2 + $0x158] sm:$0xff]  }
 0x870   :  { %13081 = vmatprep.mubr.bf16.mxu1 %v16934_v42  ;;  %v17133_v42 = vpack.c.bf16 %v7306_v43, %v7305_v32  ;;  %v7323_v32 = vld [vmem:[#allocation2 + $0x151] sm:$0xff]  ;;  %v7324_v43 = vld [vmem:[#allocation2 + $0x159] sm:$0xff] }
 0x871   :  { %v17179_v17 = vpack.c.bf16 %v7324_v43, %v7323_v32  ;;  %v7339_v43 = vld [vmem:[#allocation2 + $0x241] sm:$0xff] }
 0x877   :  { %13082 = vmatmul.mubr.bf16.gmra.mrb[60].mxu1 %v17113_v7 }
 0x878   :  { %13101 = vmatprep.mubr.bf16.mxu1 %v7361_v25  ;;  %v7318_v25 = vld [vmem:[#allocation2 + $0x111] sm:$0xff] }
 0x879   :  { %v17169_v23 = vpack.c.bf16 %v7318_v25, %v7317_v31  ;;  %v7335_v25 = vld [vmem:[#allocation2 + $0x211] sm:$0xff] }
 0x87f   :  { %13102 = vmatmul.mubr.bf16.vlgmr.msra.gmra.mrb[0].mxu1 %v17116_v62 }
 0x880   :  { %13105 = vmatprep.mubr.bf16.mxu1 %v17121_v33  ;;  %13166 = vmatpush3.bf16.msra.mxu1 %v14654_v16  ;;  %v17152_v16 = vpack.c.bf16 %v7312_v46, %v7311_v50  ;;  %v17185_v50 = vpack.c.bf16 %v7328_v38, %v7327_v12  ;;  %v7342_v12 = vld [vmem:[#allocation2 + $0x261] sm:$0xff] }
 0x881   :  { %13167 = vmatprep.subr.bf16.mxu1 %v14655_v44 }
 0x884   :  { %13168 = vmatpush3.bf16.msra.mxu1 %v14655_v44  ;;  %v7321_v44 = vld [vmem:[#allocation2 + $0x139] sm:$0xff] }
 0x885   :  { %13169 = vmatprep.subr.bf16.mxu1 %v14656_v28 }
 0x887   :  { %13106 = vmatmul.mubr.bf16.gmra.mrb[4].mxu1 %v17128_v3 }
 0x888   :  { %13109 = vmatprep.mubr.bf16.mxu1 %v17133_v42  ;;  %13170 = vmatpush3.bf16.msra.mxu1 %v14656_v28  ;;  %v7322_v28 = vld [vmem:[#allocation2 + $0x141] sm:$0xff] }
 0x889   :  { %13171 = vmatprep.subr.bf16.mxu1 %v14657_v48  ;;  %v17175_v45 = vpack.c.bf16 %v7322_v28, %v7321_v44  ;;  %v7338_v44 = vld [vmem:[#allocation2 + $0x231] sm:$0xff]  ;;  %v17194_v28 = vpack.c.bf16 %v7336_v39, %v7335_v25  ;;  %v7347_v25 = vld [vmem:[#allocation2 + $0x2a1] sm:$0xff]  ;;  %v7348_v39 = vld [vmem:[#allocation2 + $0x2a9] sm:$0xff] }
 0x88a   :  { %v17196_v32 = vpack.c.bf16 %v7338_v44, %v7337_v52  ;;  %v7349_v52 = vld [vmem:[#allocation2 + $0x2b9] sm:$0xff]  ;;  %v7350_v44 = vld [vmem:[#allocation2 + $0x2c1] sm:$0xff] }
 0x88c   :  { %13172 = vmatpush3.bf16.msra.mxu1 %v14657_v48  ;;  %v7325_v48 = vld [vmem:[#allocation2 + $0x169] sm:$0xff] }
 0x88d   :  { %13173 = vmatprep.subr.bf16.mxu1 %v14658_v27 }
 0x88f   :  { %13110 = vmatmul.mubr.bf16.gmra.mrb[8].mxu1 %v17140_v41 }
 0x890   :  { %13113 = vmatprep.mubr.bf16.mxu1 %v17145_v18  ;;  %13174 = vmatpush3.bf16.msra.mxu1 %v14658_v27  ;;  %v7326_v27 = vld [vmem:[#allocation2 + $0x171] sm:$0xff] }
 0x891   :  { %13175 = vmatprep.subr.bf16.mxu1 %v14659_v11  ;;  %v17181_v8 = vpack.c.bf16 %v7326_v27, %v7325_v48  ;;  %v7340_v48 = vld [vmem:[#allocation2 + $0x249] sm:$0xff]  ;;  %v7341_v27 = vld [vmem:[#allocation2 + $0x259] sm:$0xff] }
 0x892   :  { %v17200_v38 = vpack.c.bf16 %v7340_v48, %v7339_v43  ;;  %v17212_v43 = vpack.c.bf16 %v7348_v39, %v7347_v25  ;;  %v17214_v48 = vpack.c.bf16 %v7350_v44, %v7349_v52  ;;  %v7355_v25 = vld [vmem:[#allocation2 + $0x301] sm:$0xff]  ;;  %v7356_v39 = vld [vmem:[#allocation2 + $0x309] sm:$0xff]  ;;  %v7357_v52 = vld [vmem:[#allocation2 + $0x319] sm:$0xff] }
 0x893   :  { %v7358_v44 = vld [vmem:[#allocation2 + $0x321] sm:$0xff] }
 0x894   :  { %13176 = vmatpush3.bf16.msra.mxu1 %v14659_v11  ;;  %v7329_v11 = vld [vmem:[#allocation2 + $0x1c9] sm:$0xff]  ;;  %19503 = vst [vmem:[#allocation10_spill] sm:$0xff] %v17212_v43 }
 0x895   :  { %13177 = vmatprep.subr.bf16.mxu1 %v14660_v9 }
 0x897   :  { %13114 = vmatmul.mubr.bf16.gmra.mrb[12].mxu1 %v17152_v16 }
 0x898   :  { %13117 = vmatprep.mubr.bf16.mxu1 %v17157_v35  ;;  %13178 = vmatpush3.bf16.msra.mxu1 %v14660_v9  ;;  %v7330_v9 = vld [vmem:[#allocation2 + $0x1d1] sm:$0xff] }
 0x899   :  { %13179 = vmatprep.subr.bf16.mxu1 %v14661_v13  ;;  %v7377_v46 = vpack.c.bf16 %v7330_v9, %v7329_v11  ;;  %v17202_v11 = vpack.c.bf16 %v7342_v12, %v7341_v27  ;;  %v7343_v9 = vld [vmem:[#allocation2 + $0x271] sm:$0xff]  ;;  %v7352_v12 = vld [vmem:[#allocation2 + $0x2d9] sm:$0xff] }
 0x89a   :  { %v7351_v27 = vld [vmem:[#allocation2 + $0x2d1] sm:$0xff] }
 0x89c   :  { %13180 = vmatpush3.bf16.msra.mxu1 %v14661_v13  ;;  %v7333_v13 = vld [vmem:[#allocation2 + $0x1f9] sm:$0xff] }
 0x89d   :  { %13245 = vmatprep.subr.bf16.mxu1 %v17164_v19  ;;  %v17190_v31 = vpack.c.bf16 %v7334_v36, %v7333_v13  ;;  %v17208_v36 = vpack.c.bf16 %v7346_v15, %v7345_v22  ;;  %v17218_v22 = vpack.c.bf16 %v7352_v12, %v7351_v27  ;;  %v7359_v27 = vld [vmem:[#allocation2 + $0x331] sm:$0xff]  ;;  %v7360_v12 = vld [vmem:[#allocation2 + $0x339] sm:$0xff] }
 0x89f   :  { %13118 = vmatmul.mubr.bf16.gmra.mrb[16].mxu1 %v17166_v61  ;;  %19502 = vst [vmem:[#allocation8_spill] sm:$0xff] %v17208_v36 }
 0x8a0   :  { %13121 = vmatprep.mubr.bf16.mxu1 %v17169_v23 }
 0x8a7   :  { %13122 = vmatmul.mubr.bf16.gmra.mrb[20].mxu1 %v17173_v34 }
 0x8a8   :  { %13125 = vmatprep.mubr.bf16.mxu1 %v17175_v45 }
 0x8af   :  { %13126 = vmatmul.mubr.bf16.gmra.mrb[24].mxu1 %v17179_v17 }
 0x8b0   :  { %13129 = vmatprep.mubr.bf16.mxu1 %v17181_v8 }
 0x8b7   :  { %13130 = vmatmul.mubr.bf16.gmra.mrb[28].mxu1 %v17185_v50 }
 0x8b8   :  { %13133 = vmatprep.mubr.bf16.mxu1 %v7377_v46  ;;  %v7344_v46 = vld [vmem:[#allocation2 + $0x279] sm:$0xff] }
 0x8b9   :  { %v17206_v13 = vpack.c.bf16 %v7344_v46, %v7343_v9  ;;  %v7353_v9 = vld [vmem:[#allocation2 + $0x2e9] sm:$0xff]  ;;  %v7354_v46 = vld [vmem:[#allocation2 + $0x2f1] sm:$0xff] }
 0x8ba   :  { %v17220_v15 = vpack.c.bf16 %v7354_v46, %v7353_v9  ;;  %v17230_v9 = vpack.c.bf16 %v7360_v12, %v7359_v27  ;;  %v14663_v46 = vld [vmem:[%s19093_s2 + $0x188] sm:$0xff]   ;;  %v8334_v27 = vld [vmem:[#allocation2 + $0x98] sm:$0xff] }
 0x8bf   :  { %13134 = vmatmul.mubr.bf16.gmra.mrb[32].mxu1 %v17188_v51 }
 0x8c0   :  { %13137 = vmatprep.mubr.bf16.mxu1 %v17190_v31 }
 0x8c7   :  { %13138 = vmatmul.mubr.bf16.gmra.mrb[36].mxu1 %v17194_v28 }
 0x8c8   :  { %13141 = vmatprep.mubr.bf16.mxu1 %v17196_v32 }
 0x8cf   :  { %13142 = vmatmul.mubr.bf16.gmra.mrb[40].mxu1 %v17200_v38 }
 0x8d0   :  { %13145 = vmatprep.mubr.bf16.mxu1 %v17202_v11 }
 0x8d7   :  { %13146 = vmatmul.mubr.bf16.gmra.mrb[44].mxu1 %v17206_v13 }
 0x8d8   :  { %13149 = vmatprep.mubr.bf16.mxu1 %v17208_v36  ;;  %v17224_v36 = vpack.c.bf16 %v7356_v39, %v7355_v25  ;;  %v14664_v25 = vld [vmem:[%s19093_s2 + $0x190] sm:$0xff]   ;;  %v8331_v39 = vld [vmem:[#allocation2 + $0x78] sm:$0xff] }
 0x8df   :  { %13150 = vmatmul.mubr.bf16.gmra.mrb[48].mxu1 %v17212_v43  ;;  %v17226_v43 = vpack.c.bf16 %v7358_v44, %v7357_v52  ;;  %v8332_v52 = vld [vmem:[#allocation2 + $0x80] sm:$0xff]  ;;  %v8333_v44 = vld [vmem:[#allocation2 + $0x90] sm:$0xff] }
 0x8e0   :  { %13153 = vmatprep.mubr.bf16.mxu1 %v17214_v48  ;;  %v8392_v12 = vpack.c.bf16 %v8332_v52, %v8331_v39  ;;  %v8349_v39 = vld [vmem:[#allocation2 + $0x150] sm:$0xff]  ;;  %v8350_v52 = vld [vmem:[#allocation2 + $0x158] sm:$0xff] }
 0x8e7   :  { %13154 = vmatmul.mubr.bf16.gmra.mrb[52].mxu1 %v17218_v22 }
 0x8e8   :  { %13157 = vmatprep.mubr.bf16.mxu1 %v17220_v15 }
 0x8ef   :  { %13158 = vmatmul.mubr.bf16.gmra.mrb[56].mxu1 %v17224_v36 }
 0x8f0   :  { %13161 = vmatprep.mubr.bf16.mxu1 %v17226_v43 }
 0x8f7   :  { %13162 = vmatmul.mubr.bf16.gmra.mrb[60].mxu1 %v17230_v9 }
 0x8f8   :  { %13181 = vmatprep.mubr.bf16.mxu1 %v16937_v57  ;;  %v14665_v57 = vld [vmem:[%s19093_s2 + $0x198] sm:$0xff]  }
 0x8ff   :  { %13182 = vmatmul.mubr.bf16.vlgmr.msra.gmra.mrb[0].mxu1 %v16942_v20  ;;  %v14666_v20 = vld [vmem:[%s19093_s2 + $0x1a0] sm:$0xff]  }
 0x900   :  { %13185 = vmatprep.mubr.bf16.mxu1 %v16950_v1  ;;  %13246 = vmatpush3.bf16.msra.mxu1 %v17164_v19  ;;  %v14667_v1 = vld [vmem:[%s19093_s2 + $0x1a8] sm:$0xff]  }
 0x901   :  { %13247 = vmatprep.subr.bf16.mxu1 %v14663_v46 }
 0x904   :  { %13248 = vmatpush3.bf16.msra.mxu1 %v14663_v46  ;;  %v14673_v46 = vld [vmem:[%s19093_s2 + $0x1d8] sm:$0xff]  }
 0x905   :  { %13249 = vmatprep.subr.bf16.mxu1 %v14664_v25 }
 0x907   :  { %13186 = vmatmul.mubr.bf16.gmra.mrb[4].mxu1 %v16955_v49  ;;  %v14668_v49 = vld [vmem:[%s19093_s2 + $0x1b0] sm:$0xff]  }
 0x908   :  { %13189 = vmatprep.mubr.bf16.mxu1 %v16962_v60  ;;  %13250 = vmatpush3.bf16.msra.mxu1 %v14664_v25  ;;  %v14669_v60 = vld [vmem:[%s19093_s2 + $0x1b8] sm:$0xff]   ;;  %v8393_v25 = vpack.c.bf16 %v8334_v27, %v8333_v44  ;;  %v8401_v27 = vpack.c.bf16 %v8350_v52, %v8349_v39  ;;  %v8373_v39 = vld [vmem:[#allocation2 + $0x2a0] sm:$0xff]  ;;  %v8374_v52 = vld [vmem:[#allocation2 + $0x2a8] sm:$0xff] }
 0x909   :  { %13251 = vmatprep.subr.bf16.mxu1 %v14665_v57 }
 0x90c   :  { %13252 = vmatpush3.bf16.msra.mxu1 %v14665_v57  ;;  %v14674_v57 = vld [vmem:[%s19093_s2 + $0x1e0] sm:$0xff]  }
 0x90d   :  { %13253 = vmatprep.subr.bf16.mxu1 %v14666_v20 }
 0x90f   :  { %13190 = vmatmul.mubr.bf16.gmra.mrb[8].mxu1 %v16967_v63  ;;  %v14670_v63 = vld [vmem:[%s19093_s2 + $0x1c0] sm:$0xff]  }
 0x910   :  { %13193 = vmatprep.mubr.bf16.mxu1 %v16974_v10  ;;  %13254 = vmatpush3.bf16.msra.mxu1 %v14666_v20  ;;  %v7841_v10 = vld [vmem:[#allocation2 + $0x182] sm:$0xff] }
 0x911   :  { %13255 = vmatprep.subr.bf16.mxu1 %v14667_v1  ;;  %v8335_v20 = vld [vmem:[#allocation2 + $0xa8] sm:$0xff] }
 0x914   :  { %13256 = vmatpush3.bf16.msra.mxu1 %v14667_v1  ;;  %v8336_v1 = vld [vmem:[#allocation2 + $0xb0] sm:$0xff] }
 0x915   :  { %13257 = vmatprep.subr.bf16.mxu1 %v14668_v49 }
 0x917   :  { %13194 = vmatmul.mubr.bf16.gmra.mrb[12].mxu1 %v16979_v58  ;;  %v7842_v58 = vld [vmem:[#allocation2 + $0x18a] sm:$0xff] }
 0x918   :  { %13197 = vmatprep.mubr.bf16.mxu1 %v16988_v0  ;;  %13258 = vmatpush3.bf16.msra.mxu1 %v14668_v49  ;;  %v17273_v0 = vpack.c.bf16 %v7842_v58, %v7841_v10  ;;  %v8337_v49 = vld [vmem:[#allocation2 + $0xc0] sm:$0xff]  ;;  %v14675_v10 = vld [vmem:[%s19093_s2 + $0x1e8] sm:$0xff]  }
 0x919   :  { %13259 = vmatprep.subr.bf16.mxu1 %v14669_v60 }
 0x91c   :  { %13260 = vmatpush3.bf16.msra.mxu1 %v14669_v60  ;;  %v8338_v60 = vld [vmem:[#allocation2 + $0xc8] sm:$0xff] }
 0x91d   :  { %13325 = vmatprep.subr.bf16.mxu1 %v14670_v63  ;;  %v8395_v58 = vpack.c.bf16 %v8338_v60, %v8337_v49  ;;  %v8358_v49 = vld [vmem:[#allocation2 + $0x1e8] sm:$0xff] }
 0x91f   :  { %13198 = vmatmul.mubr.bf16.gmra.mrb[16].mxu1 %v16991_v47  ;;  %v19504_v47 = vld [vmem:[#allocation3_spill] sm:$0xff] }
 0x920   :  { %13201 = vmatprep.mubr.bf16.mxu1 %v16995_v30  ;;  %v19505_v30 = vld [vmem:[#allocation4_spill] sm:$0xff] }
 0x927   :  { %13202 = vmatmul.mubr.bf16.gmra.mrb[20].mxu1 %v16997_v53  ;;  %v19506_v53 = vld [vmem:[#allocation6_spill] sm:$0xff] }
 0x928   :  { %13205 = vmatprep.mubr.bf16.mxu1 %v17001_v6  ;;  %v19507_v6 = vld [vmem:[#allocation7_spill] sm:$0xff] }
 0x92f   :  { %13206 = vmatmul.mubr.bf16.gmra.mrb[24].mxu1 %v17003_v2  ;;  %v7873_v2 = vld [vmem:[#allocation2 + $0x332] sm:$0xff] }
 0x930   :  { %13209 = vmatprep.mubr.bf16.mxu1 %v17007_v40  ;;  %v7874_v40 = vld [vmem:[#allocation2 + $0x33a] sm:$0xff] }
 0x937   :  { %13210 = vmatmul.mubr.bf16.gmra.mrb[28].mxu1 %v17273_v0 }
 0x938   :  { %13213 = vmatprep.mubr.bf16.mxu1 %v17010_v14  ;;  %v8325_v14 = vld [vmem:[#allocation2 + $0x30] sm:$0xff] }
 0x93f   :  { %13214 = vmatmul.mubr.bf16.gmra.mrb[32].mxu1 %v17012_v55  ;;  %v8326_v55 = vld [vmem:[#allocation2 + $0x38] sm:$0xff] }
 0x940   :  { %13217 = vmatprep.mubr.bf16.mxu1 %v17016_v37  ;;  %v17291_v37 = vpack.c.bf16 %v7874_v40, %v7873_v2  ;;  %v8342_v2 = vld [vmem:[#allocation2 + $0xf8] sm:$0xff] }
 0x947   :  { %13218 = vmatmul.mubr.bf16.gmra.mrb[36].mxu1 %v17018_v26  ;;  %v8389_v26 = vpack.c.bf16 %v8326_v55, %v8325_v14  ;;  %v14677_v14 = vld [vmem:[%s19093_s2 + $0x1f8] sm:$0xff]  }
 0x948   :  { %13221 = vmatprep.mubr.bf16.mxu1 %v17022_v29  ;;  %v8327_v29 = vld [vmem:[#allocation2 + $0x48] sm:$0xff] }
 0x94f   :  { %13222 = vmatmul.mubr.bf16.gmra.mrb[40].mxu1 %v19504_v47  ;;  %v14676_v47 = vld [vmem:[%s19093_s2 + $0x1f0] sm:$0xff]  }
 0x950   :  { %13225 = vmatprep.mubr.bf16.mxu1 %v19505_v30  ;;  %v8339_v30 = vld [vmem:[#allocation2 + $0xd8] sm:$0xff] }
 0x957   :  { %13226 = vmatmul.mubr.bf16.gmra.mrb[44].mxu1 %v19506_v53  ;;  %v8340_v53 = vld [vmem:[#allocation2 + $0xe0] sm:$0xff] }
 0x958   :  { %13229 = vmatprep.mubr.bf16.mxu1 %v19507_v6  ;;  %v8341_v6 = vld [vmem:[#allocation2 + $0xf0] sm:$0xff]  ;;  %v8396_v40 = vpack.c.bf16 %v8340_v53, %v8339_v30 }
 0x959   :  { %v8397_v55 = vpack.c.bf16 %v8342_v2, %v8341_v6  ;;  %v8363_v6 = vld [vmem:[#allocation2 + $0x228] sm:$0xff]  ;;  %v8364_v2 = vld [vmem:[#allocation2 + $0x230] sm:$0xff] }
 0x95f   :  { %13230 = vmatmul.mubr.bf16.gmra.mrb[48].mxu1 %v17036_v54  ;;  %v8329_v54 = vld [vmem:[#allocation2 + $0x60] sm:$0xff] }
 0x960   :  { %13233 = vmatprep.mubr.bf16.mxu1 %v17040_v21  ;;  %v8328_v21 = vld [vmem:[#allocation2 + $0x50] sm:$0xff] }
 0x961   :  { %v8390_v19 = vpack.c.bf16 %v8328_v21, %v8327_v29  ;;  %v8343_v29 = vld [vmem:[#allocation2 + $0x108] sm:$0xff]  ;;  %v8344_v21 = vld [vmem:[#allocation2 + $0x110] sm:$0xff] }
 0x967   :  { %13234 = vmatmul.mubr.bf16.gmra.mrb[52].mxu1 %v17042_v59  ;;  %v8330_v59 = vld [vmem:[#allocation2 + $0x68] sm:$0xff] }
 0x968   :  { %13237 = vmatprep.mubr.bf16.mxu1 %v17046_v56  ;;  %v14671_v56 = vld [vmem:[%s19093_s2 + $0x1c8] sm:$0xff]  }
 0x96f   :  { %13238 = vmatmul.mubr.bf16.gmra.mrb[56].mxu1 %v17048_v24  ;;  %v8391_v24 = vpack.c.bf16 %v8330_v59, %v8329_v54  ;;  %v8345_v54 = vld [vmem:[#allocation2 + $0x120] sm:$0xff]  ;;  %v8346_v59 = vld [vmem:[#allocation2 + $0x128] sm:$0xff] }
 0x970   :  { %13241 = vmatprep.mubr.bf16.mxu1 %v17052_v4  ;;  %v14672_v4 = vld [vmem:[%s19093_s2 + $0x1d0] sm:$0xff]  }
 0x977   :  { %13242 = vmatmul.mubr.bf16.gmra.mrb[60].mxu1 %v17291_v37 }
 0x978   :  { %13261 = vmatprep.mubr.bf16.mxu1 %v8389_v26  ;;  %v17318_v26 = vld [vmem:[%s19093_s2 + $0x200] sm:$0xff]  }
 0x97f   :  { %13262 = vmatmul.mubr.bf16.vlgmr.msra.gmra.mrb[0].mxu1 %v8390_v19  ;;  %v8398_v19 = vpack.c.bf16 %v8344_v21, %v8343_v29  ;;  %v8367_v29 = vld [vmem:[#allocation2 + $0x258] sm:$0xff]  ;;  %v8368_v21 = vld [vmem:[#allocation2 + $0x260] sm:$0xff] }
 0x980   :  { %13265 = vmatprep.mubr.bf16.mxu1 %v8391_v24  ;;  %13326 = vmatpush3.bf16.msra.mxu1 %v14670_v63  ;;  %v8394_v63 = vpack.c.bf16 %v8336_v1, %v8335_v20  ;;  %v8347_v24 = vld [vmem:[#allocation2 + $0x138] sm:$0xff]  ;;  %v8357_v1 = vld [vmem:[#allocation2 + $0x1e0] sm:$0xff] }
 0x981   :  { %13327 = vmatprep.subr.bf16.mxu1 %v14671_v56  ;;  %v8405_v60 = vpack.c.bf16 %v8358_v49, %v8357_v1 }
 0x984   :  { %13328 = vmatpush3.bf16.msra.mxu1 %v14671_v56  ;;  %v8399_v56 = vpack.c.bf16 %v8346_v59, %v8345_v54  ;;  %v8369_v54 = vld [vmem:[#allocation2 + $0x270] sm:$0xff]  ;;  %v8370_v59 = vld [vmem:[#allocation2 + $0x278] sm:$0xff] }
 0x985   :  { %13329 = vmatprep.subr.bf16.mxu1 %v14672_v4 }
 0x987   :  { %13266 = vmatmul.mubr.bf16.gmra.mrb[4].mxu1 %v8392_v12  ;;  %v8351_v12 = vld [vmem:[#allocation2 + $0x168] sm:$0xff] }
 0x988   :  { %13269 = vmatprep.mubr.bf16.mxu1 %v8393_v25  ;;  %13330 = vmatpush3.bf16.msra.mxu1 %v14672_v4  ;;  %v8348_v4 = vld [vmem:[#allocation2 + $0x140] sm:$0xff] }
 0x989   :  { %13331 = vmatprep.subr.bf16.mxu1 %v14673_v46  ;;  %v8400_v44 = vpack.c.bf16 %v8348_v4, %v8347_v24  ;;  %v8371_v24 = vld [vmem:[#allocation2 + $0x288] sm:$0xff]  ;;  %v8372_v4 = vld [vmem:[#allocation2 + $0x290] sm:$0xff] }
 0x98c   :  { %13332 = vmatpush3.bf16.msra.mxu1 %v14673_v46  ;;  %v8352_v46 = vld [vmem:[#allocation2 + $0x170] sm:$0xff] }
 0x98d   :  { %13333 = vmatprep.subr.bf16.mxu1 %v14674_v57  ;;  %v8402_v25 = vpack.c.bf16 %v8352_v46, %v8351_v12  ;;  %v8375_v12 = vld [vmem:[#allocation2 + $0x2b8] sm:$0xff]  ;;  %v8376_v46 = vld [vmem:[#allocation2 + $0x2c0] sm:$0xff] }
 0x98e   :  { %v8414_v1 = vpack.c.bf16 %v8376_v46, %v8375_v12  ;;  %v9375_v46 = vld [vmem:[#allocation2 + $0x13a] sm:$0xff] }
 0x98f   :  { %13270 = vmatmul.mubr.bf16.gmra.mrb[8].mxu1 %v8394_v63  ;;  %v8359_v63 = vld [vmem:[#allocation2 + $0x1f8] sm:$0xff] }
 0x990   :  { %13273 = vmatprep.mubr.bf16.mxu1 %v8395_v58  ;;  %13334 = vmatpush3.bf16.msra.mxu1 %v14674_v57  ;;  %v14693_v57 = vld [vmem:[#allocation2] sm:$0xff]  ;;  %v8361_v58 = vld [vmem:[#allocation2 + $0x210] sm:$0xff] }
 0x991   :  { %13335 = vmatprep.subr.bf16.mxu1 %v14675_v10  ;;  %v8404_v20 = vpack.c.bf16 %v14693_v57, %v14693_v57  ;;  %v8378_v57 = vld [vmem:[#allocation2 + $0x2d8] sm:$0xff] }
 0x994   :  { %13336 = vmatpush3.bf16.msra.mxu1 %v14675_v10  ;;  %v8360_v10 = vld [vmem:[#allocation2 + $0x200] sm:$0xff] }
 0x995   :  { %13337 = vmatprep.subr.bf16.mxu1 %v14676_v47  ;;  %v8406_v30 = vpack.c.bf16 %v8360_v10, %v8359_v63  ;;  %v8380_v63 = vld [vmem:[#allocation2 + $0x2f0] sm:$0xff]  ;;  %v8381_v10 = vld [vmem:[#allocation2 + $0x300] sm:$0xff] }
 0x997   :  { %13274 = vmatmul.mubr.bf16.gmra.mrb[12].mxu1 %v8396_v40  ;;  %v8365_v40 = vld [vmem:[#allocation2 + $0x240] sm:$0xff] }
 0x998   :  { %13277 = vmatprep.mubr.bf16.mxu1 %v8397_v55  ;;  %13338 = vmatpush3.bf16.msra.mxu1 %v14676_v47  ;;  %v8362_v47 = vld [vmem:[#allocation2 + $0x218] sm:$0xff] }
 0x999   :  { %13339 = vmatprep.subr.bf16.mxu1 %v14677_v14  ;;  %v8407_v53 = vpack.c.bf16 %v8362_v47, %v8361_v58  ;;  %v8382_v58 = vld [vmem:[#allocation2 + $0x308] sm:$0xff] }
 0x99c   :  { %13340 = vmatpush3.bf16.msra.mxu1 %v14677_v14  ;;  %v8366_v14 = vld [vmem:[#allocation2 + $0x248] sm:$0xff] }
 0x99d   :  { %13405 = vmatprep.subr.bf16.mxu1 %v17318_v26  ;;  %v8409_v55 = vpack.c.bf16 %v8366_v14, %v8365_v40  ;;  %v14679_v40 = vld [vmem:[%s19093_s2 + $0x208] sm:$0xff]   ;;  %v14680_v14 = vld [vmem:[%s19093_s2 + $0x210] sm:$0xff]  }
 0x99f   :  { %13278 = vmatmul.mubr.bf16.gmra.mrb[16].mxu1 %v8398_v19  ;;  %v8410_v19 = vpack.c.bf16 %v8368_v21, %v8367_v29  ;;  %v9367_v21 = vld [vmem:[#allocation2 + $0xda] sm:$0xff] }
 0x9a0   :  { %13281 = vmatprep.mubr.bf16.mxu1 %v8399_v56  ;;  %v8411_v56 = vpack.c.bf16 %v8370_v59, %v8369_v54  ;;  %v9368_v54 = vld [vmem:[#allocation2 + $0xe2] sm:$0xff]  ;;  %v9369_v59 = vld [vmem:[#allocation2 + $0xf2] sm:$0xff] }
 0x9a7   :  { %13282 = vmatmul.mubr.bf16.gmra.mrb[20].mxu1 %v8400_v44  ;;  %v8412_v44 = vpack.c.bf16 %v8372_v4, %v8371_v24  ;;  %v9371_v4 = vld [vmem:[#allocation2 + $0x10a] sm:$0xff] }
 0x9a8   :  { %13285 = vmatprep.mubr.bf16.mxu1 %v8401_v27  ;;  %v8413_v27 = vpack.c.bf16 %v8374_v52, %v8373_v39  ;;  %v9372_v39 = vld [vmem:[#allocation2 + $0x112] sm:$0xff]  ;;  %v9373_v52 = vld [vmem:[#allocation2 + $0x122] sm:$0xff] }
 0x9af   :  { %13286 = vmatmul.mubr.bf16.gmra.mrb[24].mxu1 %v8402_v25  ;;  %v8377_v25 = vld [vmem:[#allocation2 + $0x2d0] sm:$0xff] }
 0x9b0   :  { %13289 = vmatprep.mubr.bf16.mxu1 %v17095_v5  ;;  %v8408_v5 = vpack.c.bf16 %v8364_v2, %v8363_v6  ;;  %v8415_v49 = vpack.c.bf16 %v8378_v57, %v8377_v25  ;;  %v8384_v6 = vld [vmem:[#allocation2 + $0x320] sm:$0xff]  ;;  %v9377_v57 = vld [vmem:[#allocation2 + $0x152] sm:$0xff] }
 0x9b1   :  { %v9376_v25 = vld [vmem:[#allocation2 + $0x142] sm:$0xff] }
 0x9b7   :  { %13290 = vmatmul.mubr.bf16.gmra.mrb[28].mxu1 %v8404_v20 }
 0x9b8   :  { %13293 = vmatprep.mubr.bf16.mxu1 %v8405_v60  ;;  %v8379_v60 = vld [vmem:[#allocation2 + $0x2e8] sm:$0xff] }
 0x9b9   :  { %v8416_v47 = vpack.c.bf16 %v8380_v63, %v8379_v60  ;;  %v9379_v63 = vld [vmem:[#allocation2 + $0x16a] sm:$0xff] }
 0x9bf   :  { %13294 = vmatmul.mubr.bf16.gmra.mrb[32].mxu1 %v8406_v30  ;;  %v8417_v30 = vpack.c.bf16 %v8382_v58, %v8381_v10  ;;  %v9380_v10 = vld [vmem:[#allocation2 + $0x172] sm:$0xff] }
 0x9c0   :  { %13297 = vmatprep.mubr.bf16.mxu1 %v8407_v53  ;;  %v8383_v53 = vld [vmem:[#allocation2 + $0x318] sm:$0xff]  ;;  %v9430_v58 = vpack.c.bf16 %v9380_v10, %v9379_v63 }
 0x9c1   :  { %v8418_v2 = vpack.c.bf16 %v8384_v6, %v8383_v53  ;;  %v9385_v6 = vld [vmem:[#allocation2 + $0x1e2] sm:$0xff] }
 0x9c7   :  { %13298 = vmatmul.mubr.bf16.gmra.mrb[36].mxu1 %v8408_v5  ;;  %v9366_v5 = vld [vmem:[#allocation2 + $0xca] sm:$0xff] }
 0x9c8   :  { %13301 = vmatprep.mubr.bf16.mxu1 %v8409_v55 }
 0x9cf   :  { %13302 = vmatmul.mubr.bf16.gmra.mrb[40].mxu1 %v8410_v19  ;;  %v9370_v19 = vld [vmem:[#allocation2 + $0xfa] sm:$0xff] }
 0x9d0   :  { %13305 = vmatprep.mubr.bf16.mxu1 %v8411_v56  ;;  %v9424_v56 = vpack.c.bf16 %v9368_v54, %v9367_v21  ;;  %v9425_v24 = vpack.c.bf16 %v9370_v19, %v9369_v59  ;;  %v9411_v21 = vld [vmem:[#allocation2 + $0x31a] sm:$0xff]  ;;  %v9412_v54 = vld [vmem:[#allocation2 + $0x322] sm:$0xff]  ;;  %v9415_v19 = vld [vmem:[#allocation2 + $0x34a] sm:$0xff] }
 0x9d1   :  { %v9446_v59 = vpack.c.bf16 %v9412_v54, %v9411_v21 }
 0x9d7   :  { %13306 = vmatmul.mubr.bf16.gmra.mrb[44].mxu1 %v8412_v44  ;;  %v9374_v44 = vld [vmem:[#allocation2 + $0x12a] sm:$0xff] }
 0x9d8   :  { %13309 = vmatprep.mubr.bf16.mxu1 %v8413_v27  ;;  %v9426_v27 = vpack.c.bf16 %v9372_v39, %v9371_v4  ;;  %v9427_v12 = vpack.c.bf16 %v9374_v44, %v9373_v52 }
 0x9df   :  { %13310 = vmatmul.mubr.bf16.gmra.mrb[48].mxu1 %v8414_v1  ;;  %v9378_v1 = vld [vmem:[#allocation2 + $0x15a] sm:$0xff] }
 0x9e0   :  { %13313 = vmatprep.mubr.bf16.mxu1 %v8415_v49  ;;  %v9428_v49 = vpack.c.bf16 %v9376_v25, %v9375_v46  ;;  %v9429_v60 = vpack.c.bf16 %v9378_v1, %v9377_v57 }
 0x9e7   :  { %13314 = vmatmul.mubr.bf16.gmra.mrb[52].mxu1 %v8416_v47  ;;  %v9383_v47 = vld [vmem:[#allocation2 + $0x19a] sm:$0xff] }
 0x9e8   :  { %13317 = vmatprep.mubr.bf16.mxu1 %v8417_v30  ;;  %v9384_v30 = vld [vmem:[#allocation2 + $0x1a2] sm:$0xff] }
 0x9e9   :  { %v9432_v53 = vpack.c.bf16 %v9384_v30, %v9383_v47 }
 0x9ef   :  { %13318 = vmatmul.mubr.bf16.gmra.mrb[56].mxu1 %v8418_v2  ;;  %v9386_v2 = vld [vmem:[#allocation2 + $0x1ea] sm:$0xff] }
 0x9f0   :  { %13321 = vmatprep.mubr.bf16.mxu1 %v17113_v7  ;;  %v14681_v7 = vld [vmem:[%s19093_s2 + $0x218] sm:$0xff]  }
 0x9f7   :  { %13322 = vmatmul.mubr.bf16.gmra.mrb[60].mxu1 %v8404_v20  ;;  %v9365_v20 = vld [vmem:[#allocation2 + $0xc2] sm:$0xff] }
 0x9f8   :  { %13341 = vmatprep.mubr.bf16.mxu1 %v17116_v62  ;;  %v14682_v62 = vld [vmem:[%s19093_s2 + $0x220] sm:$0xff]   ;;  %v9423_v29 = vpack.c.bf16 %v9366_v5, %v9365_v20  ;;  %v9410_v5 = vld [vmem:[#allocation2 + $0x30a] sm:$0xff] }
 0x9f9   :  { %v9409_v20 = vld [vmem:[#allocation2 + $0x302] sm:$0xff] }
 0x9ff   :  { %13342 = vmatmul.mubr.bf16.vlgmr.msra.gmra.mrb[0].mxu1 %v17121_v33  ;;  %v14683_v33 = vld [vmem:[%s19093_s2 + $0x228] sm:$0xff]  }
 0xa00   :  { %13345 = vmatprep.mubr.bf16.mxu1 %v17128_v3  ;;  %13406 = vmatpush3.bf16.msra.mxu1 %v17318_v26  ;;  %v14684_v3 = vld [vmem:[%s19093_s2 + $0x230] sm:$0xff]  }
 0xa01   :  { %13407 = vmatprep.subr.bf16.mxu1 %v14679_v40  ;;  %v9364_v26 = vld [vmem:[#allocation2 + $0xb2] sm:$0xff] }
 0xa04   :  { %13408 = vmatpush3.bf16.msra.mxu1 %v14679_v40  ;;  %v9433_v40 = vpack.c.bf16 %v9386_v2, %v9385_v6 }
 0xa05   :  { %13409 = vmatprep.subr.bf16.mxu1 %v14680_v14 }
 0xa07   :  { %13346 = vmatmul.mubr.bf16.gmra.mrb[4].mxu1 %v17133_v42  ;;  %v14685_v42 = vld [vmem:[%s19093_s2 + $0x238] sm:$0xff]  }
 0xa08   :  { %13349 = vmatprep.mubr.bf16.mxu1 %v17140_v41  ;;  %13410 = vmatpush3.bf16.msra.mxu1 %v14680_v14  ;;  %v8869_v41 = vld [vmem:[#allocation2 + $0x199] sm:$0xff] }
 0xa09   :  { %13411 = vmatprep.subr.bf16.mxu1 %v14681_v7  ;;  %v9387_v14 = vld [vmem:[#allocation2 + $0x1fa] sm:$0xff] }
 0xa0c   :  { %13412 = vmatpush3.bf16.msra.mxu1 %v14681_v7  ;;  %v9388_v7 = vld [vmem:[#allocation2 + $0x202] sm:$0xff] }
 0xa0d   :  { %13413 = vmatprep.subr.bf16.mxu1 %v14682_v62 }
 0xa0f   :  { %13350 = vmatmul.mubr.bf16.gmra.mrb[8].mxu1 %v17145_v18  ;;  %v8870_v18 = vld [vmem:[#allocation2 + $0x1a1] sm:$0xff] }
 0xa10   :  { %13353 = vmatprep.mubr.bf16.mxu1 %v17152_v16  ;;  %13414 = vmatpush3.bf16.msra.mxu1 %v14682_v62  ;;  %v8918_v16 = vpack.c.bf16 %v8870_v18, %v8869_v41  ;;  %v9389_v62 = vld [vmem:[#allocation2 + $0x212] sm:$0xff]  ;;  %v9391_v41 = vld [vmem:[#allocation2 + $0x22a] sm:$0xff] }
 0xa11   :  { %13415 = vmatprep.subr.bf16.mxu1 %v14683_v33  ;;  %v9392_v18 = vld [vmem:[#allocation2 + $0x232] sm:$0xff] }
 0xa14   :  { %13416 = vmatpush3.bf16.msra.mxu1 %v14683_v33  ;;  %v9390_v33 = vld [vmem:[#allocation2 + $0x21a] sm:$0xff] }
 0xa15   :  { %13417 = vmatprep.subr.bf16.mxu1 %v14684_v3 }
 0xa17   :  { %13354 = vmatmul.mubr.bf16.gmra.mrb[12].mxu1 %v17157_v35  ;;  %v19508_v35 = vld [vmem:[#allocation8_spill] sm:$0xff] }
 0xa18   :  { %13357 = vmatprep.mubr.bf16.mxu1 %v17166_v61  ;;  %13418 = vmatpush3.bf16.msra.mxu1 %v14684_v3  ;;  %v19509_v61 = vld [vmem:[#allocation10_spill] sm:$0xff]  ;;  %v9434_v3 = vpack.c.bf16 %v9388_v7, %v9387_v14 }
 0xa19   :  { %13419 = vmatprep.subr.bf16.mxu1 %v14685_v42 }
 0xa1c   :  { %13420 = vmatpush3.bf16.msra.mxu1 %v14685_v42  ;;  %v9435_v42 = vpack.c.bf16 %v9390_v33, %v9389_v62 }
 0xa1f   :  { %13358 = vmatmul.mubr.bf16.gmra.mrb[16].mxu1 %v17169_v23  ;;  %v8901_v23 = vld [vmem:[#allocation2 + $0x349] sm:$0xff] }
 0xa20   :  { %13361 = vmatprep.mubr.bf16.mxu1 %v17173_v34  ;;  %v8902_v34 = vld [vmem:[#allocation2 + $0x351] sm:$0xff] }
 0xa27   :  { %13362 = vmatmul.mubr.bf16.gmra.mrb[20].mxu1 %v17175_v45  ;;  %v8934_v45 = vpack.c.bf16 %v8902_v34, %v8901_v23  ;;  %v9395_v23 = vld [vmem:[#allocation2 + $0x25a] sm:$0xff]  ;;  %v9396_v34 = vld [vmem:[#allocation2 + $0x262] sm:$0xff] }
 0xa28   :  { %13365 = vmatprep.mubr.bf16.mxu1 %v17179_v17  ;;  %v9353_v17 = vld [vmem:[#allocation2 + $0x32] sm:$0xff] }
 0xa2f   :  { %13366 = vmatmul.mubr.bf16.gmra.mrb[24].mxu1 %v17181_v8  ;;  %v9354_v8 = vld [vmem:[#allocation2 + $0x3a] sm:$0xff] }
 0xa30   :  { %13369 = vmatprep.mubr.bf16.mxu1 %v17185_v50  ;;  %v9417_v50 = vpack.c.bf16 %v9354_v8, %v9353_v17  ;;  %v9398_v17 = vld [vmem:[#allocation2 + $0x27a] sm:$0xff]  ;;  %v9438_v8 = vpack.c.bf16 %v9396_v34, %v9395_v23 }
 0xa37   :  { %13370 = vmatmul.mubr.bf16.gmra.mrb[28].mxu1 %v8918_v16  ;;  %v9393_v16 = vld [vmem:[#allocation2 + $0x242] sm:$0xff] }
 0xa38   :  { %13373 = vmatprep.mubr.bf16.mxu1 %v17188_v51  ;;  %v9355_v51 = vld [vmem:[#allocation2 + $0x4a] sm:$0xff] }
 0xa3f   :  { %13374 = vmatmul.mubr.bf16.gmra.mrb[32].mxu1 %v17190_v31  ;;  %v9356_v31 = vld [vmem:[#allocation2 + $0x52] sm:$0xff] }
 0xa40   :  { %13377 = vmatprep.mubr.bf16.mxu1 %v17194_v28  ;;  %v9357_v28 = vld [vmem:[#allocation2 + $0x62] sm:$0xff] }
 0xa47   :  { %13378 = vmatmul.mubr.bf16.gmra.mrb[36].mxu1 %v17196_v32  ;;  %v9358_v32 = vld [vmem:[#allocation2 + $0x6a] sm:$0xff] }
 0xa48   :  { %13381 = vmatprep.mubr.bf16.mxu1 %v17200_v38  ;;  %v9418_v38 = vpack.c.bf16 %v9356_v31, %v9355_v51  ;;  %v9399_v51 = vld [vmem:[#allocation2 + $0x28a] sm:$0xff]  ;;  %v9400_v31 = vld [vmem:[#allocation2 + $0x292] sm:$0xff] }
 0xa4f   :  { %13382 = vmatmul.mubr.bf16.gmra.mrb[40].mxu1 %v17202_v11  ;;  %v9419_v11 = vpack.c.bf16 %v9358_v32, %v9357_v28  ;;  %v9401_v28 = vld [vmem:[#allocation2 + $0x2a2] sm:$0xff]  ;;  %v9402_v32 = vld [vmem:[#allocation2 + $0x2aa] sm:$0xff] }
 0xa50   :  { %13385 = vmatprep.mubr.bf16.mxu1 %v17206_v13  ;;  %v9359_v13 = vld [vmem:[#allocation2 + $0x7a] sm:$0xff] }
 0xa57   :  { %13386 = vmatmul.mubr.bf16.gmra.mrb[44].mxu1 %v19508_v35  ;;  %v9436_v35 = vpack.c.bf16 %v9392_v18, %v9391_v41 }
 0xa58   :  { %13389 = vmatprep.mubr.bf16.mxu1 %v19509_v61 }
 0xa5f   :  { %13390 = vmatmul.mubr.bf16.gmra.mrb[48].mxu1 %v17214_v48  ;;  %v9362_v48 = vld [vmem:[#allocation2 + $0x9a] sm:$0xff] }
 0xa60   :  { %13393 = vmatprep.mubr.bf16.mxu1 %v17218_v22 }
 0xa67   :  { %13394 = vmatmul.mubr.bf16.gmra.mrb[52].mxu1 %v17220_v15 }
 0xa68   :  { %13397 = vmatprep.mubr.bf16.mxu1 %v17224_v36  ;;  %v9360_v36 = vld [vmem:[#allocation2 + $0x82] sm:$0xff] }
 0xa69   :  { %v9420_v22 = vpack.c.bf16 %v9360_v36, %v9359_v13  ;;  %v9403_v13 = vld [vmem:[#allocation2 + $0x2ba] sm:$0xff]  ;;  %v9404_v36 = vld [vmem:[#allocation2 + $0x2c2] sm:$0xff] }
 0xa6f   :  { %13398 = vmatmul.mubr.bf16.gmra.mrb[56].mxu1 %v17226_v43  ;;  %v9361_v43 = vld [vmem:[#allocation2 + $0x92] sm:$0xff] }
 0xa70   :  { %13401 = vmatprep.mubr.bf16.mxu1 %v17230_v9  ;;  %v9421_v15 = vpack.c.bf16 %v9362_v48, %v9361_v43  ;;  %v9363_v9 = vld [vmem:[#allocation2 + $0xaa] sm:$0xff]  ;;  %v9405_v43 = vld [vmem:[#allocation2 + $0x2d2] sm:$0xff]  ;;  %v9406_v48 = vld [vmem:[#allocation2 + $0x2da] sm:$0xff] }
 0xa71   :  { %v9422_v55 = vpack.c.bf16 %v9364_v26, %v9363_v9  ;;  %v9407_v9 = vld [vmem:[#allocation2 + $0x2ea] sm:$0xff]  ;;  %v9408_v26 = vld [vmem:[#allocation2 + $0x2f2] sm:$0xff] }
 0xa77   :  { %13402 = vmatmul.mubr.bf16.gmra.mrb[60].mxu1 %v8934_v45  ;;  %v9397_v45 = vld [vmem:[#allocation2 + $0x272] sm:$0xff] }
 0xa78   :  { %13421 = vmatprep.mubr.bf16.mxu1 %v9417_v50  ;;  %v9439_v50 = vpack.c.bf16 %v9398_v17, %v9397_v45 }
 0xa7f   :  { %13422 = vmatmul.mubr.bf16.vlgmr.msra.gmra.mrb[0].mxu1 %v9418_v38  ;;  %v9440_v38 = vpack.c.bf16 %v9400_v31, %v9399_v51 }
 0xa80   :  { %13425 = vmatprep.mubr.bf16.mxu1 %v9419_v11  ;;  %v9441_v11 = vpack.c.bf16 %v9402_v32, %v9401_v28 }
 0xa87   :  { %13426 = vmatmul.mubr.bf16.gmra.mrb[4].mxu1 %v9420_v22  ;;  %v9442_v22 = vpack.c.bf16 %v9404_v36, %v9403_v13 }
 0xa88   :  { %13429 = vmatprep.mubr.bf16.mxu1 %v9421_v15  ;;  %v9443_v15 = vpack.c.bf16 %v9406_v48, %v9405_v43 }
 0xa8f   :  { %13430 = vmatmul.mubr.bf16.gmra.mrb[8].mxu1 %v9422_v55  ;;  %v9444_v55 = vpack.c.bf16 %v9408_v26, %v9407_v9 }
 0xa90   :  { %13433 = vmatprep.mubr.bf16.mxu1 %v9423_v29  ;;  %v9445_v29 = vpack.c.bf16 %v9410_v5, %v9409_v20 }
 0xa97   :  { %13434 = vmatmul.mubr.bf16.gmra.mrb[12].mxu1 %v9424_v56  ;;  %v9416_v56 = vld [vmem:[#allocation2 + $0x352] sm:$0xff] }
 0xa98   :  { %13437 = vmatprep.mubr.bf16.mxu1 %v9425_v24  ;;  %v9448_v24 = vpack.c.bf16 %v9416_v56, %v9415_v19 }
 0xa9f   :  { %13438 = vmatmul.mubr.bf16.gmra.mrb[16].mxu1 %v9426_v27 }
 0xaa0   :  { %13441 = vmatprep.mubr.bf16.mxu1 %v9427_v12 }
 0xaa7   :  { %13442 = vmatmul.mubr.bf16.gmra.mrb[20].mxu1 %v9428_v49 }
 0xaa8   :  { %13445 = vmatprep.mubr.bf16.mxu1 %v9429_v60 }
 0xaaf   :  { %13446 = vmatmul.mubr.bf16.gmra.mrb[24].mxu1 %v9430_v58 }
 0xab0   :  { %13449 = vmatprep.mubr.bf16.mxu1 %v17273_v0  ;;  %v9394_v0 = vld [vmem:[#allocation2 + $0x24a] sm:$0xff] }
 0xab1   :  { %v9437_v61 = vpack.c.bf16 %v9394_v0, %v9393_v16 }
 0xab7   :  { %13450 = vmatmul.mubr.bf16.gmra.mrb[28].mxu1 %v9432_v53 }
 0xab8   :  { %13453 = vmatprep.mubr.bf16.mxu1 %v9433_v40 }
 0xabf   :  { %13454 = vmatmul.mubr.bf16.gmra.mrb[32].mxu1 %v9434_v3 }
 0xac0   :  { %13457 = vmatprep.mubr.bf16.mxu1 %v9435_v42 }
 0xac7   :  { %13458 = vmatmul.mubr.bf16.gmra.mrb[36].mxu1 %v9436_v35 }
 0xac8   :  { %13461 = vmatprep.mubr.bf16.mxu1 %v9437_v61 }
 0xacf   :  { %13462 = vmatmul.mubr.bf16.gmra.mrb[40].mxu1 %v9438_v8 }
 0xad0   :  { %13465 = vmatprep.mubr.bf16.mxu1 %v9439_v50 }
 0xad7   :  { %13466 = vmatmul.mubr.bf16.gmra.mrb[44].mxu1 %v9440_v38 }
 0xad8   :  { %13469 = vmatprep.mubr.bf16.mxu1 %v9441_v11 }
 0xadf   :  { %13470 = vmatmul.mubr.bf16.gmra.mrb[48].mxu1 %v9442_v22 }
 0xae0   :  { %13473 = vmatprep.mubr.bf16.mxu1 %v9443_v15 }
 0xae7   :  { %13474 = vmatmul.mubr.bf16.gmra.mrb[52].mxu1 %v9444_v55 }
 0xae8   :  { %13477 = vmatprep.mubr.bf16.mxu1 %v9445_v29 }
 0xaef   :  { %13478 = vmatmul.mubr.bf16.gmra.mrb[56].mxu1 %v9446_v59 }
 0xaf0   :  { %13481 = vmatprep.mubr.bf16.mxu1 %v17291_v37 }
 0xaf7   :  { %13482 = vmatmul.mubr.bf16.gmra.mrb[60].mxu1 %v9448_v24 }
 0xb52   :  { %v17377_v4 = vpop.f32.mrb[0].mxu1 }
 0xb53   :  { %19510 = vst [vmem:[#allocation13_spill] sm:$0xff] %v17377_v4  ;;  %v17379_v39 = vpop.f32.mrb[1].mxu1 }
 0xb54   :  { %v17381_v52 = vpop.f32.mrb[2].mxu1 }
 0xb55   :  { %19511 = vst [vmem:[#allocation15_spill] sm:$0xff] %v17381_v52  ;;  %v17383_v44 = vpop.f32.mrb[3].mxu1 }
 0xb56   :  { %19512 = vst [vmem:[#allocation18_spill] sm:$0xff] %v17383_v44  ;;  %v9869_v27 = vadd.f32 %v17383_v44, %v17379_v39 }
 0xb58   :  { %v9870_v12 = vadd.f32 %v17377_v4, %v9869_v27 }
 0xb5a   :  { %v17388_v46 = vpop.f32.mrb[4].mxu1  ;;  %v9871_v37 = vadd.f32 %v17381_v52, %v9870_v12 }
 0xb5b   :  { %v17391_v25 = vpop.f32.mrb[5].mxu1 }
 0xb5c   :  { %19513 = vst [vmem:[#allocation20_spill] sm:$0xff] %v17391_v25  ;;  %v9872_v57 = vadd.f32 %v9871_v37, %v17391_v25  ;;  %v17394_v1 = vpop.f32.mrb[6].mxu1 }
 0xb5d   :  { %v17396_v49 = vpop.f32.mrb[7].mxu1 }
 0xb5e   :  { %v9873_v60 = vadd.f32 %v9872_v57, %v17396_v49 }
 0xb60   :  { %v9874_v63 = vadd.f32 %v17388_v46, %v9873_v60 }
 0xb62   :  { %v17400_v10 = vpop.f32.mrb[8].mxu1  ;;  %v9875_v58 = vadd.f32 %v17394_v1, %v9874_v63 }
 0xb63   :  { %v17403_v47 = vpop.f32.mrb[9].mxu1 }
 0xb64   :  { %v9876_v30 = vadd.f32 %v9875_v58, %v17403_v47  ;;  %v17406_v53 = vpop.f32.mrb[10].mxu1 }
 0xb65   :  { %v17408_v6 = vpop.f32.mrb[11].mxu1 }
 0xb66   :  { %v9877_v2 = vadd.f32 %v9876_v30, %v17408_v6 }
 0xb68   :  { %v9878_v40 = vadd.f32 %v17400_v10, %v9877_v2 }
 0xb6a   :  { %v17412_v14 = vpop.f32.mrb[12].mxu1  ;;  %v9879_v7 = vadd.f32 %v17406_v53, %v9878_v40 }
 0xb6b   :  { %v17415_v62 = vpop.f32.mrb[13].mxu1 }
 0xb6c   :  { %v9880_v33 = vadd.f32 %v9879_v7, %v17415_v62  ;;  %v17418_v3 = vpop.f32.mrb[14].mxu1 }
 0xb6d   :  { %v17420_v42 = vpop.f32.mrb[15].mxu1 }
 0xb6e   :  { %v9881_v41 = vadd.f32 %v9880_v33, %v17420_v42 }
 0xb70   :  { %v9882_v18 = vadd.f32 %v17412_v14, %v9881_v41 }
 0xb72   :  { %v17424_v16 = vpop.f32.mrb[16].mxu1  ;;  %v9883_v0 = vadd.f32 %v17418_v3, %v9882_v18 }
 0xb73   :  { %v17427_v35 = vpop.f32.mrb[17].mxu1 }
 0xb74   :  { %v9884_v61 = vadd.f32 %v9883_v0, %v17427_v35  ;;  %v17430_v23 = vpop.f32.mrb[18].mxu1 }
 0xb75   :  { %v17432_v34 = vpop.f32.mrb[19].mxu1 }
 0xb76   :  { %v9885_v45 = vadd.f32 %v9884_v61, %v17432_v34 }
 0xb78   :  { %v9886_v17 = vadd.f32 %v17424_v16, %v9885_v45 }
 0xb7a   :  { %v17436_v8 = vpop.f32.mrb[20].mxu1  ;;  %v9887_v50 = vadd.f32 %v17430_v23, %v9886_v17 }
 0xb7b   :  { %v17439_v51 = vpop.f32.mrb[21].mxu1 }
 0xb7c   :  { %v9888_v31 = vadd.f32 %v9887_v50, %v17439_v51  ;;  %v17442_v28 = vpop.f32.mrb[22].mxu1 }
 0xb7d   :  { %v17444_v32 = vpop.f32.mrb[23].mxu1 }
 0xb7e   :  { %v9889_v38 = vadd.f32 %v9888_v31, %v17444_v32 }
 0xb80   :  { %v9890_v11 = vadd.f32 %v17436_v8, %v9889_v38 }
 0xb82   :  { %v17448_v13 = vpop.f32.mrb[24].mxu1  ;;  %v9891_v36 = vadd.f32 %v17442_v28, %v9890_v11 }
 0xb83   :  { %v17451_v43 = vpop.f32.mrb[25].mxu1 }
 0xb84   :  { %v9892_v48 = vadd.f32 %v9891_v36, %v17451_v43  ;;  %v17454_v22 = vpop.f32.mrb[26].mxu1 }
 0xb85   :  { %v17456_v15 = vpop.f32.mrb[27].mxu1 }
 0xb86   :  { %v9893_v9 = vadd.f32 %v9892_v48, %v17456_v15 }
 0xb88   :  { %v9894_v26 = vadd.f32 %v17448_v13, %v9893_v9 }
 0xb8a   :  { %v17460_v20 = vpop.f32.mrb[28].mxu1  ;;  %v9895_v5 = vadd.f32 %v17454_v22, %v9894_v26 }
 0xb8b   :  { %v17463_v55 = vpop.f32.mrb[29].mxu1 }
 0xb8c   :  { %v9896_v29 = vadd.f32 %v9895_v5, %v17463_v55  ;;  %v17466_v21 = vpop.f32.mrb[30].mxu1 }
 0xb8d   :  { %v17468_v54 = vpop.f32.mrb[31].mxu1 }
 0xb8e   :  { %v9897_v59 = vadd.f32 %v9896_v29, %v17468_v54 }
 0xb90   :  { %v9898_v19 = vadd.f32 %v17460_v20, %v9897_v59 }
 0xb92   :  { %v17472_v56 = vpop.f32.mrb[32].mxu1  ;;  %v9899_v24 = vadd.f32 %v17466_v21, %v9898_v19 }
 0xb93   :  { %v17475_v27 = vpop.f32.mrb[33].mxu1 }
 0xb94   :  { %v9900_v12 = vadd.f32 %v9899_v24, %v17475_v27  ;;  %v17478_v37 = vpop.f32.mrb[34].mxu1 }
 0xb95   :  { %v17480_v57 = vpop.f32.mrb[35].mxu1 }
 0xb96   :  { %v9901_v60 = vadd.f32 %v9900_v12, %v17480_v57 }
 0xb98   :  { %v9902_v63 = vadd.f32 %v17472_v56, %v9901_v60 }
 0xb9a   :  { %v17484_v58 = vpop.f32.mrb[36].mxu1  ;;  %v9903_v30 = vadd.f32 %v17478_v37, %v9902_v63 }
 0xb9b   :  { %v17487_v2 = vpop.f32.mrb[37].mxu1 }
 0xb9c   :  { %v9904_v40 = vadd.f32 %v9903_v30, %v17487_v2  ;;  %v17490_v7 = vpop.f32.mrb[38].mxu1 }
 0xb9d   :  { %v17492_v33 = vpop.f32.mrb[39].mxu1 }
 0xb9e   :  { %v9905_v41 = vadd.f32 %v9904_v40, %v17492_v33 }
 0xba0   :  { %v9906_v18 = vadd.f32 %v17484_v58, %v9905_v41 }
 0xba2   :  { %v17496_v0 = vpop.f32.mrb[40].mxu1  ;;  %v9907_v61 = vadd.f32 %v17490_v7, %v9906_v18 }
 0xba3   :  { %v17499_v45 = vpop.f32.mrb[41].mxu1 }
 0xba4   :  { %v9908_v17 = vadd.f32 %v9907_v61, %v17499_v45  ;;  %v17502_v50 = vpop.f32.mrb[42].mxu1 }
 0xba5   :  { %19514 = vst [vmem:[#allocation24_spill] sm:$0xff] %v17502_v50  ;;  %v17504_v31 = vpop.f32.mrb[43].mxu1 }
 0xba6   :  { %v9909_v38 = vadd.f32 %v9908_v17, %v17504_v31 }
 0xba8   :  { %v9910_v11 = vadd.f32 %v17496_v0, %v9909_v38 }
 0xbaa   :  { %v17508_v36 = vpop.f32.mrb[44].mxu1  ;;  %v9911_v48 = vadd.f32 %v17502_v50, %v9910_v11 }
 0xbab   :  { %19515 = vst [vmem:[#allocation21_spill] sm:$0xff] %v17508_v36  ;;  %v17511_v9 = vpop.f32.mrb[45].mxu1 }
 0xbac   :  { %19516 = vst [vmem:[#allocation23_spill] sm:$0xff] %v17511_v9  ;;  %v9912_v26 = vadd.f32 %v9911_v48, %v17511_v9  ;;  %v17514_v5 = vpop.f32.mrb[46].mxu1 }
 0xbad   :  { %19517 = vst [vmem:[#allocation26_spill] sm:$0xff] %v17514_v5  ;;  %v17516_v29 = vpop.f32.mrb[47].mxu1 }
 0xbae   :  { %19518 = vst [vmem:[#allocation25_spill] sm:$0xff] %v17516_v29  ;;  %v9913_v59 = vadd.f32 %v9912_v26, %v17516_v29 }
 0xbb0   :  { %v9914_v19 = vadd.f32 %v17508_v36, %v9913_v59 }
 0xbb2   :  { %v17520_v24 = vpop.f32.mrb[48].mxu1  ;;  %v9915_v12 = vadd.f32 %v17514_v5, %v9914_v19 }
 0xbb3   :  { %19519 = vst [vmem:[#allocation27_spill] sm:$0xff] %v17520_v24  ;;  %v17523_v60 = vpop.f32.mrb[49].mxu1 }
 0xbb4   :  { %19520 = vst [vmem:[#allocation12_spill] sm:$0xff] %v17523_v60  ;;  %v9916_v63 = vadd.f32 %v9915_v12, %v17523_v60  ;;  %v17526_v30 = vpop.f32.mrb[50].mxu1 }
 0xbb5   :  { %19521 = vst [vmem:[#allocation9_spill] sm:$0xff] %v17526_v30  ;;  %v17528_v40 = vpop.f32.mrb[51].mxu1 }
 0xbb6   :  { %19522 = vst [vmem:[#allocation11_spill] sm:$0xff] %v17528_v40  ;;  %v9917_v41 = vadd.f32 %v9916_v63, %v17528_v40 }
 0xbb8   :  { %v9918_v18 = vadd.f32 %v17520_v24, %v9917_v41 }
 0xbba   :  { %v17532_v61 = vpop.f32.mrb[52].mxu1  ;;  %v9919_v17 = vadd.f32 %v17526_v30, %v9918_v18 }
 0xbbb   :  { %19523 = vst [vmem:[#allocation14_spill] sm:$0xff] %v17532_v61  ;;  %v17535_v38 = vpop.f32.mrb[53].mxu1 }
 0xbbc   :  { %19524 = vst [vmem:[#allocation16_spill] sm:$0xff] %v17535_v38  ;;  %v9920_v11 = vadd.f32 %v9919_v17, %v17535_v38  ;;  %v17538_v48 = vpop.f32.mrb[54].mxu1 }
 0xbbd   :  { %19525 = vst [vmem:[#allocation17_spill] sm:$0xff] %v17538_v48  ;;  %v17540_v26 = vpop.f32.mrb[55].mxu1 }
 0xbbe   :  { %19526 = vst [vmem:[#allocation19_spill] sm:$0xff] %v17540_v26  ;;  %v9921_v59 = vadd.f32 %v9920_v11, %v17540_v26 }
 0xbc0   :  { %v9922_v19 = vadd.f32 %v17532_v61, %v9921_v59 }
 0xbc2   :  { %v17544_v12 = vpop.f32.mrb[56].mxu1  ;;  %v9923_v63 = vadd.f32 %v17538_v48, %v9922_v19 }
 0xbc3   :  { %19527 = vst [vmem:[#allocation22_spill] sm:$0xff] %v17544_v12  ;;  %v17547_v41 = vpop.f32.mrb[57].mxu1 }
 0xbc4   :  { %19528 = vst [vmem:[#allocation5_spill] sm:$0xff] %v17547_v41  ;;  %v9924_v18 = vadd.f32 %v9923_v63, %v17547_v41  ;;  %v17550_v30 = vpop.f32.mrb[58].mxu1 }
 0xbc5   :  { %19529 = vst [vmem:[#allocation3_spill] sm:$0xff] %v17550_v30  ;;  %v17552_v24 = vpop.f32.mrb[59].mxu1 }
 0xbc6   :  { %19530 = vst [vmem:[#allocation4_spill] sm:$0xff] %v17552_v24  ;;  %v9925_v17 = vadd.f32 %v9924_v18, %v17552_v24 }
 0xbc8   :  { %v9926_v38 = vadd.f32 %v17544_v12, %v9925_v17 }
 0xbca   :  { %v17556_v40 = vpop.f32.mrb[60].mxu1  ;;  %v9927_v11 = vadd.f32 %v17550_v30, %v9926_v38 }
 0xbcb   :  { %19531 = vst [vmem:[#allocation6_spill] sm:$0xff] %v17556_v40  ;;  %v17559_v59 = vpop.f32.mrb[61].mxu1 }
 0xbcc   :  { %19532 = vst [vmem:[#allocation7_spill] sm:$0xff] %v17559_v59  ;;  %v9928_v19 = vadd.f32 %v9927_v11, %v17559_v59  ;;  %v17562_v48 = vpop.f32.mrb[62].mxu1 }
 0xbcd   :  { %v17564_v61 = vpop.f32.mrb[63].mxu1 }
 0xbce   :  { %19533 = vst [vmem:[#allocation8_spill] sm:$0xff] %v17564_v61  ;;  %v9929_v63 = vadd.f32 %v9928_v19, %v17564_v61 }
 0xbd0   :  { %v9930_v41 = vadd.f32 %v17556_v40, %v9929_v63 }
 0xbd2   :  { %v9931_v18 = vadd.f32 %v17562_v48, %v9930_v41 }
 0xbd4   :  { %v9932_v24 = vrot.slane %v9931_v18, 4 }
 0xbd6   :  { %v9933_v17 = vadd.f32 %v9932_v24, %v9931_v18 }
 0xbd8   :  { %v9934_v12 = vrot.slane %v9933_v17, 2 }
 0xbda   :  { %v9935_v26 = vadd.f32 %v9934_v12, %v9933_v17 }
 0xbdc   :  { %v9936_v60 = vrot.slane %v9935_v26, 1 }
 0xbde   :  { %v9937_v38 = vadd.f32 %v9936_v60, %v9935_v26 }
 0xbe0   :  { %v17569_v30 = vmul.f32 0.001953125, %v9937_v38 }
 0xbe2   :  { %v9939_v11 = vsub.f32 %v17379_v39, %v17569_v30  ;;  %v9940_v59 = vsub.f32 %v17383_v44, %v17569_v30  ;;  %v9941_v19 = vsub.f32 %v17377_v4, %v17569_v30  ;;  %v9942_v24 = vsub.f32 %v17381_v52, %v17569_v30 }
 0xbe3   :  { %v9943_v12 = vsub.f32 %v17391_v25, %v17569_v30  ;;  %v9944_v41 = vsub.f32 %v17396_v49, %v17569_v30  ;;  %v9945_v38 = vsub.f32 %v17388_v46, %v17569_v30  ;;  %v9947_v25 = vsub.f32 %v17403_v47, %v17569_v30 }
 0xbe4   :  { %v10003_v63 = vmul.f32 %v9939_v11, %v9939_v11  ;;  %v10004_v40 = vmul.f32 %v9940_v59, %v9940_v59  ;;  %v10005_v60 = vmul.f32 %v9941_v19, %v9941_v19  ;;  %v10006_v18 = vmul.f32 %v9942_v24, %v9942_v24 }
 0xbe5   :  { %v10007_v44 = vmul.f32 %v9943_v12, %v9943_v12  ;;  %v9946_v59 = vsub.f32 %v17394_v1, %v17569_v30  ;;  %v10008_v11 = vmul.f32 %v9944_v41, %v9944_v41  ;;  %v10009_v19 = vmul.f32 %v9945_v38, %v9945_v38 }
 0xbe6   :  { %v10067_v26 = vadd.f32 %v10004_v40, %v10003_v63  ;;  %v9948_v63 = vsub.f32 %v17408_v6, %v17569_v30  ;;  %v10011_v12 = vmul.f32 %v9947_v25, %v9947_v25 }
 0xbe7   :  { %v10010_v24 = vmul.f32 %v9946_v59, %v9946_v59 }
 0xbe8   :  { %v10068_v17 = vadd.f32 %v10067_v26, %v10005_v60  ;;  %v9949_v26 = vsub.f32 %v17400_v10, %v17569_v30  ;;  %v10012_v41 = vmul.f32 %v9948_v63, %v9948_v63 }
 0xbea   :  { %v10069_v4 = vadd.f32 %v10068_v17, %v10006_v18  ;;  %v9950_v17 = vsub.f32 %v17406_v53, %v17569_v30  ;;  %v10013_v38 = vmul.f32 %v9949_v26, %v9949_v26 }
 0xbec   :  { %v10070_v52 = vadd.f32 %v10069_v4, %v10007_v44  ;;  %v9951_v44 = vsub.f32 %v17415_v62, %v17569_v30  ;;  %v10014_v59 = vmul.f32 %v9950_v17, %v9950_v17 }
 0xbee   :  { %v10071_v40 = vadd.f32 %v10070_v52, %v10008_v11  ;;  %v9952_v11 = vsub.f32 %v17420_v42, %v17569_v30  ;;  %v10015_v25 = vmul.f32 %v9951_v44, %v9951_v44 }
 0xbf0   :  { %v10072_v60 = vadd.f32 %v10071_v40, %v10009_v19  ;;  %v9953_v40 = vsub.f32 %v17412_v14, %v17569_v30  ;;  %v10016_v63 = vmul.f32 %v9952_v11, %v9952_v11 }
 0xbf2   :  { %v10073_v18 = vadd.f32 %v10072_v60, %v10010_v24  ;;  %v9954_v60 = vsub.f32 %v17418_v3, %v17569_v30  ;;  %v10017_v26 = vmul.f32 %v9953_v40, %v9953_v40 }
 0xbf4   :  { %v10074_v4 = vadd.f32 %v10073_v18, %v10011_v12  ;;  %v9955_v18 = vsub.f32 %v17427_v35, %v17569_v30  ;;  %v10018_v17 = vmul.f32 %v9954_v60, %v9954_v60 }
 0xbf6   :  { %v10075_v52 = vadd.f32 %v10074_v4, %v10012_v41  ;;  %v9956_v4 = vsub.f32 %v17432_v34, %v17569_v30  ;;  %v10019_v44 = vmul.f32 %v9955_v18, %v9955_v18 }
 0xbf8   :  { %v10076_v19 = vadd.f32 %v10075_v52, %v10013_v38  ;;  %v9957_v52 = vsub.f32 %v17424_v16, %v17569_v30  ;;  %v10020_v11 = vmul.f32 %v9956_v4, %v9956_v4 }
 0xbfa   :  { %v10077_v24 = vadd.f32 %v10076_v19, %v10014_v59  ;;  %v9958_v19 = vsub.f32 %v17430_v23, %v17569_v30  ;;  %v10021_v40 = vmul.f32 %v9957_v52, %v9957_v52 }
 0xbfc   :  { %v10078_v12 = vadd.f32 %v10077_v24, %v10015_v25  ;;  %v9959_v24 = vsub.f32 %v17439_v51, %v17569_v30  ;;  %v10022_v60 = vmul.f32 %v9958_v19, %v9958_v19 }
 0xbfe   :  { %v10079_v41 = vadd.f32 %v10078_v12, %v10016_v63  ;;  %v9960_v12 = vsub.f32 %v17444_v32, %v17569_v30  ;;  %v10023_v18 = vmul.f32 %v9959_v24, %v9959_v24 }
 0xc00   :  { %v10080_v38 = vadd.f32 %v10079_v41, %v10017_v26  ;;  %v9961_v41 = vsub.f32 %v17436_v8, %v17569_v30  ;;  %v10024_v4 = vmul.f32 %v9960_v12, %v9960_v12 }
 0xc02   :  { %v10081_v59 = vadd.f32 %v10080_v38, %v10018_v17  ;;  %v9962_v38 = vsub.f32 %v17442_v28, %v17569_v30  ;;  %v10025_v52 = vmul.f32 %v9961_v41, %v9961_v41 }
 0xc04   :  { %v10082_v25 = vadd.f32 %v10081_v59, %v10019_v44  ;;  %v9963_v59 = vsub.f32 %v17451_v43, %v17569_v30  ;;  %v10026_v19 = vmul.f32 %v9962_v38, %v9962_v38 }
 0xc06   :  { %v10083_v63 = vadd.f32 %v10082_v25, %v10020_v11  ;;  %v9964_v25 = vsub.f32 %v17456_v15, %v17569_v30  ;;  %v10027_v24 = vmul.f32 %v9963_v59, %v9963_v59 }
 0xc08   :  { %v10084_v26 = vadd.f32 %v10083_v63, %v10021_v40  ;;  %v9965_v63 = vsub.f32 %v17448_v13, %v17569_v30  ;;  %v10028_v12 = vmul.f32 %v9964_v25, %v9964_v25 }
 0xc0a   :  { %v10085_v17 = vadd.f32 %v10084_v26, %v10022_v60  ;;  %v9966_v26 = vsub.f32 %v17454_v22, %v17569_v30  ;;  %v10029_v41 = vmul.f32 %v9965_v63, %v9965_v63 }
 0xc0c   :  { %v10086_v44 = vadd.f32 %v10085_v17, %v10023_v18  ;;  %v9967_v17 = vsub.f32 %v17463_v55, %v17569_v30  ;;  %v10030_v38 = vmul.f32 %v9966_v26, %v9966_v26 }
 0xc0e   :  { %v10087_v11 = vadd.f32 %v10086_v44, %v10024_v4  ;;  %v9968_v44 = vsub.f32 %v17468_v54, %v17569_v30  ;;  %v10031_v59 = vmul.f32 %v9967_v17, %v9967_v17 }
 0xc10   :  { %v10088_v40 = vadd.f32 %v10087_v11, %v10025_v52  ;;  %v9969_v11 = vsub.f32 %v17460_v20, %v17569_v30  ;;  %v10032_v25 = vmul.f32 %v9968_v44, %v9968_v44 }
 0xc12   :  { %v10089_v60 = vadd.f32 %v10088_v40, %v10026_v19  ;;  %v9970_v40 = vsub.f32 %v17466_v21, %v17569_v30  ;;  %v10033_v63 = vmul.f32 %v9969_v11, %v9969_v11 }
 0xc14   :  { %v10090_v18 = vadd.f32 %v10089_v60, %v10027_v24  ;;  %v9971_v60 = vsub.f32 %v17475_v27, %v17569_v30  ;;  %v10034_v26 = vmul.f32 %v9970_v40, %v9970_v40 }
 0xc16   :  { %v10091_v4 = vadd.f32 %v10090_v18, %v10028_v12  ;;  %v9972_v18 = vsub.f32 %v17480_v57, %v17569_v30  ;;  %v10035_v17 = vmul.f32 %v9971_v60, %v9971_v60 }
 0xc18   :  { %v10092_v52 = vadd.f32 %v10091_v4, %v10029_v41  ;;  %v9973_v4 = vsub.f32 %v17472_v56, %v17569_v30  ;;  %v10036_v44 = vmul.f32 %v9972_v18, %v9972_v18 }
 0xc1a   :  { %v10093_v19 = vadd.f32 %v10092_v52, %v10030_v38  ;;  %v9974_v52 = vsub.f32 %v17478_v37, %v17569_v30  ;;  %v10037_v11 = vmul.f32 %v9973_v4, %v9973_v4 }
 0xc1c   :  { %v10094_v24 = vadd.f32 %v10093_v19, %v10031_v59  ;;  %v9975_v19 = vsub.f32 %v17487_v2, %v17569_v30  ;;  %v10038_v40 = vmul.f32 %v9974_v52, %v9974_v52 }
 0xc1e   :  { %v10095_v12 = vadd.f32 %v10094_v24, %v10032_v25  ;;  %v9976_v24 = vsub.f32 %v17492_v33, %v17569_v30  ;;  %v10039_v60 = vmul.f32 %v9975_v19, %v9975_v19 }
 0xc20   :  { %v10096_v41 = vadd.f32 %v10095_v12, %v10033_v63  ;;  %v9977_v12 = vsub.f32 %v17484_v58, %v17569_v30  ;;  %v10040_v18 = vmul.f32 %v9976_v24, %v9976_v24 }
 0xc22   :  { %v10097_v38 = vadd.f32 %v10096_v41, %v10034_v26  ;;  %v9978_v41 = vsub.f32 %v17490_v7, %v17569_v30  ;;  %v10041_v4 = vmul.f32 %v9977_v12, %v9977_v12 }
 0xc24   :  { %v10098_v59 = vadd.f32 %v10097_v38, %v10035_v17  ;;  %v9979_v38 = vsub.f32 %v17499_v45, %v17569_v30  ;;  %v10042_v52 = vmul.f32 %v9978_v41, %v9978_v41 }
 0xc26   :  { %v10099_v25 = vadd.f32 %v10098_v59, %v10036_v44  ;;  %v9980_v59 = vsub.f32 %v17504_v31, %v17569_v30  ;;  %v10043_v19 = vmul.f32 %v9979_v38, %v9979_v38 }
 0xc28   :  { %v10100_v63 = vadd.f32 %v10099_v25, %v10037_v11  ;;  %v9981_v25 = vsub.f32 %v17496_v0, %v17569_v30  ;;  %v10044_v24 = vmul.f32 %v9980_v59, %v9980_v59 }
 0xc2a   :  { %v10101_v26 = vadd.f32 %v10100_v63, %v10038_v40  ;;  %v9982_v63 = vsub.f32 %v17502_v50, %v17569_v30  ;;  %v10045_v12 = vmul.f32 %v9981_v25, %v9981_v25 }
 0xc2c   :  { %v10102_v17 = vadd.f32 %v10101_v26, %v10039_v60  ;;  %v9983_v26 = vsub.f32 %v17511_v9, %v17569_v30  ;;  %v10046_v41 = vmul.f32 %v9982_v63, %v9982_v63 }
 0xc2e   :  { %v10103_v44 = vadd.f32 %v10102_v17, %v10040_v18  ;;  %v9984_v17 = vsub.f32 %v17516_v29, %v17569_v30  ;;  %v10047_v38 = vmul.f32 %v9983_v26, %v9983_v26 }
 0xc30   :  { %v10104_v11 = vadd.f32 %v10103_v44, %v10041_v4  ;;  %v9985_v44 = vsub.f32 %v17508_v36, %v17569_v30  ;;  %v10048_v59 = vmul.f32 %v9984_v17, %v9984_v17 }
 0xc32   :  { %v10105_v40 = vadd.f32 %v10104_v11, %v10042_v52  ;;  %v9986_v11 = vsub.f32 %v17514_v5, %v17569_v30  ;;  %v10049_v25 = vmul.f32 %v9985_v44, %v9985_v44 }
 0xc34   :  { %v10106_v60 = vadd.f32 %v10105_v40, %v10043_v19  ;;  %v19534_v40 = vld [vmem:[#allocation12_spill] sm:$0xff]  ;;  %v10050_v63 = vmul.f32 %v9986_v11, %v9986_v11 }
 0xc35   :  { %v9987_v9 = vsub.f32 %v19534_v40, %v17569_v30 }
 0xc36   :  { %v10107_v18 = vadd.f32 %v10106_v60, %v10044_v24  ;;  %v19535_v60 = vld [vmem:[#allocation11_spill] sm:$0xff] }
 0xc37   :  { %v9988_v29 = vsub.f32 %v19535_v60, %v17569_v30  ;;  %v10051_v26 = vmul.f32 %v9987_v9, %v9987_v9 }
 0xc38   :  { %v10108_v4 = vadd.f32 %v10107_v18, %v10045_v12  ;;  %v19536_v18 = vld [vmem:[#allocation27_spill] sm:$0xff] }
 0xc39   :  { %v9989_v36 = vsub.f32 %v19536_v18, %v17569_v30  ;;  %v10052_v17 = vmul.f32 %v9988_v29, %v9988_v29 }
 0xc3a   :  { %v10109_v52 = vadd.f32 %v10108_v4, %v10046_v41  ;;  %v19537_v4 = vld [vmem:[#allocation9_spill] sm:$0xff] }
 0xc3b   :  { %v9990_v5 = vsub.f32 %v19537_v4, %v17569_v30  ;;  %v10053_v44 = vmul.f32 %v9989_v36, %v9989_v36 }
 0xc3c   :  { %v10110_v19 = vadd.f32 %v10109_v52, %v10047_v38  ;;  %v19538_v52 = vld [vmem:[#allocation16_spill] sm:$0xff] }
 0xc3d   :  { %v9991_v40 = vsub.f32 %v19538_v52, %v17569_v30  ;;  %v10054_v11 = vmul.f32 %v9990_v5, %v9990_v5 }
 0xc3e   :  { %v10111_v24 = vadd.f32 %v10110_v19, %v10048_v59  ;;  %v19539_v19 = vld [vmem:[#allocation19_spill] sm:$0xff] }
 0xc3f   :  { %v9992_v60 = vsub.f32 %v19539_v19, %v17569_v30  ;;  %v10055_v9 = vmul.f32 %v9991_v40, %v9991_v40 }
 0xc40   :  { %v10112_v12 = vadd.f32 %v10111_v24, %v10049_v25  ;;  %v19540_v24 = vld [vmem:[#allocation14_spill] sm:$0xff] }
 0xc41   :  { %v9993_v18 = vsub.f32 %v19540_v24, %v17569_v30  ;;  %v10056_v29 = vmul.f32 %v9992_v60, %v9992_v60 }
 0xc42   :  { %v10113_v41 = vadd.f32 %v10112_v12, %v10050_v63  ;;  %v19541_v12 = vld [vmem:[#allocation17_spill] sm:$0xff] }
 0xc43   :  { %v9994_v4 = vsub.f32 %v19541_v12, %v17569_v30  ;;  %v10057_v36 = vmul.f32 %v9993_v18, %v9993_v18 }
 0xc44   :  { %v10114_v38 = vadd.f32 %v10113_v41, %v10051_v26  ;;  %v19542_v41 = vld [vmem:[#allocation5_spill] sm:$0xff] }
 0xc45   :  { %v9995_v52 = vsub.f32 %v19542_v41, %v17569_v30  ;;  %v10058_v5 = vmul.f32 %v9994_v4, %v9994_v4 }
 0xc46   :  { %v10115_v59 = vadd.f32 %v10114_v38, %v10052_v17  ;;  %v19543_v38 = vld [vmem:[#allocation4_spill] sm:$0xff] }
 0xc47   :  { %v9996_v19 = vsub.f32 %v19543_v38, %v17569_v30  ;;  %v10059_v40 = vmul.f32 %v9995_v52, %v9995_v52 }
 0xc48   :  { %v10116_v25 = vadd.f32 %v10115_v59, %v10053_v44  ;;  %v19544_v59 = vld [vmem:[#allocation22_spill] sm:$0xff] }
 0xc49   :  { %v9997_v24 = vsub.f32 %v19544_v59, %v17569_v30  ;;  %v10060_v60 = vmul.f32 %v9996_v19, %v9996_v19 }
 0xc4a   :  { %v10117_v63 = vadd.f32 %v10116_v25, %v10054_v11  ;;  %v19545_v25 = vld [vmem:[#allocation3_spill] sm:$0xff] }
 0xc4b   :  { %v9998_v12 = vsub.f32 %v19545_v25, %v17569_v30  ;;  %v10061_v18 = vmul.f32 %v9997_v24, %v9997_v24 }
 0xc4c   :  { %v10118_v26 = vadd.f32 %v10117_v63, %v10055_v9  ;;  %v19546_v63 = vld [vmem:[#allocation7_spill] sm:$0xff] }
 0xc4d   :  { %v9999_v41 = vsub.f32 %v19546_v63, %v17569_v30  ;;  %v10062_v4 = vmul.f32 %v9998_v12, %v9998_v12 }
 0xc4e   :  { %v10119_v17 = vadd.f32 %v10118_v26, %v10056_v29  ;;  %v10000_v26 = vsub.f32 %v17564_v61, %v17569_v30 }
 0xc4f   :  { %v10063_v52 = vmul.f32 %v9999_v41, %v9999_v41  ;;  %v17702_v41 = vld [vmem:[%s19092_s0] sm:$0xff]  }
 0xc50   :  { %v10120_v44 = vadd.f32 %v10119_v17, %v10057_v36  ;;  %v19547_v17 = vld [vmem:[#allocation6_spill] sm:$0xff]  ;;  %v10064_v19 = vmul.f32 %v10000_v26, %v10000_v26  ;;  %19548 = vst [vmem:[#allocation10_spill] sm:$0xff] %v17702_v41  ;;  %v17733_v26 = vld [vmem:[%s19092_s0 + $0x30] sm:$0xff]  }
 0xc51   :  { %v10001_v59 = vsub.f32 %v19547_v17, %v17569_v30  ;;  %19554 = vst [vmem:[#allocation34_spill] sm:$0xff] %v17733_v26  ;;  %v17852_v26 = vld [vmem:[%s19092_s0 + $0xb0] sm:$0xff]   ;;  %v19597_v41 = vld [vmem:[#allocation14_spill] sm:$0xff] }
 0xc52   :  { %v10121_v11 = vadd.f32 %v10120_v44, %v10058_v5  ;;  %v10002_v44 = vsub.f32 %v17562_v48, %v17569_v30  ;;  %19570 = vst [vmem:[#allocation50_spill] sm:$0xff] %v17852_v26  ;;  %v19581_v26 = vld [vmem:[#allocation21_spill] sm:$0xff] }
 0xc54   :  { %v10122_v9 = vadd.f32 %v10121_v11, %v10059_v40  ;;  %v10065_v11 = vmul.f32 %v10001_v59, %v10001_v59  ;;  %v10066_v63 = vmul.f32 %v10002_v44, %v10002_v44  ;;  %v17707_v59 = vld [vmem:[%s19092_s0 + $0x8] sm:$0xff]   ;;  %v17747_v44 = vld [vmem:[%s19092_s0 + $0x40] sm:$0xff]  }
 0xc55   :  { %19549 = vst [vmem:[#allocation29_spill] sm:$0xff] %v17707_v59  ;;  %19556 = vst [vmem:[#allocation36_spill] sm:$0xff] %v17747_v44  ;;  %v19577_v44 = vld [vmem:[#allocation20_spill] sm:$0xff]  ;;  %v19595_v59 = vld [vmem:[#allocation19_spill] sm:$0xff] }
 0xc56   :  { %v10123_v29 = vadd.f32 %v10122_v9, %v10060_v60 }
 0xc58   :  { %v10124_v36 = vadd.f32 %v10123_v29, %v10061_v18 }
 0xc5a   :  { %v10125_v5 = vadd.f32 %v10124_v36, %v10062_v4  ;;  %v17803_v36 = vld [vmem:[%s19092_s0 + $0x80] sm:$0xff]  }
 0xc5b   :  { %19564 = vst [vmem:[#allocation44_spill] sm:$0xff] %v17803_v36  ;;  %v9867_v4 = vld [vmem:[%s19096_s5] sm:$0x1]  ;;  %v19578_v36 = vld [vmem:[#allocation24_spill] sm:$0xff] }
 0xc5c   :  { %v10126_v40 = vadd.f32 %v10125_v5, %v10063_v52  ;;  %v17742_v5 = vld [vmem:[%s19092_s0 + $0x38] sm:$0xff]   ;;  %v17789_v52 = vld [vmem:[%s19092_s0 + $0x70] sm:$0xff]  }
 0xc5d   :  { %19555 = vst [vmem:[#allocation35_spill] sm:$0xff] %v17742_v5  ;;  %19562 = vst [vmem:[#allocation42_spill] sm:$0xff] %v17789_v52  ;;  %v17865_v5 = vld [vmem:[%s19092_s0 + $0xc0] sm:$0xff]  }
 0xc5e   :  { %v10127_v25 = vadd.f32 %v10126_v40, %v10064_v19  ;;  %v17775_v40 = vld [vmem:[%s19092_s0 + $0x60] sm:$0xff]   ;;  %19572 = vst [vmem:[#allocation52_spill] sm:$0xff] %v17865_v5 }
 0xc5f   :  { %19560 = vst [vmem:[#allocation40_spill] sm:$0xff] %v17775_v40  ;;  %v17838_v19 = vld [vmem:[%s19092_s0 + $0xa0] sm:$0xff]  }
 0xc60   :  { %v10128_v24 = vadd.f32 %v10127_v25, %v10065_v11  ;;  %v17712_v25 = vld [vmem:[%s19092_s0 + $0x10] sm:$0xff]   ;;  %v17784_v11 = vld [vmem:[%s19092_s0 + $0x68] sm:$0xff]   ;;  %19568 = vst [vmem:[#allocation48_spill] sm:$0xff] %v17838_v19  ;;  %v19579_v5 = vld [vmem:[#allocation23_spill] sm:$0xff] }
 0xc61   :  { %19550 = vst [vmem:[#allocation30_spill] sm:$0xff] %v17712_v25  ;;  %19561 = vst [vmem:[#allocation41_spill] sm:$0xff] %v17784_v11  ;;  %v19583_v19 = vld [vmem:[#allocation26_spill] sm:$0xff]  ;;  %v19593_v25 = vld [vmem:[#allocation16_spill] sm:$0xff] }
 0xc62   :  { %v10129_v60 = vadd.f32 %v10128_v24, %v10066_v63  ;;  %v17728_v63 = vld [vmem:[%s19092_s0 + $0x28] sm:$0xff]   ;;  %v17770_v24 = vld [vmem:[%s19092_s0 + $0x58] sm:$0xff]  }
 0xc63   :  { %19553 = vst [vmem:[#allocation33_spill] sm:$0xff] %v17728_v63  ;;  %19559 = vst [vmem:[#allocation39_spill] sm:$0xff] %v17770_v24  ;;  %v17843_v24 = vld [vmem:[%s19092_s0 + $0xa8] sm:$0xff]   ;;  %v19587_v63 = vld [vmem:[#allocation11_spill] sm:$0xff] }
 0xc64   :  { %v10130_v9 = vrot.slane %v10129_v60, 4  ;;  %19569 = vst [vmem:[#allocation49_spill] sm:$0xff] %v17843_v24  ;;  %v19574_v24 = vld [vmem:[#allocation18_spill] sm:$0xff] }
 0xc66   :  { %v10131_v38 = vadd.f32 %v10130_v9, %v10129_v60  ;;  %v17756_v60 = vld [vmem:[%s19092_s0 + $0x48] sm:$0xff]   ;;  %v17761_v9 = vld [vmem:[%s19092_s0 + $0x50] sm:$0xff]  }
 0xc67   :  { %19557 = vst [vmem:[#allocation37_spill] sm:$0xff] %v17756_v60  ;;  %19558 = vst [vmem:[#allocation38_spill] sm:$0xff] %v17761_v9  ;;  %v17829_v9 = vld [vmem:[%s19092_s0 + $0x98] sm:$0xff]   ;;  %v19575_v60 = vld [vmem:[#allocation13_spill] sm:$0xff] }
 0xc68   :  { %v10132_v61 = vrot.slane %v10131_v38, 2  ;;  %19567 = vst [vmem:[#allocation47_spill] sm:$0xff] %v17829_v9 }
 0xc6a   :  { %v10133_v12 = vadd.f32 %v10132_v61, %v10131_v38  ;;  %v17722_v61 = vld [vmem:[%s19092_s0 + $0x20] sm:$0xff]   ;;  %v17817_v38 = vld [vmem:[%s19092_s0 + $0x90] sm:$0xff]  }
 0xc6b   :  { %19552 = vst [vmem:[#allocation32_spill] sm:$0xff] %v17722_v61  ;;  %19566 = vst [vmem:[#allocation46_spill] sm:$0xff] %v17817_v38  ;;  %v19585_v38 = vld [vmem:[#allocation12_spill] sm:$0xff]  ;;  %v19589_v61 = vld [vmem:[#allocation27_spill] sm:$0xff] }
 0xc6c   :  { %v10134_v18 = vrot.slane %v10133_v12, 1 }
 0xc6e   :  { %v10135_v29 = vadd.f32 %v10134_v18, %v10133_v12  ;;  %v17812_v18 = vld [vmem:[%s19092_s0 + $0x88] sm:$0xff]  }
 0xc6f   :  { %19565 = vst [vmem:[#allocation45_spill] sm:$0xff] %v17812_v18 }
 0xc70   :  { %v10136_v50 = vmul.f32 0.001953125, %v10135_v29  ;;  %v17798_v29 = vld [vmem:[%s19092_s0 + $0x78] sm:$0xff]  }
 0xc71   :  { %19563 = vst [vmem:[#allocation43_spill] sm:$0xff] %v17798_v29  ;;  %v17857_v29 = vld [vmem:[%s19092_s0 + $0xb8] sm:$0xff]  }
 0xc72   :  { %v10137_v17 = vadd.f32 1e-05, %v10136_v50  ;;  %v17717_v50 = vld [vmem:[%s19092_s0 + $0x18] sm:$0xff]   ;;  %19571 = vst [vmem:[#allocation51_spill] sm:$0xff] %v17857_v29  ;;  %v19580_v29 = vld [vmem:[#allocation25_spill] sm:$0xff] }
 0xc73   :  { %19551 = vst [vmem:[#allocation31_spill] sm:$0xff] %v17717_v50  ;;  %v19591_v50 = vld [vmem:[#allocation9_spill] sm:$0xff] }
 0xc74   :  { %14688 = vrsqrt.f32 %v10137_v17 }
 0xc7e   :  { %v14689_v12 = vpop.eup %14688 }
 0xc7f   :  { %v10139_v52 = vmul.f32 %v14689_v12, %v9867_v4  ;;  %v19573_v4 = vld [vmem:[#allocation28_spill] sm:$0xff] }
 0xc81   :  { %v17872_v12 = vrot.slane %v10139_v52, %v19573_v4  ;;  %v17878_v9 = vmul.f32 %v10139_v52, %v17569_v30  ;;  %v19576_v30 = vld [vmem:[#allocation15_spill] sm:$0xff] }
 0xc83   :  { %v17885_v40 = vmul.f32 %v17872_v12, %v17379_v39  ;;  %v17889_v17 = vmul.f32 %v17872_v12, %v19574_v24  ;;  %v17893_v11 = vmul.f32 %v19575_v60, %v17872_v12  ;;  %v17897_v52 = vmul.f32 %v19576_v30, %v17872_v12 }
 0xc84   :  { %v17901_v18 = vmul.f32 %v17872_v12, %v19577_v44  ;;  %v17905_v39 = vmul.f32 %v17872_v12, %v17396_v49  ;;  %v17909_v24 = vmul.f32 %v17388_v46, %v17872_v12  ;;  %v17913_v60 = vmul.f32 %v17394_v1, %v17872_v12 }
 0xc85   :  { %v17917_v30 = vmul.f32 %v17872_v12, %v17403_v47  ;;  %v17921_v44 = vmul.f32 %v17872_v12, %v17408_v6  ;;  %v17925_v49 = vmul.f32 %v17400_v10, %v17872_v12  ;;  %v17929_v46 = vmul.f32 %v17406_v53, %v17872_v12 }
 0xc86   :  { %v17933_v1 = vmul.f32 %v17872_v12, %v17415_v62  ;;  %v17937_v47 = vmul.f32 %v17872_v12, %v17420_v42  ;;  %v17941_v6 = vmul.f32 %v17412_v14, %v17872_v12  ;;  %v17945_v10 = vmul.f32 %v17418_v3, %v17872_v12 }
 0xc87   :  { %v17949_v53 = vmul.f32 %v17872_v12, %v17427_v35  ;;  %v17953_v62 = vmul.f32 %v17872_v12, %v17432_v34  ;;  %v17957_v42 = vmul.f32 %v17424_v16, %v17872_v12  ;;  %v17961_v14 = vmul.f32 %v17430_v23, %v17872_v12 }
 0xc88   :  { %v17965_v3 = vmul.f32 %v17872_v12, %v17439_v51  ;;  %v17969_v35 = vmul.f32 %v17872_v12, %v17444_v32  ;;  %v17973_v34 = vmul.f32 %v17436_v8, %v17872_v12  ;;  %v17977_v16 = vmul.f32 %v17442_v28, %v17872_v12 }
 0xc89   :  { %v17981_v23 = vmul.f32 %v17872_v12, %v17451_v43  ;;  %v17985_v51 = vmul.f32 %v17872_v12, %v17456_v15  ;;  %v17989_v32 = vmul.f32 %v17448_v13, %v17872_v12  ;;  %v17993_v8 = vmul.f32 %v17454_v22, %v17872_v12 }
 0xc8a   :  { %v17997_v28 = vmul.f32 %v17872_v12, %v17463_v55  ;;  %v18001_v43 = vmul.f32 %v17872_v12, %v17468_v54  ;;  %v18005_v15 = vmul.f32 %v17460_v20, %v17872_v12  ;;  %v18009_v13 = vmul.f32 %v17466_v21, %v17872_v12 }
 0xc8b   :  { %v18013_v22 = vmul.f32 %v17872_v12, %v17475_v27  ;;  %v18017_v55 = vmul.f32 %v17872_v12, %v17480_v57  ;;  %v18021_v54 = vmul.f32 %v17472_v56, %v17872_v12  ;;  %v18025_v20 = vmul.f32 %v17478_v37, %v17872_v12 }
 0xc8c   :  { %v18029_v21 = vmul.f32 %v17872_v12, %v17487_v2  ;;  %v18033_v27 = vmul.f32 %v17872_v12, %v17492_v33  ;;  %v18037_v57 = vmul.f32 %v17484_v58, %v17872_v12  ;;  %v18041_v56 = vmul.f32 %v17490_v7, %v17872_v12 }
 0xc8d   :  { %v18045_v37 = vmul.f32 %v17872_v12, %v17499_v45  ;;  %v18049_v2 = vmul.f32 %v17872_v12, %v17504_v31  ;;  %v18053_v33 = vmul.f32 %v17496_v0, %v17872_v12  ;;  %v18057_v58 = vmul.f32 %v19578_v36, %v17872_v12 }
 0xc8e   :  { %v18061_v7 = vmul.f32 %v17872_v12, %v19579_v5  ;;  %v18065_v45 = vmul.f32 %v17872_v12, %v19580_v29  ;;  %v18069_v31 = vmul.f32 %v19581_v26, %v17872_v12  ;;  %v18073_v0 = vmul.f32 %v19583_v19, %v17872_v12  ;;  %v9868_v19 = vld [vmem:[%s19097_s6] sm:$0x1] }
 0xc8f   :  { %v18077_v36 = vmul.f32 %v17872_v12, %v19585_v38  ;;  %v18081_v5 = vmul.f32 %v17872_v12, %v19587_v63  ;;  %v18085_v29 = vmul.f32 %v19589_v61, %v17872_v12  ;;  %v18089_v26 = vmul.f32 %v19591_v50, %v17872_v12 }
 0xc90   :  { %19582 = vst [vmem:[#allocation28_spill] sm:$0xff] %v18069_v31  ;;  %19584 = vst [vmem:[#allocation18_spill] sm:$0xff] %v18073_v0  ;;  %v18096_v38 = vmul.f32 %v17872_v12, %v19593_v25  ;;  %v18100_v63 = vmul.f32 %v17872_v12, %v19595_v59  ;;  %v18104_v61 = vmul.f32 %v19597_v41, %v17872_v12  ;;  %v18118_v25 = vld [vmem:[%s19092_s0 + $0xd0] sm:$0xff]   ;;  %v19605_v41 = vld [vmem:[#allocation4_spill] sm:$0xff] }
 0xc91   :  { %19586 = vst [vmem:[#allocation13_spill] sm:$0xff] %v18077_v36  ;;  %19588 = vst [vmem:[#allocation15_spill] sm:$0xff] %v18081_v5  ;;  %v19603_v59 = vld [vmem:[#allocation5_spill] sm:$0xff]  ;;  %v18139_v36 = vld [vmem:[%s19092_s0 + $0xd8] sm:$0xff]  }
 0xc92   :  { %19590 = vst [vmem:[#allocation20_spill] sm:$0xff] %v18085_v29  ;;  %19592 = vst [vmem:[#allocation24_spill] sm:$0xff] %v18089_v26  ;;  %v19599_v29 = vld [vmem:[#allocation17_spill] sm:$0xff]  ;;  %v18113_v26 = vld [vmem:[%s19092_s0 + $0xc8] sm:$0xff]  }
 0xc93   :  { %19594 = vst [vmem:[#allocation23_spill] sm:$0xff] %v18096_v38  ;;  %19596 = vst [vmem:[#allocation25_spill] sm:$0xff] %v18100_v63  ;;  %v18108_v50 = vmul.f32 %v19599_v29, %v17872_v12  ;;  %v18122_v63 = vmul.f32 %v17872_v12, %v19603_v59  ;;  %v19607_v29 = vld [vmem:[#allocation22_spill] sm:$0xff]  ;;  %v19609_v38 = vld [vmem:[#allocation3_spill] sm:$0xff] }
 0xc94   :  { %19598 = vst [vmem:[#allocation21_spill] sm:$0xff] %v18104_v61  ;;  %19601 = vst [vmem:[#allocation12_spill] sm:$0xff] %v18113_v26  ;;  %v18126_v61 = vmul.f32 %v17872_v12, %v19605_v41  ;;  %v18134_v5 = vmul.f32 %v19609_v38, %v17872_v12  ;;  %v18144_v59 = vld [vmem:[%s19092_s0 + $0xe0] sm:$0xff]   ;;  %v19617_v38 = vld [vmem:[#allocation6_spill] sm:$0xff] }
 0xc95   :  { %19600 = vst [vmem:[#allocation26_spill] sm:$0xff] %v18108_v50  ;;  %19602 = vst [vmem:[#allocation11_spill] sm:$0xff] %v18118_v25  ;;  %v18130_v50 = vmul.f32 %v19607_v29, %v17872_v12  ;;  %v19613_v41 = vld [vmem:[#allocation7_spill] sm:$0xff]  ;;  %v19615_v29 = vld [vmem:[#allocation8_spill] sm:$0xff] }
 0xc96   :  { %19604 = vst [vmem:[#allocation27_spill] sm:$0xff] %v18122_v63  ;;  %19606 = vst [vmem:[#allocation9_spill] sm:$0xff] %v18126_v61  ;;  %v18148_v61 = vmul.f32 %v17872_v12, %v19613_v41  ;;  %v18160_v63 = vmul.f32 %v17562_v48, %v17872_v12  ;;  %v18165_v0 = vld [vmem:[%s19092_s0 + $0xe8] sm:$0xff]   ;;  %v10211_v41 = vsub.f32 %v9868_v19, %v17878_v9  ;;  %v18179_v48 = vld [vmem:[%s19092_s0 + $0xf8] sm:$0xff]   ;;  %v19623_v9 = vmov %v18069_v31 }
 0xc97   :  { %19608 = vst [vmem:[#allocation16_spill] sm:$0xff] %v18130_v50  ;;  %19610 = vst [vmem:[#allocation19_spill] sm:$0xff] %v18134_v5  ;;  %v18152_v50 = vmul.f32 %v17872_v12, %v19615_v29  ;;  %v18156_v5 = vmul.f32 %v19617_v38, %v17872_v12  ;;  %v18174_v38 = vld [vmem:[%s19092_s0 + $0xf0] sm:$0xff]   ;;  %v19624_v31 = vld [vmem:[#allocation18_spill] sm:$0xff] }
 0xc98   :  { %19611 = vst [vmem:[#allocation14_spill] sm:$0xff] %v18139_v36  ;;  %19612 = vst [vmem:[#allocation17_spill] sm:$0xff] %v18144_v59  ;;  %v19626_v26 = vld [vmem:[#allocation15_spill] sm:$0xff] }
 0xc99   :  { %19614 = vst [vmem:[#allocation5_spill] sm:$0xff] %v18148_v61  ;;  %19616 = vst [vmem:[#allocation4_spill] sm:$0xff] %v18152_v50  ;;  %v18186_v50 = vrot.slane %v10211_v41, %v19573_v4  ;;  %v19627_v61 = vld [vmem:[#allocation20_spill] sm:$0xff] }
 0xc9a   :  { %19618 = vst [vmem:[#allocation22_spill] sm:$0xff] %v18156_v5  ;;  %19619 = vst [vmem:[#allocation3_spill] sm:$0xff] %v18160_v63  ;;  %v19625_v63 = vld [vmem:[#allocation13_spill] sm:$0xff]  ;;  %v19628_v19 = vld [vmem:[#allocation24_spill] sm:$0xff] }
 0xc9b   :  { %19620 = vst [vmem:[#allocation7_spill] sm:$0xff] %v18165_v0  ;;  %19621 = vst [vmem:[#allocation8_spill] sm:$0xff] %v18174_v38  ;;  %v18197_v29 = vadd.f32 %v18186_v50, %v17885_v40  ;;  %v18201_v4 = vadd.f32 %v18186_v50, %v17889_v17  ;;  %v18205_v41 = vadd.f32 %v18186_v50, %v17893_v11  ;;  %v19632_v38 = vld [vmem:[#allocation25_spill] sm:$0xff] }
 0xc9c   :  { %19622 = vst [vmem:[#allocation6_spill] sm:$0xff] %v18179_v48  ;;  %v18209_v5 = vadd.f32 %v18186_v50, %v17897_v52  ;;  %v18213_v12 = vadd.f32 %v18186_v50, %v17901_v18  ;;  %v18217_v40 = vadd.f32 %v18186_v50, %v17905_v39  ;;  %v18221_v17 = vadd.f32 %v18186_v50, %v17909_v24  ;;  %v19630_v48 = vld [vmem:[#allocation23_spill] sm:$0xff]  ;;  %v19634_v0 = vld [vmem:[#allocation21_spill] sm:$0xff]  ;;  %v19636_v59 = vld [vmem:[#allocation26_spill] sm:$0xff] }
 0xc9d   :  { %v18225_v11 = vadd.f32 %v18186_v50, %v17913_v60  ;;  %v18229_v52 = vadd.f32 %v18186_v50, %v17917_v30  ;;  %v18233_v18 = vadd.f32 %v18186_v50, %v17921_v44  ;;  %v18237_v39 = vadd.f32 %v18186_v50, %v17925_v49  ;;  %v19638_v36 = vld [vmem:[#allocation27_spill] sm:$0xff]  ;;  %v19640_v25 = vld [vmem:[#allocation9_spill] sm:$0xff] }
 0xc9e   :  { %v18241_v24 = vadd.f32 %v18186_v50, %v17929_v46  ;;  %v18245_v60 = vadd.f32 %v18186_v50, %v17933_v1  ;;  %v18249_v30 = vadd.f32 %v18186_v50, %v17937_v47  ;;  %v18253_v44 = vadd.f32 %v18186_v50, %v17941_v6 }
 0xc9f   :  { %v18257_v49 = vadd.f32 %v18186_v50, %v17945_v10  ;;  %v18261_v46 = vadd.f32 %v18186_v50, %v17949_v53  ;;  %v18265_v1 = vadd.f32 %v18186_v50, %v17953_v62  ;;  %v18269_v47 = vadd.f32 %v18186_v50, %v17957_v42 }
 0xca0   :  { %v18273_v6 = vadd.f32 %v18186_v50, %v17961_v14  ;;  %v18277_v10 = vadd.f32 %v18186_v50, %v17965_v3  ;;  %v18281_v53 = vadd.f32 %v18186_v50, %v17969_v35  ;;  %v18285_v62 = vadd.f32 %v18186_v50, %v17973_v34 }
 0xca1   :  { %v18289_v42 = vadd.f32 %v18186_v50, %v17977_v16  ;;  %v18293_v14 = vadd.f32 %v18186_v50, %v17981_v23  ;;  %v18297_v3 = vadd.f32 %v18186_v50, %v17985_v51  ;;  %v18301_v35 = vadd.f32 %v18186_v50, %v17989_v32 }
 0xca2   :  { %v18305_v34 = vadd.f32 %v18186_v50, %v17993_v8  ;;  %v18309_v16 = vadd.f32 %v18186_v50, %v17997_v28  ;;  %v18313_v23 = vadd.f32 %v18186_v50, %v18001_v43  ;;  %v18317_v51 = vadd.f32 %v18186_v50, %v18005_v15 }
 0xca3   :  { %v18321_v32 = vadd.f32 %v18186_v50, %v18009_v13  ;;  %v18325_v8 = vadd.f32 %v18186_v50, %v18013_v22  ;;  %v18329_v28 = vadd.f32 %v18186_v50, %v18017_v55  ;;  %v18333_v43 = vadd.f32 %v18186_v50, %v18021_v54 }
 0xca4   :  { %v18337_v15 = vadd.f32 %v18186_v50, %v18025_v20  ;;  %v18341_v13 = vadd.f32 %v18186_v50, %v18029_v21  ;;  %v18345_v22 = vadd.f32 %v18186_v50, %v18033_v27  ;;  %v18349_v55 = vadd.f32 %v18186_v50, %v18037_v57 }
 0xca5   :  { %v18353_v54 = vadd.f32 %v18186_v50, %v18041_v56  ;;  %v18357_v20 = vadd.f32 %v18186_v50, %v18045_v37  ;;  %v18361_v21 = vadd.f32 %v18186_v50, %v18049_v2  ;;  %v18365_v27 = vadd.f32 %v18186_v50, %v18053_v33 }
 0xca6   :  { %v18369_v57 = vadd.f32 %v18186_v50, %v18057_v58  ;;  %v18373_v56 = vadd.f32 %v18186_v50, %v18061_v7  ;;  %v18377_v37 = vadd.f32 %v18186_v50, %v18065_v45  ;;  %v18381_v2 = vadd.f32 %v18186_v50, %v19623_v9 }
 0xca7   :  { %v18385_v33 = vadd.f32 %v18186_v50, %v19624_v31  ;;  %v18389_v58 = vadd.f32 %v18186_v50, %v19625_v63  ;;  %v18393_v7 = vadd.f32 %v18186_v50, %v19626_v26  ;;  %v18397_v45 = vadd.f32 %v18186_v50, %v19627_v61 }
 0xca8   :  { %v18401_v9 = vadd.f32 %v18186_v50, %v19628_v19  ;;  %v18405_v31 = vadd.f32 %v18186_v50, %v19630_v48  ;;  %v18409_v63 = vadd.f32 %v18186_v50, %v19632_v38  ;;  %v18413_v26 = vadd.f32 %v18186_v50, %v19634_v0 }
 0xca9   :  { %v18417_v61 = vadd.f32 %v18186_v50, %v19636_v59  ;;  %v18421_v19 = vadd.f32 %v18186_v50, %v19638_v36  ;;  %v18425_v48 = vadd.f32 %v18186_v50, %v19640_v25 }
 0xcaa   :  { %19629 = vst [vmem:[#allocation28_spill] sm:$0xff] %v18401_v9  ;;  %19631 = vst [vmem:[#allocation18_spill] sm:$0xff] %v18405_v31  ;;  %v19642_v31 = vld [vmem:[#allocation16_spill] sm:$0xff] }
 0xcab   :  { %19633 = vst [vmem:[#allocation13_spill] sm:$0xff] %v18409_v63  ;;  %19635 = vst [vmem:[#allocation15_spill] sm:$0xff] %v18413_v26  ;;  %v18429_v38 = vadd.f32 %v18186_v50, %v19642_v31  ;;  %v19644_v63 = vld [vmem:[#allocation19_spill] sm:$0xff]  ;;  %v19646_v26 = vld [vmem:[#allocation5_spill] sm:$0xff] }
 0xcac   :  { %19637 = vst [vmem:[#allocation20_spill] sm:$0xff] %v18417_v61  ;;  %19639 = vst [vmem:[#allocation24_spill] sm:$0xff] %v18421_v19  ;;  %v18433_v0 = vadd.f32 %v18186_v50, %v19644_v63  ;;  %v18437_v59 = vadd.f32 %v18186_v50, %v19646_v26  ;;  %v19648_v61 = vld [vmem:[#allocation4_spill] sm:$0xff]  ;;  %v19650_v19 = vld [vmem:[#allocation22_spill] sm:$0xff] }
 0xcad   :  { %19641 = vst [vmem:[#allocation23_spill] sm:$0xff] %v18425_v48  ;;  %19643 = vst [vmem:[#allocation25_spill] sm:$0xff] %v18429_v38  ;;  %v18441_v36 = vadd.f32 %v18186_v50, %v19648_v61  ;;  %v18445_v25 = vadd.f32 %v18186_v50, %v19650_v19  ;;  %v19651_v48 = vld [vmem:[#allocation3_spill] sm:$0xff]  ;;  %v19653_v38 = vld [vmem:[#allocation10_spill] sm:$0xff] }
 0xcae   :  { %19645 = vst [vmem:[#allocation21_spill] sm:$0xff] %v18433_v0  ;;  %19647 = vst [vmem:[#allocation26_spill] sm:$0xff] %v18437_v59  ;;  %v18449_v31 = vadd.f32 %v18186_v50, %v19651_v48  ;;  %v19654_v63 = vunpack.c.l.bf16 %v19653_v38  ;;  %v19655_v26 = vunpack.c.h.bf16 %v19653_v38  ;;  %v19656_v61 = vld [vmem:[#allocation29_spill] sm:$0xff]  ;;  %v19659_v48 = vld [vmem:[#allocation30_spill] sm:$0xff] }
 0xcaf   :  { %19649 = vst [vmem:[#allocation27_spill] sm:$0xff] %v18441_v36  ;;  %v19657_v36 = vunpack.c.l.bf16 %v19656_v61  ;;  %v19658_v19 = vunpack.c.h.bf16 %v19656_v61  ;;  %v19661_v38 = vunpack.c.h.bf16 %v19659_v48  ;;  %v19665_v61 = vld [vmem:[#allocation32_spill] sm:$0xff] }
 0xcb0   :  { %19652 = vst [vmem:[#allocation9_spill] sm:$0xff] %v18449_v31  ;;  %v18454_v0 = vadd.f32 %v19654_v63, %v18197_v29  ;;  %v18459_v59 = vadd.f32 %v19655_v26, %v18201_v4  ;;  %v19660_v31 = vunpack.c.l.bf16 %v19659_v48  ;;  %v19662_v63 = vld [vmem:[#allocation31_spill] sm:$0xff]  ;;  %v19668_v48 = vld [vmem:[#allocation33_spill] sm:$0xff] }
 0xcb1   :  { %v18464_v9 = vadd.f32 %v19657_v36, %v18205_v41  ;;  %v18469_v50 = vadd.f32 %v19658_v19, %v18209_v5  ;;  %v18479_v4 = vadd.f32 %v19661_v38, %v18217_v40  ;;  %v19663_v26 = vunpack.c.l.bf16 %v19662_v63 }
 0xcb2   :  { %v18474_v29 = vadd.f32 %v19660_v31, %v18213_v12  ;;  %v19664_v36 = vunpack.c.h.bf16 %v19662_v63  ;;  %v19666_v19 = vunpack.c.l.bf16 %v19665_v61  ;;  %v19667_v31 = vunpack.c.h.bf16 %v19665_v61 }
 0xcb3   :  { %v18484_v41 = vadd.f32 %v19663_v26, %v18221_v17  ;;  %v19669_v38 = vunpack.c.l.bf16 %v19668_v48  ;;  %v19670_v63 = vunpack.c.h.bf16 %v19668_v48  ;;  %v19671_v26 = vld [vmem:[#allocation34_spill] sm:$0xff] }
 0xcb4   :  { %v18489_v5 = vadd.f32 %v19664_v36, %v18225_v11  ;;  %v18494_v12 = vadd.f32 %v19666_v19, %v18229_v52  ;;  %v18499_v40 = vadd.f32 %v19667_v31, %v18233_v18  ;;  %v19672_v36 = vunpack.c.l.bf16 %v19671_v26  ;;  %v19674_v19 = vld [vmem:[#allocation35_spill] sm:$0xff] }
 0xcb5   :  { %v18504_v17 = vadd.f32 %v19669_v38, %v18237_v39  ;;  %v18509_v11 = vadd.f32 %v19670_v63, %v18241_v24  ;;  %v19673_v61 = vunpack.c.h.bf16 %v19671_v26  ;;  %v19675_v31 = vunpack.c.l.bf16 %v19674_v19  ;;  %v19677_v38 = vld [vmem:[#allocation36_spill] sm:$0xff] }
 0xcb6   :  { %v18514_v52 = vadd.f32 %v19672_v36, %v18245_v60  ;;  %v19676_v48 = vunpack.c.h.bf16 %v19674_v19  ;;  %v19678_v63 = vunpack.c.l.bf16 %v19677_v38  ;;  %v19679_v26 = vunpack.c.h.bf16 %v19677_v38  ;;  %v19680_v36 = vld [vmem:[#allocation37_spill] sm:$0xff] }
 0xcb7   :  { %v18519_v18 = vadd.f32 %v19673_v61, %v18249_v30  ;;  %v18524_v39 = vadd.f32 %v19675_v31, %v18253_v44  ;;  %v19681_v61 = vunpack.c.l.bf16 %v19680_v36  ;;  %v19682_v19 = vunpack.c.h.bf16 %v19680_v36  ;;  %v19683_v31 = vld [vmem:[#allocation38_spill] sm:$0xff] }
 0xcb8   :  { %v18529_v24 = vadd.f32 %v19676_v48, %v18257_v49  ;;  %v18534_v60 = vadd.f32 %v19678_v63, %v18261_v46  ;;  %v18539_v30 = vadd.f32 %v19679_v26, %v18265_v1  ;;  %v19684_v48 = vunpack.c.l.bf16 %v19683_v31  ;;  %v19686_v63 = vld [vmem:[#allocation39_spill] sm:$0xff] }
 0xcb9   :  { %v18544_v44 = vadd.f32 %v19681_v61, %v18269_v47  ;;  %v18549_v49 = vadd.f32 %v19682_v19, %v18273_v6  ;;  %v19685_v38 = vunpack.c.h.bf16 %v19683_v31  ;;  %v19687_v26 = vunpack.c.l.bf16 %v19686_v63  ;;  %v19689_v61 = vld [vmem:[#allocation40_spill] sm:$0xff] }
 0xcba   :  { %v18554_v46 = vadd.f32 %v19684_v48, %v18277_v10  ;;  %v19688_v36 = vunpack.c.h.bf16 %v19686_v63  ;;  %v19690_v19 = vunpack.c.l.bf16 %v19689_v61  ;;  %v19691_v31 = vunpack.c.h.bf16 %v19689_v61  ;;  %v19692_v48 = vld [vmem:[#allocation41_spill] sm:$0xff] }
 0xcbb   :  { %v18559_v1 = vadd.f32 %v19685_v38, %v18281_v53  ;;  %v18564_v47 = vadd.f32 %v19687_v26, %v18285_v62  ;;  %v19693_v38 = vunpack.c.l.bf16 %v19692_v48  ;;  %v19694_v63 = vunpack.c.h.bf16 %v19692_v48  ;;  %v19695_v26 = vld [vmem:[#allocation42_spill] sm:$0xff] }
 0xcbc   :  { %v18569_v6 = vadd.f32 %v19688_v36, %v18289_v42  ;;  %v18574_v10 = vadd.f32 %v19690_v19, %v18293_v14  ;;  %v18579_v53 = vadd.f32 %v19691_v31, %v18297_v3  ;;  %v19696_v36 = vunpack.c.l.bf16 %v19695_v26  ;;  %v19698_v19 = vld [vmem:[#allocation43_spill] sm:$0xff] }
 0xcbd   :  { %v18584_v62 = vadd.f32 %v19693_v38, %v18301_v35  ;;  %v18589_v42 = vadd.f32 %v19694_v63, %v18305_v34  ;;  %v19697_v61 = vunpack.c.h.bf16 %v19695_v26  ;;  %v19699_v31 = vunpack.c.l.bf16 %v19698_v19  ;;  %v19701_v38 = vld [vmem:[#allocation44_spill] sm:$0xff] }
 0xcbe   :  { %v18594_v14 = vadd.f32 %v19696_v36, %v18309_v16  ;;  %v19700_v48 = vunpack.c.h.bf16 %v19698_v19  ;;  %v19702_v16 = vunpack.c.l.bf16 %v19701_v38  ;;  %v19704_v36 = vld [vmem:[#allocation45_spill] sm:$0xff] }
 0xcbf   :  { %v18599_v3 = vadd.f32 %v19697_v61, %v18313_v23  ;;  %v18604_v35 = vadd.f32 %v19699_v31, %v18317_v51  ;;  %v19703_v23 = vunpack.c.h.bf16 %v19701_v38  ;;  %v19705_v51 = vunpack.c.l.bf16 %v19704_v36  ;;  %v19707_v31 = vld [vmem:[#allocation46_spill] sm:$0xff] }
 0xcc0   :  { %v18609_v34 = vadd.f32 %v19700_v48, %v18321_v32  ;;  %v18614_v63 = vadd.f32 %v19702_v16, %v18325_v8  ;;  %v19706_v32 = vunpack.c.h.bf16 %v19704_v36  ;;  %v19708_v48 = vunpack.c.l.bf16 %v19707_v31  ;;  %v19710_v16 = vld [vmem:[#allocation47_spill] sm:$0xff] }
 0xcc1   :  { %v18619_v26 = vadd.f32 %v19703_v23, %v18329_v28  ;;  %v18624_v61 = vadd.f32 %v19705_v51, %v18333_v43  ;;  %v19709_v38 = vunpack.c.h.bf16 %v19707_v31  ;;  %v19711_v23 = vunpack.c.l.bf16 %v19710_v16  ;;  %v19713_v51 = vld [vmem:[#allocation48_spill] sm:$0xff] }
 0xcc2   :  { %v18629_v19 = vadd.f32 %v19706_v32, %v18337_v15  ;;  %v18634_v8 = vadd.f32 %v19708_v48, %v18341_v13  ;;  %v19712_v36 = vunpack.c.h.bf16 %v19710_v16  ;;  %v19714_v32 = vunpack.c.l.bf16 %v19713_v51  ;;  %v19716_v48 = vld [vmem:[#allocation49_spill] sm:$0xff] }
 0xcc3   :  { %v18639_v28 = vadd.f32 %v19709_v38, %v18345_v22  ;;  %v18644_v43 = vadd.f32 %v19711_v23, %v18349_v55  ;;  %v19715_v31 = vunpack.c.h.bf16 %v19713_v51  ;;  %v19717_v38 = vunpack.c.l.bf16 %v19716_v48  ;;  %v19719_v23 = vld [vmem:[#allocation50_spill] sm:$0xff] }
 0xcc4   :  { %v18649_v15 = vadd.f32 %v19712_v36, %v18353_v54  ;;  %v18654_v13 = vadd.f32 %v19714_v32, %v18357_v20  ;;  %v19718_v16 = vunpack.c.h.bf16 %v19716_v48  ;;  %v19720_v36 = vunpack.c.l.bf16 %v19719_v23  ;;  %v19722_v32 = vld [vmem:[#allocation51_spill] sm:$0xff] }
 0xcc5   :  { %v18659_v22 = vadd.f32 %v19715_v31, %v18361_v21  ;;  %v18664_v55 = vadd.f32 %v19717_v38, %v18365_v27  ;;  %v19721_v51 = vunpack.c.h.bf16 %v19719_v23  ;;  %v19723_v31 = vunpack.c.l.bf16 %v19722_v32  ;;  %v19727_v38 = vld [vmem:[#allocation52_spill] sm:$0xff] }
 0xcc6   :  { %v18669_v54 = vadd.f32 %v19718_v16, %v18369_v57  ;;  %v18674_v20 = vadd.f32 %v19720_v36, %v18373_v56  ;;  %v19725_v48 = vunpack.c.h.bf16 %v19722_v32  ;;  %v19728_v16 = vunpack.c.l.bf16 %v19727_v38  ;;  %v19732_v36 = vld [vmem:[#allocation12_spill] sm:$0xff] }
 0xcc7   :  { %v18679_v21 = vadd.f32 %v19721_v51, %v18377_v37  ;;  %v18684_v27 = vadd.f32 %v19723_v31, %v18381_v2  ;;  %v19730_v23 = vunpack.c.h.bf16 %v19727_v38  ;;  %v19733_v51 = vunpack.c.l.bf16 %v19732_v36  ;;  %v19735_v31 = vld [vmem:[#allocation28_spill] sm:$0xff] }
 0xcc8   :  { %v18689_v57 = vadd.f32 %v19725_v48, %v18385_v33  ;;  %v18694_v56 = vadd.f32 %v19728_v16, %v18389_v58  ;;  %v19736_v32 = vunpack.c.h.bf16 %v19732_v36  ;;  %v19738_v48 = vld [vmem:[#allocation18_spill] sm:$0xff]  ;;  %v19742_v16 = vld [vmem:[#allocation13_spill] sm:$0xff] }
 0xcc9   :  { %19724 = vst [vmem:[#allocation16_spill] sm:$0xff] %v18684_v27  ;;  %v18699_v37 = vadd.f32 %v19730_v23, %v18393_v7  ;;  %v18704_v2 = vadd.f32 %v19733_v51, %v18397_v45  ;;  %v19745_v23 = vld [vmem:[#allocation15_spill] sm:$0xff]  ;;  %v19749_v51 = vld [vmem:[#allocation20_spill] sm:$0xff] }
 0xcca   :  { %19726 = vst [vmem:[#allocation19_spill] sm:$0xff] %v18689_v57  ;;  %19729 = vst [vmem:[#allocation5_spill] sm:$0xff] %v18694_v56  ;;  %v18709_v33 = vadd.f32 %v19736_v32, %v19735_v31  ;;  %v19739_v57 = vld [vmem:[#allocation11_spill] sm:$0xff]  ;;  %v19752_v32 = vld [vmem:[#allocation24_spill] sm:$0xff] }
 0xccb   :  { %19731 = vst [vmem:[#allocation4_spill] sm:$0xff] %v18699_v37  ;;  %19734 = vst [vmem:[#allocation22_spill] sm:$0xff] %v18704_v2  ;;  %v19740_v27 = vunpack.c.l.bf16 %v19739_v57  ;;  %v19743_v38 = vunpack.c.h.bf16 %v19739_v57  ;;  %v19746_v37 = vld [vmem:[#allocation14_spill] sm:$0xff] }
 0xccc   :  { %19737 = vst [vmem:[#allocation3_spill] sm:$0xff] %v18709_v33  ;;  %v19747_v56 = vunpack.c.l.bf16 %v19746_v37  ;;  %v19750_v36 = vunpack.c.h.bf16 %v19746_v37  ;;  %v19753_v33 = vld [vmem:[#allocation17_spill] sm:$0xff] }
 0xccd   :  { %v18714_v58 = vadd.f32 %v19740_v27, %v19738_v48  ;;  %v18719_v7 = vadd.f32 %v19743_v38, %v19742_v16  ;;  %v19754_v2 = vunpack.c.l.bf16 %v19753_v33  ;;  %v19755_v48 = vld [vmem:[#allocation23_spill] sm:$0xff]  ;;  %v19756_v57 = vunpack.c.h.bf16 %v19753_v33  ;;  %v19758_v38 = vld [vmem:[#allocation25_spill] sm:$0xff] }
 0xcce   :  { %v18724_v45 = vadd.f32 %v19747_v56, %v19745_v23  ;;  %v18729_v31 = vadd.f32 %v19750_v36, %v19749_v51  ;;  %v19761_v23 = vld [vmem:[#allocation21_spill] sm:$0xff]  ;;  %v19763_v36 = vld [vmem:[#allocation26_spill] sm:$0xff] }
 0xccf   :  { %19741 = vst [vmem:[#allocation10_spill] sm:$0xff] %v18714_v58  ;;  %19744 = vst [vmem:[#allocation29_spill] sm:$0xff] %v18719_v7  ;;  %v18734_v27 = vadd.f32 %v19754_v2, %v19752_v32  ;;  %v18739_v16 = vadd.f32 %v19756_v57, %v19755_v48  ;;  %v19759_v7 = vld [vmem:[#allocation7_spill] sm:$0xff]  ;;  %v19768_v57 = vld [vmem:[#allocation6_spill] sm:$0xff] }
 0xcd0   :  { %19748 = vst [vmem:[#allocation30_spill] sm:$0xff] %v18724_v45  ;;  %19751 = vst [vmem:[#allocation31_spill] sm:$0xff] %v18729_v31  ;;  %v19760_v58 = vunpack.c.l.bf16 %v19759_v7  ;;  %v19762_v37 = vunpack.c.h.bf16 %v19759_v7  ;;  %v19764_v31 = vld [vmem:[#allocation8_spill] sm:$0xff]  ;;  %v19766_v32 = vld [vmem:[#allocation27_spill] sm:$0xff]  ;;  %v19771_v7 = vunpack.c.h.bf16 %v19768_v57 }
 0xcd1   :  { %19757 = vst [vmem:[#allocation32_spill] sm:$0xff] %v18739_v16  ;;  %v19765_v45 = vunpack.c.l.bf16 %v19764_v31  ;;  %v19767_v33 = vunpack.c.h.bf16 %v19764_v31  ;;  %v19769_v16 = vunpack.c.l.bf16 %v19768_v57  ;;  %v10477_v31 = vmax.f32 %v18469_v50, 0.0 }
 0xcd2   :  { %v18744_v56 = vadd.f32 %v19760_v58, %v19758_v38  ;;  %v18749_v51 = vadd.f32 %v19762_v37, %v19761_v23  ;;  %v19770_v38 = vld [vmem:[#allocation9_spill] sm:$0xff]  ;;  %v10474_v37 = vmax.f32 %v18454_v0, 0.0  ;;  %v10482_v57 = vmax.f32 %v18494_v12, 0.0 }
 0xcd3   :  { %v18754_v2 = vadd.f32 %v19765_v45, %v19763_v36  ;;  %v18759_v48 = vadd.f32 %v19767_v33, %v19766_v32  ;;  %v18764_v58 = vadd.f32 %v19769_v16, %v18445_v25  ;;  %v18769_v23 = vadd.f32 %v19771_v7, %v19770_v38  ;;  %10542 = vst.msk [vmem:[%s19098_s7 + $0x18] sm:$0xff] %vm10538_vm0, %v10477_v31  ;;  %v19777_v7 = vld [vmem:[#allocation3_spill] sm:$0xff] }
 0xcd4   :  { %v10475_v45 = vmax.f32 %v18459_v59, 0.0  ;;  %v10476_v36 = vmax.f32 %v18464_v9, 0.0  ;;  %v10478_v32 = vmax.f32 %v18474_v29, 0.0  ;;  %v10479_v33 = vmax.f32 %v18479_v4, 0.0  ;;  %10539 = vst.msk [vmem:[%s19098_s7] sm:$0xff] %vm10538_vm0, %v10474_v37  ;;  %10547 = vst.msk [vmem:[%s19098_s7 + $0x40] sm:$0xff] %vm10538_vm0, %v10482_v57 }
 0xcd5   :  { %v10480_v25 = vmax.f32 %v18484_v41, 0.0  ;;  %v10481_v16 = vmax.f32 %v18489_v5, 0.0  ;;  %v10483_v38 = vmax.f32 %v18499_v40, 0.0  ;;  %v10484_v0 = vmax.f32 %v18504_v17, 0.0 }
 0xcd6   :  { %v10485_v59 = vmax.f32 %v18509_v11, 0.0  ;;  %10540 = vst.msk [vmem:[%s19098_s7 + $0x8] sm:$0xff] %vm10538_vm0, %v10475_v45  ;;  %10541 = vst.msk [vmem:[%s19098_s7 + $0x10] sm:$0xff] %vm10538_vm0, %v10476_v36  ;;  %v10486_v9 = vmax.f32 %v18514_v52, 0.0  ;;  %v10487_v50 = vmax.f32 %v18519_v18, 0.0  ;;  %v10488_v29 = vmax.f32 %v18524_v39, 0.0 }
 0xcd7   :  { %v10489_v4 = vmax.f32 %v18529_v24, 0.0  ;;  %10543 = vst.msk [vmem:[%s19098_s7 + $0x20] sm:$0xff] %vm10538_vm0, %v10478_v32  ;;  %10544 = vst.msk [vmem:[%s19098_s7 + $0x28] sm:$0xff] %vm10538_vm0, %v10479_v33  ;;  %v10490_v41 = vmax.f32 %v18534_v60, 0.0  ;;  %v10491_v5 = vmax.f32 %v18539_v30, 0.0  ;;  %v10492_v12 = vmax.f32 %v18544_v44, 0.0 }
 0xcd8   :  { %10545 = vst.msk [vmem:[%s19098_s7 + $0x30] sm:$0xff] %vm10538_vm0, %v10480_v25  ;;  %10546 = vst.msk [vmem:[%s19098_s7 + $0x38] sm:$0xff] %vm10538_vm0, %v10481_v16  ;;  %v10493_v40 = vmax.f32 %v18549_v49, 0.0  ;;  %v10494_v17 = vmax.f32 %v18554_v46, 0.0  ;;  %v10495_v11 = vmax.f32 %v18559_v1, 0.0  ;;  %v10496_v52 = vmax.f32 %v18564_v47, 0.0 }
 0xcd9   :  { %10548 = vst.msk [vmem:[%s19098_s7 + $0x48] sm:$0xff] %vm10538_vm0, %v10483_v38  ;;  %10549 = vst.msk [vmem:[%s19098_s7 + $0x50] sm:$0xff] %vm10538_vm0, %v10484_v0  ;;  %v10497_v18 = vmax.f32 %v18569_v6, 0.0  ;;  %v10498_v39 = vmax.f32 %v18574_v10, 0.0  ;;  %v10499_v24 = vmax.f32 %v18579_v53, 0.0  ;;  %v10500_v60 = vmax.f32 %v18584_v62, 0.0 }
 0xcda   :  { %10550 = vst.msk [vmem:[%s19098_s7 + $0x58] sm:$0xff] %vm10538_vm0, %v10485_v59  ;;  %10551 = vst.msk [vmem:[%s19098_s7 + $0x60] sm:$0xff] %vm10538_vm0, %v10486_v9  ;;  %v10501_v30 = vmax.f32 %v18589_v42, 0.0  ;;  %v10502_v44 = vmax.f32 %v18594_v14, 0.0  ;;  %v10503_v49 = vmax.f32 %v18599_v3, 0.0  ;;  %v10504_v46 = vmax.f32 %v18604_v35, 0.0 }
 0xcdb   :  { %10552 = vst.msk [vmem:[%s19098_s7 + $0x68] sm:$0xff] %vm10538_vm0, %v10487_v50  ;;  %10553 = vst.msk [vmem:[%s19098_s7 + $0x70] sm:$0xff] %vm10538_vm0, %v10488_v29  ;;  %v10505_v1 = vmax.f32 %v18609_v34, 0.0  ;;  %v10506_v47 = vmax.f32 %v18614_v63, 0.0  ;;  %v10507_v6 = vmax.f32 %v18619_v26, 0.0  ;;  %v10508_v10 = vmax.f32 %v18624_v61, 0.0 }
 0xcdc   :  { %10554 = vst.msk [vmem:[%s19098_s7 + $0x78] sm:$0xff] %vm10538_vm0, %v10489_v4  ;;  %10555 = vst.msk [vmem:[%s19098_s7 + $0x80] sm:$0xff] %vm10538_vm0, %v10490_v41  ;;  %v10509_v53 = vmax.f32 %v18629_v19, 0.0  ;;  %v10510_v62 = vmax.f32 %v18634_v8, 0.0  ;;  %v10511_v42 = vmax.f32 %v18639_v28, 0.0  ;;  %v10512_v14 = vmax.f32 %v18644_v43, 0.0 }
 0xcdd   :  { %10556 = vst.msk [vmem:[%s19098_s7 + $0x88] sm:$0xff] %vm10538_vm0, %v10491_v5  ;;  %10557 = vst.msk [vmem:[%s19098_s7 + $0x90] sm:$0xff] %vm10538_vm0, %v10492_v12  ;;  %v10513_v3 = vmax.f32 %v18649_v15, 0.0  ;;  %v10514_v35 = vmax.f32 %v18654_v13, 0.0  ;;  %v10515_v34 = vmax.f32 %v18659_v22, 0.0  ;;  %v10516_v63 = vmax.f32 %v18664_v55, 0.0 }
 0xcde   :  { %10558 = vst.msk [vmem:[%s19098_s7 + $0x98] sm:$0xff] %vm10538_vm0, %v10493_v40  ;;  %10559 = vst.msk [vmem:[%s19098_s7 + $0xa0] sm:$0xff] %vm10538_vm0, %v10494_v17  ;;  %v10517_v26 = vmax.f32 %v18669_v54, 0.0  ;;  %v10518_v61 = vmax.f32 %v18674_v20, 0.0  ;;  %v10519_v19 = vmax.f32 %v18679_v21, 0.0  ;;  %v19772_v8 = vld [vmem:[#allocation16_spill] sm:$0xff] }
 0xcdf   :  { %10560 = vst.msk [vmem:[%s19098_s7 + $0xa8] sm:$0xff] %vm10538_vm0, %v10495_v11  ;;  %10561 = vst.msk [vmem:[%s19098_s7 + $0xb0] sm:$0xff] %vm10538_vm0, %v10496_v52  ;;  %v10520_v28 = vmax.f32 %v19772_v8, 0.0  ;;  %v19773_v43 = vld [vmem:[#allocation19_spill] sm:$0xff]  ;;  %v19774_v13 = vld [vmem:[#allocation5_spill] sm:$0xff]  ;;  %v10525_v37 = vmax.f32 %v19777_v7, 0.0 }
 0xce0   :  { %10562 = vst.msk [vmem:[%s19098_s7 + $0xb8] sm:$0xff] %vm10538_vm0, %v10497_v18  ;;  %10563 = vst.msk [vmem:[%s19098_s7 + $0xc0] sm:$0xff] %vm10538_vm0, %v10498_v39  ;;  %v10521_v15 = vmax.f32 %v19773_v43, 0.0  ;;  %v10522_v22 = vmax.f32 %v19774_v13, 0.0  ;;  %v19775_v55 = vld [vmem:[#allocation4_spill] sm:$0xff]  ;;  %v19776_v20 = vld [vmem:[#allocation22_spill] sm:$0xff] }
 0xce1   :  { %10564 = vst.msk [vmem:[%s19098_s7 + $0xc8] sm:$0xff] %vm10538_vm0, %v10499_v24  ;;  %10565 = vst.msk [vmem:[%s19098_s7 + $0xd0] sm:$0xff] %vm10538_vm0, %v10500_v60  ;;  %v10523_v54 = vmax.f32 %v19775_v55, 0.0  ;;  %v10524_v21 = vmax.f32 %v19776_v20, 0.0  ;;  %v19778_v45 = vld [vmem:[#allocation10_spill] sm:$0xff]  ;;  %v19779_v31 = vld [vmem:[#allocation29_spill] sm:$0xff] }
 0xce2   :  { %10566 = vst.msk [vmem:[%s19098_s7 + $0xd8] sm:$0xff] %vm10538_vm0, %v10501_v30  ;;  %10567 = vst.msk [vmem:[%s19098_s7 + $0xe0] sm:$0xff] %vm10538_vm0, %v10502_v44  ;;  %v10526_v36 = vmax.f32 %v19778_v45, 0.0  ;;  %v10527_v32 = vmax.f32 %v19779_v31, 0.0  ;;  %v19780_v33 = vld [vmem:[#allocation30_spill] sm:$0xff]  ;;  %v19781_v16 = vld [vmem:[#allocation31_spill] sm:$0xff] }
 0xce3   :  { %10568 = vst.msk [vmem:[%s19098_s7 + $0xe8] sm:$0xff] %vm10538_vm0, %v10503_v49  ;;  %10569 = vst.msk [vmem:[%s19098_s7 + $0xf0] sm:$0xff] %vm10538_vm0, %v10504_v46  ;;  %v10528_v25 = vmax.f32 %v19780_v33, 0.0  ;;  %v10529_v57 = vmax.f32 %v19781_v16, 0.0  ;;  %v10530_v38 = vmax.f32 %v18734_v27, 0.0  ;;  %v19782_v0 = vld [vmem:[#allocation32_spill] sm:$0xff] }
 0xce4   :  { %10570 = vst.msk [vmem:[%s19098_s7 + $0xf8] sm:$0xff] %vm10538_vm0, %v10505_v1  ;;  %10571 = vst.msk [vmem:[%s19098_s7 + $0x100] sm:$0xff] %vm10538_vm0, %v10506_v47  ;;  %v10531_v59 = vmax.f32 %v19782_v0, 0.0  ;;  %v10532_v9 = vmax.f32 %v18744_v56, 0.0  ;;  %v10533_v50 = vmax.f32 %v18749_v51, 0.0  ;;  %v10534_v27 = vmax.f32 %v18754_v2, 0.0 }
 0xce5   :  { %10572 = vst.msk [vmem:[%s19098_s7 + $0x108] sm:$0xff] %vm10538_vm0, %v10507_v6  ;;  %10573 = vst.msk [vmem:[%s19098_s7 + $0x110] sm:$0xff] %vm10538_vm0, %v10508_v10  ;;  %v10535_v56 = vmax.f32 %v18759_v48, 0.0  ;;  %v10536_v51 = vmax.f32 %v18764_v58, 0.0  ;;  %v10537_v29 = vmax.f32 %v18769_v23, 0.0 }
 0xce6   :  { %10574 = vst.msk [vmem:[%s19098_s7 + $0x118] sm:$0xff] %vm10538_vm0, %v10509_v53  ;;  %10575 = vst.msk [vmem:[%s19098_s7 + $0x120] sm:$0xff] %vm10538_vm0, %v10510_v62 }
 0xce7   :  { %10576 = vst.msk [vmem:[%s19098_s7 + $0x128] sm:$0xff] %vm10538_vm0, %v10511_v42  ;;  %10577 = vst.msk [vmem:[%s19098_s7 + $0x130] sm:$0xff] %vm10538_vm0, %v10512_v14 }
 0xce8   :  { %10578 = vst.msk [vmem:[%s19098_s7 + $0x138] sm:$0xff] %vm10538_vm0, %v10513_v3  ;;  %10579 = vst.msk [vmem:[%s19098_s7 + $0x140] sm:$0xff] %vm10538_vm0, %v10514_v35 }
 0xce9   :  { %10580 = vst.msk [vmem:[%s19098_s7 + $0x148] sm:$0xff] %vm10538_vm0, %v10515_v34  ;;  %10581 = vst.msk [vmem:[%s19098_s7 + $0x150] sm:$0xff] %vm10538_vm0, %v10516_v63 }
 0xcea   :  { %10582 = vst.msk [vmem:[%s19098_s7 + $0x158] sm:$0xff] %vm10538_vm0, %v10517_v26  ;;  %10583 = vst.msk [vmem:[%s19098_s7 + $0x160] sm:$0xff] %vm10538_vm0, %v10518_v61 }
 0xceb   :  { %10584 = vst.msk [vmem:[%s19098_s7 + $0x168] sm:$0xff] %vm10538_vm0, %v10519_v19  ;;  %10585 = vst.msk [vmem:[%s19098_s7 + $0x170] sm:$0xff] %vm10538_vm0, %v10520_v28 }
 0xcec   :  { %10586 = vst.msk [vmem:[%s19098_s7 + $0x178] sm:$0xff] %vm10538_vm0, %v10521_v15  ;;  %10587 = vst.msk [vmem:[%s19098_s7 + $0x180] sm:$0xff] %vm10538_vm0, %v10522_v22 }
 0xced   :  { %10588 = vst.msk [vmem:[%s19098_s7 + $0x188] sm:$0xff] %vm10538_vm0, %v10523_v54  ;;  %10589 = vst.msk [vmem:[%s19098_s7 + $0x190] sm:$0xff] %vm10538_vm0, %v10524_v21 }
 0xcee   :  { %10590 = vst.msk [vmem:[%s19098_s7 + $0x198] sm:$0xff] %vm10538_vm0, %v10525_v37  ;;  %10591 = vst.msk [vmem:[%s19098_s7 + $0x1a0] sm:$0xff] %vm10538_vm0, %v10526_v36 }
 0xcef   :  { %10592 = vst.msk [vmem:[%s19098_s7 + $0x1a8] sm:$0xff] %vm10538_vm0, %v10527_v32  ;;  %10593 = vst.msk [vmem:[%s19098_s7 + $0x1b0] sm:$0xff] %vm10538_vm0, %v10528_v25 }
 0xcf0   :  { %10594 = vst.msk [vmem:[%s19098_s7 + $0x1b8] sm:$0xff] %vm10538_vm0, %v10529_v57  ;;  %10595 = vst.msk [vmem:[%s19098_s7 + $0x1c0] sm:$0xff] %vm10538_vm0, %v10530_v38 }
 0xcf1   :  { %10596 = vst.msk [vmem:[%s19098_s7 + $0x1c8] sm:$0xff] %vm10538_vm0, %v10531_v59  ;;  %10597 = vst.msk [vmem:[%s19098_s7 + $0x1d0] sm:$0xff] %vm10538_vm0, %v10532_v9 }
 0xcf2   :  { %10598 = vst.msk [vmem:[%s19098_s7 + $0x1d8] sm:$0xff] %vm10538_vm0, %v10533_v50  ;;  %10599 = vst.msk [vmem:[%s19098_s7 + $0x1e0] sm:$0xff] %vm10538_vm0, %v10534_v27 }
 0xcf3   :  { %10600 = vst.msk [vmem:[%s19098_s7 + $0x1e8] sm:$0xff] %vm10538_vm0, %v10535_v56  ;;  %10601 = vst.msk [vmem:[%s19098_s7 + $0x1f0] sm:$0xff] %vm10538_vm0, %v10536_v51 }
 0xcf4   :  { %10602 = vst.msk [vmem:[%s19098_s7 + $0x1f8] sm:$0xff] %vm10538_vm0, %v10537_v29 }

</bundles_post_ra>
